<compile_context>
chip_gen: v6e
topology: v6e:2x2x1
jax: 0.10.0
libtpu: 0.0.40
codegen_flags: <defaults>
</compile_context>

<pallas_src>
import numpy as np
import jax
import jax.numpy as jnp
from jax import lax
from jax.experimental import pallas as pl
from jax.experimental.pallas import tpu as pltpu

WIN_SIZE = 11
SIGMA = 1.5
DATA_RANGE = 1.0
C1 = (0.01 * DATA_RANGE) ** 2
C2 = (0.03 * DATA_RANGE) ** 2
LEVELS = 3
G_MAX = 16                                  # max (x,y) plane pairs per grid step
_VMEM_BUDGET = 20 * 1024 * 1024             # budget used when sizing G
_VMEM_LIMIT = 32 * 1024 * 1024              # explicit scoped-VMEM limit (safe on v5e/v6e/v7x)


def _gauss_win():
    coords = np.arange(WIN_SIZE, dtype=np.float64) - WIN_SIZE // 2
    g = np.exp(-(coords ** 2) / (2.0 * SIGMA ** 2))
    return (g / g.sum()).astype(np.float32)


def _filter_mats(H, W):
    """2-D banded-Toeplitz matrices for the separable 'valid' Gaussian conv."""
    win = _gauss_win()
    Ho, Wo = H - WIN_SIZE + 1, W - WIN_SIZE + 1
    A = np.zeros((Ho, H), np.float32)           # vertical pass:  A @ img
    for i in range(Ho):
        A[i, i:i + WIN_SIZE] = win
    Bm = np.zeros((W, Wo), np.float32)          # horizontal pass: img @ Bm
    for j in range(Wo):
        Bm[j:j + WIN_SIZE, j] = win
    return A, Bm


def _pool_mats(H, W):
    """2x2 average pool (stride 2) expressed as Pv @ img @ Ph (2-D constants)."""
    r = np.arange(H // 2)
    Pv = np.zeros((H // 2, H), np.float32)
    Pv[r, 2 * r] = 0.5
    Pv[r, 2 * r + 1] = 0.5
    c = np.arange(W // 2)
    Ph = np.zeros((W, W // 2), np.float32)
    Ph[2 * c, c] = 0.5
    Ph[2 * c + 1, c] = 0.5
    return Pv, Ph


def _bmm(lhs, rhs):
    """Batched matmul (b,i,j)@(b,j,k)->(b,i,k) on the MXU."""
    return lax.dot_general(
        lhs, rhs, (((2,), (1,)), ((0,), (0,))),
        preferred_element_type=jnp.float32)


def _make_kernel(G, levels):
    def level_stats(planes, A, Bm):
        # planes: (2G, H, W) = [x planes ; y planes]; A: (Ho, H); Bm: (W, Wo)
        H, W = planes.shape[1], planes.shape[2]
        Ho, Wo = A.shape[0], Bm.shape[1]
        x = planes[:G]
        y = planes[G:]
        # order along the batch dim: [x, y, x*x, y*y, x*y] -> (5G, H, W)
        stacked = jnp.concatenate([planes, x * x, y * y, x * y], axis=0)
        # horizontal pass: one flattened 2-D matmul (M = 5G*H), weight pushed once
        hp = jnp.dot(stacked.reshape(5 * G * H, W), Bm,
                     preferred_element_type=jnp.float32).reshape(5 * G, H, Wo)
        # vertical pass: batched matmul, shared 2-D weight broadcast in-kernel
        f = _bmm(jnp.broadcast_to(A, (5 * G, Ho, H)), hp)        # (5G, Ho, Wo)
        mu1, mu2 = f[:G], f[G:2 * G]
        exx, eyy, exy = f[2 * G:3 * G], f[3 * G:4 * G], f[4 * G:]
        mu11, mu22, mu12 = mu1 * mu1, mu2 * mu2, mu1 * mu2
        sxx, syy, sxy = exx - mu11, eyy - mu22, exy - mu12       # keep f32 (cancellation)
        cs_map = (2.0 * sxy + C2) / (sxx + syy + C2)
        ssim_map = ((2.0 * mu12 + C1) / (mu11 + mu22 + C1)) * cs_map
        inv = 1.0 / float(Ho * Wo)

        def mean(m):  # (G, Ho, Wo) -> (G, 1, 1) via two single-axis reductions
            s = jnp.sum(m, axis=2, keepdims=True)
            return jnp.sum(s, axis=1, keepdims=True) * inv

        return mean(ssim_map), mean(cs_map)

    def pool(planes, Pv, Ph):
        # planes: (2G, H, W); Pv: (H/2, H); Ph: (W, W/2)
        twoG, H, W = planes.shape
        Hh, Wh = Pv.shape[0], Ph.shape[1]
        t = jnp.dot(planes.reshape(twoG * H, W), Ph,
                    preferred_element_type=jnp.float32).reshape(twoG, H, Wh)
        return _bmm(jnp.broadcast_to(Pv, (twoG, Hh, H)), t)      # (2G, H/2, W/2)

    def kernel(xy_ref, *rest):
        out_ref = rest[-1]
        mats = rest[:-1]
        filt = mats[:2 * levels]              # [A0, B0, A1, B1, A2, B2]
        pools = mats[2 * levels:]             # [Pv0, Ph0, Pv1, Ph1]
        xy = xy_ref[...]                      # (2, G, H, W)
        planes = xy.reshape(2 * G, xy.shape[2], xy.shape[3])     # (2G, H, W)
        stats = []
        for lvl in range(levels):             # static unroll (3 levels)
            s, c = level_stats(planes, filt[2 * lvl][...], filt[2 * lvl + 1][...])
            stats += [s, c]
            if lvl < levels - 1:
                planes = pool(planes, pools[2 * lvl][...], pools[2 * lvl + 1][...])
        out_ref[...] = jnp.concatenate(stats, axis=2)            # one (G,1,6) store

    return kernel


def _vmem_bytes(G, H, W, levels):
    """Allocation-derived per-step VMEM estimate (f32 bytes)."""
    by = 2 * (2 * G * H * W) * 4              # fused xy block, double-buffered
    h, w = H, W
    const = 0
    for lvl in range(levels):                 # un-broadcast 2-D constants
        ho, wo = h - WIN_SIZE + 1, w - WIN_SIZE + 1
        const += (ho * h + w * wo) * 4
        if lvl < levels - 1:
            const += ((h // 2) * h + w * (w // 2)) * 4
            h, w = h // 2, w // 2
    by += 2 * const
    ho, wo = H - WIN_SIZE + 1, W - WIN_SIZE + 1
    by += 4 * (2 * G * H * W                  # planes
               + 5 * G * H * W                # stacked
               + 5 * G * H * wo               # hp
               + 5 * G * ho * H               # broadcast A
               + 5 * G * ho * wo              # f
               + 4 * G * ho * wo)             # ssim/cs maps + temps
    by += 2 * G * 2 * levels * 4              # output block
    return by


def _choose_g(P, H, W, levels):
    g = min(G_MAX, P)
    # Only force >=2 grid steps for larger batches: helps v7x's 2 TensorCores,
    # and on single-TC v5e/v6e the steps are big enough that it costs nothing.
    if P >= 16:
        g = min(g, (P + 1) // 2)
    while g > 1 and _vmem_bytes(g, H, W, levels) > _VMEM_BUDGET:
        g -= 1
    return max(1, g)


def msssim_loss(x, y, levels=LEVELS):
    """MS-SSIM loss = 1 - MS-SSIM(x, y).  x, y: (B, C, H, W) in [0, 1]."""
    x = x.astype(jnp.float32)
    y = y.astype(jnp.float32)
    B, C, H, W = x.shape
    down = 2 ** (levels - 1)
    assert H % down == 0 and W % down == 0, "H, W must be divisible by 2**(levels-1)"
    assert H // down >= WIN_SIZE and W // down >= WIN_SIZE, \
        "coarsest level smaller than the 11-tap window"

    P = B * C
    G = _choose_g(P, H, W, levels)
    nb = -(-P // G)
    P_pad = nb * G

    xf = x.reshape(P, H, W)
    yf = y.reshape(P, H, W)
    if P_pad != P:
        pad = ((0, P_pad - P), (0, 0), (0, 0))
        xf = jnp.pad(xf, pad)
        yf = jnp.pad(yf, pad)
    xy = jnp.stack([xf, yf], axis=0)                      # (2, P_pad, H, W)

    # Un-broadcast 2-D constants (Toeplitz Gaussian + pooling matrices).
    mats = []
    h, w = H, W
    for lvl in range(levels):
        A, Bm = _filter_mats(h, w)
        mats += [jnp.asarray(A), jnp.asarray(Bm)]
        if lvl < levels - 1:
            h, w = h // 2, w // 2
    h, w = H, W
    for lvl in range(levels - 1):
        Pv, Ph = _pool_mats(h, w)
        mats += [jnp.asarray(Pv), jnp.asarray(Ph)]
        h, w = h // 2, w // 2

    in_specs = [pl.BlockSpec((2, G, H, W), lambda i: (0, i, 0, 0))]
    for m in mats:
        in_specs.append(pl.BlockSpec(m.shape, lambda i: (0, 0)))

    stats = pl.pallas_call(
        _make_kernel(G, levels),
        out_shape=jax.ShapeDtypeStruct((P_pad, 1, 2 * levels), jnp.float32),
        grid=(nb,),
        in_specs=in_specs,
        out_specs=pl.BlockSpec((G, 1, 2 * levels), lambda i: (i, 0, 0)),
        compiler_params=pltpu.CompilerParams(
            dimension_semantics=("parallel",),
            vmem_limit_bytes=_VMEM_LIMIT),
    )(xy, *mats)

    stats = stats[:P, 0, :]                               # (P, 2*levels)
    wts = np.array([0.0448, 0.2856, 0.3001, 0.2363, 0.1333], np.float32)[:levels]
    wts = wts / wts.sum()
    vals = []
    for lvl in range(levels):
        v = stats[:, 2 * lvl + 1] if lvl < levels - 1 else stats[:, 2 * lvl]
        # relu(cs_l) for l < levels-1 and relu(ssim) at the final level, exactly
        # as pytorch_msssim.ms_ssim does (also prevents NaN from neg ** frac).
        vals.append(jnp.maximum(v, 0.0))
    ms = jnp.prod(jnp.stack(vals, axis=0) ** jnp.asarray(wts)[:, None], axis=0)
    return 1.0 - jnp.mean(ms)                             # size_average=True


if __name__ == "__main__":
    key = jax.random.PRNGKey(0)
    kx, ky = jax.random.split(key)
    # spatial must survive 2 poolings plus an 11-tap valid conv -> 64x64
    B, C, H, W = 2, 3, 64, 64
    x = jax.random.uniform(kx, (B, C, H, W), dtype=jnp.float32)
    y = jax.random.uniform(ky, (B, C, H, W), dtype=jnp.float32)

    loss = jax.jit(msssim_loss)(x, y)
    jax.block_until_ready(loss)
    assert loss.shape == () and bool(jnp.isfinite(loss))
    print("KERNEL_OK")
</pallas_src>

<mosaic_0001>
module attributes {stable_mosaic.version = 11 : i64} {
  func.func @kernel(%arg0: i32, %arg1: memref<2x6x64x64xf32, #tpu.memory_space<vmem>>, %arg2: memref<54x64xf32, #tpu.memory_space<vmem>>, %arg3: memref<64x54xf32, #tpu.memory_space<vmem>>, %arg4: memref<22x32xf32, #tpu.memory_space<vmem>>, %arg5: memref<32x22xf32, #tpu.memory_space<vmem>>, %arg6: memref<6x16xf32, #tpu.memory_space<vmem>>, %arg7: memref<16x6xf32, #tpu.memory_space<vmem>>, %arg8: memref<32x64xf32, #tpu.memory_space<vmem>>, %arg9: memref<64x32xf32, #tpu.memory_space<vmem>>, %arg10: memref<16x32xf32, #tpu.memory_space<vmem>>, %arg11: memref<32x16xf32, #tpu.memory_space<vmem>>, %arg12: memref<6x1x6xf32, #tpu.memory_space<vmem>>) attributes {dimension_semantics = [#tpu.dimension_semantics<parallel>], iteration_bounds = array<i64: 1>, scalar_prefetch = 0 : i64, scratch_operands = 0 : i64, tpu.core_type = #tpu.core_type<tc>, window_params = [{transform_indices = @transform_0, window_bounds = array<i64: 2, 6, 64, 64>}, {pipeline_mode = #tpu.pipeline_mode<synchronous>, transform_indices = @transform_1, window_bounds = array<i64: 54, 64>}, {pipeline_mode = #tpu.pipeline_mode<synchronous>, transform_indices = @transform_2, window_bounds = array<i64: 64, 54>}, {pipeline_mode = #tpu.pipeline_mode<synchronous>, transform_indices = @transform_3, window_bounds = array<i64: 22, 32>}, {pipeline_mode = #tpu.pipeline_mode<synchronous>, transform_indices = @transform_4, window_bounds = array<i64: 32, 22>}, {pipeline_mode = #tpu.pipeline_mode<synchronous>, transform_indices = @transform_5, window_bounds = array<i64: 6, 16>}, {pipeline_mode = #tpu.pipeline_mode<synchronous>, transform_indices = @transform_6, window_bounds = array<i64: 16, 6>}, {pipeline_mode = #tpu.pipeline_mode<synchronous>, transform_indices = @transform_7, window_bounds = array<i64: 32, 64>}, {pipeline_mode = #tpu.pipeline_mode<synchronous>, transform_indices = @transform_8, window_bounds = array<i64: 64, 32>}, {pipeline_mode = #tpu.pipeline_mode<synchronous>, transform_indices = @transform_9, window_bounds = array<i64: 16, 32>}, {pipeline_mode = #tpu.pipeline_mode<synchronous>, transform_indices = @transform_10, window_bounds = array<i64: 32, 16>}, {transform_indices = @transform_11, window_bounds = array<i64: 6, 1, 6>}]} {
    %c0 = arith.constant 0 : index
    %c0_0 = arith.constant 0 : index
    %c0_1 = arith.constant 0 : index
    %c0_2 = arith.constant 0 : index
    %0 = vector.load %arg1[%c0, %c0_0, %c0_1, %c0_2] : memref<2x6x64x64xf32, #tpu.memory_space<vmem>>, vector<2x6x64x64xf32>
    %1 = vector.shape_cast %0 : vector<2x6x64x64xf32> to vector<12x64x64xf32>
    %c0_3 = arith.constant 0 : index
    %c0_4 = arith.constant 0 : index
    %2 = vector.load %arg2[%c0_3, %c0_4] : memref<54x64xf32, #tpu.memory_space<vmem>>, vector<54x64xf32>
    %c0_5 = arith.constant 0 : index
    %c0_6 = arith.constant 0 : index
    %3 = vector.load %arg3[%c0_5, %c0_6] : memref<64x54xf32, #tpu.memory_space<vmem>>, vector<64x54xf32>
    %4 = vector.extract_strided_slice %1 {offsets = [0, 0, 0], sizes = [6, 64, 64], strides = [1, 1, 1]} : vector<12x64x64xf32> to vector<6x64x64xf32>
    %5 = vector.extract_strided_slice %1 {offsets = [6, 0, 0], sizes = [6, 64, 64], strides = [1, 1, 1]} : vector<12x64x64xf32> to vector<6x64x64xf32>
    %6 = arith.mulf %4, %4 : vector<6x64x64xf32>
    %7 = arith.mulf %5, %5 : vector<6x64x64xf32>
    %8 = arith.mulf %4, %5 : vector<6x64x64xf32>
    %9 = tpu.concatenate %1, %6, %7, %8 in 0 : vector<12x64x64xf32>, vector<6x64x64xf32>, vector<6x64x64xf32>, vector<6x64x64xf32> -> vector<30x64x64xf32>
    %10 = vector.shape_cast %9 : vector<30x64x64xf32> to vector<1920x64xf32>
    %cst = arith.constant dense<0.000000e+00> : vector<1920x54xf32>
    %11 = tpu.matmul %10, %3, %cst {dimension_numbers = #tpu.dot_dimension_numbers<[1], [0], [0], [1], [0, 0, 1, 1], [], []>} : vector<1920x64xf32>, vector<64x54xf32>, vector<1920x54xf32> -> vector<1920x54xf32>
    %12 = vector.shape_cast %11 : vector<1920x54xf32> to vector<30x64x54xf32>
    %13 = vector.shape_cast %2 : vector<54x64xf32> to vector<1x54x64xf32>
    %14 = vector.broadcast %13 : vector<1x54x64xf32> to vector<30x54x64xf32>
    %cst_7 = arith.constant dense<0.000000e+00> : vector<30x54x54xf32>
    %15 = tpu.matmul %14, %12, %cst_7 {dimension_numbers = #tpu.dot_dimension_numbers<[2], [1], [1], [2], [0, 0, 0, 1, 1, 2], [0], [0]>} : vector<30x54x64xf32>, vector<30x64x54xf32>, vector<30x54x54xf32> -> vector<30x54x54xf32>
    %16 = vector.extract_strided_slice %15 {offsets = [0, 0, 0], sizes = [6, 54, 54], strides = [1, 1, 1]} : vector<30x54x54xf32> to vector<6x54x54xf32>
    %17 = vector.extract_strided_slice %15 {offsets = [6, 0, 0], sizes = [6, 54, 54], strides = [1, 1, 1]} : vector<30x54x54xf32> to vector<6x54x54xf32>
    %18 = vector.extract_strided_slice %15 {offsets = [12, 0, 0], sizes = [6, 54, 54], strides = [1, 1, 1]} : vector<30x54x54xf32> to vector<6x54x54xf32>
    %19 = vector.extract_strided_slice %15 {offsets = [18, 0, 0], sizes = [6, 54, 54], strides = [1, 1, 1]} : vector<30x54x54xf32> to vector<6x54x54xf32>
    %20 = vector.extract_strided_slice %15 {offsets = [24, 0, 0], sizes = [6, 54, 54], strides = [1, 1, 1]} : vector<30x54x54xf32> to vector<6x54x54xf32>
    %21 = arith.mulf %16, %16 : vector<6x54x54xf32>
    %22 = arith.mulf %17, %17 : vector<6x54x54xf32>
    %23 = arith.mulf %16, %17 : vector<6x54x54xf32>
    %24 = arith.subf %18, %21 : vector<6x54x54xf32>
    %25 = arith.subf %19, %22 : vector<6x54x54xf32>
    %26 = arith.subf %20, %23 : vector<6x54x54xf32>
    %cst_8 = arith.constant 2.000000e+00 : f32
    %27 = vector.broadcast %cst_8 : f32 to vector<6x54x54xf32>
    %28 = arith.mulf %27, %26 : vector<6x54x54xf32>
    %cst_9 = arith.constant 8.99999984E-4 : f32
    %29 = vector.broadcast %cst_9 : f32 to vector<6x54x54xf32>
    %30 = arith.addf %28, %29 : vector<6x54x54xf32>
    %31 = arith.addf %24, %25 : vector<6x54x54xf32>
    %cst_10 = arith.constant 8.99999984E-4 : f32
    %32 = vector.broadcast %cst_10 : f32 to vector<6x54x54xf32>
    %33 = arith.addf %31, %32 : vector<6x54x54xf32>
    %34 = arith.divf %30, %33 : vector<6x54x54xf32>
    %cst_11 = arith.constant 2.000000e+00 : f32
    %35 = vector.broadcast %cst_11 : f32 to vector<6x54x54xf32>
    %36 = arith.mulf %35, %23 : vector<6x54x54xf32>
    %cst_12 = arith.constant 9.99999974E-5 : f32
    %37 = vector.broadcast %cst_12 : f32 to vector<6x54x54xf32>
    %38 = arith.addf %36, %37 : vector<6x54x54xf32>
    %39 = arith.addf %21, %22 : vector<6x54x54xf32>
    %cst_13 = arith.constant 9.99999974E-5 : f32
    %40 = vector.broadcast %cst_13 : f32 to vector<6x54x54xf32>
    %41 = arith.addf %39, %40 : vector<6x54x54xf32>
    %42 = arith.divf %38, %41 : vector<6x54x54xf32>
    %43 = arith.mulf %42, %34 : vector<6x54x54xf32>
    %cst_14 = arith.constant dense<0.000000e+00> : vector<6x54xf32>
    %44 = vector.multi_reduction <add>, %43, %cst_14 [2] : vector<6x54x54xf32> to vector<6x54xf32>
    %45 = vector.shape_cast %44 : vector<6x54xf32> to vector<6x54x1xf32>
    %cst_15 = arith.constant dense<0.000000e+00> : vector<6x1xf32>
    %46 = vector.multi_reduction <add>, %45, %cst_15 [1] : vector<6x54x1xf32> to vector<6x1xf32>
    %47 = vector.shape_cast %46 : vector<6x1xf32> to vector<6x1x1xf32>
    %cst_16 = arith.constant 3.42935527E-4 : f32
    %48 = vector.broadcast %cst_16 : f32 to vector<6x1x1xf32>
    %49 = arith.mulf %47, %48 : vector<6x1x1xf32>
    %cst_17 = arith.constant dense<0.000000e+00> : vector<6x54xf32>
    %50 = vector.multi_reduction <add>, %34, %cst_17 [2] : vector<6x54x54xf32> to vector<6x54xf32>
    %51 = vector.shape_cast %50 : vector<6x54xf32> to vector<6x54x1xf32>
    %cst_18 = arith.constant dense<0.000000e+00> : vector<6x1xf32>
    %52 = vector.multi_reduction <add>, %51, %cst_18 [1] : vector<6x54x1xf32> to vector<6x1xf32>
    %53 = vector.shape_cast %52 : vector<6x1xf32> to vector<6x1x1xf32>
    %cst_19 = arith.constant 3.42935527E-4 : f32
    %54 = vector.broadcast %cst_19 : f32 to vector<6x1x1xf32>
    %55 = arith.mulf %53, %54 : vector<6x1x1xf32>
    %c0_20 = arith.constant 0 : index
    %c0_21 = arith.constant 0 : index
    %56 = vector.load %arg8[%c0_20, %c0_21] : memref<32x64xf32, #tpu.memory_space<vmem>>, vector<32x64xf32>
    %c0_22 = arith.constant 0 : index
    %c0_23 = arith.constant 0 : index
    %57 = vector.load %arg9[%c0_22, %c0_23] : memref<64x32xf32, #tpu.memory_space<vmem>>, vector<64x32xf32>
    %58 = vector.shape_cast %1 : vector<12x64x64xf32> to vector<768x64xf32>
    %cst_24 = arith.constant dense<0.000000e+00> : vector<768x32xf32>
    %59 = tpu.matmul %58, %57, %cst_24 {dimension_numbers = #tpu.dot_dimension_numbers<[1], [0], [0], [1], [0, 0, 1, 1], [], []>} : vector<768x64xf32>, vector<64x32xf32>, vector<768x32xf32> -> vector<768x32xf32>
    %60 = vector.shape_cast %59 : vector<768x32xf32> to vector<12x64x32xf32>
    %61 = vector.shape_cast %56 : vector<32x64xf32> to vector<1x32x64xf32>
    %62 = vector.broadcast %61 : vector<1x32x64xf32> to vector<12x32x64xf32>
    %cst_25 = arith.constant dense<0.000000e+00> : vector<12x32x32xf32>
    %63 = tpu.matmul %62, %60, %cst_25 {dimension_numbers = #tpu.dot_dimension_numbers<[2], [1], [1], [2], [0, 0, 0, 1, 1, 2], [0], [0]>} : vector<12x32x64xf32>, vector<12x64x32xf32>, vector<12x32x32xf32> -> vector<12x32x32xf32>
    %c0_26 = arith.constant 0 : index
    %c0_27 = arith.constant 0 : index
    %64 = vector.load %arg4[%c0_26, %c0_27] : memref<22x32xf32, #tpu.memory_space<vmem>>, vector<22x32xf32>
    %c0_28 = arith.constant 0 : index
    %c0_29 = arith.constant 0 : index
    %65 = vector.load %arg5[%c0_28, %c0_29] : memref<32x22xf32, #tpu.memory_space<vmem>>, vector<32x22xf32>
    %66 = vector.extract_strided_slice %63 {offsets = [0, 0, 0], sizes = [6, 32, 32], strides = [1, 1, 1]} : vector<12x32x32xf32> to vector<6x32x32xf32>
    %67 = vector.extract_strided_slice %63 {offsets = [6, 0, 0], sizes = [6, 32, 32], strides = [1, 1, 1]} : vector<12x32x32xf32> to vector<6x32x32xf32>
    %68 = arith.mulf %66, %66 : vector<6x32x32xf32>
    %69 = arith.mulf %67, %67 : vector<6x32x32xf32>
    %70 = arith.mulf %66, %67 : vector<6x32x32xf32>
    %71 = tpu.concatenate %63, %68, %69, %70 in 0 : vector<12x32x32xf32>, vector<6x32x32xf32>, vector<6x32x32xf32>, vector<6x32x32xf32> -> vector<30x32x32xf32>
    %72 = vector.shape_cast %71 : vector<30x32x32xf32> to vector<960x32xf32>
    %cst_30 = arith.constant dense<0.000000e+00> : vector<960x22xf32>
    %73 = tpu.matmul %72, %65, %cst_30 {dimension_numbers = #tpu.dot_dimension_numbers<[1], [0], [0], [1], [0, 0, 1, 1], [], []>} : vector<960x32xf32>, vector<32x22xf32>, vector<960x22xf32> -> vector<960x22xf32>
    %74 = vector.shape_cast %73 : vector<960x22xf32> to vector<30x32x22xf32>
    %75 = vector.shape_cast %64 : vector<22x32xf32> to vector<1x22x32xf32>
    %76 = vector.broadcast %75 : vector<1x22x32xf32> to vector<30x22x32xf32>
    %cst_31 = arith.constant dense<0.000000e+00> : vector<30x22x22xf32>
    %77 = tpu.matmul %76, %74, %cst_31 {dimension_numbers = #tpu.dot_dimension_numbers<[2], [1], [1], [2], [0, 0, 0, 1, 1, 2], [0], [0]>} : vector<30x22x32xf32>, vector<30x32x22xf32>, vector<30x22x22xf32> -> vector<30x22x22xf32>
    %78 = vector.extract_strided_slice %77 {offsets = [0, 0, 0], sizes = [6, 22, 22], strides = [1, 1, 1]} : vector<30x22x22xf32> to vector<6x22x22xf32>
    %79 = vector.extract_strided_slice %77 {offsets = [6, 0, 0], sizes = [6, 22, 22], strides = [1, 1, 1]} : vector<30x22x22xf32> to vector<6x22x22xf32>
    %80 = vector.extract_strided_slice %77 {offsets = [12, 0, 0], sizes = [6, 22, 22], strides = [1, 1, 1]} : vector<30x22x22xf32> to vector<6x22x22xf32>
    %81 = vector.extract_strided_slice %77 {offsets = [18, 0, 0], sizes = [6, 22, 22], strides = [1, 1, 1]} : vector<30x22x22xf32> to vector<6x22x22xf32>
    %82 = vector.extract_strided_slice %77 {offsets = [24, 0, 0], sizes = [6, 22, 22], strides = [1, 1, 1]} : vector<30x22x22xf32> to vector<6x22x22xf32>
    %83 = arith.mulf %78, %78 : vector<6x22x22xf32>
    %84 = arith.mulf %79, %79 : vector<6x22x22xf32>
    %85 = arith.mulf %78, %79 : vector<6x22x22xf32>
    %86 = arith.subf %80, %83 : vector<6x22x22xf32>
    %87 = arith.subf %81, %84 : vector<6x22x22xf32>
    %88 = arith.subf %82, %85 : vector<6x22x22xf32>
    %cst_32 = arith.constant 2.000000e+00 : f32
    %89 = vector.broadcast %cst_32 : f32 to vector<6x22x22xf32>
    %90 = arith.mulf %89, %88 : vector<6x22x22xf32>
    %cst_33 = arith.constant 8.99999984E-4 : f32
    %91 = vector.broadcast %cst_33 : f32 to vector<6x22x22xf32>
    %92 = arith.addf %90, %91 : vector<6x22x22xf32>
    %93 = arith.addf %86, %87 : vector<6x22x22xf32>
    %cst_34 = arith.constant 8.99999984E-4 : f32
    %94 = vector.broadcast %cst_34 : f32 to vector<6x22x22xf32>
    %95 = arith.addf %93, %94 : vector<6x22x22xf32>
    %96 = arith.divf %92, %95 : vector<6x22x22xf32>
    %cst_35 = arith.constant 2.000000e+00 : f32
    %97 = vector.broadcast %cst_35 : f32 to vector<6x22x22xf32>
    %98 = arith.mulf %97, %85 : vector<6x22x22xf32>
    %cst_36 = arith.constant 9.99999974E-5 : f32
    %99 = vector.broadcast %cst_36 : f32 to vector<6x22x22xf32>
    %100 = arith.addf %98, %99 : vector<6x22x22xf32>
    %101 = arith.addf %83, %84 : vector<6x22x22xf32>
    %cst_37 = arith.constant 9.99999974E-5 : f32
    %102 = vector.broadcast %cst_37 : f32 to vector<6x22x22xf32>
    %103 = arith.addf %101, %102 : vector<6x22x22xf32>
    %104 = arith.divf %100, %103 : vector<6x22x22xf32>
    %105 = arith.mulf %104, %96 : vector<6x22x22xf32>
    %cst_38 = arith.constant dense<0.000000e+00> : vector<6x22xf32>
    %106 = vector.multi_reduction <add>, %105, %cst_38 [2] : vector<6x22x22xf32> to vector<6x22xf32>
    %107 = vector.shape_cast %106 : vector<6x22xf32> to vector<6x22x1xf32>
    %cst_39 = arith.constant dense<0.000000e+00> : vector<6x1xf32>
    %108 = vector.multi_reduction <add>, %107, %cst_39 [1] : vector<6x22x1xf32> to vector<6x1xf32>
    %109 = vector.shape_cast %108 : vector<6x1xf32> to vector<6x1x1xf32>
    %cst_40 = arith.constant 0.00206611562 : f32
    %110 = vector.broadcast %cst_40 : f32 to vector<6x1x1xf32>
    %111 = arith.mulf %109, %110 : vector<6x1x1xf32>
    %cst_41 = arith.constant dense<0.000000e+00> : vector<6x22xf32>
    %112 = vector.multi_reduction <add>, %96, %cst_41 [2] : vector<6x22x22xf32> to vector<6x22xf32>
    %113 = vector.shape_cast %112 : vector<6x22xf32> to vector<6x22x1xf32>
    %cst_42 = arith.constant dense<0.000000e+00> : vector<6x1xf32>
    %114 = vector.multi_reduction <add>, %113, %cst_42 [1] : vector<6x22x1xf32> to vector<6x1xf32>
    %115 = vector.shape_cast %114 : vector<6x1xf32> to vector<6x1x1xf32>
    %cst_43 = arith.constant 0.00206611562 : f32
    %116 = vector.broadcast %cst_43 : f32 to vector<6x1x1xf32>
    %117 = arith.mulf %115, %116 : vector<6x1x1xf32>
    %c0_44 = arith.constant 0 : index
    %c0_45 = arith.constant 0 : index
    %118 = vector.load %arg10[%c0_44, %c0_45] : memref<16x32xf32, #tpu.memory_space<vmem>>, vector<16x32xf32>
    %c0_46 = arith.constant 0 : index
    %c0_47 = arith.constant 0 : index
    %119 = vector.load %arg11[%c0_46, %c0_47] : memref<32x16xf32, #tpu.memory_space<vmem>>, vector<32x16xf32>
    %120 = vector.shape_cast %63 : vector<12x32x32xf32> to vector<384x32xf32>
    %cst_48 = arith.constant dense<0.000000e+00> : vector<384x16xf32>
    %121 = tpu.matmul %120, %119, %cst_48 {dimension_numbers = #tpu.dot_dimension_numbers<[1], [0], [0], [1], [0, 0, 1, 1], [], []>} : vector<384x32xf32>, vector<32x16xf32>, vector<384x16xf32> -> vector<384x16xf32>
    %122 = vector.shape_cast %121 : vector<384x16xf32> to vector<12x32x16xf32>
    %123 = vector.shape_cast %118 : vector<16x32xf32> to vector<1x16x32xf32>
    %124 = vector.broadcast %123 : vector<1x16x32xf32> to vector<12x16x32xf32>
    %cst_49 = arith.constant dense<0.000000e+00> : vector<12x16x16xf32>
    %125 = tpu.matmul %124, %122, %cst_49 {dimension_numbers = #tpu.dot_dimension_numbers<[2], [1], [1], [2], [0, 0, 0, 1, 1, 2], [0], [0]>} : vector<12x16x32xf32>, vector<12x32x16xf32>, vector<12x16x16xf32> -> vector<12x16x16xf32>
    %c0_50 = arith.constant 0 : index
    %c0_51 = arith.constant 0 : index
    %126 = vector.load %arg6[%c0_50, %c0_51] : memref<6x16xf32, #tpu.memory_space<vmem>>, vector<6x16xf32>
    %c0_52 = arith.constant 0 : index
    %c0_53 = arith.constant 0 : index
    %127 = vector.load %arg7[%c0_52, %c0_53] : memref<16x6xf32, #tpu.memory_space<vmem>>, vector<16x6xf32>
    %128 = vector.extract_strided_slice %125 {offsets = [0, 0, 0], sizes = [6, 16, 16], strides = [1, 1, 1]} : vector<12x16x16xf32> to vector<6x16x16xf32>
    %129 = vector.extract_strided_slice %125 {offsets = [6, 0, 0], sizes = [6, 16, 16], strides = [1, 1, 1]} : vector<12x16x16xf32> to vector<6x16x16xf32>
    %130 = arith.mulf %128, %128 : vector<6x16x16xf32>
    %131 = arith.mulf %129, %129 : vector<6x16x16xf32>
    %132 = arith.mulf %128, %129 : vector<6x16x16xf32>
    %133 = tpu.concatenate %125, %130, %131, %132 in 0 : vector<12x16x16xf32>, vector<6x16x16xf32>, vector<6x16x16xf32>, vector<6x16x16xf32> -> vector<30x16x16xf32>
    %134 = vector.shape_cast %133 : vector<30x16x16xf32> to vector<480x16xf32>
    %cst_54 = arith.constant dense<0.000000e+00> : vector<480x6xf32>
    %135 = tpu.matmul %134, %127, %cst_54 {dimension_numbers = #tpu.dot_dimension_numbers<[1], [0], [0], [1], [0, 0, 1, 1], [], []>} : vector<480x16xf32>, vector<16x6xf32>, vector<480x6xf32> -> vector<480x6xf32>
    %136 = vector.shape_cast %135 : vector<480x6xf32> to vector<30x16x6xf32>
    %137 = vector.shape_cast %126 : vector<6x16xf32> to vector<1x6x16xf32>
    %138 = vector.broadcast %137 : vector<1x6x16xf32> to vector<30x6x16xf32>
    %cst_55 = arith.constant dense<0.000000e+00> : vector<30x6x6xf32>
    %139 = tpu.matmul %138, %136, %cst_55 {dimension_numbers = #tpu.dot_dimension_numbers<[2], [1], [1], [2], [0, 0, 0, 1, 1, 2], [0], [0]>} : vector<30x6x16xf32>, vector<30x16x6xf32>, vector<30x6x6xf32> -> vector<30x6x6xf32>
    %140 = vector.extract_strided_slice %139 {offsets = [0, 0, 0], sizes = [6, 6, 6], strides = [1, 1, 1]} : vector<30x6x6xf32> to vector<6x6x6xf32>
    %141 = vector.extract_strided_slice %139 {offsets = [6, 0, 0], sizes = [6, 6, 6], strides = [1, 1, 1]} : vector<30x6x6xf32> to vector<6x6x6xf32>
    %142 = vector.extract_strided_slice %139 {offsets = [12, 0, 0], sizes = [6, 6, 6], strides = [1, 1, 1]} : vector<30x6x6xf32> to vector<6x6x6xf32>
    %143 = vector.extract_strided_slice %139 {offsets = [18, 0, 0], sizes = [6, 6, 6], strides = [1, 1, 1]} : vector<30x6x6xf32> to vector<6x6x6xf32>
    %144 = vector.extract_strided_slice %139 {offsets = [24, 0, 0], sizes = [6, 6, 6], strides = [1, 1, 1]} : vector<30x6x6xf32> to vector<6x6x6xf32>
    %145 = arith.mulf %140, %140 : vector<6x6x6xf32>
    %146 = arith.mulf %141, %141 : vector<6x6x6xf32>
    %147 = arith.mulf %140, %141 : vector<6x6x6xf32>
    %148 = arith.subf %142, %145 : vector<6x6x6xf32>
    %149 = arith.subf %143, %146 : vector<6x6x6xf32>
    %150 = arith.subf %144, %147 : vector<6x6x6xf32>
    %cst_56 = arith.constant 2.000000e+00 : f32
    %151 = vector.broadcast %cst_56 : f32 to vector<6x6x6xf32>
    %152 = arith.mulf %151, %150 : vector<6x6x6xf32>
    %cst_57 = arith.constant 8.99999984E-4 : f32
    %153 = vector.broadcast %cst_57 : f32 to vector<6x6x6xf32>
    %154 = arith.addf %152, %153 : vector<6x6x6xf32>
    %155 = arith.addf %148, %149 : vector<6x6x6xf32>
    %cst_58 = arith.constant 8.99999984E-4 : f32
    %156 = vector.broadcast %cst_58 : f32 to vector<6x6x6xf32>
    %157 = arith.addf %155, %156 : vector<6x6x6xf32>
    %158 = arith.divf %154, %157 : vector<6x6x6xf32>
    %cst_59 = arith.constant 2.000000e+00 : f32
    %159 = vector.broadcast %cst_59 : f32 to vector<6x6x6xf32>
    %160 = arith.mulf %159, %147 : vector<6x6x6xf32>
    %cst_60 = arith.constant 9.99999974E-5 : f32
    %161 = vector.broadcast %cst_60 : f32 to vector<6x6x6xf32>
    %162 = arith.addf %160, %161 : vector<6x6x6xf32>
    %163 = arith.addf %145, %146 : vector<6x6x6xf32>
    %cst_61 = arith.constant 9.99999974E-5 : f32
    %164 = vector.broadcast %cst_61 : f32 to vector<6x6x6xf32>
    %165 = arith.addf %163, %164 : vector<6x6x6xf32>
    %166 = arith.divf %162, %165 : vector<6x6x6xf32>
    %167 = arith.mulf %166, %158 : vector<6x6x6xf32>
    %cst_62 = arith.constant dense<0.000000e+00> : vector<6x6xf32>
    %168 = vector.multi_reduction <add>, %167, %cst_62 [2] : vector<6x6x6xf32> to vector<6x6xf32>
    %169 = vector.shape_cast %168 : vector<6x6xf32> to vector<6x6x1xf32>
    %cst_63 = arith.constant dense<0.000000e+00> : vector<6x1xf32>
    %170 = vector.multi_reduction <add>, %169, %cst_63 [1] : vector<6x6x1xf32> to vector<6x1xf32>
    %171 = vector.shape_cast %170 : vector<6x1xf32> to vector<6x1x1xf32>
    %cst_64 = arith.constant 0.027777778 : f32
    %172 = vector.broadcast %cst_64 : f32 to vector<6x1x1xf32>
    %173 = arith.mulf %171, %172 : vector<6x1x1xf32>
    %cst_65 = arith.constant dense<0.000000e+00> : vector<6x6xf32>
    %174 = vector.multi_reduction <add>, %158, %cst_65 [2] : vector<6x6x6xf32> to vector<6x6xf32>
    %175 = vector.shape_cast %174 : vector<6x6xf32> to vector<6x6x1xf32>
    %cst_66 = arith.constant dense<0.000000e+00> : vector<6x1xf32>
    %176 = vector.multi_reduction <add>, %175, %cst_66 [1] : vector<6x6x1xf32> to vector<6x1xf32>
    %177 = vector.shape_cast %176 : vector<6x1xf32> to vector<6x1x1xf32>
    %cst_67 = arith.constant 0.027777778 : f32
    %178 = vector.broadcast %cst_67 : f32 to vector<6x1x1xf32>
    %179 = arith.mulf %177, %178 : vector<6x1x1xf32>
    %180 = tpu.concatenate %49, %55, %111, %117, %173, %179 in 2 : vector<6x1x1xf32>, vector<6x1x1xf32>, vector<6x1x1xf32>, vector<6x1x1xf32>, vector<6x1x1xf32>, vector<6x1x1xf32> -> vector<6x1x6xf32>
    %c0_68 = arith.constant 0 : index
    %c0_69 = arith.constant 0 : index
    %c0_70 = arith.constant 0 : index
    %181 = vector.load %arg12[%c0_68, %c0_69, %c0_70] : memref<6x1x6xf32, #tpu.memory_space<vmem>>, vector<6x1x6xf32>
    tpu.vector_store %arg12[%c0_68, %c0_69, %c0_70], %180 {strides = array<i32>} : memref<6x1x6xf32, #tpu.memory_space<vmem>>, vector<6x1x6xf32>,
    return
  }
  func.func @transform_0(%arg0: i32) -> (i32, i32, i32, i32) {
    %c0_i32 = arith.constant 0 : i32
    %c0_i32_0 = arith.constant 0 : i32
    %c0_i32_1 = arith.constant 0 : i32
    %c0_i32_2 = arith.constant 0 : i32
    return %c0_i32, %arg0, %c0_i32_0, %c0_i32_1 : i32, i32, i32, i32
  }
  func.func @transform_1(%arg0: i32) -> (i32, i32) {
    %c0_i32 = arith.constant 0 : i32
    %c0_i32_0 = arith.constant 0 : i32
    %c0_i32_1 = arith.constant 0 : i32
    return %c0_i32, %c0_i32_0 : i32, i32
  }
  func.func @transform_2(%arg0: i32) -> (i32, i32) {
    %c0_i32 = arith.constant 0 : i32
    %c0_i32_0 = arith.constant 0 : i32
    %c0_i32_1 = arith.constant 0 : i32
    return %c0_i32, %c0_i32_0 : i32, i32
  }
  func.func @transform_3(%arg0: i32) -> (i32, i32) {
    %c0_i32 = arith.constant 0 : i32
    %c0_i32_0 = arith.constant 0 : i32
    %c0_i32_1 = arith.constant 0 : i32
    return %c0_i32, %c0_i32_0 : i32, i32
  }
  func.func @transform_4(%arg0: i32) -> (i32, i32) {
    %c0_i32 = arith.constant 0 : i32
    %c0_i32_0 = arith.constant 0 : i32
    %c0_i32_1 = arith.constant 0 : i32
    return %c0_i32, %c0_i32_0 : i32, i32
  }
  func.func @transform_5(%arg0: i32) -> (i32, i32) {
    %c0_i32 = arith.constant 0 : i32
    %c0_i32_0 = arith.constant 0 : i32
    %c0_i32_1 = arith.constant 0 : i32
    return %c0_i32, %c0_i32_0 : i32, i32
  }
  func.func @transform_6(%arg0: i32) -> (i32, i32) {
    %c0_i32 = arith.constant 0 : i32
    %c0_i32_0 = arith.constant 0 : i32
    %c0_i32_1 = arith.constant 0 : i32
    return %c0_i32, %c0_i32_0 : i32, i32
  }
  func.func @transform_7(%arg0: i32) -> (i32, i32) {
    %c0_i32 = arith.constant 0 : i32
    %c0_i32_0 = arith.constant 0 : i32
    %c0_i32_1 = arith.constant 0 : i32
    return %c0_i32, %c0_i32_0 : i32, i32
  }
  func.func @transform_8(%arg0: i32) -> (i32, i32) {
    %c0_i32 = arith.constant 0 : i32
    %c0_i32_0 = arith.constant 0 : i32
    %c0_i32_1 = arith.constant 0 : i32
    return %c0_i32, %c0_i32_0 : i32, i32
  }
  func.func @transform_9(%arg0: i32) -> (i32, i32) {
    %c0_i32 = arith.constant 0 : i32
    %c0_i32_0 = arith.constant 0 : i32
    %c0_i32_1 = arith.constant 0 : i32
    return %c0_i32, %c0_i32_0 : i32, i32
  }
  func.func @transform_10(%arg0: i32) -> (i32, i32) {
    %c0_i32 = arith.constant 0 : i32
    %c0_i32_0 = arith.constant 0 : i32
    %c0_i32_1 = arith.constant 0 : i32
    return %c0_i32, %c0_i32_0 : i32, i32
  }
  func.func @transform_11(%arg0: i32) -> (i32, i32, i32) {
    %c0_i32 = arith.constant 0 : i32
    %c0_i32_0 = arith.constant 0 : i32
    %c0_i32_1 = arith.constant 0 : i32
    return %arg0, %c0_i32, %c0_i32_0 : i32, i32, i32
  }
}

</mosaic_0001>

<bundles_post_ra>
// kernel: msssim_loss.1
= control target key start
LH: loop header
LB: loop body
LE: loop exit
PB: predicated region body
PF: predicated region fallthrough
CT: control target
= control target key end

     0   :  { %vm293_vm0 = vcmask 523264   ;;  %v30093_v49 = vmov 0.0   ;;  %vm22535_vm1 = vmmov 0   ;;  %vm6098_vm2 = vcmask 441344   ;;  %s30081_s2 = inlined_call_operand.vmem [shape: f32[64,54], index: 2, kind: input, shape index: {}]   ;;  %s30082_s0 = inlined_call_operand.vmem [shape: f32[2,6,64,64], index: 0, kind: input, shape index: {}]   ;;  %s30083_s1 = inlined_call_operand.vmem [shape: f32[54,64], index: 1, kind: input, shape index: {}]   ;;  %s30084_s8 = inlined_call_operand.vmem [shape: f32[64,32], index: 8, kind: input, shape index: {}]   ;;  %s30085_s7 = inlined_call_operand.vmem [shape: f32[32,64], index: 7, kind: input, shape index: {}]   ;;  %s30086_s4 = inlined_call_operand.vmem [shape: f32[32,22], index: 4, kind: input, shape index: {}]   ;;  %s30087_s3 = inlined_call_operand.vmem [shape: f32[22,32], index: 3, kind: input, shape index: {}]   ;;  %s30088_s10 = inlined_call_operand.vmem [shape: f32[32,16], index: 10, kind: input, shape index: {}]   ;;  %s30089_s9 = inlined_call_operand.vmem [shape: f32[16,32], index: 9, kind: input, shape index: {}]   ;;  %s30090_s6 = inlined_call_operand.vmem [shape: f32[16,6], index: 6, kind: input, shape index: {}]   ;;  %s30091_s5 = inlined_call_operand.vmem [shape: f32[6,16], index: 5, kind: input, shape index: {}]   ;;  %s30092_s11 = inlined_call_operand.vmem [shape: f32[6,1,6], index: 11, kind: output, shape index: {}]  }
   0x1   :  { %v148_v0 = vld [vmem:[%s30081_s2 + $0x38] sm:$0xff]  ;;  %v147_v1 = vld [vmem:[%s30081_s2 + $0x30] sm:$0xff]  ;;  %v146_v2 = vld [vmem:[%s30081_s2 + $0x28] sm:$0xff]  ;;  %19292 = vmatprep.subr.mxu1 %v30093_v49  ;;  %19308 = vmatprep.mubr.msk.f32.mxu1 %vm22535_vm1, %v30093_v49  ;;  %vm6117_vm3 = vcmask 439296   ;;  %vm6231_vm4 = vcmask 1045504   ;;  %vm16348_vm5 = vcmask 7168  }
   0x2   :  { %18916 = vmatprep.subr.mxu0 %v148_v0  ;;  %v22608_v3 = vld [vmem:[%s30082_s0] sm:$0xff]  ;;  %v144_v5 = vld [vmem:[%s30081_s2 + $0x18] sm:$0xff]  ;;  %v143_v6 = vld [vmem:[%s30081_s2 + $0x10] sm:$0xff]  ;;  %vm8189_vm6 = vcmask 261120   ;;  %vm11966_vm7 = vcmask 179200   ;;  %vm11973_vm8 = vcmask 177152  }
   0x3   :  { %18917 = vmatpush3.msra.mxu0 %v148_v0  ;;  %18932 = vmatprep.mubr.msk.f32.mxu0 %vm293_vm0, %v22608_v3  ;;  %v145_v4 = vld [vmem:[%s30081_s2 + $0x20] sm:$0xff]  ;;  %v142_v7 = vld [vmem:[%s30081_s2 + $0x8] sm:$0xff]  ;;  %v22635_v10 = vld [vmem:[%s30082_s0 + $0x10] sm:$0xff]  ;;  %vm16355_vm9 = vcmask 15360   ;;  %vm16362_vm10 = vcmask 23552   ;;  %vm13452_vm11 = vcmask 130048  }
   0x4   :  { %18918 = vmatprep.subr.mxu0 %v147_v1  ;;  %v141_v8 = vld [vmem:[%s30081_s2] sm:$0xff]  ;;  %v22630_v9 = vld [vmem:[%s30082_s0 + $0x8] sm:$0xff]  ;;  %v22644_v11 = vld [vmem:[%s30082_s0 + $0x18] sm:$0xff]  ;;  %vm16215_vm12 = vcmask 46080   ;;  %vm16369_vm13 = vcmask 31744   ;;  %vm16376_vm14 = vcmask 39936  }
   0x5   :  { %18919 = vmatpush3.msra.mxu0 %v147_v1  ;;  %v22649_v12 = vld [vmem:[%s30082_s0 + $0x20] sm:$0xff]  ;;  %v22658_v13 = vld [vmem:[%s30082_s0 + $0x28] sm:$0xff]  ;;  %v22663_v14 = vld [vmem:[%s30082_s0 + $0x30] sm:$0xff]  ;;  %vm16383_vm15 = vcmask 40960  }
   0x6   :  { %18920 = vmatprep.subr.mxu0 %v146_v2  ;;  %v22672_v15 = vld [vmem:[%s30082_s0 + $0x38] sm:$0xff]  ;;  %v22677_v16 = vld [vmem:[%s30082_s0 + $0x40] sm:$0xff]  ;;  %v22686_v17 = vld [vmem:[%s30082_s0 + $0x48] sm:$0xff] }
   0x7   :  { %18921 = vmatpush3.msra.mxu0 %v146_v2  ;;  %v22691_v18 = vld [vmem:[%s30082_s0 + $0x50] sm:$0xff]  ;;  %v22700_v19 = vld [vmem:[%s30082_s0 + $0x58] sm:$0xff]  ;;  %v22705_v20 = vld [vmem:[%s30082_s0 + $0x60] sm:$0xff] }
   0x8   :  { %18922 = vmatprep.subr.mxu0 %v145_v4  ;;  %v22714_v21 = vld [vmem:[%s30082_s0 + $0x68] sm:$0xff]  ;;  %v22719_v22 = vld [vmem:[%s30082_s0 + $0x70] sm:$0xff]  ;;  %v22728_v23 = vld [vmem:[%s30082_s0 + $0x78] sm:$0xff] }
   0x9   :  { %18923 = vmatpush3.msra.mxu0 %v145_v4  ;;  %v22733_v24 = vld [vmem:[%s30082_s0 + $0x80] sm:$0xff]  ;;  %v22742_v25 = vld [vmem:[%s30082_s0 + $0x88] sm:$0xff]  ;;  %v22747_v26 = vld [vmem:[%s30082_s0 + $0x90] sm:$0xff] }
   0xa   :  { %18924 = vmatprep.subr.mxu0 %v144_v5  ;;  %v22756_v27 = vld [vmem:[%s30082_s0 + $0x98] sm:$0xff]  ;;  %v22761_v28 = vld [vmem:[%s30082_s0 + $0xa0] sm:$0xff]  ;;  %v22770_v29 = vld [vmem:[%s30082_s0 + $0xa8] sm:$0xff] }
   0xb   :  { %18925 = vmatpush3.msra.mxu0 %v144_v5  ;;  %v22775_v30 = vld [vmem:[%s30082_s0 + $0xb0] sm:$0xff]  ;;  %v22784_v31 = vld [vmem:[%s30082_s0 + $0xb8] sm:$0xff]  ;;  %v22789_v32 = vld [vmem:[%s30082_s0 + $0xc0] sm:$0xff] }
   0xc   :  { %18926 = vmatprep.subr.mxu0 %v143_v6  ;;  %v22798_v33 = vld [vmem:[%s30082_s0 + $0xc8] sm:$0xff]  ;;  %v22803_v34 = vld [vmem:[%s30082_s0 + $0xd0] sm:$0xff]  ;;  %v22812_v35 = vld [vmem:[%s30082_s0 + $0xd8] sm:$0xff] }
   0xd   :  { %18927 = vmatpush3.msra.mxu0 %v143_v6  ;;  %v22817_v36 = vld [vmem:[%s30082_s0 + $0xe0] sm:$0xff]  ;;  %v22826_v37 = vld [vmem:[%s30082_s0 + $0xe8] sm:$0xff]  ;;  %v22831_v38 = vld [vmem:[%s30082_s0 + $0xf0] sm:$0xff] }
   0xe   :  { %18928 = vmatprep.subr.mxu0 %v142_v7  ;;  %v22840_v39 = vld [vmem:[%s30082_s0 + $0xf8] sm:$0xff]  ;;  %v22845_v40 = vld [vmem:[%s30082_s0 + $0x100] sm:$0xff]  ;;  %v22854_v41 = vld [vmem:[%s30082_s0 + $0x108] sm:$0xff] }
   0xf   :  { %18929 = vmatpush3.msra.mxu0 %v142_v7  ;;  %v22859_v42 = vld [vmem:[%s30082_s0 + $0x110] sm:$0xff]  ;;  %v22868_v43 = vld [vmem:[%s30082_s0 + $0x118] sm:$0xff]  ;;  %v22873_v44 = vld [vmem:[%s30082_s0 + $0x120] sm:$0xff] }
  0x10   :  { %18930 = vmatprep.subr.mxu0 %v141_v8  ;;  %v22882_v45 = vld [vmem:[%s30082_s0 + $0x128] sm:$0xff]  ;;  %v22887_v46 = vld [vmem:[%s30082_s0 + $0x130] sm:$0xff]  ;;  %v22896_v47 = vld [vmem:[%s30082_s0 + $0x138] sm:$0xff] }
  0x11   :  { %18931 = vmatpush3.msra.mxu0 %v141_v8  ;;  %v22901_v48 = vld [vmem:[%s30082_s0 + $0x140] sm:$0xff]  ;;  %v22911_v50 = vld [vmem:[%s30082_s0 + $0x148] sm:$0xff]  ;;  %v22917_v51 = vld [vmem:[%s30082_s0 + $0x150] sm:$0xff] }
  0x12   :  { %18933 = vmatmul.mubr.msk.f32.vlgmr.msra.gmra.mxu0 %vm293_vm0, %v22630_v9  ;;  %19958 = vmatprep.subr.mxu0 %v30093_v49  ;;  %v22926_v52 = vld [vmem:[%s30082_s0 + $0x158] sm:$0xff]  ;;  %v22931_v53 = vld [vmem:[%s30082_s0 + $0x160] sm:$0xff]  ;;  %v22940_v54 = vld [vmem:[%s30082_s0 + $0x168] sm:$0xff] }
  0x13   :  { %18935 = vmatprep.mubr.msk.f32.mxu0 %vm293_vm0, %v22635_v10  ;;  %v22945_v55 = vld [vmem:[%s30082_s0 + $0x170] sm:$0xff]  ;;  %v22954_v56 = vld [vmem:[%s30082_s0 + $0x178] sm:$0xff]  ;;  %v22959_v57 = vld [vmem:[%s30082_s0 + $0x180] sm:$0xff] }
  0x14   :  { %v22970_v58 = vld [vmem:[%s30082_s0 + $0x188] sm:$0xff]  ;;  %v22975_v59 = vld [vmem:[%s30082_s0 + $0x190] sm:$0xff]  ;;  %v22984_v60 = vld [vmem:[%s30082_s0 + $0x198] sm:$0xff] }
  0x15   :  { %v22989_v61 = vld [vmem:[%s30082_s0 + $0x1a0] sm:$0xff]  ;;  %v22998_v62 = vld [vmem:[%s30082_s0 + $0x1a8] sm:$0xff]  ;;  %v23003_v63 = vld [vmem:[%s30082_s0 + $0x1b0] sm:$0xff] }
  0x16   :  { %18936 = vmatmul.mubr.msk.f32.gmra.mxu0 %vm293_vm0, %v22644_v11  ;;  %v23012_v0 = vld [vmem:[%s30082_s0 + $0x1b8] sm:$0xff]  ;;  %v23017_v1 = vld [vmem:[%s30082_s0 + $0x1c0] sm:$0xff]  ;;  %v23026_v2 = vld [vmem:[%s30082_s0 + $0x1c8] sm:$0xff] }
  0x17   :  { %18938 = vmatprep.mubr.msk.f32.mxu0 %vm293_vm0, %v22649_v12  ;;  %30269 = vst [vmem:[#allocation2_spill] sm:$0xff] %v23026_v2  ;;  %v23031_v4 = vld [vmem:[%s30082_s0 + $0x1d0] sm:$0xff]  ;;  %v23040_v5 = vld [vmem:[%s30082_s0 + $0x1d8] sm:$0xff]  ;;  %v23045_v6 = vld [vmem:[%s30082_s0 + $0x1e0] sm:$0xff] }
  0x18   :  { %30270 = vst [vmem:[#allocation3_spill] sm:$0xff] %v23031_v4  ;;  %30271 = vst [vmem:[#allocation4_spill] sm:$0xff] %v23040_v5  ;;  %v23054_v7 = vld [vmem:[%s30082_s0 + $0x1e8] sm:$0xff]  ;;  %v23059_v8 = vld [vmem:[%s30082_s0 + $0x1f0] sm:$0xff] }
  0x19   :  { %30272 = vst [vmem:[#allocation5_spill] sm:$0xff] %v23045_v6  ;;  %30273 = vst [vmem:[#allocation6_spill] sm:$0xff] %v23054_v7  ;;  %v23068_v49 = vld [vmem:[%s30082_s0 + $0x1f8] sm:$0xff] }
  0x1a   :  { %18939 = vmatmul.mubr.msk.f32.gmra.mxu0 %vm293_vm0, %v22658_v13  ;;  %30274 = vst [vmem:[#allocation7_spill] sm:$0xff] %v23059_v8  ;;  %30275 = vst [vmem:[#allocation8_spill] sm:$0xff] %v23068_v49 }
  0x1b   :  { %18941 = vmatprep.mubr.msk.f32.mxu0 %vm293_vm0, %v22663_v14 }
  0x1e   :  { %18942 = vmatmul.mubr.msk.f32.gmra.mxu0 %vm293_vm0, %v22672_v15 }
  0x1f   :  { %18944 = vmatprep.mubr.msk.f32.mxu0 %vm293_vm0, %v22677_v16 }
  0x22   :  { %18945 = vmatmul.mubr.msk.f32.gmra.mxu0 %vm293_vm0, %v22686_v17 }
  0x23   :  { %18947 = vmatprep.mubr.msk.f32.mxu0 %vm293_vm0, %v22691_v18 }
  0x26   :  { %18948 = vmatmul.mubr.msk.f32.gmra.mxu0 %vm293_vm0, %v22700_v19 }
  0x27   :  { %18950 = vmatprep.mubr.msk.f32.mxu0 %vm293_vm0, %v22705_v20 }
  0x2a   :  { %18951 = vmatmul.mubr.msk.f32.gmra.mxu0 %vm293_vm0, %v22714_v21 }
  0x2b   :  { %18953 = vmatprep.mubr.msk.f32.mxu0 %vm293_vm0, %v22719_v22 }
  0x2e   :  { %18954 = vmatmul.mubr.msk.f32.gmra.mxu0 %vm293_vm0, %v22728_v23 }
  0x2f   :  { %18956 = vmatprep.mubr.msk.f32.mxu0 %vm293_vm0, %v22733_v24 }
  0x32   :  { %18957 = vmatmul.mubr.msk.f32.gmra.mxu0 %vm293_vm0, %v22742_v25 }
  0x33   :  { %18959 = vmatprep.mubr.msk.f32.mxu0 %vm293_vm0, %v22747_v26 }
  0x36   :  { %18960 = vmatmul.mubr.msk.f32.gmra.mxu0 %vm293_vm0, %v22756_v27 }
  0x37   :  { %18962 = vmatprep.mubr.msk.f32.mxu0 %vm293_vm0, %v22761_v28 }
  0x3a   :  { %18963 = vmatmul.mubr.msk.f32.gmra.mxu0 %vm293_vm0, %v22770_v29 }
  0x3b   :  { %18965 = vmatprep.mubr.msk.f32.mxu0 %vm293_vm0, %v22775_v30 }
  0x3e   :  { %18966 = vmatmul.mubr.msk.f32.gmra.mxu0 %vm293_vm0, %v22784_v31 }
  0x3f   :  { %18968 = vmatprep.mubr.msk.f32.mxu0 %vm293_vm0, %v22789_v32 }
  0x42   :  { %18969 = vmatmul.mubr.msk.f32.gmra.mxu0 %vm293_vm0, %v22798_v33 }
  0x43   :  { %18971 = vmatprep.mubr.msk.f32.mxu0 %vm293_vm0, %v22803_v34 }
  0x46   :  { %18972 = vmatmul.mubr.msk.f32.gmra.mxu0 %vm293_vm0, %v22812_v35 }
  0x47   :  { %18974 = vmatprep.mubr.msk.f32.mxu0 %vm293_vm0, %v22817_v36 }
  0x4a   :  { %18975 = vmatmul.mubr.msk.f32.gmra.mxu0 %vm293_vm0, %v22826_v37 }
  0x4b   :  { %18977 = vmatprep.mubr.msk.f32.mxu0 %vm293_vm0, %v22831_v38 }
  0x4e   :  { %18978 = vmatmul.mubr.msk.f32.gmra.mxu0 %vm293_vm0, %v22840_v39 }
  0x4f   :  { %18980 = vmatprep.mubr.msk.f32.mxu0 %vm293_vm0, %v22845_v40 }
  0x52   :  { %18981 = vmatmul.mubr.msk.f32.gmra.mxu0 %vm293_vm0, %v22854_v41 }
  0x53   :  { %18983 = vmatprep.mubr.msk.f32.mxu0 %vm293_vm0, %v22859_v42 }
  0x56   :  { %18984 = vmatmul.mubr.msk.f32.gmra.mxu0 %vm293_vm0, %v22868_v43 }
  0x57   :  { %18986 = vmatprep.mubr.msk.f32.mxu0 %vm293_vm0, %v22873_v44 }
  0x5a   :  { %18987 = vmatmul.mubr.msk.f32.gmra.mxu0 %vm293_vm0, %v22882_v45 }
  0x5b   :  { %18989 = vmatprep.mubr.msk.f32.mxu0 %vm293_vm0, %v22887_v46 }
  0x5e   :  { %18990 = vmatmul.mubr.msk.f32.gmra.mxu0 %vm293_vm0, %v22896_v47 }
  0x5f   :  { %18992 = vmatprep.mubr.msk.f32.mxu0 %vm293_vm0, %v22901_v48 }
  0x62   :  { %18993 = vmatmul.mubr.msk.f32.gmra.mxu0 %vm293_vm0, %v22911_v50 }
  0x63   :  { %18995 = vmatprep.mubr.msk.f32.mxu0 %vm293_vm0, %v22917_v51 }
  0x66   :  { %18996 = vmatmul.mubr.msk.f32.gmra.mxu0 %vm293_vm0, %v22926_v52 }
  0x67   :  { %18998 = vmatprep.mubr.msk.f32.mxu0 %vm293_vm0, %v22931_v53 }
  0x6a   :  { %18999 = vmatmul.mubr.msk.f32.gmra.mxu0 %vm293_vm0, %v22940_v54 }
  0x6b   :  { %19001 = vmatprep.mubr.msk.f32.mxu0 %vm293_vm0, %v22945_v55 }
  0x6e   :  { %19002 = vmatmul.mubr.msk.f32.gmra.mxu0 %vm293_vm0, %v22954_v56 }
  0x6f   :  { %19004 = vmatprep.mubr.msk.f32.mxu0 %vm293_vm0, %v22959_v57 }
  0x72   :  { %19005 = vmatmul.mubr.msk.f32.gmra.mxu0 %vm293_vm0, %v22970_v58 }
  0x73   :  { %19007 = vmatprep.mubr.msk.f32.mxu0 %vm293_vm0, %v22975_v59 }
  0x76   :  { %19008 = vmatmul.mubr.msk.f32.gmra.mxu0 %vm293_vm0, %v22984_v60 }
  0x77   :  { %19010 = vmatprep.mubr.msk.f32.mxu0 %vm293_vm0, %v22989_v61 }
  0x7a   :  { %19011 = vmatmul.mubr.msk.f32.gmra.mxu0 %vm293_vm0, %v22998_v62 }
  0x7b   :  { %19013 = vmatprep.mubr.msk.f32.mxu0 %vm293_vm0, %v23003_v63 }
  0x7e   :  { %19014 = vmatmul.mubr.msk.f32.gmra.mxu0 %vm293_vm0, %v23012_v0 }
  0x7f   :  { %19016 = vmatprep.mubr.msk.f32.mxu0 %vm293_vm0, %v23017_v1 }
  0x82   :  { %19017 = vmatmul.mubr.msk.f32.gmra.mxu0 %vm293_vm0, %v23026_v2 }
  0x83   :  { %19019 = vmatprep.mubr.msk.f32.mxu0 %vm293_vm0, %v23031_v4  ;;  %v152_v4 = vmul.f32 %v22644_v11, %v22644_v11  ;;  %v156_v11 = vmul.f32 %v22672_v15, %v22672_v15  ;;  %v30308_v15 = vmov 0.0  }
  0x86   :  { %19020 = vmatmul.mubr.msk.f32.gmra.mxu0 %vm293_vm0, %v23040_v5  ;;  %v150_v5 = vmul.f32 %v22630_v9, %v22630_v9  ;;  %v154_v9 = vmul.f32 %v22658_v13, %v22658_v13  ;;  %v158_v13 = vmul.f32 %v22686_v17, %v22686_v17  ;;  %v161_v17 = vmul.f32 %v22705_v20, %v22705_v20 }
  0x87   :  { %19022 = vmatprep.mubr.msk.f32.mxu0 %vm293_vm0, %v23045_v6  ;;  %v23073_v6 = vld [vmem:[%s30082_s0 + $0x200] sm:$0xff] }
  0x88   :  { %30276 = vst [vmem:[#allocation9_spill] sm:$0xff] %v23073_v6 }
  0x8a   :  { %19023 = vmatmul.mubr.msk.f32.gmra.mxu0 %vm293_vm0, %v23054_v7  ;;  %v23087_v7 = vld [vmem:[%s30082_s0 + $0x210] sm:$0xff] }
  0x8b   :  { %19025 = vmatprep.mubr.msk.f32.mxu0 %vm293_vm0, %v23059_v8  ;;  %v23082_v8 = vld [vmem:[%s30082_s0 + $0x208] sm:$0xff]  ;;  %30278 = vst [vmem:[#allocation11_spill] sm:$0xff] %v23087_v7 }
  0x8c   :  { %30277 = vst [vmem:[#allocation10_spill] sm:$0xff] %v23082_v8 }
  0x8e   :  { %19026 = vmatmul.mubr.msk.f32.gmra.mxu0 %vm293_vm0, %v23068_v49  ;;  %v23101_v49 = vld [vmem:[%s30082_s0 + $0x220] sm:$0xff] }
  0x8f   :  { %19028 = vmatprep.mubr.msk.f32.mxu0 %vm293_vm0, %v23073_v6  ;;  %v23096_v6 = vld [vmem:[%s30082_s0 + $0x218] sm:$0xff]  ;;  %30280 = vst [vmem:[#allocation13_spill] sm:$0xff] %v23101_v49 }
  0x90   :  { %30279 = vst [vmem:[#allocation12_spill] sm:$0xff] %v23096_v6 }
  0x92   :  { %19029 = vmatmul.mubr.msk.f32.gmra.mxu0 %vm293_vm0, %v23082_v8  ;;  %v23115_v8 = vld [vmem:[%s30082_s0 + $0x230] sm:$0xff] }
  0x93   :  { %19031 = vmatprep.mubr.msk.f32.mxu0 %vm293_vm0, %v23087_v7  ;;  %v23110_v7 = vld [vmem:[%s30082_s0 + $0x228] sm:$0xff]  ;;  %30282 = vst [vmem:[#allocation15_spill] sm:$0xff] %v23115_v8 }
  0x94   :  { %30281 = vst [vmem:[#allocation14_spill] sm:$0xff] %v23110_v7 }
  0x96   :  { %19032 = vmatmul.mubr.msk.f32.gmra.mxu0 %vm293_vm0, %v23096_v6  ;;  %v23129_v6 = vld [vmem:[%s30082_s0 + $0x240] sm:$0xff] }
  0x97   :  { %19034 = vmatprep.mubr.msk.f32.mxu0 %vm293_vm0, %v23101_v49  ;;  %v23124_v49 = vld [vmem:[%s30082_s0 + $0x238] sm:$0xff]  ;;  %30284 = vst [vmem:[#allocation17_spill] sm:$0xff] %v23129_v6 }
  0x98   :  { %30283 = vst [vmem:[#allocation16_spill] sm:$0xff] %v23124_v49 }
  0x9a   :  { %19035 = vmatmul.mubr.msk.f32.gmra.mxu0 %vm293_vm0, %v23110_v7  ;;  %v23143_v7 = vld [vmem:[%s30082_s0 + $0x250] sm:$0xff] }
  0x9b   :  { %19037 = vmatprep.mubr.msk.f32.mxu0 %vm293_vm0, %v23115_v8  ;;  %v23138_v8 = vld [vmem:[%s30082_s0 + $0x248] sm:$0xff]  ;;  %30286 = vst [vmem:[#allocation19_spill] sm:$0xff] %v23143_v7 }
  0x9c   :  { %30285 = vst [vmem:[#allocation18_spill] sm:$0xff] %v23138_v8 }
  0x9e   :  { %19038 = vmatmul.mubr.msk.f32.gmra.mxu0 %vm293_vm0, %v23124_v49  ;;  %v23157_v49 = vld [vmem:[%s30082_s0 + $0x260] sm:$0xff] }
  0x9f   :  { %19040 = vmatprep.mubr.msk.f32.mxu0 %vm293_vm0, %v23129_v6  ;;  %v23152_v6 = vld [vmem:[%s30082_s0 + $0x258] sm:$0xff]  ;;  %30288 = vst [vmem:[#allocation21_spill] sm:$0xff] %v23157_v49 }
  0xa0   :  { %30287 = vst [vmem:[#allocation20_spill] sm:$0xff] %v23152_v6 }
  0xa2   :  { %19041 = vmatmul.mubr.msk.f32.gmra.mxu0 %vm293_vm0, %v23138_v8  ;;  %v23171_v8 = vld [vmem:[%s30082_s0 + $0x270] sm:$0xff] }
  0xa3   :  { %19043 = vmatprep.mubr.msk.f32.mxu0 %vm293_vm0, %v23143_v7  ;;  %v23166_v7 = vld [vmem:[%s30082_s0 + $0x268] sm:$0xff]  ;;  %30290 = vst [vmem:[#allocation23_spill] sm:$0xff] %v23171_v8 }
  0xa4   :  { %30289 = vst [vmem:[#allocation22_spill] sm:$0xff] %v23166_v7 }
  0xa6   :  { %19044 = vmatmul.mubr.msk.f32.gmra.mxu0 %vm293_vm0, %v23152_v6  ;;  %v23185_v6 = vld [vmem:[%s30082_s0 + $0x280] sm:$0xff] }
  0xa7   :  { %19046 = vmatprep.mubr.msk.f32.mxu0 %vm293_vm0, %v23157_v49  ;;  %v23180_v49 = vld [vmem:[%s30082_s0 + $0x278] sm:$0xff]  ;;  %30292 = vst [vmem:[#allocation25_spill] sm:$0xff] %v23185_v6 }
  0xa8   :  { %30291 = vst [vmem:[#allocation24_spill] sm:$0xff] %v23180_v49 }
  0xaa   :  { %19047 = vmatmul.mubr.msk.f32.gmra.mxu0 %vm293_vm0, %v23166_v7  ;;  %v23199_v7 = vld [vmem:[%s30082_s0 + $0x290] sm:$0xff] }
  0xab   :  { %19049 = vmatprep.mubr.msk.f32.mxu0 %vm293_vm0, %v23171_v8  ;;  %v23194_v8 = vld [vmem:[%s30082_s0 + $0x288] sm:$0xff]  ;;  %30294 = vst [vmem:[#allocation27_spill] sm:$0xff] %v23199_v7 }
  0xac   :  { %30293 = vst [vmem:[#allocation26_spill] sm:$0xff] %v23194_v8 }
  0xae   :  { %19050 = vmatmul.mubr.msk.f32.gmra.mxu0 %vm293_vm0, %v23180_v49  ;;  %v23213_v49 = vld [vmem:[%s30082_s0 + $0x2a0] sm:$0xff] }
  0xaf   :  { %19052 = vmatprep.mubr.msk.f32.mxu0 %vm293_vm0, %v23185_v6  ;;  %v23208_v6 = vld [vmem:[%s30082_s0 + $0x298] sm:$0xff]  ;;  %30296 = vst [vmem:[#allocation29_spill] sm:$0xff] %v23213_v49 }
  0xb0   :  { %30295 = vst [vmem:[#allocation28_spill] sm:$0xff] %v23208_v6 }
  0xb2   :  { %19053 = vmatmul.mubr.msk.f32.gmra.mxu0 %vm293_vm0, %v23194_v8  ;;  %v23227_v8 = vld [vmem:[%s30082_s0 + $0x2b0] sm:$0xff] }
  0xb3   :  { %19055 = vmatprep.mubr.msk.f32.mxu0 %vm293_vm0, %v23199_v7  ;;  %v23222_v7 = vld [vmem:[%s30082_s0 + $0x2a8] sm:$0xff]  ;;  %30298 = vst [vmem:[#allocation31_spill] sm:$0xff] %v23227_v8 }
  0xb4   :  { %30297 = vst [vmem:[#allocation30_spill] sm:$0xff] %v23222_v7 }
  0xb6   :  { %19056 = vmatmul.mubr.msk.f32.gmra.mxu0 %vm293_vm0, %v23208_v6  ;;  %v23241_v6 = vld [vmem:[%s30082_s0 + $0x2c0] sm:$0xff] }
  0xb7   :  { %19058 = vmatprep.mubr.msk.f32.mxu0 %vm293_vm0, %v23213_v49  ;;  %v23236_v49 = vld [vmem:[%s30082_s0 + $0x2b8] sm:$0xff]  ;;  %30300 = vst [vmem:[#allocation33_spill] sm:$0xff] %v23241_v6 }
  0xb8   :  { %30299 = vst [vmem:[#allocation32_spill] sm:$0xff] %v23236_v49 }
  0xba   :  { %19059 = vmatmul.mubr.msk.f32.gmra.mxu0 %vm293_vm0, %v23222_v7  ;;  %v23255_v7 = vld [vmem:[%s30082_s0 + $0x2d0] sm:$0xff] }
  0xbb   :  { %19061 = vmatprep.mubr.msk.f32.mxu0 %vm293_vm0, %v23227_v8  ;;  %v23250_v8 = vld [vmem:[%s30082_s0 + $0x2c8] sm:$0xff]  ;;  %30302 = vst [vmem:[#allocation35_spill] sm:$0xff] %v23255_v7 }
  0xbc   :  { %30301 = vst [vmem:[#allocation34_spill] sm:$0xff] %v23250_v8 }
  0xbe   :  { %19062 = vmatmul.mubr.msk.f32.gmra.mxu0 %vm293_vm0, %v23236_v49  ;;  %v23269_v49 = vld [vmem:[%s30082_s0 + $0x2e0] sm:$0xff] }
  0xbf   :  { %19064 = vmatprep.mubr.msk.f32.mxu0 %vm293_vm0, %v23241_v6  ;;  %v23264_v6 = vld [vmem:[%s30082_s0 + $0x2d8] sm:$0xff]  ;;  %30304 = vst [vmem:[#allocation37_spill] sm:$0xff] %v23269_v49 }
  0xc0   :  { %30303 = vst [vmem:[#allocation36_spill] sm:$0xff] %v23264_v6 }
  0xc2   :  { %19065 = vmatmul.mubr.msk.f32.gmra.mxu0 %vm293_vm0, %v23250_v8  ;;  %v23283_v8 = vld [vmem:[%s30082_s0 + $0x2f0] sm:$0xff] }
  0xc3   :  { %19067 = vmatprep.mubr.msk.f32.mxu0 %vm293_vm0, %v23255_v7  ;;  %v23278_v7 = vld [vmem:[%s30082_s0 + $0x2e8] sm:$0xff]  ;;  %30306 = vst [vmem:[#allocation39_spill] sm:$0xff] %v23283_v8 }
  0xc4   :  { %30305 = vst [vmem:[#allocation38_spill] sm:$0xff] %v23278_v7 }
  0xc6   :  { %19068 = vmatmul.mubr.msk.f32.gmra.mxu0 %vm293_vm0, %v23264_v6  ;;  %v149_v6 = vmul.f32 %v22608_v3, %v22608_v3  ;;  %v153_v3 = vmul.f32 %v22649_v12, %v22649_v12  ;;  %v157_v12 = vmul.f32 %v22677_v16, %v22677_v16  ;;  %v160_v16 = vmul.f32 %v22700_v19, %v22700_v19 }
  0xc7   :  { %19070 = vmatprep.mubr.msk.f32.mxu0 %vm293_vm0, %v23269_v49  ;;  %v23292_v49 = vld [vmem:[%s30082_s0 + $0x2f8] sm:$0xff]  ;;  %v163_v19 = vmul.f32 %v22719_v22, %v22719_v22  ;;  %v165_v22 = vmul.f32 %v22733_v24, %v22733_v24  ;;  %v23373_v24 = vld [vmem:[%s30083_s1 + $0x8] sm:$0xff] }
  0xc8   :  { %30307 = vst [vmem:[#allocation40_spill] sm:$0xff] %v23292_v49 }
  0xca   :  { %19071 = vmatmul.mubr.msk.f32.gmra.mxu0 %vm293_vm0, %v23278_v7  ;;  %v151_v7 = vmul.f32 %v22635_v10, %v22635_v10  ;;  %v155_v10 = vmul.f32 %v22663_v14, %v22663_v14  ;;  %v159_v14 = vmul.f32 %v22691_v18, %v22691_v18 }
  0xcb   :  { %19073 = vmatprep.mubr.msk.f32.mxu0 %vm293_vm0, %v23283_v8 }
  0xce   :  { %19074 = vmatmul.mubr.msk.f32.gmra.mxu0 %vm293_vm0, %v23292_v49 }
  0xcf   :  { %19076 = vmatprep.mubr.msk.f32.mxu0 %vm293_vm0, %v149_v6 }
  0xd2   :  { %v18934_v8 = vpop.f32.mrf.mxu0  ;;  %19077 = vmatmul.mubr.msk.f32.gmra.mxu0 %vm293_vm0, %v150_v5 }
  0xd3   :  { %19079 = vmatprep.mubr.msk.f32.mxu0 %vm293_vm0, %v151_v7 }
  0xd4   :  { %v1080_v49 = vpop.f32.mrf.mxu0 }
  0xd6   :  { %v18937_v2 = vpop.f32.mrf.mxu0  ;;  %19080 = vmatmul.mubr.msk.f32.gmra.mxu0 %vm293_vm0, %v152_v4 }
  0xd7   :  { %19082 = vmatprep.mubr.msk.f32.mxu0 %vm293_vm0, %v153_v3 }
  0xd8   :  { %v1090_v5 = vpop.f32.mrf.mxu0 }
  0xda   :  { %v18940_v6 = vpop.f32.mrf.mxu0  ;;  %19083 = vmatmul.mubr.msk.f32.gmra.mxu0 %vm293_vm0, %v154_v9 }
  0xdb   :  { %19085 = vmatprep.mubr.msk.f32.mxu0 %vm293_vm0, %v155_v10 }
  0xdc   :  { %v1100_v4 = vpop.f32.mrf.mxu0 }
  0xde   :  { %v18943_v7 = vpop.f32.mrf.mxu0  ;;  %19086 = vmatmul.mubr.msk.f32.gmra.mxu0 %vm293_vm0, %v156_v11  ;;  %v162_v11 = vmul.f32 %v22714_v21, %v22714_v21  ;;  %v23356_v21 = vld [vmem:[%s30083_s1] sm:$0xff] }
  0xdf   :  { %19293 = vmatpush3.msra.mxu1 %v18943_v7  ;;  %19088 = vmatprep.mubr.msk.f32.mxu0 %vm293_vm0, %v157_v12  ;;  %v164_v12 = vmul.f32 %v22728_v23, %v22728_v23 }
  0xe0   :  { %v1110_v3 = vpop.f32.mrf.mxu0  ;;  %19294 = vmatprep.subr.mxu1 %v30308_v15 }
  0xe1   :  { %19295 = vmatpush3.msra.mxu1 %v1110_v3  ;;  %v23413_v3 = vld [vmem:[%s30083_s1 + $0x18] sm:$0xff] }
  0xe2   :  { %v23328_v9 = vpop.f32.mrf.mxu0  ;;  %19089 = vmatmul.mubr.msk.f32.gmra.mxu0 %vm293_vm0, %v158_v13  ;;  %19296 = vmatprep.subr.mxu1 %v30308_v15  ;;  %v170_v13 = vmul.f32 %v22770_v29, %v22770_v29  ;;  %v171_v29 = vmul.f32 %v22775_v30, %v22775_v30  ;;  %v173_v30 = vmul.f32 %v22789_v32, %v22789_v32 }
  0xe3   :  { %19297 = vmatpush3.msra.mxu1 %v18940_v6  ;;  %19091 = vmatprep.mubr.msk.f32.mxu0 %vm293_vm0, %v159_v14 }
  0xe4   :  { %v23337_v18 = vpop.f32.mrf.mxu0  ;;  %19298 = vmatprep.subr.mxu1 %v30308_v15 }
  0xe5   :  { %19299 = vmatpush3.msra.mxu1 %v1100_v4 }
  0xe6   :  { %v18949_v10 = vpop.f32.mrf.mxu0  ;;  %19092 = vmatmul.mubr.msk.f32.gmra.mxu0 %vm293_vm0, %v160_v16  ;;  %19300 = vmatprep.subr.mxu1 %v30308_v15  ;;  %v172_v16 = vmul.f32 %v22784_v31, %v22784_v31  ;;  %v23433_v31 = vld [vmem:[%s30083_s1 + $0x20] sm:$0xff] }
  0xe7   :  { %19301 = vmatpush3.msra.mxu1 %v18937_v2  ;;  %19094 = vmatprep.mubr.msk.f32.mxu0 %vm293_vm0, %v161_v17 }
  0xe8   :  { %v1130_v20 = vpop.f32.mrf.mxu0  ;;  %19302 = vmatprep.subr.mxu1 %v30308_v15 }
  0xe9   :  { %19303 = vmatpush3.msra.mxu1 %v1090_v5  ;;  %v166_v5 = vmul.f32 %v22742_v25, %v22742_v25  ;;  %v167_v25 = vmul.f32 %v22747_v26, %v22747_v26  ;;  %v23392_v26 = vld [vmem:[%s30083_s1 + $0x10] sm:$0xff] }
  0xea   :  { %v18952_v6 = vpop.f32.mrf.mxu0  ;;  %19095 = vmatmul.mubr.msk.f32.gmra.mxu0 %vm293_vm0, %v162_v11  ;;  %19304 = vmatprep.subr.mxu1 %v30308_v15  ;;  %v174_v11 = vmul.f32 %v22798_v33, %v22798_v33  ;;  %v23452_v33 = vld [vmem:[%s30083_s1 + $0x28] sm:$0xff] }
  0xeb   :  { %19305 = vmatpush3.msra.mxu1 %v18934_v8  ;;  %19097 = vmatprep.mubr.msk.f32.mxu0 %vm293_vm0, %v163_v19 }
  0xec   :  { %v1140_v2 = vpop.f32.mrf.mxu0  ;;  %19306 = vmatprep.subr.mxu1 %v30308_v15 }
  0xed   :  { %19307 = vmatpush3.msra.mxu1 %v1080_v49  ;;  %v168_v49 = vmul.f32 %v22756_v27, %v22756_v27  ;;  %v169_v27 = vmul.f32 %v22761_v28, %v22761_v28 }
  0xee   :  { %v18955_v4 = vpop.f32.mrf.mxu0  ;;  %19098 = vmatmul.mubr.msk.f32.gmra.mxu0 %vm293_vm0, %v164_v12  ;;  %19309 = vmatmul.mubr.msk.f32.vlgmr.msra.gmra.mxu1 %vm293_vm0, %v23356_v21  ;;  %v178_v12 = vmul.f32 %v22826_v37, %v22826_v37  ;;  %v180_v37 = vmul.f32 %v22840_v39, %v22840_v39  ;;  %v182_v39 = vmul.f32 %v22854_v41, %v22854_v41 }
  0xef   :  { %19329 = vmatprep.subr.mxu1 %v30308_v15  ;;  %19100 = vmatprep.mubr.msk.f32.mxu0 %vm293_vm0, %v165_v22  ;;  %v184_v41 = vmul.f32 %v22868_v43, %v22868_v43  ;;  %v186_v43 = vmul.f32 %v22882_v45, %v22882_v45  ;;  %v188_v45 = vmul.f32 %v22896_v47, %v22896_v47 }
  0xf0   :  { %19330 = vmatpush3.msra.mxu1 %v18955_v4  ;;  %v1150_v23 = vpop.f32.mrf.mxu0  ;;  %19311 = vmatprep.mubr.msk.f32.mxu1 %vm22535_vm1, %v30308_v15  ;;  %v190_v47 = vmul.f32 %v22911_v50, %v22911_v50  ;;  %v192_v50 = vmul.f32 %v22926_v52, %v22926_v52  ;;  %v194_v52 = vmul.f32 %v22940_v54, %v22940_v54 }
  0xf1   :  { %19331 = vmatprep.subr.mxu1 %v30308_v15  ;;  %v196_v54 = vmul.f32 %v22954_v56, %v22954_v56  ;;  %v198_v56 = vmul.f32 %v22970_v58, %v22970_v58  ;;  %v199_v58 = vmul.f32 %v22975_v59, %v22975_v59  ;;  %v201_v59 = vmul.f32 %v22989_v61, %v22989_v61 }
  0xf2   :  { %19332 = vmatpush3.msra.mxu1 %v1150_v23  ;;  %v23380_v8 = vpop.f32.mrf.mxu0  ;;  %19101 = vmatmul.mubr.msk.f32.gmra.mxu0 %vm293_vm0, %v166_v5  ;;  %v203_v61 = vmul.f32 %v23003_v63, %v23003_v63  ;;  %v205_v63 = vmul.f32 %v23017_v1, %v23017_v1 }
  0xf3   :  { %19312 = vmatmul.mubr.msk.f32.gmra.mxu1 %vm293_vm0, %v23373_v24  ;;  %19333 = vmatprep.subr.mxu1 %v30308_v15 }
  0xf4   :  { %19334 = vmatpush3.msra.mxu1 %v18952_v6  ;;  %v23386_v7 = vpop.f32.mrf.mxu0  ;;  %19103 = vmatprep.mubr.msk.f32.mxu0 %vm293_vm0, %v167_v25 }
  0xf5   :  { %19335 = vmatprep.subr.mxu1 %v30308_v15  ;;  %19314 = vmatprep.mubr.msk.f32.mxu1 %vm22535_vm1, %v30308_v15 }
  0xf6   :  { %19336 = vmatpush3.msra.mxu1 %v1140_v2  ;;  %v23401_v14 = vpop.f32.mrf.mxu0  ;;  %19104 = vmatmul.mubr.msk.f32.gmra.mxu0 %vm293_vm0, %v168_v49 }
  0xf7   :  { %19315 = vmatmul.mubr.msk.f32.gmra.mxu1 %vm293_vm0, %v23392_v26  ;;  %19337 = vmatprep.subr.mxu1 %v30308_v15 }
  0xf8   :  { %19338 = vmatpush3.msra.mxu1 %v18949_v10  ;;  %v23407_v28 = vpop.f32.mrf.mxu0  ;;  %19106 = vmatprep.mubr.msk.f32.mxu0 %vm293_vm0, %v169_v27  ;;  %v185_v27 = vmul.f32 %v22873_v44, %v22873_v44  ;;  %v187_v44 = vmul.f32 %v22887_v46, %v22887_v46  ;;  %v189_v46 = vmul.f32 %v22901_v48, %v22901_v48 }
  0xf9   :  { %19339 = vmatprep.subr.mxu1 %v30308_v15  ;;  %19317 = vmatprep.mubr.msk.f32.mxu1 %vm22535_vm1, %v30308_v15  ;;  %v191_v48 = vmul.f32 %v22917_v51, %v22917_v51  ;;  %v193_v51 = vmul.f32 %v22931_v53, %v22931_v53 }
  0xfa   :  { %19340 = vmatpush3.msra.mxu1 %v1130_v20  ;;  %v18964_v17 = vpop.f32.mrf.mxu0  ;;  %19107 = vmatmul.mubr.msk.f32.gmra.mxu0 %vm293_vm0, %v170_v13 }
  0xfb   :  { %19318 = vmatmul.mubr.msk.f32.gmra.mxu1 %vm293_vm0, %v23413_v3  ;;  %19341 = vmatprep.subr.mxu1 %v30308_v15 }
  0xfc   :  { %19342 = vmatpush3.msra.mxu1 %v23328_v9  ;;  %v1180_v10 = vpop.f32.mrf.mxu0  ;;  %19109 = vmatprep.mubr.msk.f32.mxu0 %vm293_vm0, %v171_v29  ;;  %v175_v9 = vmul.f32 %v22803_v34, %v22803_v34  ;;  %v177_v34 = vmul.f32 %v22817_v36, %v22817_v36  ;;  %v179_v36 = vmul.f32 %v22831_v38, %v22831_v38 }
  0xfd   :  { %19343 = vmatprep.subr.mxu1 %v30308_v15  ;;  %19320 = vmatprep.mubr.msk.f32.mxu1 %vm22535_vm1, %v30308_v15  ;;  %v181_v38 = vmul.f32 %v22845_v40, %v22845_v40  ;;  %v183_v40 = vmul.f32 %v22859_v42, %v22859_v42 }
  0xfe   :  { %19344 = vmatpush3.msra.mxu1 %v23337_v18  ;;  %v18967_v32 = vpop.f32.mrf.mxu0  ;;  %19110 = vmatmul.mubr.msk.f32.gmra.mxu0 %vm293_vm0, %v172_v16  ;;  %v176_v18 = vmul.f32 %v22812_v35, %v22812_v35  ;;  %v23472_v35 = vld [vmem:[%s30083_s1 + $0x30] sm:$0x3f] }
  0xff   :  { %19321 = vmatmul.mubr.msk.f32.gmra.mxu1 %vm293_vm0, %v23433_v31  ;;  %19112 = vmatprep.mubr.msk.f32.mxu0 %vm293_vm0, %v173_v30 }
 0x100   :  { %v1190_v19 = vpop.f32.mrf.mxu0  ;;  %19323 = vmatprep.mubr.msk.f32.mxu1 %vm22535_vm1, %v30308_v15  ;;  %19366 = vmatprep.subr.mxu1 %v30308_v15 }
 0x102   :  { %v23457_v20 = vpop.f32.mrf.mxu0  ;;  %19113 = vmatmul.mubr.msk.f32.gmra.mxu0 %vm293_vm0, %v174_v11 }
 0x103   :  { %19324 = vmatmul.mubr.msk.f32.gmra.mxu1 %vm293_vm0, %v23452_v33  ;;  %19115 = vmatprep.mubr.msk.f32.mxu0 %vm293_vm0, %v175_v9 }
 0x104   :  { %v23465_v6 = vpop.f32.mrf.mxu0  ;;  %19326 = vmatprep.mubr.msk.f32.mxu1 %vm22535_vm1, %v30308_v15 }
 0x106   :  { %v23476_v22 = vpop.f32.mrf.mxu0  ;;  %19116 = vmatmul.mubr.msk.f32.gmra.mxu0 %vm293_vm0, %v176_v18 }
 0x107   :  { %19327 = vmatmul.mubr.msk.f32.gmra.mxu1 %vm293_vm0, %v23472_v35  ;;  %19118 = vmatprep.mubr.msk.f32.mxu0 %vm293_vm0, %v177_v34 }
 0x108   :  { %v23484_v2 = vpop.f32.mrf.mxu0  ;;  %19345 = vmatprep.mubr.msk.f32.mxu1 %vm22535_vm1, %v30308_v15 }
 0x10a   :  { %v23490_v5 = vpop.f32.mrf.mxu0  ;;  %19119 = vmatmul.mubr.msk.f32.gmra.mxu0 %vm293_vm0, %v178_v12 }
 0x10b   :  { %19346 = vmatmul.mubr.msk.f32.vlgmr.msra.gmra.mxu1 %vm293_vm0, %v23356_v21  ;;  %19121 = vmatprep.mubr.msk.f32.mxu0 %vm293_vm0, %v179_v36  ;;  %v30309_v36 = vld [vmem:[#allocation2_spill] sm:$0xff] }
 0x10c   :  { %19367 = vmatpush3.msra.mxu1 %v18967_v32  ;;  %v23496_v4 = vpop.f32.mrf.mxu0  ;;  %19348 = vmatprep.mubr.msk.f32.mxu1 %vm22535_vm1, %v30308_v15 }
 0x10d   :  { %19368 = vmatprep.subr.mxu1 %v30308_v15 }
 0x10e   :  { %19369 = vmatpush3.msra.mxu1 %v1190_v19  ;;  %v23505_v23 = vpop.f32.mrf.mxu0  ;;  %19122 = vmatmul.mubr.msk.f32.gmra.mxu0 %vm293_vm0, %v180_v37  ;;  %v200_v19 = vmul.f32 %v22984_v60, %v22984_v60  ;;  %v202_v60 = vmul.f32 %v22998_v62, %v22998_v62  ;;  %v204_v62 = vmul.f32 %v23012_v0, %v23012_v0  ;;  %v30310_v37 = vld [vmem:[#allocation3_spill] sm:$0xff] }
 0x10f   :  { %19370 = vmatprep.subr.mxu1 %v30308_v15  ;;  %19349 = vmatmul.mubr.msk.f32.gmra.mxu1 %vm293_vm0, %v23373_v24  ;;  %v206_v0 = vmul.f32 %v30309_v36, %v30309_v36  ;;  %v207_v1 = vmul.f32 %v30310_v37, %v30310_v37  ;;  %v30323_v36 = vld [vmem:[#allocation16_spill] sm:$0xff] }
 0x110   :  { %19371 = vmatpush3.msra.mxu1 %v18964_v17  ;;  %v23511_v25 = vpop.f32.mrf.mxu0  ;;  %19124 = vmatprep.mubr.msk.f32.mxu0 %vm293_vm0, %v181_v38 }
 0x111   :  { %19372 = vmatprep.subr.mxu1 %v30308_v15  ;;  %19351 = vmatprep.mubr.msk.f32.mxu1 %vm22535_vm1, %v30308_v15 }
 0x112   :  { %19373 = vmatpush3.msra.mxu1 %v1180_v10  ;;  %v23521_v49 = vpop.f32.mrf.mxu0  ;;  %19125 = vmatmul.mubr.msk.f32.gmra.mxu0 %vm293_vm0, %v182_v39  ;;  %v195_v10 = vmul.f32 %v22945_v55, %v22945_v55  ;;  %v197_v55 = vmul.f32 %v22959_v57, %v22959_v57 }
 0x113   :  { %19374 = vmatprep.subr.mxu1 %v30308_v15  ;;  %19352 = vmatmul.mubr.msk.f32.gmra.mxu1 %vm293_vm0, %v23392_v26 }
 0x114   :  { %19375 = vmatpush3.msra.mxu1 %v23401_v14  ;;  %v23528_v42 = vpop.f32.mrf.mxu0  ;;  %19127 = vmatprep.mubr.msk.f32.mxu0 %vm293_vm0, %v183_v40 }
 0x115   :  { %19376 = vmatprep.subr.mxu1 %v30308_v15  ;;  %19354 = vmatprep.mubr.msk.f32.mxu1 %vm22535_vm1, %v30308_v15 }
 0x116   :  { %19377 = vmatpush3.msra.mxu1 %v23407_v28  ;;  %v23539_v13 = vpop.f32.mrf.mxu0  ;;  %19128 = vmatmul.mubr.msk.f32.gmra.mxu0 %vm293_vm0, %v184_v41  ;;  %v30313_v41 = vld [vmem:[#allocation6_spill] sm:$0xff] }
 0x117   :  { %19378 = vmatprep.subr.mxu1 %v30308_v15  ;;  %19355 = vmatmul.mubr.msk.f32.gmra.mxu1 %vm293_vm0, %v23413_v3 }
 0x118   :  { %19379 = vmatpush3.msra.mxu1 %v23380_v8  ;;  %v23548_v14 = vpop.f32.mrf.mxu0  ;;  %19130 = vmatprep.mubr.msk.f32.mxu0 %vm293_vm0, %v185_v27  ;;  %v210_v27 = vmul.f32 %v30313_v41, %v30313_v41 }
 0x119   :  { %19380 = vmatprep.subr.mxu1 %v30308_v15  ;;  %19357 = vmatprep.mubr.msk.f32.mxu1 %vm22535_vm1, %v30308_v15 }
 0x11a   :  { %19381 = vmatpush3.msra.mxu1 %v23386_v7  ;;  %v23557_v28 = vpop.f32.mrf.mxu0  ;;  %19131 = vmatmul.mubr.msk.f32.gmra.mxu0 %vm293_vm0, %v186_v43 }
 0x11b   :  { %19358 = vmatmul.mubr.msk.f32.gmra.mxu1 %vm293_vm0, %v23433_v31  ;;  %19133 = vmatprep.mubr.msk.f32.mxu0 %vm293_vm0, %v187_v44 }
 0x11c   :  { %v23565_v8 = vpop.f32.mrf.mxu0  ;;  %19360 = vmatprep.mubr.msk.f32.mxu1 %vm22535_vm1, %v30308_v15  ;;  %19403 = vmatprep.subr.mxu1 %v30308_v15 }
 0x11e   :  { %v23572_v7 = vpop.f32.mrf.mxu0  ;;  %19134 = vmatmul.mubr.msk.f32.gmra.mxu0 %vm293_vm0, %v188_v45  ;;  %v30314_v45 = vld [vmem:[#allocation7_spill] sm:$0xff] }
 0x11f   :  { %19361 = vmatmul.mubr.msk.f32.gmra.mxu1 %vm293_vm0, %v23452_v33  ;;  %19136 = vmatprep.mubr.msk.f32.mxu0 %vm293_vm0, %v189_v46  ;;  %v211_v46 = vmul.f32 %v30314_v45, %v30314_v45  ;;  %v30326_v45 = vld [vmem:[#allocation19_spill] sm:$0xff] }
 0x120   :  { %v23580_v29 = vpop.f32.mrf.mxu0  ;;  %19363 = vmatprep.mubr.msk.f32.mxu1 %vm22535_vm1, %v30308_v15 }
 0x122   :  { %v23586_v16 = vpop.f32.mrf.mxu0  ;;  %19137 = vmatmul.mubr.msk.f32.gmra.mxu0 %vm293_vm0, %v190_v47  ;;  %v30315_v47 = vld [vmem:[#allocation8_spill] sm:$0xff] }
 0x123   :  { %19364 = vmatmul.mubr.msk.f32.gmra.mxu1 %vm293_vm0, %v23472_v35  ;;  %19139 = vmatprep.mubr.msk.f32.mxu0 %vm293_vm0, %v191_v48 }
 0x124   :  { %v23594_v17 = vpop.f32.mrf.mxu0  ;;  %19382 = vmatprep.mubr.msk.f32.mxu1 %vm22535_vm1, %v30308_v15 }
 0x126   :  { %v23600_v30 = vpop.f32.mrf.mxu0  ;;  %19140 = vmatmul.mubr.msk.f32.gmra.mxu0 %vm293_vm0, %v192_v50 }
 0x127   :  { %19383 = vmatmul.mubr.msk.f32.vlgmr.msra.gmra.mxu1 %vm293_vm0, %v23356_v21  ;;  %19142 = vmatprep.mubr.msk.f32.mxu0 %vm293_vm0, %v193_v51 }
 0x128   :  { %19404 = vmatpush3.msra.mxu1 %v23505_v23  ;;  %v23607_v53 = vpop.f32.mrf.mxu0  ;;  %19385 = vmatprep.mubr.msk.f32.mxu1 %vm22535_vm1, %v30308_v15 }
 0x129   :  { %19405 = vmatprep.subr.mxu1 %v30308_v15 }
 0x12a   :  { %19406 = vmatpush3.msra.mxu1 %v23511_v25  ;;  %v23617_v11 = vpop.f32.mrf.mxu0  ;;  %19143 = vmatmul.mubr.msk.f32.gmra.mxu0 %vm293_vm0, %v194_v52  ;;  %v30312_v25 = vld [vmem:[#allocation5_spill] sm:$0xff] }
 0x12b   :  { %19407 = vmatprep.subr.mxu1 %v30308_v15  ;;  %19386 = vmatmul.mubr.msk.f32.gmra.mxu1 %vm293_vm0, %v23373_v24  ;;  %v209_v40 = vmul.f32 %v30312_v25, %v30312_v25  ;;  %v30325_v25 = vld [vmem:[#allocation18_spill] sm:$0xff] }
 0x12c   :  { %19408 = vmatpush3.msra.mxu1 %v23490_v5  ;;  %v23624_v32 = vpop.f32.mrf.mxu0  ;;  %19145 = vmatprep.mubr.msk.f32.mxu0 %vm293_vm0, %v195_v10 }
 0x12d   :  { %19409 = vmatprep.subr.mxu1 %v30308_v15  ;;  %19388 = vmatprep.mubr.msk.f32.mxu1 %vm22535_vm1, %v30308_v15 }
 0x12e   :  { %19410 = vmatpush3.msra.mxu1 %v23496_v4  ;;  %v23635_v9 = vpop.f32.mrf.mxu0  ;;  %19146 = vmatmul.mubr.msk.f32.gmra.mxu0 %vm293_vm0, %v196_v54  ;;  %v30311_v4 = vld [vmem:[#allocation4_spill] sm:$0xff] }
 0x12f   :  { %19411 = vmatprep.subr.mxu1 %v30308_v15  ;;  %19389 = vmatmul.mubr.msk.f32.gmra.mxu1 %vm293_vm0, %v23392_v26  ;;  %v208_v38 = vmul.f32 %v30311_v4, %v30311_v4 }
 0x130   :  { %19412 = vmatpush3.msra.mxu1 %v23476_v22  ;;  %v23642_v57 = vpop.f32.mrf.mxu0  ;;  %19148 = vmatprep.mubr.msk.f32.mxu0 %vm293_vm0, %v197_v55 }
 0x131   :  { %19413 = vmatprep.subr.mxu1 %v30308_v15  ;;  %19391 = vmatprep.mubr.msk.f32.mxu1 %vm22535_vm1, %v30308_v15 }
 0x132   :  { %19414 = vmatpush3.msra.mxu1 %v23484_v2  ;;  %v23653_v18 = vpop.f32.mrf.mxu0  ;;  %19149 = vmatmul.mubr.msk.f32.gmra.mxu0 %vm293_vm0, %v198_v56 }
 0x133   :  { %19415 = vmatprep.subr.mxu1 %v30308_v15  ;;  %19392 = vmatmul.mubr.msk.f32.gmra.mxu1 %vm293_vm0, %v23413_v3 }
 0x134   :  { %19416 = vmatpush3.msra.mxu1 %v23457_v20  ;;  %v23662_v34 = vpop.f32.mrf.mxu0  ;;  %19151 = vmatprep.mubr.msk.f32.mxu0 %vm293_vm0, %v199_v58 }
 0x135   :  { %19417 = vmatprep.subr.mxu1 %v30308_v15  ;;  %19394 = vmatprep.mubr.msk.f32.mxu1 %vm22535_vm1, %v30308_v15 }
 0x136   :  { %19418 = vmatpush3.msra.mxu1 %v23465_v6  ;;  %v23671_v12 = vpop.f32.mrf.mxu0  ;;  %19152 = vmatmul.mubr.msk.f32.gmra.mxu0 %vm293_vm0, %v200_v19 }
 0x137   :  { %19395 = vmatmul.mubr.msk.f32.gmra.mxu1 %vm293_vm0, %v23433_v31  ;;  %19154 = vmatprep.mubr.msk.f32.mxu0 %vm293_vm0, %v201_v59 }
 0x138   :  { %v23679_v20 = vpop.f32.mrf.mxu0  ;;  %19397 = vmatprep.mubr.msk.f32.mxu1 %vm22535_vm1, %v30308_v15  ;;  %19440 = vmatprep.subr.mxu1 %v30308_v15 }
 0x13a   :  { %v23686_v6 = vpop.f32.mrf.mxu0  ;;  %19155 = vmatmul.mubr.msk.f32.gmra.mxu0 %vm293_vm0, %v202_v60 }
 0x13b   :  { %19398 = vmatmul.mubr.msk.f32.gmra.mxu1 %vm293_vm0, %v23452_v33  ;;  %19157 = vmatprep.mubr.msk.f32.mxu0 %vm293_vm0, %v203_v61  ;;  %v30322_v61 = vld [vmem:[#allocation15_spill] sm:$0xff] }
 0x13c   :  { %v23694_v22 = vpop.f32.mrf.mxu0  ;;  %19400 = vmatprep.mubr.msk.f32.mxu1 %vm22535_vm1, %v30308_v15 }
 0x13e   :  { %v23700_v2 = vpop.f32.mrf.mxu0  ;;  %19158 = vmatmul.mubr.msk.f32.gmra.mxu0 %vm293_vm0, %v204_v62  ;;  %v219_v62 = vmul.f32 %v30322_v61, %v30322_v61 }
 0x13f   :  { %19401 = vmatmul.mubr.msk.f32.gmra.mxu1 %vm293_vm0, %v23472_v35  ;;  %19160 = vmatprep.mubr.msk.f32.mxu0 %vm293_vm0, %v205_v63 }
 0x140   :  { %v23708_v5 = vpop.f32.mrf.mxu0  ;;  %19419 = vmatprep.mubr.msk.f32.mxu1 %vm22535_vm1, %v30308_v15 }
 0x142   :  { %v23714_v39 = vpop.f32.mrf.mxu0  ;;  %19161 = vmatmul.mubr.msk.f32.gmra.mxu0 %vm293_vm0, %v206_v0  ;;  %v220_v0 = vmul.f32 %v30323_v36, %v30323_v36 }
 0x143   :  { %19420 = vmatmul.mubr.msk.f32.vlgmr.msra.gmra.mxu1 %vm293_vm0, %v23356_v21  ;;  %19163 = vmatprep.mubr.msk.f32.mxu0 %vm293_vm0, %v207_v1  ;;  %v30324_v1 = vld [vmem:[#allocation17_spill] sm:$0xff] }
 0x144   :  { %19441 = vmatpush3.msra.mxu1 %v23572_v7  ;;  %v23721_v23 = vpop.f32.mrf.mxu0  ;;  %19422 = vmatprep.mubr.msk.f32.mxu1 %vm22535_vm1, %v30308_v15  ;;  %v212_v7 = vmul.f32 %v30315_v47, %v30315_v47  ;;  %v221_v4 = vmul.f32 %v30324_v1, %v30324_v1  ;;  %v30327_v47 = vld [vmem:[#allocation20_spill] sm:$0xff] }
 0x145   :  { %19442 = vmatprep.subr.mxu1 %v30308_v15 }
 0x146   :  { %19443 = vmatpush3.msra.mxu1 %v23580_v29  ;;  %v23731_v43 = vpop.f32.mrf.mxu0  ;;  %19164 = vmatmul.mubr.msk.f32.gmra.mxu0 %vm293_vm0, %v208_v38  ;;  %v30316_v29 = vld [vmem:[#allocation9_spill] sm:$0xff] }
 0x147   :  { %19444 = vmatprep.subr.mxu1 %v30308_v15  ;;  %19423 = vmatmul.mubr.msk.f32.gmra.mxu1 %vm293_vm0, %v23373_v24  ;;  %v213_v50 = vmul.f32 %v30316_v29, %v30316_v29 }
 0x148   :  { %19445 = vmatpush3.msra.mxu1 %v23557_v28  ;;  %v23738_v44 = vpop.f32.mrf.mxu0  ;;  %19166 = vmatprep.mubr.msk.f32.mxu0 %vm293_vm0, %v209_v40  ;;  %v222_v40 = vmul.f32 %v30325_v25, %v30325_v25 }
 0x149   :  { %19446 = vmatprep.subr.mxu1 %v30308_v15  ;;  %19425 = vmatprep.mubr.msk.f32.mxu1 %vm22535_vm1, %v30308_v15 }
 0x14a   :  { %19447 = vmatpush3.msra.mxu1 %v23565_v8  ;;  %v23749_v48 = vpop.f32.mrf.mxu0  ;;  %19167 = vmatmul.mubr.msk.f32.gmra.mxu0 %vm293_vm0, %v210_v27  ;;  %v30317_v8 = vld [vmem:[#allocation10_spill] sm:$0xff] }
 0x14b   :  { %19448 = vmatprep.subr.mxu1 %v30308_v15  ;;  %19426 = vmatmul.mubr.msk.f32.gmra.mxu1 %vm293_vm0, %v23392_v26  ;;  %v214_v51 = vmul.f32 %v30317_v8, %v30317_v8 }
 0x14c   :  { %19449 = vmatpush3.msra.mxu1 %v23539_v13  ;;  %v23756_v28 = vpop.f32.mrf.mxu0  ;;  %19169 = vmatprep.mubr.msk.f32.mxu0 %vm293_vm0, %v211_v46  ;;  %v30318_v13 = vld [vmem:[#allocation11_spill] sm:$0xff]  ;;  %v223_v46 = vmul.f32 %v30326_v45, %v30326_v45  ;;  %v30337_v45 = vld [vmem:[#allocation30_spill] sm:$0xff] }
 0x14d   :  { %19450 = vmatprep.subr.mxu1 %v30308_v15  ;;  %19428 = vmatprep.mubr.msk.f32.mxu1 %vm22535_vm1, %v30308_v15  ;;  %v215_v10 = vmul.f32 %v30318_v13, %v30318_v13 }
 0x14e   :  { %19451 = vmatpush3.msra.mxu1 %v23548_v14  ;;  %v23767_v52 = vpop.f32.mrf.mxu0  ;;  %19170 = vmatmul.mubr.msk.f32.gmra.mxu0 %vm293_vm0, %v212_v7  ;;  %v30319_v14 = vld [vmem:[#allocation12_spill] sm:$0xff]  ;;  %v224_v7 = vmul.f32 %v30327_v47, %v30327_v47 }
 0x14f   :  { %19452 = vmatprep.subr.mxu1 %v30308_v15  ;;  %19429 = vmatmul.mubr.msk.f32.gmra.mxu1 %vm293_vm0, %v23413_v3  ;;  %v216_v55 = vmul.f32 %v30319_v14, %v30319_v14 }
 0x150   :  { %19453 = vmatpush3.msra.mxu1 %v23521_v49  ;;  %v23776_v54 = vpop.f32.mrf.mxu0  ;;  %19172 = vmatprep.mubr.msk.f32.mxu0 %vm293_vm0, %v213_v50  ;;  %v30320_v49 = vld [vmem:[#allocation13_spill] sm:$0xff] }
 0x151   :  { %19454 = vmatprep.subr.mxu1 %v30308_v15  ;;  %19431 = vmatprep.mubr.msk.f32.mxu1 %vm22535_vm1, %v30308_v15  ;;  %v217_v58 = vmul.f32 %v30320_v49, %v30320_v49  ;;  %v30328_v50 = vld [vmem:[#allocation21_spill] sm:$0xff] }
 0x152   :  { %19455 = vmatpush3.msra.mxu1 %v23528_v42  ;;  %v23785_v56 = vpop.f32.mrf.mxu0  ;;  %19173 = vmatmul.mubr.msk.f32.gmra.mxu0 %vm293_vm0, %v214_v51  ;;  %v30321_v42 = vld [vmem:[#allocation14_spill] sm:$0xff]  ;;  %v225_v8 = vmul.f32 %v30328_v50, %v30328_v50 }
 0x153   :  { %19432 = vmatmul.mubr.msk.f32.gmra.mxu1 %vm293_vm0, %v23433_v31  ;;  %19175 = vmatprep.mubr.msk.f32.mxu0 %vm293_vm0, %v215_v10  ;;  %v218_v59 = vmul.f32 %v30321_v42, %v30321_v42  ;;  %v30330_v10 = vld [vmem:[#allocation23_spill] sm:$0xff] }
 0x154   :  { %v23793_v19 = vpop.f32.mrf.mxu0  ;;  %19434 = vmatprep.mubr.msk.f32.mxu1 %vm22535_vm1, %v30308_v15  ;;  %19477 = vmatprep.subr.mxu1 %v30308_v15  ;;  %v227_v14 = vmul.f32 %v30330_v10, %v30330_v10 }
 0x156   :  { %v23800_v60 = vpop.f32.mrf.mxu0  ;;  %19176 = vmatmul.mubr.msk.f32.gmra.mxu0 %vm293_vm0, %v216_v55 }
 0x157   :  { %19435 = vmatmul.mubr.msk.f32.gmra.mxu1 %vm293_vm0, %v23452_v33  ;;  %19178 = vmatprep.mubr.msk.f32.mxu0 %vm293_vm0, %v217_v58 }
 0x158   :  { %v23808_v63 = vpop.f32.mrf.mxu0  ;;  %19437 = vmatprep.mubr.msk.f32.mxu1 %vm22535_vm1, %v30308_v15 }
 0x15a   :  { %v23814_v37 = vpop.f32.mrf.mxu0  ;;  %19179 = vmatmul.mubr.msk.f32.gmra.mxu0 %vm293_vm0, %v218_v59 }
 0x15b   :  { %19438 = vmatmul.mubr.msk.f32.gmra.mxu1 %vm293_vm0, %v23472_v35  ;;  %19181 = vmatprep.mubr.msk.f32.mxu0 %vm293_vm0, %v219_v62 }
 0x15c   :  { %v23822_v38 = vpop.f32.mrf.mxu0  ;;  %19456 = vmatprep.mubr.msk.f32.mxu1 %vm22535_vm1, %v30308_v15 }
 0x15e   :  { %v23828_v41 = vpop.f32.mrf.mxu0  ;;  %19182 = vmatmul.mubr.msk.f32.gmra.mxu0 %vm293_vm0, %v220_v0 }
 0x15f   :  { %19457 = vmatmul.mubr.msk.f32.vlgmr.msra.gmra.mxu1 %vm293_vm0, %v23356_v21  ;;  %19184 = vmatprep.mubr.msk.f32.mxu0 %vm293_vm0, %v221_v4  ;;  %v30336_v4 = vld [vmem:[#allocation29_spill] sm:$0xff] }
 0x160   :  { %19478 = vmatpush3.msra.mxu1 %v23635_v9  ;;  %v23835_v27 = vpop.f32.mrf.mxu0  ;;  %19459 = vmatprep.mubr.msk.f32.mxu1 %vm22535_vm1, %v30308_v15  ;;  %v233_v25 = vmul.f32 %v30336_v4, %v30336_v4 }
 0x161   :  { %19479 = vmatprep.subr.mxu1 %v30308_v15 }
 0x162   :  { %19480 = vmatpush3.msra.mxu1 %v23642_v57  ;;  %v23845_v29 = vpop.f32.mrf.mxu0  ;;  %19185 = vmatmul.mubr.msk.f32.gmra.mxu0 %vm293_vm0, %v222_v40  ;;  %v30329_v57 = vld [vmem:[#allocation22_spill] sm:$0xff] }
 0x163   :  { %19481 = vmatprep.subr.mxu1 %v30308_v15  ;;  %19460 = vmatmul.mubr.msk.f32.gmra.mxu1 %vm293_vm0, %v23373_v24  ;;  %v226_v51 = vmul.f32 %v30329_v57, %v30329_v57  ;;  %v30339_v57 = vld [vmem:[#allocation32_spill] sm:$0xff] }
 0x164   :  { %19482 = vmatpush3.msra.mxu1 %v23617_v11  ;;  %v23852_v9 = vpop.f32.mrf.mxu0  ;;  %19187 = vmatprep.mubr.msk.f32.mxu0 %vm293_vm0, %v223_v46  ;;  %v234_v46 = vmul.f32 %v30337_v45, %v30337_v45 }
 0x165   :  { %19483 = vmatprep.subr.mxu1 %v30308_v15  ;;  %19462 = vmatprep.mubr.msk.f32.mxu1 %vm22535_vm1, %v30308_v15 }
 0x166   :  { %19484 = vmatpush3.msra.mxu1 %v23624_v32  ;;  %v23863_v13 = vpop.f32.mrf.mxu0  ;;  %19188 = vmatmul.mubr.msk.f32.gmra.mxu0 %vm293_vm0, %v224_v7  ;;  %v30331_v32 = vld [vmem:[#allocation24_spill] sm:$0xff]  ;;  %v30338_v7 = vld [vmem:[#allocation31_spill] sm:$0xff] }
 0x167   :  { %19485 = vmatprep.subr.mxu1 %v30308_v15  ;;  %19463 = vmatmul.mubr.msk.f32.gmra.mxu1 %vm293_vm0, %v23392_v26  ;;  %v228_v55 = vmul.f32 %v30331_v32, %v30331_v32  ;;  %v235_v50 = vmul.f32 %v30338_v7, %v30338_v7  ;;  %v30340_v32 = vld [vmem:[#allocation33_spill] sm:$0xff] }
 0x168   :  { %19486 = vmatpush3.msra.mxu1 %v23600_v30  ;;  %v23870_v11 = vpop.f32.mrf.mxu0  ;;  %19190 = vmatprep.mubr.msk.f32.mxu0 %vm293_vm0, %v225_v8  ;;  %v30332_v30 = vld [vmem:[#allocation25_spill] sm:$0xff] }
 0x169   :  { %19487 = vmatprep.subr.mxu1 %v30308_v15  ;;  %19465 = vmatprep.mubr.msk.f32.mxu1 %vm22535_vm1, %v30308_v15  ;;  %v229_v58 = vmul.f32 %v30332_v30, %v30332_v30  ;;  %v30341_v30 = vld [vmem:[#allocation34_spill] sm:$0xff] }
 0x16a   :  { %19488 = vmatpush3.msra.mxu1 %v23607_v53  ;;  %v23881_v49 = vpop.f32.mrf.mxu0  ;;  %19191 = vmatmul.mubr.msk.f32.gmra.mxu0 %vm293_vm0, %v226_v51  ;;  %v30333_v53 = vld [vmem:[#allocation26_spill] sm:$0xff]  ;;  %v236_v51 = vmul.f32 %v30339_v57, %v30339_v57 }
 0x16b   :  { %19489 = vmatprep.subr.mxu1 %v30308_v15  ;;  %19466 = vmatmul.mubr.msk.f32.gmra.mxu1 %vm293_vm0, %v23413_v3  ;;  %v230_v59 = vmul.f32 %v30333_v53, %v30333_v53 }
 0x16c   :  { %19490 = vmatpush3.msra.mxu1 %v23586_v16  ;;  %v23890_v42 = vpop.f32.mrf.mxu0  ;;  %19193 = vmatprep.mubr.msk.f32.mxu0 %vm293_vm0, %v227_v14  ;;  %v30334_v16 = vld [vmem:[#allocation27_spill] sm:$0xff] }
 0x16d   :  { %19491 = vmatprep.subr.mxu1 %v30308_v15  ;;  %19468 = vmatprep.mubr.msk.f32.mxu1 %vm22535_vm1, %v30308_v15  ;;  %v231_v62 = vmul.f32 %v30334_v16, %v30334_v16 }
 0x16e   :  { %19492 = vmatpush3.msra.mxu1 %v23594_v17  ;;  %v23899_v61 = vpop.f32.mrf.mxu0  ;;  %19194 = vmatmul.mubr.msk.f32.gmra.mxu0 %vm293_vm0, %v228_v55  ;;  %v30335_v17 = vld [vmem:[#allocation28_spill] sm:$0xff]  ;;  %v237_v55 = vmul.f32 %v30340_v32, %v30340_v32 }
 0x16f   :  { %19469 = vmatmul.mubr.msk.f32.gmra.mxu1 %vm293_vm0, %v23433_v31  ;;  %19196 = vmatprep.mubr.msk.f32.mxu0 %vm293_vm0, %v229_v58  ;;  %v232_v0 = vmul.f32 %v30335_v17, %v30335_v17  ;;  %v238_v58 = vmul.f32 %v30341_v30, %v30341_v30  ;;  %v22309_v30 = vld [vmem:[%s30082_s0 + $0x188] sm:$0xff] }
 0x170   :  { %v23907_v36 = vpop.f32.mrf.mxu0  ;;  %19471 = vmatprep.mubr.msk.f32.mxu1 %vm22535_vm1, %v30308_v15  ;;  %19514 = vmatprep.subr.mxu1 %v30308_v15 }
 0x172   :  { %v23914_v1 = vpop.f32.mrf.mxu0  ;;  %19197 = vmatmul.mubr.msk.f32.gmra.mxu0 %vm293_vm0, %v230_v59  ;;  %v30342_v59 = vld [vmem:[#allocation35_spill] sm:$0xff] }
 0x173   :  { %19472 = vmatmul.mubr.msk.f32.gmra.mxu1 %vm293_vm0, %v23452_v33  ;;  %19199 = vmatprep.mubr.msk.f32.mxu0 %vm293_vm0, %v231_v62  ;;  %v239_v16 = vmul.f32 %v30342_v59, %v30342_v59 }
 0x174   :  { %v23922_v40 = vpop.f32.mrf.mxu0  ;;  %19474 = vmatprep.mubr.msk.f32.mxu1 %vm22535_vm1, %v30308_v15 }
 0x176   :  { %v23928_v47 = vpop.f32.mrf.mxu0  ;;  %19200 = vmatmul.mubr.msk.f32.gmra.mxu0 %vm293_vm0, %v232_v0  ;;  %v30344_v0 = vld [vmem:[#allocation37_spill] sm:$0xff] }
 0x177   :  { %19475 = vmatmul.mubr.msk.f32.gmra.mxu1 %vm293_vm0, %v23472_v35  ;;  %19202 = vmatprep.mubr.msk.f32.mxu0 %vm293_vm0, %v233_v25  ;;  %v241_v4 = vmul.f32 %v30344_v0, %v30344_v0 }
 0x178   :  { %v23936_v8 = vpop.f32.mrf.mxu0  ;;  %19493 = vmatprep.mubr.msk.f32.mxu1 %vm22535_vm1, %v30308_v15 }
 0x17a   :  { %v23942_v10 = vpop.f32.mrf.mxu0  ;;  %19203 = vmatmul.mubr.msk.f32.gmra.mxu0 %vm293_vm0, %v234_v46 }
 0x17b   :  { %19494 = vmatmul.mubr.msk.f32.vlgmr.msra.gmra.mxu1 %vm293_vm0, %v23356_v21  ;;  %19205 = vmatprep.mubr.msk.f32.mxu0 %vm293_vm0, %v235_v50 }
 0x17c   :  { %19515 = vmatpush3.msra.mxu1 %v23700_v2  ;;  %v23949_v14 = vpop.f32.mrf.mxu0  ;;  %19496 = vmatprep.mubr.msk.f32.mxu1 %vm22535_vm1, %v30308_v15 }
 0x17d   :  { %19516 = vmatprep.subr.mxu1 %v30308_v15 }
 0x17e   :  { %19517 = vmatpush3.msra.mxu1 %v23708_v5  ;;  %v23959_v53 = vpop.f32.mrf.mxu0  ;;  %19206 = vmatmul.mubr.msk.f32.gmra.mxu0 %vm293_vm0, %v236_v51  ;;  %v30343_v5 = vld [vmem:[#allocation36_spill] sm:$0xff]  ;;  %v22307_v51 = vld [vmem:[%s30082_s0 + $0x180] sm:$0xff] }
 0x17f   :  { %19518 = vmatprep.subr.mxu1 %v30308_v15  ;;  %19497 = vmatmul.mubr.msk.f32.gmra.mxu1 %vm293_vm0, %v23373_v24  ;;  %v240_v62 = vmul.f32 %v30343_v5, %v30343_v5  ;;  %v22311_v5 = vld [vmem:[%s30082_s0 + $0x190] sm:$0xff] }
 0x180   :  { %19519 = vmatpush3.msra.mxu1 %v23686_v6  ;;  %v23966_v2 = vpop.f32.mrf.mxu0  ;;  %19208 = vmatprep.mubr.msk.f32.mxu0 %vm293_vm0, %v237_v55 }
 0x181   :  { %19520 = vmatprep.subr.mxu1 %v30308_v15  ;;  %19499 = vmatprep.mubr.msk.f32.mxu1 %vm22535_vm1, %v30308_v15 }
 0x182   :  { %19521 = vmatpush3.msra.mxu1 %v23694_v22  ;;  %v23977_v17 = vpop.f32.mrf.mxu0  ;;  %19209 = vmatmul.mubr.msk.f32.gmra.mxu0 %vm293_vm0, %v238_v58  ;;  %v30345_v22 = vld [vmem:[#allocation38_spill] sm:$0xff] }
 0x183   :  { %19522 = vmatprep.subr.mxu1 %v30308_v15  ;;  %19500 = vmatmul.mubr.msk.f32.gmra.mxu1 %vm293_vm0, %v23392_v26  ;;  %v242_v25 = vmul.f32 %v30345_v22, %v30345_v22  ;;  %v22313_v22 = vld [vmem:[%s30082_s0 + $0x198] sm:$0xff] }
 0x184   :  { %19523 = vmatpush3.msra.mxu1 %v23671_v12  ;;  %v23984_v6 = vpop.f32.mrf.mxu0  ;;  %19211 = vmatprep.mubr.msk.f32.mxu0 %vm293_vm0, %v239_v16  ;;  %v30346_v12 = vld [vmem:[#allocation39_spill] sm:$0xff]  ;;  %v22310_v16 = vld [vmem:[%s30082_s0 + $0x10] sm:$0xff] }
 0x185   :  { %19524 = vmatprep.subr.mxu1 %v30308_v15  ;;  %19502 = vmatprep.mubr.msk.f32.mxu1 %vm22535_vm1, %v30308_v15  ;;  %v243_v46 = vmul.f32 %v30346_v12, %v30346_v12 }
 0x186   :  { %19525 = vmatpush3.msra.mxu1 %v23679_v20  ;;  %v23995_v45 = vpop.f32.mrf.mxu0  ;;  %19212 = vmatmul.mubr.msk.f32.gmra.mxu0 %vm293_vm0, %v240_v62  ;;  %v30347_v20 = vld [vmem:[#allocation40_spill] sm:$0xff]  ;;  %v247_v62 = vmul.f32 %v22311_v5, %v22310_v16 }
 0x187   :  { %19526 = vmatprep.subr.mxu1 %v30308_v15  ;;  %19503 = vmatmul.mubr.msk.f32.gmra.mxu1 %vm293_vm0, %v23413_v3  ;;  %v244_v50 = vmul.f32 %v30347_v20, %v30347_v20  ;;  %v22315_v20 = vld [vmem:[%s30082_s0 + $0x1a0] sm:$0xff]  ;;  %v22318_v16 = vld [vmem:[%s30082_s0 + $0x30] sm:$0xff] }
 0x188   :  { %19527 = vmatpush3.msra.mxu1 %v23653_v18  ;;  %v24004_v7 = vpop.f32.mrf.mxu0  ;;  %19214 = vmatprep.mubr.msk.f32.mxu0 %vm293_vm0, %v241_v4  ;;  %v22306_v18 = vld [vmem:[%s30082_s0] sm:$0xff]  ;;  %v22312_v4 = vld [vmem:[%s30082_s0 + $0x18] sm:$0xff]  ;;  %v22319_v5 = vld [vmem:[%s30082_s0 + $0x1b0] sm:$0xff] }
 0x189   :  { %19528 = vmatprep.subr.mxu1 %v30308_v15  ;;  %19505 = vmatprep.mubr.msk.f32.mxu1 %vm22535_vm1, %v30308_v15  ;;  %v245_v32 = vmul.f32 %v22307_v51, %v22306_v18  ;;  %v22316_v51 = vld [vmem:[%s30082_s0 + $0x28] sm:$0xff] }
 0x18a   :  { %19529 = vmatpush3.msra.mxu1 %v23662_v34  ;;  %v24013_v57 = vpop.f32.mrf.mxu0  ;;  %19215 = vmatmul.mubr.msk.f32.gmra.mxu0 %vm293_vm0, %v242_v25  ;;  %v22308_v34 = vld [vmem:[%s30082_s0 + $0x8] sm:$0xff]  ;;  %v248_v25 = vmul.f32 %v22313_v22, %v22312_v4 }
 0x18b   :  { %19506 = vmatmul.mubr.msk.f32.gmra.mxu1 %vm293_vm0, %v23433_v31  ;;  %19217 = vmatprep.mubr.msk.f32.mxu0 %vm293_vm0, %v243_v46  ;;  %v246_v58 = vmul.f32 %v22309_v30, %v22308_v34  ;;  %v22314_v46 = vld [vmem:[%s30082_s0 + $0x20] sm:$0xff] }
 0x18c   :  { %v24025_v55 = vpop.f32.mrf.mxu0  ;;  %19508 = vmatprep.mubr.msk.f32.mxu1 %vm22535_vm1, %v30308_v15  ;;  %19551 = vmatprep.subr.mxu1 %v30308_v15 }
 0x18e   :  { %v24036_v59 = vpop.f32.mrf.mxu0  ;;  %19218 = vmatmul.mubr.msk.f32.gmra.mxu0 %vm293_vm0, %v244_v50  ;;  %v249_v50 = vmul.f32 %v22315_v20, %v22314_v46  ;;  %v22322_v46 = vld [vmem:[%s30082_s0 + $0x40] sm:$0xff] }
 0x18f   :  { %19509 = vmatmul.mubr.msk.f32.gmra.mxu1 %vm293_vm0, %v23452_v33  ;;  %19220 = vmatprep.mubr.msk.f32.mxu0 %vm293_vm0, %v245_v32  ;;  %v22317_v32 = vld [vmem:[%s30082_s0 + $0x1a8] sm:$0xff] }
 0x190   :  { %v24048_v0 = vpop.f32.mrf.mxu0  ;;  %19511 = vmatprep.mubr.msk.f32.mxu1 %vm22535_vm1, %v30308_v15  ;;  %v250_v34 = vmul.f32 %v22317_v32, %v22316_v51 }
 0x192   :  { %v24058_v12 = vpop.f32.mrf.mxu0  ;;  %19221 = vmatmul.mubr.msk.f32.gmra.mxu0 %vm293_vm0, %v246_v58 }
 0x193   :  { %19512 = vmatmul.mubr.msk.f32.gmra.mxu1 %vm293_vm0, %v23472_v35  ;;  %19223 = vmatprep.mubr.msk.f32.mxu0 %vm293_vm0, %v247_v62  ;;  %v251_v62 = vmul.f32 %v22319_v5, %v22318_v16 }
 0x194   :  { %v24070_v18 = vpop.f32.mrf.mxu0  ;;  %19530 = vmatprep.mubr.msk.f32.mxu1 %vm22535_vm1, %v30308_v15 }
 0x196   :  { %v24080_v30 = vpop.f32.mrf.mxu0  ;;  %19224 = vmatmul.mubr.msk.f32.gmra.mxu0 %vm293_vm0, %v248_v25 }
 0x197   :  { %19531 = vmatmul.mubr.msk.f32.vlgmr.msra.gmra.mxu1 %vm293_vm0, %v23356_v21  ;;  %19226 = vmatprep.mubr.msk.f32.mxu0 %vm293_vm0, %v249_v50  ;;  %v22320_v21 = vld [vmem:[%s30082_s0 + $0x38] sm:$0xff] }
 0x198   :  { %19552 = vmatpush3.msra.mxu1 %v23767_v52  ;;  %v24087_v58 = vpop.f32.mrf.mxu0  ;;  %19533 = vmatprep.mubr.msk.f32.mxu1 %vm22535_vm1, %v30308_v15  ;;  %v22321_v52 = vld [vmem:[%s30082_s0 + $0x1b8] sm:$0xff] }
 0x199   :  { %19553 = vmatprep.subr.mxu1 %v30308_v15  ;;  %v252_v4 = vmul.f32 %v22321_v52, %v22320_v21  ;;  %v22330_v21 = vld [vmem:[%s30082_s0 + $0x60] sm:$0xff] }
 0x19a   :  { %19554 = vmatpush3.msra.mxu1 %v23776_v54  ;;  %v24105_v22 = vpop.f32.mrf.mxu0  ;;  %19227 = vmatmul.mubr.msk.f32.gmra.mxu0 %vm293_vm0, %v250_v34  ;;  %v22323_v54 = vld [vmem:[%s30082_s0 + $0x1c0] sm:$0xff]  ;;  %v22326_v34 = vld [vmem:[%s30082_s0 + $0x50] sm:$0xff] }
 0x19b   :  { %19555 = vmatprep.subr.mxu1 %v30308_v15  ;;  %19534 = vmatmul.mubr.msk.f32.gmra.mxu1 %vm293_vm0, %v23373_v24  ;;  %v253_v20 = vmul.f32 %v22323_v54, %v22322_v46  ;;  %v22324_v24 = vld [vmem:[%s30082_s0 + $0x48] sm:$0xff]  ;;  %v22331_v52 = vld [vmem:[%s30082_s0 + $0x1e0] sm:$0xff] }
 0x19c   :  { %19556 = vmatpush3.msra.mxu1 %v23749_v48  ;;  %v24112_v25 = vpop.f32.mrf.mxu0  ;;  %19229 = vmatprep.mubr.msk.f32.mxu0 %vm293_vm0, %v251_v62  ;;  %v22325_v48 = vld [vmem:[%s30082_s0 + $0x1c8] sm:$0xff] }
 0x19d   :  { %19557 = vmatprep.subr.mxu1 %v30308_v15  ;;  %19536 = vmatprep.mubr.msk.f32.mxu1 %vm22535_vm1, %v30308_v15  ;;  %v254_v50 = vmul.f32 %v22325_v48, %v22324_v24  ;;  %v22333_v46 = vld [vmem:[%s30082_s0 + $0x1e8] sm:$0xff]  ;;  %v22335_v24 = vld [vmem:[%s30082_s0 + $0x1f0] sm:$0xff] }
 0x19e   :  { %19558 = vmatpush3.msra.mxu1 %v23756_v28  ;;  %v24131_v51 = vpop.f32.mrf.mxu0  ;;  %19230 = vmatmul.mubr.msk.f32.gmra.mxu0 %vm293_vm0, %v252_v4  ;;  %v22327_v28 = vld [vmem:[%s30082_s0 + $0x1d0] sm:$0xff]  ;;  %v257_v4 = vmul.f32 %v22331_v52, %v22330_v21  ;;  %v22341_v21 = vld [vmem:[%s30082_s0 + $0x208] sm:$0xff] }
 0x19f   :  { %19559 = vmatprep.subr.mxu1 %v30308_v15  ;;  %19537 = vmatmul.mubr.msk.f32.gmra.mxu1 %vm293_vm0, %v23392_v26  ;;  %v255_v16 = vmul.f32 %v22327_v28, %v22326_v34  ;;  %v22328_v26 = vld [vmem:[%s30082_s0 + $0x58] sm:$0xff] }
 0x1a0   :  { %19560 = vmatpush3.msra.mxu1 %v23731_v43  ;;  %v24138_v32 = vpop.f32.mrf.mxu0  ;;  %19232 = vmatprep.mubr.msk.f32.mxu0 %vm293_vm0, %v253_v20  ;;  %v22329_v43 = vld [vmem:[%s30082_s0 + $0x1d8] sm:$0xff]  ;;  %v22334_v20 = vld [vmem:[%s30082_s0 + $0x70] sm:$0xff] }
 0x1a1   :  { %19561 = vmatprep.subr.mxu1 %v30308_v15  ;;  %19539 = vmatprep.mubr.msk.f32.mxu1 %vm22535_vm1, %v30308_v15  ;;  %v256_v5 = vmul.f32 %v22329_v43, %v22328_v26  ;;  %v259_v48 = vmul.f32 %v22335_v24, %v22334_v20  ;;  %v22339_v26 = vld [vmem:[%s30082_s0 + $0x200] sm:$0xff] }
 0x1a2   :  { %19562 = vmatpush3.msra.mxu1 %v23738_v44  ;;  %v24157_v62 = vpop.f32.mrf.mxu0  ;;  %19233 = vmatmul.mubr.msk.f32.gmra.mxu0 %vm293_vm0, %v254_v50 }
 0x1a3   :  { %19563 = vmatprep.subr.mxu1 %v30308_v15  ;;  %19540 = vmatmul.mubr.msk.f32.gmra.mxu1 %vm293_vm0, %v23413_v3  ;;  %v22332_v3 = vld [vmem:[%s30082_s0 + $0x68] sm:$0xff] }
 0x1a4   :  { %19564 = vmatpush3.msra.mxu1 %v23714_v39  ;;  %v24170_v44 = vpop.f32.mrf.mxu0  ;;  %19235 = vmatprep.mubr.msk.f32.mxu0 %vm293_vm0, %v255_v16  ;;  %v258_v54 = vmul.f32 %v22333_v46, %v22332_v3  ;;  %v22338_v16 = vld [vmem:[%s30082_s0 + $0x80] sm:$0xff]  ;;  %v22342_v46 = vld [vmem:[%s30082_s0 + $0x90] sm:$0xff] }
 0x1a5   :  { %19565 = vmatprep.subr.mxu1 %v30308_v15  ;;  %19542 = vmatprep.mubr.msk.f32.mxu1 %vm22535_vm1, %v30308_v15  ;;  %v261_v43 = vmul.f32 %v22339_v26, %v22338_v16  ;;  %v24260_v26 = vld [vmem:[%s30083_s1] sm:$0xff] }
 0x1a6   :  { %19566 = vmatpush3.msra.mxu1 %v23721_v23  ;;  %v24183_v39 = vpop.f32.mrf.mxu0  ;;  %19236 = vmatmul.mubr.msk.f32.gmra.mxu0 %vm293_vm0, %v256_v5  ;;  %v22337_v23 = vld [vmem:[%s30082_s0 + $0x1f8] sm:$0xff] }
 0x1a7   :  { %19543 = vmatmul.mubr.msk.f32.gmra.mxu1 %vm293_vm0, %v23433_v31  ;;  %19238 = vmatprep.mubr.msk.f32.mxu0 %vm293_vm0, %v257_v4  ;;  %v22336_v31 = vld [vmem:[%s30082_s0 + $0x78] sm:$0xff] }
 0x1a8   :  { %v24195_v50 = vpop.f32.mrf.mxu0  ;;  %19545 = vmatprep.mubr.msk.f32.mxu1 %vm22535_vm1, %v30308_v15  ;;  %19588 = vmatprep.subr.mxu1 %v30308_v15  ;;  %v260_v34 = vmul.f32 %v22337_v23, %v22336_v31  ;;  %v22345_v31 = vld [vmem:[%s30082_s0 + $0x218] sm:$0xff] }
 0x1aa   :  { %v24206_v28 = vpop.f32.mrf.mxu0  ;;  %19239 = vmatmul.mubr.msk.f32.gmra.mxu0 %vm293_vm0, %v258_v54  ;;  %v22343_v54 = vld [vmem:[%s30082_s0 + $0x210] sm:$0xff] }
 0x1ab   :  { %19546 = vmatmul.mubr.msk.f32.gmra.mxu1 %vm293_vm0, %v23452_v33  ;;  %19241 = vmatprep.mubr.msk.f32.mxu0 %vm293_vm0, %v259_v48  ;;  %v22340_v33 = vld [vmem:[%s30082_s0 + $0x88] sm:$0xff]  ;;  %v263_v20 = vmul.f32 %v22343_v54, %v22342_v46 }
 0x1ac   :  { %v24218_v5 = vpop.f32.mrf.mxu0  ;;  %19548 = vmatprep.mubr.msk.f32.mxu1 %vm22535_vm1, %v30308_v15  ;;  %v262_v52 = vmul.f32 %v22341_v21, %v22340_v33  ;;  %v22347_v33 = vld [vmem:[%s30082_s0 + $0xa0] sm:$0xff]  ;;  %v22350_v54 = vld [vmem:[%s30082_s0 + $0x228] sm:$0xff] }
 0x1ad   :  { %v22348_v21 = vld [vmem:[%s30082_s0 + $0x220] sm:$0xff] }
 0x1ae   :  { %v24228_v4 = vpop.f32.mrf.mxu0  ;;  %19242 = vmatmul.mubr.msk.f32.gmra.mxu0 %vm293_vm0, %v260_v34  ;;  %v24231_v3 = vpop.f32.mrf.mxu1 }
 0x1af   :  { %30348 = vst [vmem:[#allocation2_spill] sm:$0xff] %v24231_v3  ;;  %19549 = vmatmul.mubr.msk.f32.gmra.mxu1 %vm293_vm0, %v23472_v35  ;;  %19244 = vmatprep.mubr.msk.f32.mxu0 %vm293_vm0, %v261_v43  ;;  %v22344_v35 = vld [vmem:[%s30082_s0 + $0x98] sm:$0xff] }
 0x1b0   :  { %v24242_v24 = vpop.f32.mrf.mxu0  ;;  %v19310_v48 = vpop.f32.mrf.mxu1  ;;  %19567 = vmatprep.mubr.msk.f32.mxu1 %vm22535_vm1, %v30308_v15  ;;  %v264_v23 = vmul.f32 %v22345_v31, %v22344_v35  ;;  %v24293_v31 = vld [vmem:[%s30083_s1 + $0x8] sm:$0xff] }
 0x1b2   :  { %v24252_v34 = vpop.f32.mrf.mxu0  ;;  %19245 = vmatmul.mubr.msk.f32.gmra.mxu0 %vm293_vm0, %v262_v52  ;;  %v265_v52 = vmul.f32 %v22348_v21, %v22347_v33 }
 0x1b3   :  { %30349 = vst [vmem:[#allocation3_spill] sm:$0xff] %v24252_v34  ;;  %v24255_v16 = vpop.f32.mrf.mxu1  ;;  %19568 = vmatmul.mubr.msk.f32.vlgmr.msra.gmra.mxu1 %vm293_vm0, %v24260_v26  ;;  %19247 = vmatprep.mubr.msk.f32.mxu0 %vm293_vm0, %v263_v20 }
 0x1b4   :  { %30350 = vst [vmem:[#allocation4_spill] sm:$0xff] %v24255_v16  ;;  %19589 = vmatpush3.msra.mxu1 %v23828_v41  ;;  %v24266_v43 = vpop.f32.mrf.mxu0  ;;  %19570 = vmatprep.mubr.msk.f32.mxu1 %vm22535_vm1, %v30308_v15  ;;  %v22349_v41 = vld [vmem:[%s30082_s0 + $0xa8] sm:$0xff] }
 0x1b5   :  { %30351 = vst [vmem:[#allocation5_spill] sm:$0xff] %v24266_v43  ;;  %19590 = vmatprep.subr.mxu1 %v30308_v15  ;;  %v19313_v46 = vpop.f32.mrf.mxu1  ;;  %v266_v20 = vmul.f32 %v22350_v54, %v22349_v41  ;;  %v22370_v16 = vld [vmem:[%s30082_s0 + $0x268] sm:$0xff] }
 0x1b6   :  { %19591 = vmatpush3.msra.mxu1 %v23835_v27  ;;  %v24284_v48 = vpop.f32.mrf.mxu0  ;;  %19248 = vmatmul.mubr.msk.f32.gmra.mxu0 %vm293_vm0, %v264_v23  ;;  %v22352_v27 = vld [vmem:[%s30082_s0 + $0xb0] sm:$0xff] }
 0x1b7   :  { %19592 = vmatprep.subr.mxu1 %v30308_v15  ;;  %v24288_v35 = vpop.f32.mrf.mxu1  ;;  %19571 = vmatmul.mubr.msk.f32.gmra.mxu1 %vm293_vm0, %v24293_v31  ;;  %v22353_v23 = vld [vmem:[%s30082_s0 + $0x230] sm:$0xff] }
 0x1b8   :  { %30352 = vst [vmem:[#allocation6_spill] sm:$0xff] %v24288_v35  ;;  %19593 = vmatpush3.msra.mxu1 %v23814_v37  ;;  %v24298_v33 = vpop.f32.mrf.mxu0  ;;  %19250 = vmatprep.mubr.msk.f32.mxu0 %vm293_vm0, %v265_v52  ;;  %v267_v21 = vmul.f32 %v22353_v23, %v22352_v27  ;;  %v22354_v37 = vld [vmem:[%s30082_s0 + $0xb8] sm:$0xff]  ;;  %v24326_v23 = vld [vmem:[%s30083_s1 + $0x10] sm:$0xff] }
 0x1b9   :  { %19594 = vmatprep.subr.mxu1 %v30308_v15  ;;  %v19316_v46 = vpop.f32.mrf.mxu1  ;;  %19573 = vmatprep.mubr.msk.f32.mxu1 %vm22535_vm1, %v30308_v15  ;;  %v22355_v52 = vld [vmem:[%s30082_s0 + $0x238] sm:$0xff] }
 0x1ba   :  { %v268_v41 = vmul.f32 %v22355_v52, %v22354_v37  ;;  %19595 = vmatpush3.msra.mxu1 %v23822_v38  ;;  %v24317_v54 = vpop.f32.mrf.mxu0  ;;  %19251 = vmatmul.mubr.msk.f32.gmra.mxu0 %vm293_vm0, %v266_v20  ;;  %v22357_v38 = vld [vmem:[%s30082_s0 + $0xc0] sm:$0xff] }
 0x1bb   :  { %19596 = vmatprep.subr.mxu1 %v30308_v15  ;;  %v24321_v27 = vpop.f32.mrf.mxu1  ;;  %19574 = vmatmul.mubr.msk.f32.gmra.mxu1 %vm293_vm0, %v24326_v23  ;;  %v22358_v20 = vld [vmem:[%s30082_s0 + $0x240] sm:$0xff] }
 0x1bc   :  { %30353 = vst [vmem:[#allocation7_spill] sm:$0xff] %v24321_v27  ;;  %19597 = vmatpush3.msra.mxu1 %v23800_v60  ;;  %v24331_v46 = vpop.f32.mrf.mxu0  ;;  %19253 = vmatprep.mubr.msk.f32.mxu0 %vm293_vm0, %v267_v21  ;;  %v269_v37 = vmul.f32 %v22358_v20, %v22357_v38  ;;  %v22359_v60 = vld [vmem:[%s30082_s0 + $0xc8] sm:$0xff]  ;;  %v24359_v20 = vld [vmem:[%s30083_s1 + $0x18] sm:$0xff] }
 0x1bd   :  { %19598 = vmatprep.subr.mxu1 %v30308_v15  ;;  %v19319_v52 = vpop.f32.mrf.mxu1  ;;  %19576 = vmatprep.mubr.msk.f32.mxu1 %vm22535_vm1, %v30308_v15  ;;  %v22360_v21 = vld [vmem:[%s30082_s0 + $0x248] sm:$0xff] }
 0x1be   :  { %v270_v27 = vmul.f32 %v22360_v21, %v22359_v60  ;;  %19599 = vmatpush3.msra.mxu1 %v23808_v63  ;;  %v24350_v35 = vpop.f32.mrf.mxu0  ;;  %19254 = vmatmul.mubr.msk.f32.gmra.mxu0 %vm293_vm0, %v268_v41  ;;  %v22362_v63 = vld [vmem:[%s30082_s0 + $0xd0] sm:$0xff] }
 0x1bf   :  { %19600 = vmatprep.subr.mxu1 %v30308_v15  ;;  %v24354_v38 = vpop.f32.mrf.mxu1  ;;  %19577 = vmatmul.mubr.msk.f32.gmra.mxu1 %vm293_vm0, %v24359_v20  ;;  %v22363_v41 = vld [vmem:[%s30082_s0 + $0x250] sm:$0xff] }
 0x1c0   :  { %30354 = vst [vmem:[#allocation8_spill] sm:$0xff] %v24354_v38  ;;  %v271_v52 = vmul.f32 %v22363_v41, %v22362_v63  ;;  %19601 = vmatpush3.msra.mxu1 %v23785_v56  ;;  %v24370_v60 = vpop.f32.mrf.mxu0  ;;  %19256 = vmatprep.mubr.msk.f32.mxu0 %vm293_vm0, %v269_v37  ;;  %v22364_v38 = vld [vmem:[%s30082_s0 + $0xd8] sm:$0xff] }
 0x1c1   :  { %19602 = vmatprep.subr.mxu1 %v30308_v15  ;;  %v19322_v21 = vpop.f32.mrf.mxu1  ;;  %19579 = vmatprep.mubr.msk.f32.mxu1 %vm22535_vm1, %v30308_v15  ;;  %v22365_v63 = vld [vmem:[%s30082_s0 + $0x258] sm:$0xff] }
 0x1c2   :  { %v272_v41 = vmul.f32 %v22365_v63, %v22364_v38  ;;  %19603 = vmatpush3.msra.mxu1 %v23793_v19  ;;  %v24383_v56 = vpop.f32.mrf.mxu0  ;;  %19257 = vmatmul.mubr.msk.f32.gmra.mxu0 %vm293_vm0, %v270_v27  ;;  %v24391_v21 = vld [vmem:[%s30083_s1 + $0x20] sm:$0xff] }
 0x1c3   :  { %30355 = vst [vmem:[#allocation9_spill] sm:$0xff] %v24383_v56  ;;  %v24386_v37 = vpop.f32.mrf.mxu1  ;;  %19580 = vmatmul.mubr.msk.f32.gmra.mxu1 %vm293_vm0, %v24391_v21  ;;  %19259 = vmatprep.mubr.msk.f32.mxu0 %vm293_vm0, %v271_v52  ;;  %v22367_v19 = vld [vmem:[%s30082_s0 + $0xe0] sm:$0xff]  ;;  %v22369_v52 = vld [vmem:[%s30082_s0 + $0xe8] sm:$0xff] }
 0x1c4   :  { %30356 = vst [vmem:[#allocation10_spill] sm:$0xff] %v24386_v37  ;;  %v22368_v27 = vld [vmem:[%s30082_s0 + $0x260] sm:$0xff]  ;;  %v24402_v63 = vpop.f32.mrf.mxu0  ;;  %19582 = vmatprep.mubr.msk.f32.mxu1 %vm22535_vm1, %v30308_v15  ;;  %19625 = vmatprep.subr.mxu1 %v30308_v15  ;;  %v274_v3 = vmul.f32 %v22370_v16, %v22369_v52  ;;  %v22372_v16 = vld [vmem:[%s30082_s0 + $0xf0] sm:$0xff] }
 0x1c5   :  { %v273_v38 = vmul.f32 %v22368_v27, %v22367_v19  ;;  %30357 = vst [vmem:[#allocation11_spill] sm:$0xff] %v24402_v63  ;;  %v19325_v37 = vpop.f32.mrf.mxu1  ;;  %v24421_v27 = vld [vmem:[%s30083_s1 + $0x28] sm:$0xff]  ;;  %v22374_v63 = vld [vmem:[%s30082_s0 + $0xf8] sm:$0xff] }
 0x1c6   :  { %v24413_v56 = vpop.f32.mrf.mxu0  ;;  %19260 = vmatmul.mubr.msk.f32.gmra.mxu0 %vm293_vm0, %v272_v41  ;;  %v22373_v41 = vld [vmem:[%s30082_s0 + $0x270] sm:$0xff] }
 0x1c7   :  { %30358 = vst [vmem:[#allocation12_spill] sm:$0xff] %v24413_v56  ;;  %v24416_v19 = vpop.f32.mrf.mxu1  ;;  %19583 = vmatmul.mubr.msk.f32.gmra.mxu1 %vm293_vm0, %v24421_v27  ;;  %19262 = vmatprep.mubr.msk.f32.mxu0 %vm293_vm0, %v273_v38  ;;  %v275_v37 = vmul.f32 %v22373_v41, %v22372_v16  ;;  %v22375_v38 = vld [vmem:[%s30082_s0 + $0x278] sm:$0xff]  ;;  %v24450_v41 = vld [vmem:[%s30083_s1 + $0x30] sm:$0x3f] }
 0x1c8   :  { %30359 = vst [vmem:[#allocation13_spill] sm:$0xff] %v24416_v19  ;;  %v24432_v52 = vpop.f32.mrf.mxu0  ;;  %19585 = vmatprep.mubr.msk.f32.mxu1 %vm22535_vm1, %v30308_v15  ;;  %v276_v56 = vmul.f32 %v22375_v38, %v22374_v63  ;;  %v22377_v63 = vld [vmem:[%s30082_s0 + $0x100] sm:$0xff] }
 0x1c9   :  { %30360 = vst [vmem:[#allocation14_spill] sm:$0xff] %v24432_v52  ;;  %v19328_v19 = vpop.f32.mrf.mxu1  ;;  %v22379_v52 = vld [vmem:[%s30082_s0 + $0x108] sm:$0xff] }
 0x1ca   :  { %v24442_v43 = vpop.f32.mrf.mxu0  ;;  %19263 = vmatmul.mubr.msk.f32.gmra.mxu0 %vm293_vm0, %v274_v3  ;;  %v22378_v3 = vld [vmem:[%s30082_s0 + $0x280] sm:$0xff] }
 0x1cb   :  { %30361 = vst [vmem:[#allocation15_spill] sm:$0xff] %v24442_v43  ;;  %v24445_v16 = vpop.f32.mrf.mxu1  ;;  %19586 = vmatmul.mubr.msk.f32.gmra.mxu1 %vm293_vm0, %v24450_v41  ;;  %19265 = vmatprep.mubr.msk.f32.mxu0 %vm293_vm0, %v275_v37  ;;  %v277_v19 = vmul.f32 %v22378_v3, %v22377_v63  ;;  %v22380_v37 = vld [vmem:[%s30082_s0 + $0x288] sm:$0xff] }
 0x1cc   :  { %30362 = vst [vmem:[#allocation16_spill] sm:$0xff] %v24445_v16  ;;  %v24461_v38 = vpop.f32.mrf.mxu0  ;;  %19604 = vmatprep.mubr.msk.f32.mxu1 %vm22535_vm1, %v30308_v15  ;;  %v278_v43 = vmul.f32 %v22380_v37, %v22379_v52  ;;  %v22381_v52 = vld [vmem:[%s30082_s0 + $0x110] sm:$0xff] }
 0x1cd   :  { %30363 = vst [vmem:[#allocation17_spill] sm:$0xff] %v24461_v38  ;;  %v19347_v16 = vpop.f32.mrf.mxu1 }
 0x1ce   :  { %v24471_v34 = vpop.f32.mrf.mxu0  ;;  %19266 = vmatmul.mubr.msk.f32.gmra.mxu0 %vm293_vm0, %v276_v56  ;;  %v22382_v56 = vld [vmem:[%s30082_s0 + $0x290] sm:$0xff] }
 0x1cf   :  { %v24474_v63 = vpop.f32.mrf.mxu1  ;;  %19605 = vmatmul.mubr.msk.f32.vlgmr.msra.gmra.mxu1 %vm293_vm0, %v24260_v26  ;;  %19268 = vmatprep.mubr.msk.f32.mxu0 %vm293_vm0, %v277_v19  ;;  %v279_v3 = vmul.f32 %v22382_v56, %v22381_v52  ;;  %v22384_v19 = vld [vmem:[%s30082_s0 + $0x298] sm:$0xff] }
 0x1d0   :  { %30364 = vst [vmem:[#allocation18_spill] sm:$0xff] %v24474_v63  ;;  %19626 = vmatpush3.msra.mxu1 %v23899_v61  ;;  %v24480_v16 = vpop.f32.mrf.mxu0  ;;  %19607 = vmatprep.mubr.msk.f32.mxu1 %vm22535_vm1, %v30308_v15  ;;  %v22383_v61 = vld [vmem:[%s30082_s0 + $0x118] sm:$0xff] }
 0x1d1   :  { %19627 = vmatprep.subr.mxu1 %v30308_v15  ;;  %v19350_v37 = vpop.f32.mrf.mxu1  ;;  %v280_v63 = vmul.f32 %v22384_v19, %v22383_v61 }
 0x1d2   :  { %19628 = vmatpush3.msra.mxu1 %v23907_v36  ;;  %v24498_v38 = vpop.f32.mrf.mxu0  ;;  %19269 = vmatmul.mubr.msk.f32.gmra.mxu0 %vm293_vm0, %v278_v43  ;;  %v22385_v36 = vld [vmem:[%s30082_s0 + $0x120] sm:$0xff] }
 0x1d3   :  { %30365 = vst [vmem:[#allocation19_spill] sm:$0xff] %v24498_v38  ;;  %19629 = vmatprep.subr.mxu1 %v30308_v15  ;;  %v24502_v52 = vpop.f32.mrf.mxu1  ;;  %19608 = vmatmul.mubr.msk.f32.gmra.mxu1 %vm293_vm0, %v24293_v31  ;;  %v22386_v43 = vld [vmem:[%s30082_s0 + $0x2a0] sm:$0xff] }
 0x1d4   :  { %30366 = vst [vmem:[#allocation20_spill] sm:$0xff] %v24502_v52  ;;  %19630 = vmatpush3.msra.mxu1 %v23881_v49  ;;  %v24507_v56 = vpop.f32.mrf.mxu0  ;;  %19271 = vmatprep.mubr.msk.f32.mxu0 %vm293_vm0, %v279_v3  ;;  %v281_v37 = vmul.f32 %v22386_v43, %v22385_v36  ;;  %v22387_v49 = vld [vmem:[%s30082_s0 + $0x128] sm:$0xff] }
 0x1d5   :  { %30367 = vst [vmem:[#allocation21_spill] sm:$0xff] %v24507_v56  ;;  %19631 = vmatprep.subr.mxu1 %v30308_v15  ;;  %v19353_v61 = vpop.f32.mrf.mxu1  ;;  %19610 = vmatprep.mubr.msk.f32.mxu1 %vm22535_vm1, %v30308_v15  ;;  %v22388_v3 = vld [vmem:[%s30082_s0 + $0x2a8] sm:$0xff] }
 0x1d6   :  { %v282_v19 = vmul.f32 %v22388_v3, %v22387_v49  ;;  %19632 = vmatpush3.msra.mxu1 %v23890_v42  ;;  %v24526_v52 = vpop.f32.mrf.mxu0  ;;  %19272 = vmatmul.mubr.msk.f32.gmra.mxu0 %vm293_vm0, %v280_v63  ;;  %v22389_v42 = vld [vmem:[%s30082_s0 + $0x130] sm:$0xff] }
 0x1d7   :  { %19633 = vmatprep.subr.mxu1 %v30308_v15  ;;  %v24530_v36 = vpop.f32.mrf.mxu1  ;;  %19611 = vmatmul.mubr.msk.f32.gmra.mxu1 %vm293_vm0, %v24326_v23  ;;  %v22390_v63 = vld [vmem:[%s30082_s0 + $0x2b0] sm:$0xff] }
 0x1d8   :  { %30368 = vst [vmem:[#allocation22_spill] sm:$0xff] %v24530_v36  ;;  %19634 = vmatpush3.msra.mxu1 %v23863_v13  ;;  %v24535_v43 = vpop.f32.mrf.mxu0  ;;  %19274 = vmatprep.mubr.msk.f32.mxu0 %vm293_vm0, %v281_v37  ;;  %v283_v61 = vmul.f32 %v22390_v63, %v22389_v42  ;;  %v22391_v13 = vld [vmem:[%s30082_s0 + $0x138] sm:$0xff] }
 0x1d9   :  { %19635 = vmatprep.subr.mxu1 %v30308_v15  ;;  %v19356_v49 = vpop.f32.mrf.mxu1  ;;  %19613 = vmatprep.mubr.msk.f32.mxu1 %vm22535_vm1, %v30308_v15  ;;  %v22392_v37 = vld [vmem:[%s30082_s0 + $0x2b8] sm:$0xff] }
 0x1da   :  { %v284_v3 = vmul.f32 %v22392_v37, %v22391_v13  ;;  %19636 = vmatpush3.msra.mxu1 %v23870_v11  ;;  %v24554_v36 = vpop.f32.mrf.mxu0  ;;  %19275 = vmatmul.mubr.msk.f32.gmra.mxu0 %vm293_vm0, %v282_v19  ;;  %v22393_v11 = vld [vmem:[%s30082_s0 + $0x140] sm:$0xff] }
 0x1db   :  { %19637 = vmatprep.subr.mxu1 %v30308_v15  ;;  %v24558_v42 = vpop.f32.mrf.mxu1  ;;  %19614 = vmatmul.mubr.msk.f32.gmra.mxu1 %vm293_vm0, %v24359_v20  ;;  %v22394_v19 = vld [vmem:[%s30082_s0 + $0x2c0] sm:$0xff] }
 0x1dc   :  { %30369 = vst [vmem:[#allocation23_spill] sm:$0xff] %v24558_v42  ;;  %19638 = vmatpush3.msra.mxu1 %v23845_v29  ;;  %v24563_v63 = vpop.f32.mrf.mxu0  ;;  %19277 = vmatprep.mubr.msk.f32.mxu0 %vm293_vm0, %v283_v61  ;;  %v285_v49 = vmul.f32 %v22394_v19, %v22393_v11  ;;  %v22395_v29 = vld [vmem:[%s30082_s0 + $0x148] sm:$0xff]  ;;  %v22397_v19 = vld [vmem:[%s30082_s0 + $0x150] sm:$0xff] }
 0x1dd   :  { %19639 = vmatprep.subr.mxu1 %v30308_v15  ;;  %v19359_v13 = vpop.f32.mrf.mxu1  ;;  %19616 = vmatprep.mubr.msk.f32.mxu1 %vm22535_vm1, %v30308_v15  ;;  %v22396_v61 = vld [vmem:[%s30082_s0 + $0x2c8] sm:$0xff] }
 0x1de   :  { %v286_v37 = vmul.f32 %v22396_v61, %v22395_v29  ;;  %19640 = vmatpush3.msra.mxu1 %v23852_v9  ;;  %v24582_v42 = vpop.f32.mrf.mxu0  ;;  %19278 = vmatmul.mubr.msk.f32.gmra.mxu0 %vm293_vm0, %v284_v3  ;;  %v22398_v13 = vld [vmem:[%s30082_s0 + $0x2d0] sm:$0xff]  ;;  %v22399_v61 = vld [vmem:[%s30082_s0 + $0x158] sm:$0xff] }
 0x1df   :  { %v24585_v11 = vpop.f32.mrf.mxu1  ;;  %19617 = vmatmul.mubr.msk.f32.gmra.mxu1 %vm293_vm0, %v24391_v21  ;;  %19662 = vmatprep.subr.mxu1 %v30308_v15  ;;  %v287_v9 = vmul.f32 %v22398_v13, %v22397_v19  ;;  %v22402_v13 = vld [vmem:[%s30082_s0 + $0x2e0] sm:$0xff] }
 0x1e0   :  { %30370 = vst [vmem:[#allocation24_spill] sm:$0xff] %v24585_v11  ;;  %v24596_v29 = vpop.f32.mrf.mxu0  ;;  %19619 = vmatprep.mubr.msk.f32.mxu1 %vm22535_vm1, %v30308_v15  ;;  %19280 = vmatprep.mubr.msk.f32.mxu0 %vm293_vm0, %v285_v49  ;;  %v22400_v11 = vld [vmem:[%s30082_s0 + $0x2d8] sm:$0xff]  ;;  %v22401_v49 = vld [vmem:[%s30082_s0 + $0x160] sm:$0xff] }
 0x1e1   :  { %v19362_v3 = vpop.f32.mrf.mxu1  ;;  %v288_v56 = vmul.f32 %v22400_v11, %v22399_v61  ;;  %v289_v11 = vmul.f32 %v22402_v13, %v22401_v49  ;;  %v22403_v61 = vld [vmem:[%s30082_s0 + $0x168] sm:$0xff]  ;;  %v22405_v13 = vld [vmem:[%s30082_s0 + $0x170] sm:$0xff] }
 0x1e2   :  { %v24607_v38 = vpop.f32.mrf.mxu0  ;;  %19281 = vmatmul.mubr.msk.f32.gmra.mxu0 %vm293_vm0, %v286_v37 }
 0x1e3   :  { %30371 = vst [vmem:[#allocation25_spill] sm:$0xff] %v24607_v38  ;;  %v24610_v19 = vpop.f32.mrf.mxu1  ;;  %19620 = vmatmul.mubr.msk.f32.gmra.mxu1 %vm293_vm0, %v24421_v27  ;;  %19283 = vmatprep.mubr.msk.f32.mxu0 %vm293_vm0, %v287_v9  ;;  %v22404_v9 = vld [vmem:[%s30082_s0 + $0x2e8] sm:$0xff] }
 0x1e4   :  { %30372 = vst [vmem:[#allocation26_spill] sm:$0xff] %v24610_v19  ;;  %v24621_v3 = vpop.f32.mrf.mxu0  ;;  %19622 = vmatprep.mubr.msk.f32.mxu1 %vm22535_vm1, %v30308_v15  ;;  %v290_v19 = vmul.f32 %v22404_v9, %v22403_v61 }
 0x1e5   :  { %30373 = vst [vmem:[#allocation27_spill] sm:$0xff] %v24621_v3  ;;  %v19365_v37 = vpop.f32.mrf.mxu1 }
 0x1e6   :  { %v24631_v38 = vpop.f32.mrf.mxu0  ;;  %19284 = vmatmul.mubr.msk.f32.gmra.mxu0 %vm293_vm0, %v288_v56  ;;  %v22406_v37 = vld [vmem:[%s30082_s0 + $0x2f0] sm:$0xff] }
 0x1e7   :  { %30374 = vst [vmem:[#allocation28_spill] sm:$0xff] %v24631_v38  ;;  %v24634_v49 = vpop.f32.mrf.mxu1  ;;  %19623 = vmatmul.mubr.msk.f32.gmra.mxu1 %vm293_vm0, %v24450_v41  ;;  %19286 = vmatprep.mubr.msk.f32.mxu0 %vm293_vm0, %v289_v11  ;;  %v291_v61 = vmul.f32 %v22406_v37, %v22405_v13  ;;  %v22408_v11 = vld [vmem:[%s30082_s0 + $0x2f8] sm:$0xff] }
 0x1e8   :  { %30375 = vst [vmem:[#allocation29_spill] sm:$0xff] %v24634_v49  ;;  %v24645_v9 = vpop.f32.mrf.mxu0  ;;  %19641 = vmatprep.mubr.msk.f32.mxu1 %vm22535_vm1, %v30308_v15  ;;  %v22407_v49 = vld [vmem:[%s30082_s0 + $0x178] sm:$0xff] }
 0x1e9   :  { %v19384_v56 = vpop.f32.mrf.mxu1  ;;  %v292_v3 = vmul.f32 %v22408_v11, %v22407_v49 }
 0x1ea   :  { %v24655_v38 = vpop.f32.mrf.mxu0  ;;  %19287 = vmatmul.mubr.msk.f32.gmra.mxu0 %vm293_vm0, %v290_v19 }
 0x1eb   :  { %v24658_v13 = vpop.f32.mrf.mxu1  ;;  %19642 = vmatmul.mubr.msk.f32.vlgmr.msra.gmra.mxu1 %vm293_vm0, %v24260_v26  ;;  %19289 = vmatprep.mubr.msk.f32.mxu0 %vm293_vm0, %v291_v61 }
 0x1ec   :  { %30376 = vst [vmem:[#allocation30_spill] sm:$0xff] %v24658_v13  ;;  %19663 = vmatpush3.msra.mxu1 %v23959_v53  ;;  %v24664_v37 = vpop.f32.mrf.mxu0  ;;  %19644 = vmatprep.mubr.msk.f32.mxu1 %vm22535_vm1, %v30308_v15 }
 0x1ed   :  { %19664 = vmatprep.subr.mxu1 %v30308_v15  ;;  %v19387_v49 = vpop.f32.mrf.mxu1 }
 0x1ee   :  { %19665 = vmatpush3.msra.mxu1 %v23966_v2  ;;  %v24670_v19 = vpop.f32.mrf.mxu0  ;;  %19290 = vmatmul.mubr.msk.f32.gmra.mxu0 %vm293_vm0, %v292_v3 }
 0x1ef   :  { %19666 = vmatprep.subr.mxu1 %v30308_v15  ;;  %v24674_v56 = vpop.f32.mrf.mxu1  ;;  %19645 = vmatmul.mubr.msk.f32.gmra.mxu1 %vm293_vm0, %v24293_v31 }
 0x1f0   :  { %30377 = vst [vmem:[#allocation31_spill] sm:$0xff] %v24674_v56  ;;  %19667 = vmatpush3.msra.mxu1 %v23942_v10  ;;  %v24679_v53 = vpop.f32.mrf.mxu0  ;;  %19647 = vmatprep.mubr.msk.f32.mxu1 %vm22535_vm1, %v30308_v15 }
 0x1f1   :  { %19668 = vmatprep.subr.mxu1 %v30308_v15  ;;  %v19390_v2 = vpop.f32.mrf.mxu1  ;;  %19974 = vmatprep.mubr.msk.f32.mxu0 %vm22535_vm1, %v30308_v15 }
 0x1f2   :  { %19669 = vmatpush3.msra.mxu1 %v23949_v14  ;;  %v24687_v3 = vpop.f32.mrf.mxu0 }
 0x1f3   :  { %19670 = vmatprep.subr.mxu1 %v30308_v15  ;;  %v24690_v61 = vpop.f32.mrf.mxu1  ;;  %19648 = vmatmul.mubr.msk.f32.gmra.mxu1 %vm293_vm0, %v24326_v23 }
 0x1f4   :  { %30378 = vst [vmem:[#allocation32_spill] sm:$0xff] %v24690_v61  ;;  %19671 = vmatpush3.msra.mxu1 %v23928_v47  ;;  %v24695_v10 = vpop.f32.mrf.mxu0  ;;  %19650 = vmatprep.mubr.msk.f32.mxu1 %vm22535_vm1, %v30308_v15 }
 0x1f5   :  { %19672 = vmatprep.subr.mxu1 %v30308_v15  ;;  %v19393_v11 = vpop.f32.mrf.mxu1 }
 0x1f6   :  { %19673 = vmatpush3.msra.mxu1 %v23936_v8  ;;  %v19153_v14 = vpop.f32.mrf.mxu0 }
 0x1f7   :  { %19674 = vmatprep.subr.mxu1 %v30308_v15  ;;  %v24702_v49 = vpop.f32.mrf.mxu1  ;;  %19651 = vmatmul.mubr.msk.f32.gmra.mxu1 %vm293_vm0, %v24359_v20 }
 0x1f8   :  { %30379 = vst [vmem:[#allocation33_spill] sm:$0xff] %v24702_v49  ;;  %19675 = vmatpush3.msra.mxu1 %v23914_v1  ;;  %v1810_v47 = vpop.f32.mrf.mxu0  ;;  %19653 = vmatprep.mubr.msk.f32.mxu1 %vm22535_vm1, %v30308_v15 }
 0x1f9   :  { %19676 = vmatprep.subr.mxu1 %v30308_v15  ;;  %v19396_v2 = vpop.f32.mrf.mxu1 }
 0x1fa   :  { %19677 = vmatpush3.msra.mxu1 %v23922_v40  ;;  %v19156_v8 = vpop.f32.mrf.mxu0 }
 0x1fb   :  { %v24711_v11 = vpop.f32.mrf.mxu1  ;;  %19654 = vmatmul.mubr.msk.f32.gmra.mxu1 %vm293_vm0, %v24391_v21  ;;  %19699 = vmatprep.subr.mxu1 %v30308_v15 }
 0x1fc   :  { %30380 = vst [vmem:[#allocation34_spill] sm:$0xff] %v24711_v11  ;;  %v1820_v49 = vpop.f32.mrf.mxu0  ;;  %19656 = vmatprep.mubr.msk.f32.mxu1 %vm22535_vm1, %v30308_v15 }
 0x1fd   :  { %v19399_v1 = vpop.f32.mrf.mxu1 }
 0x1fe   :  { %v19159_v61 = vpop.f32.mrf.mxu0 }
 0x1ff   :  { %v24718_v56 = vpop.f32.mrf.mxu1  ;;  %19657 = vmatmul.mubr.msk.f32.gmra.mxu1 %vm293_vm0, %v24421_v27  ;;  %19959 = vmatpush3.msra.mxu0 %v19159_v61 }
 0x200   :  { %30381 = vst [vmem:[#allocation35_spill] sm:$0xff] %v24718_v56  ;;  %v1830_v40 = vpop.f32.mrf.mxu0  ;;  %19960 = vmatprep.subr.mxu0 %v30308_v15  ;;  %19659 = vmatprep.mubr.msk.f32.mxu1 %vm22535_vm1, %v30308_v15 }
 0x201   :  { %v19402_v2 = vpop.f32.mrf.mxu1  ;;  %19961 = vmatpush3.msra.mxu0 %v1830_v40 }
 0x202   :  { %v24725_v11 = vpop.f32.mrf.mxu0  ;;  %19962 = vmatprep.subr.mxu0 %v30308_v15 }
 0x203   :  { %v24728_v1 = vpop.f32.mrf.mxu1  ;;  %19660 = vmatmul.mubr.msk.f32.gmra.mxu1 %vm293_vm0, %v24450_v41  ;;  %19963 = vmatpush3.msra.mxu0 %v19156_v8 }
 0x204   :  { %30382 = vst [vmem:[#allocation36_spill] sm:$0xff] %v24728_v1  ;;  %v24732_v56 = vpop.f32.mrf.mxu0  ;;  %19964 = vmatprep.subr.mxu0 %v30308_v15  ;;  %19678 = vmatprep.mubr.msk.f32.mxu1 %vm22535_vm1, %v30308_v15 }
 0x205   :  { %v19421_v61 = vpop.f32.mrf.mxu1  ;;  %19965 = vmatpush3.msra.mxu0 %v1820_v49 }
 0x206   :  { %v24737_v40 = vpop.f32.mrf.mxu0  ;;  %19966 = vmatprep.subr.mxu0 %v30308_v15 }
 0x207   :  { %v24740_v2 = vpop.f32.mrf.mxu1  ;;  %19679 = vmatmul.mubr.msk.f32.vlgmr.msra.gmra.mxu1 %vm293_vm0, %v24260_v26  ;;  %19967 = vmatpush3.msra.mxu0 %v19153_v14 }
 0x208   :  { %30383 = vst [vmem:[#allocation37_spill] sm:$0xff] %v24740_v2  ;;  %19700 = vmatpush3.msra.mxu1 %v24036_v59  ;;  %v24745_v8 = vpop.f32.mrf.mxu0  ;;  %19968 = vmatprep.subr.mxu0 %v30308_v15 }
 0x209   :  { %19701 = vmatprep.subr.mxu1 %v30308_v15  ;;  %v19424_v61 = vpop.f32.mrf.mxu1  ;;  %19681 = vmatprep.mubr.msk.f32.mxu1 %vm22535_vm1, %v30308_v15 }
 0x20a   :  { %19702 = vmatpush3.msra.mxu1 %v24048_v0  ;;  %19969 = vmatpush3.msra.mxu0 %v1810_v47  ;;  %v24752_v49 = vpop.f32.mrf.mxu0 }
 0x20b   :  { %19703 = vmatprep.subr.mxu1 %v30308_v15  ;;  %v24755_v14 = vpop.f32.mrf.mxu1  ;;  %19682 = vmatmul.mubr.msk.f32.gmra.mxu1 %vm293_vm0, %v24293_v31 }
 0x20c   :  { %30384 = vst [vmem:[#allocation38_spill] sm:$0xff] %v24755_v14  ;;  %19704 = vmatpush3.msra.mxu1 %v24013_v57  ;;  %19970 = vmatprep.subr.mxu0 %v30308_v15  ;;  %v24761_v59 = vpop.f32.mrf.mxu0 }
 0x20d   :  { %19705 = vmatprep.subr.mxu1 %v30308_v15  ;;  %19971 = vmatpush3.msra.mxu0 %v24687_v3  ;;  %v19427_v0 = vpop.f32.mrf.mxu1 }
 0x20e   :  { %19706 = vmatpush3.msra.mxu1 %v24025_v55  ;;  %19972 = vmatprep.subr.mxu0 %v30308_v15  ;;  %v24767_v47 = vpop.f32.mrf.mxu0 }
 0x20f   :  { %19684 = vmatprep.mubr.msk.f32.mxu1 %vm22535_vm1, %v30308_v15  ;;  %19707 = vmatprep.subr.mxu1 %v30308_v15  ;;  %v24772_v57 = vpop.f32.mrf.mxu1 }
 0x210   :  { %30385 = vst [vmem:[#allocation39_spill] sm:$0xff] %v24772_v57  ;;  %19973 = vmatpush3.msra.mxu0 %v24695_v10  ;;  %19685 = vmatmul.mubr.msk.f32.gmra.mxu1 %vm293_vm0, %v24326_v23  ;;  %v24777_v3 = vpop.f32.mrf.mxu0 }
 0x211   :  { %19708 = vmatpush3.msra.mxu1 %v23995_v45  ;;  %v19430_v55 = vpop.f32.mrf.mxu1  ;;  %19687 = vmatprep.mubr.msk.f32.mxu1 %vm22535_vm1, %v30308_v15 }
 0x212   :  { %19709 = vmatprep.subr.mxu1 %v30308_v15  ;;  %v24783_v61 = vpop.f32.mrf.mxu0  ;;  %19975 = vmatmul.mubr.msk.f32.vlgmr.msra.gmra.mxu0 %vm293_vm0, %v24260_v26 }
 0x213   :  { %19710 = vmatpush3.msra.mxu1 %v24004_v7  ;;  %v24788_v10 = vpop.f32.mrf.mxu1  ;;  %19977 = vmatprep.mubr.msk.f32.mxu0 %vm22535_vm1, %v30308_v15 }
 0x214   :  { %30386 = vst [vmem:[#allocation40_spill] sm:$0xff] %v24788_v10  ;;  %19711 = vmatprep.subr.mxu1 %v30308_v15  ;;  %19688 = vmatmul.mubr.msk.f32.gmra.mxu1 %vm293_vm0, %v24359_v20  ;;  %v24795_v45 = vpop.f32.mrf.mxu0 }
 0x215   :  { %19712 = vmatpush3.msra.mxu1 %v23977_v17  ;;  %v19433_v0 = vpop.f32.mrf.mxu1  ;;  %19690 = vmatprep.mubr.msk.f32.mxu1 %vm22535_vm1, %v30308_v15 }
 0x216   :  { %19713 = vmatprep.subr.mxu1 %v30308_v15  ;;  %v19177_v7 = vpop.f32.mrf.mxu0  ;;  %19978 = vmatmul.mubr.msk.f32.gmra.mxu0 %vm293_vm0, %v24293_v31 }
 0x217   :  { %19714 = vmatpush3.msra.mxu1 %v23984_v6  ;;  %v24804_v55 = vpop.f32.mrf.mxu1  ;;  %19980 = vmatprep.mubr.msk.f32.mxu0 %vm22535_vm1, %v30308_v15 }
 0x218   :  { %30387 = vst [vmem:[#allocation41_spill] sm:$0xff] %v24804_v55  ;;  %19691 = vmatmul.mubr.msk.f32.gmra.mxu1 %vm293_vm0, %v24391_v21  ;;  %v24810_v17 = vpop.f32.mrf.mxu0  ;;  %19736 = vmatprep.subr.mxu1 %v30308_v15 }
 0x219   :  { %v19436_v0 = vpop.f32.mrf.mxu1  ;;  %19693 = vmatprep.mubr.msk.f32.mxu1 %vm22535_vm1, %v30308_v15  ;;  %20032 = vmatprep.subr.mxu0 %v30308_v15 }
 0x21a   :  { %v19180_v10 = vpop.f32.mrf.mxu0  ;;  %19981 = vmatmul.mubr.msk.f32.gmra.mxu0 %vm293_vm0, %v24326_v23 }
 0x21b   :  { %v24818_v6 = vpop.f32.mrf.mxu1  ;;  %19983 = vmatprep.mubr.msk.f32.mxu0 %vm22535_vm1, %v30308_v15 }
 0x21c   :  { %30388 = vst [vmem:[#allocation42_spill] sm:$0xff] %v24818_v6  ;;  %19694 = vmatmul.mubr.msk.f32.gmra.mxu1 %vm293_vm0, %v24421_v27  ;;  %v1900_v55 = vpop.f32.mrf.mxu0 }
 0x21d   :  { %v19439_v57 = vpop.f32.mrf.mxu1  ;;  %19696 = vmatprep.mubr.msk.f32.mxu1 %vm22535_vm1, %v30308_v15 }
 0x21e   :  { %v19183_v0 = vpop.f32.mrf.mxu0  ;;  %19984 = vmatmul.mubr.msk.f32.gmra.mxu0 %vm293_vm0, %v24359_v20 }
 0x21f   :  { %v24828_v14 = vpop.f32.mrf.mxu1  ;;  %20033 = vmatpush3.msra.mxu0 %v19183_v0  ;;  %19986 = vmatprep.mubr.msk.f32.mxu0 %vm22535_vm1, %v30308_v15 }
 0x220   :  { %30389 = vst [vmem:[#allocation43_spill] sm:$0xff] %v24828_v14  ;;  %19697 = vmatmul.mubr.msk.f32.gmra.mxu1 %vm293_vm0, %v24450_v41  ;;  %v1910_v6 = vpop.f32.mrf.mxu0  ;;  %20034 = vmatprep.subr.mxu0 %v30308_v15 }
 0x221   :  { %v19458_v57 = vpop.f32.mrf.mxu1  ;;  %19715 = vmatprep.mubr.msk.f32.mxu1 %vm22535_vm1, %v30308_v15  ;;  %20035 = vmatpush3.msra.mxu0 %v1910_v6 }
 0x222   :  { %v24837_v2 = vpop.f32.mrf.mxu0  ;;  %19987 = vmatmul.mubr.msk.f32.gmra.mxu0 %vm293_vm0, %v24391_v21  ;;  %20036 = vmatprep.subr.mxu0 %v30308_v15 }
 0x223   :  { %v24842_v0 = vpop.f32.mrf.mxu1  ;;  %20037 = vmatpush3.msra.mxu0 %v19180_v10  ;;  %19989 = vmatprep.mubr.msk.f32.mxu0 %vm22535_vm1, %v30308_v15 }
 0x224   :  { %30390 = vst [vmem:[#allocation44_spill] sm:$0xff] %v24842_v0  ;;  %19716 = vmatmul.mubr.msk.f32.vlgmr.msra.gmra.mxu1 %vm293_vm0, %v24260_v26  ;;  %v24848_v57 = vpop.f32.mrf.mxu0  ;;  %20038 = vmatprep.subr.mxu0 %v30308_v15 }
 0x225   :  { %19737 = vmatpush3.msra.mxu1 %v24131_v51  ;;  %v19461_v6 = vpop.f32.mrf.mxu1  ;;  %19718 = vmatprep.mubr.msk.f32.mxu1 %vm22535_vm1, %v30308_v15 }
 0x226   :  { %19738 = vmatprep.subr.mxu1 %v30308_v15  ;;  %v24855_v1 = vpop.f32.mrf.mxu0  ;;  %20039 = vmatpush3.msra.mxu0 %v1900_v55 }
 0x227   :  { %19739 = vmatpush3.msra.mxu1 %v24138_v32  ;;  %v24858_v10 = vpop.f32.mrf.mxu1  ;;  %19990 = vmatmul.mubr.msk.f32.gmra.mxu0 %vm293_vm0, %v24421_v27 }
 0x228   :  { %30391 = vst [vmem:[#allocation45_spill] sm:$0xff] %v24858_v10  ;;  %19740 = vmatprep.subr.mxu1 %v30308_v15  ;;  %19719 = vmatmul.mubr.msk.f32.gmra.mxu1 %vm293_vm0, %v24293_v31  ;;  %v24865_v51 = vpop.f32.mrf.mxu0 }
 0x229   :  { %19741 = vmatpush3.msra.mxu1 %v24105_v22  ;;  %v19464_v6 = vpop.f32.mrf.mxu1  ;;  %19721 = vmatprep.mubr.msk.f32.mxu1 %vm22535_vm1, %v30308_v15 }
 0x22a   :  { %19742 = vmatprep.subr.mxu1 %v30308_v15  ;;  %v24871_v32 = vpop.f32.mrf.mxu0  ;;  %20040 = vmatprep.subr.mxu0 %v30308_v15 }
 0x22b   :  { %19743 = vmatpush3.msra.mxu1 %v24112_v25  ;;  %v24875_v55 = vpop.f32.mrf.mxu1  ;;  %20041 = vmatpush3.msra.mxu0 %v19177_v7 }
 0x22c   :  { %30392 = vst [vmem:[#allocation46_spill] sm:$0xff] %v24875_v55  ;;  %19744 = vmatprep.subr.mxu1 %v30308_v15  ;;  %19722 = vmatmul.mubr.msk.f32.gmra.mxu1 %vm293_vm0, %v24326_v23  ;;  %v24880_v22 = vpop.f32.mrf.mxu0 }
 0x22d   :  { %19745 = vmatpush3.msra.mxu1 %v24080_v30  ;;  %v19467_v6 = vpop.f32.mrf.mxu1  ;;  %19724 = vmatprep.mubr.msk.f32.mxu1 %vm22535_vm1, %v30308_v15 }
 0x22e   :  { %19746 = vmatprep.subr.mxu1 %v30308_v15  ;;  %v24886_v10 = vpop.f32.mrf.mxu0  ;;  %20042 = vmatprep.subr.mxu0 %v30308_v15 }
 0x22f   :  { %19747 = vmatpush3.msra.mxu1 %v24087_v58  ;;  %v24890_v25 = vpop.f32.mrf.mxu1  ;;  %19992 = vmatprep.mubr.msk.f32.mxu0 %vm22535_vm1, %v30308_v15 }
 0x230   :  { %30393 = vst [vmem:[#allocation47_spill] sm:$0xff] %v24890_v25  ;;  %19748 = vmatprep.subr.mxu1 %v30308_v15  ;;  %19725 = vmatmul.mubr.msk.f32.gmra.mxu1 %vm293_vm0, %v24359_v20  ;;  %v24897_v30 = vpop.f32.mrf.mxu0 }
 0x231   :  { %19749 = vmatpush3.msra.mxu1 %v24058_v12  ;;  %v19470_v7 = vpop.f32.mrf.mxu1  ;;  %19727 = vmatprep.mubr.msk.f32.mxu1 %vm22535_vm1, %v30308_v15 }
 0x232   :  { %19750 = vmatprep.subr.mxu1 %v30308_v15  ;;  %20043 = vmatpush3.msra.mxu0 %v24810_v17  ;;  %v24904_v58 = vpop.f32.mrf.mxu0 }
 0x233   :  { %19751 = vmatpush3.msra.mxu1 %v24070_v18  ;;  %v24907_v6 = vpop.f32.mrf.mxu1  ;;  %19993 = vmatmul.mubr.msk.f32.gmra.mxu0 %vm293_vm0, %v24450_v41 }
 0x234   :  { %30394 = vst [vmem:[#allocation48_spill] sm:$0xff] %v24907_v6  ;;  %19728 = vmatmul.mubr.msk.f32.gmra.mxu1 %vm293_vm0, %v24391_v21  ;;  %20044 = vmatprep.subr.mxu0 %v30308_v15  ;;  %v24914_v12 = vpop.f32.mrf.mxu0 }
 0x235   :  { %20045 = vmatpush3.msra.mxu0 %v24783_v61  ;;  %v19473_v7 = vpop.f32.mrf.mxu1  ;;  %19730 = vmatprep.mubr.msk.f32.mxu1 %vm22535_vm1, %v30308_v15 }
 0x236   :  { %20046 = vmatprep.subr.mxu0 %v30308_v15  ;;  %20048 = vmatprep.mubr.msk.f32.mxu0 %vm22535_vm1, %v30308_v15  ;;  %v24922_v18 = vpop.f32.mrf.mxu0 }
 0x237   :  { %20047 = vmatpush3.msra.mxu0 %v24795_v45  ;;  %v24925_v17 = vpop.f32.mrf.mxu1  ;;  %19773 = vmatprep.subr.mxu1 %v30308_v15 }
 0x238   :  { %30395 = vst [vmem:[#allocation49_spill] sm:$0xff] %v24925_v17  ;;  %19731 = vmatmul.mubr.msk.f32.gmra.mxu1 %vm293_vm0, %v24421_v27  ;;  %20049 = vmatmul.mubr.msk.f32.vlgmr.msra.gmra.mxu0 %vm293_vm0, %v24260_v26  ;;  %v24932_v61 = vpop.f32.mrf.mxu0 }
 0x239   :  { %v19476_v7 = vpop.f32.mrf.mxu1  ;;  %19733 = vmatprep.mubr.msk.f32.mxu1 %vm22535_vm1, %v30308_v15  ;;  %20051 = vmatprep.mubr.msk.f32.mxu0 %vm22535_vm1, %v30308_v15 }
 0x23a   :  { %v19204_v45 = vpop.f32.mrf.mxu0  ;;  %20106 = vmatprep.subr.mxu0 %v30308_v15 }
 0x23b   :  { %v24939_v17 = vpop.f32.mrf.mxu1 }
 0x23c   :  { %30396 = vst [vmem:[#allocation50_spill] sm:$0xff] %v24939_v17  ;;  %19734 = vmatmul.mubr.msk.f32.gmra.mxu1 %vm293_vm0, %v24450_v41  ;;  %20052 = vmatmul.mubr.msk.f32.gmra.mxu0 %vm293_vm0, %v24293_v31  ;;  %v1980_v6 = vpop.f32.mrf.mxu0 }
 0x23d   :  { %v19495_v25 = vpop.f32.mrf.mxu1  ;;  %19752 = vmatprep.mubr.msk.f32.mxu1 %vm22535_vm1, %v30308_v15  ;;  %20054 = vmatprep.mubr.msk.f32.mxu0 %vm22535_vm1, %v30308_v15 }
 0x23e   :  { %v19207_v7 = vpop.f32.mrf.mxu0 }
 0x23f   :  { %v24949_v55 = vpop.f32.mrf.mxu1  ;;  %20107 = vmatpush3.msra.mxu0 %v19207_v7 }
 0x240   :  { %30397 = vst [vmem:[#allocation51_spill] sm:$0xff] %v24949_v55  ;;  %19753 = vmatmul.mubr.msk.f32.vlgmr.msra.gmra.mxu1 %vm293_vm0, %v24260_v26  ;;  %20055 = vmatmul.mubr.msk.f32.gmra.mxu0 %vm293_vm0, %v24326_v23  ;;  %v1990_v17 = vpop.f32.mrf.mxu0 }
 0x241   :  { %19774 = vmatpush3.msra.mxu1 %v24228_v4  ;;  %v19498_v25 = vpop.f32.mrf.mxu1  ;;  %19755 = vmatprep.mubr.msk.f32.mxu1 %vm22535_vm1, %v30308_v15 }
 0x242   :  { %19775 = vmatprep.subr.mxu1 %v30308_v15  ;;  %20057 = vmatprep.mubr.msk.f32.mxu0 %vm22535_vm1, %v30308_v15  ;;  %v24961_v55 = vpop.f32.mrf.mxu0 }
 0x243   :  { %19776 = vmatpush3.msra.mxu1 %v24242_v24  ;;  %v24964_v7 = vpop.f32.mrf.mxu1  ;;  %20108 = vmatprep.subr.mxu0 %v30308_v15 }
 0x244   :  { %30398 = vst [vmem:[#allocation52_spill] sm:$0xff] %v24964_v7  ;;  %19777 = vmatprep.subr.mxu1 %v30308_v15  ;;  %19756 = vmatmul.mubr.msk.f32.gmra.mxu1 %vm293_vm0, %v24293_v31  ;;  %v24970_v4 = vpop.f32.mrf.mxu0 }
 0x245   :  { %19778 = vmatpush3.msra.mxu1 %v24206_v28  ;;  %20058 = vmatmul.mubr.msk.f32.gmra.mxu0 %vm293_vm0, %v24359_v20  ;;  %v19501_v25 = vpop.f32.mrf.mxu1 }
 0x246   :  { %19779 = vmatprep.subr.mxu1 %v30308_v15  ;;  %19758 = vmatprep.mubr.msk.f32.mxu1 %vm22535_vm1, %v30308_v15  ;;  %v24978_v24 = vpop.f32.mrf.mxu0 }
 0x247   :  { %19780 = vmatpush3.msra.mxu1 %v24218_v5  ;;  %20060 = vmatprep.mubr.msk.f32.mxu0 %vm22535_vm1, %v30308_v15  ;;  %v24983_v7 = vpop.f32.mrf.mxu1 }
 0x248   :  { %30399 = vst [vmem:[#allocation53_spill] sm:$0xff] %v24983_v7  ;;  %19781 = vmatprep.subr.mxu1 %v30308_v15  ;;  %20109 = vmatpush3.msra.mxu0 %v1990_v17  ;;  %v24986_v28 = vpop.f32.mrf.mxu0 }
 0x249   :  { %19759 = vmatmul.mubr.msk.f32.gmra.mxu1 %vm293_vm0, %v24326_v23  ;;  %20061 = vmatmul.mubr.msk.f32.gmra.mxu0 %vm293_vm0, %v24391_v21  ;;  %v19504_v25 = vpop.f32.mrf.mxu1 }
 0x24a   :  { %19782 = vmatpush3.msra.mxu1 %v24183_v39  ;;  %20110 = vmatprep.subr.mxu0 %v30308_v15  ;;  %v24994_v5 = vpop.f32.mrf.mxu0 }
 0x24b   :  { %19783 = vmatprep.subr.mxu1 %v30308_v15  ;;  %20111 = vmatpush3.msra.mxu0 %v19204_v45  ;;  %v24997_v7 = vpop.f32.mrf.mxu1 }
 0x24c   :  { %30400 = vst [vmem:[#allocation54_spill] sm:$0xff] %v24997_v7  ;;  %19784 = vmatpush3.msra.mxu1 %v24195_v50  ;;  %20112 = vmatprep.subr.mxu0 %v30308_v15  ;;  %v25001_v17 = vpop.f32.mrf.mxu0 }
 0x24d   :  { %19761 = vmatprep.mubr.msk.f32.mxu1 %vm22535_vm1, %v30308_v15  ;;  %19785 = vmatprep.subr.mxu1 %v30308_v15  ;;  %v19507_v39 = vpop.f32.mrf.mxu1 }
 0x24e   :  { %20063 = vmatprep.mubr.msk.f32.mxu0 %vm22535_vm1, %v30308_v15  ;;  %20113 = vmatpush3.msra.mxu0 %v1980_v6  ;;  %v25008_v25 = vpop.f32.mrf.mxu0 }
 0x24f   :  { %19762 = vmatmul.mubr.msk.f32.gmra.mxu1 %vm293_vm0, %v24359_v20  ;;  %20064 = vmatmul.mubr.msk.f32.gmra.mxu0 %vm293_vm0, %v24421_v27  ;;  %v25014_v50 = vpop.f32.mrf.mxu1 }
 0x250   :  { %30401 = vst [vmem:[#allocation55_spill] sm:$0xff] %v25014_v50  ;;  %19786 = vmatpush3.msra.mxu1 %v24157_v62  ;;  %20114 = vmatprep.subr.mxu0 %v30308_v15  ;;  %v25018_v45 = vpop.f32.mrf.mxu0 }
 0x251   :  { %19787 = vmatprep.subr.mxu1 %v30308_v15  ;;  %20115 = vmatpush3.msra.mxu0 %v24922_v18  ;;  %v19510_v6 = vpop.f32.mrf.mxu1 }
 0x252   :  { %19788 = vmatpush3.msra.mxu1 %v24170_v44  ;;  %20116 = vmatprep.subr.mxu0 %v30308_v15  ;;  %v25024_v39 = vpop.f32.mrf.mxu0 }
 0x253   :  { %19764 = vmatprep.mubr.msk.f32.mxu1 %vm22535_vm1, %v30308_v15  ;;  %20066 = vmatprep.mubr.msk.f32.mxu0 %vm22535_vm1, %v30308_v15  ;;  %v25030_v62 = vpop.f32.mrf.mxu1 }
 0x254   :  { %30402 = vst [vmem:[#allocation56_spill] sm:$0xff] %v25030_v62  ;;  %20117 = vmatpush3.msra.mxu0 %v24932_v61  ;;  %19765 = vmatmul.mubr.msk.f32.gmra.mxu1 %vm293_vm0, %v24391_v21  ;;  %v25035_v18 = vpop.f32.mrf.mxu0 }
 0x255   :  { %20067 = vmatmul.mubr.msk.f32.gmra.mxu0 %vm293_vm0, %v24450_v41  ;;  %20118 = vmatprep.subr.mxu0 %v30308_v15  ;;  %v19513_v44 = vpop.f32.mrf.mxu1 }
 0x256   :  { %20119 = vmatpush3.msra.mxu0 %v24904_v58  ;;  %19767 = vmatprep.mubr.msk.f32.mxu1 %vm22535_vm1, %v30308_v15  ;;  %v25043_v6 = vpop.f32.mrf.mxu0 }
 0x257   :  { %20120 = vmatprep.subr.mxu0 %v30308_v15  ;;  %20122 = vmatprep.mubr.msk.f32.mxu0 %vm22535_vm1, %v30308_v15  ;;  %v25048_v61 = vpop.f32.mrf.mxu1 }
 0x258   :  { %20121 = vmatpush3.msra.mxu0 %v24914_v12  ;;  %19768 = vmatmul.mubr.msk.f32.gmra.mxu1 %vm293_vm0, %v24421_v27  ;;  %v25053_v44 = vpop.f32.mrf.mxu0 }
 0x259   :  { %20123 = vmatmul.mubr.msk.f32.vlgmr.msra.gmra.mxu0 %vm293_vm0, %v24260_v26  ;;  %19770 = vmatprep.mubr.msk.f32.mxu1 %vm22535_vm1, %v30308_v15  ;;  %v19532_v58 = vpop.f32.mrf.mxu1 }
 0x25a   :  { %20125 = vmatprep.mubr.msk.f32.mxu0 %vm22535_vm1, %v30308_v15  ;;  %19810 = vmatprep.subr.mxu1 %v30308_v15  ;;  %v19228_v62 = vpop.f32.mrf.mxu0 }
 0x25b   :  { %v25062_v50 = vpop.f32.mrf.mxu1  ;;  %20180 = vmatprep.subr.mxu0 %v30308_v15 }
 0x25c   :  { %19771 = vmatmul.mubr.msk.f32.gmra.mxu1 %vm293_vm0, %v24450_v41  ;;  %v2060_v12 = vpop.f32.mrf.mxu0 }
 0x25d   :  { %20126 = vmatmul.mubr.msk.f32.gmra.mxu0 %vm293_vm0, %v24293_v31  ;;  %19789 = vmatprep.mubr.msk.f32.mxu1 %vm22535_vm1, %v30308_v15  ;;  %v19535_v58 = vpop.f32.mrf.mxu1 }
 0x25e   :  { %20128 = vmatprep.mubr.msk.f32.mxu0 %vm22535_vm1, %v30308_v15  ;;  %v19231_v7 = vpop.f32.mrf.mxu0 }
 0x25f   :  { %v25073_v0 = vpop.f32.mrf.mxu1  ;;  %20181 = vmatpush3.msra.mxu0 %v19231_v7 }
 0x260   :  { %30403 = vst [vmem:[#allocation57_spill] sm:$0xff] %v25073_v0  ;;  %19790 = vmatmul.mubr.msk.f32.vlgmr.msra.gmra.mxu1 %vm293_vm0, %v24260_v26  ;;  %v2070_v14 = vpop.f32.mrf.mxu0  ;;  %20182 = vmatprep.subr.mxu0 %v30308_v15 }
 0x261   :  { %19811 = vmatpush3.msra.mxu1 %v24350_v35  ;;  %20129 = vmatmul.mubr.msk.f32.gmra.mxu0 %vm293_vm0, %v24326_v23  ;;  %v19538_v13 = vpop.f32.mrf.mxu1 }
 0x262   :  { %19812 = vmatprep.subr.mxu1 %v30308_v15  ;;  %19792 = vmatprep.mubr.msk.f32.mxu1 %vm22535_vm1, %v30308_v15  ;;  %v25084_v58 = vpop.f32.mrf.mxu0 }
 0x263   :  { %30404 = vst [vmem:[#allocation58_spill] sm:$0xff] %v25084_v58  ;;  %19813 = vmatpush3.msra.mxu1 %v24370_v60  ;;  %20131 = vmatprep.mubr.msk.f32.mxu0 %vm22535_vm1, %v30308_v15  ;;  %v25089_v26 = vpop.f32.mrf.mxu1  ;;  %v25218_v58 = vld [vmem:[%s30083_s1 + $0x10] sm:$0xff] }
 0x264   :  { %30405 = vst [vmem:[#allocation59_spill] sm:$0xff] %v25089_v26  ;;  %19814 = vmatprep.subr.mxu1 %v30308_v15  ;;  %19793 = vmatmul.mubr.msk.f32.gmra.mxu1 %vm293_vm0, %v24293_v31  ;;  %v25094_v35 = vpop.f32.mrf.mxu0 }
 0x265   :  { %30406 = vst [vmem:[#allocation60_spill] sm:$0xff] %v25094_v35  ;;  %19815 = vmatpush3.msra.mxu1 %v24317_v54  ;;  %20132 = vmatmul.mubr.msk.f32.gmra.mxu0 %vm293_vm0, %v24359_v20  ;;  %v19541_v13 = vpop.f32.mrf.mxu1 }
 0x266   :  { %19816 = vmatprep.subr.mxu1 %v30308_v15  ;;  %19795 = vmatprep.mubr.msk.f32.mxu1 %vm22535_vm1, %v30308_v15  ;;  %v25102_v60 = vpop.f32.mrf.mxu0 }
 0x267   :  { %30407 = vst [vmem:[#allocation61_spill] sm:$0xff] %v25102_v60  ;;  %19817 = vmatpush3.msra.mxu1 %v24331_v46  ;;  %20134 = vmatprep.mubr.msk.f32.mxu0 %vm22535_vm1, %v30308_v15  ;;  %v25107_v31 = vpop.f32.mrf.mxu1  ;;  %v30430_v60 = vld [vmem:[#allocation14_spill] sm:$0xff] }
 0x268   :  { %30408 = vst [vmem:[#allocation62_spill] sm:$0xff] %v25107_v31  ;;  %19818 = vmatprep.subr.mxu1 %v30308_v15  ;;  %20183 = vmatpush3.msra.mxu0 %v2070_v14  ;;  %v25110_v54 = vpop.f32.mrf.mxu0 }
 0x269   :  { %30409 = vst [vmem:[#allocation63_spill] sm:$0xff] %v25110_v54  ;;  %19796 = vmatmul.mubr.msk.f32.gmra.mxu1 %vm293_vm0, %v24326_v23  ;;  %20135 = vmatmul.mubr.msk.f32.gmra.mxu0 %vm293_vm0, %v24391_v21  ;;  %v19544_v7 = vpop.f32.mrf.mxu1  ;;  %v30425_v54 = vld [vmem:[#allocation17_spill] sm:$0xff] }
 0x26a   :  { %19819 = vmatpush3.msra.mxu1 %v24284_v48  ;;  %20184 = vmatprep.subr.mxu0 %v30308_v15  ;;  %v25118_v46 = vpop.f32.mrf.mxu0 }
 0x26b   :  { %30410 = vst [vmem:[#allocation64_spill] sm:$0xff] %v25118_v46  ;;  %19820 = vmatprep.subr.mxu1 %v30308_v15  ;;  %20185 = vmatpush3.msra.mxu0 %v19228_v62  ;;  %v25121_v13 = vpop.f32.mrf.mxu1  ;;  %v30413_v62 = vld [vmem:[#allocation3_spill] sm:$0xff] }
 0x26c   :  { %30411 = vst [vmem:[#allocation65_spill] sm:$0xff] %v25121_v13  ;;  %19821 = vmatpush3.msra.mxu1 %v24298_v33  ;;  %20186 = vmatprep.subr.mxu0 %v30308_v15  ;;  %v25125_v23 = vpop.f32.mrf.mxu0 }
 0x26d   :  { %30412 = vst [vmem:[#allocation66_spill] sm:$0xff] %v25125_v23  ;;  %19798 = vmatprep.mubr.msk.f32.mxu1 %vm22535_vm1, %v30308_v15  ;;  %19822 = vmatprep.subr.mxu1 %v30308_v15  ;;  %v19547_v48 = vpop.f32.mrf.mxu1 }
 0x26e   :  { %20137 = vmatprep.mubr.msk.f32.mxu0 %vm22535_vm1, %v30308_v15  ;;  %20187 = vmatpush3.msra.mxu0 %v2060_v12  ;;  %v25132_v14 = vpop.f32.mrf.mxu0  ;;  %v30415_v48 = vld [vmem:[#allocation5_spill] sm:$0xff] }
 0x26f   :  { %19799 = vmatmul.mubr.msk.f32.gmra.mxu1 %vm293_vm0, %v24359_v20  ;;  %20138 = vmatmul.mubr.msk.f32.gmra.mxu0 %vm293_vm0, %v24421_v27  ;;  %v25138_v33 = vpop.f32.mrf.mxu1 }
 0x270   :  { %19823 = vmatpush3.msra.mxu1 %v30413_v62  ;;  %20188 = vmatprep.subr.mxu0 %v30308_v15  ;;  %v25142_v7 = vpop.f32.mrf.mxu0 }
 0x271   :  { %30414 = vst [vmem:[#allocation3_spill] sm:$0xff] %v25142_v7  ;;  %19824 = vmatprep.subr.mxu1 %v30308_v15  ;;  %20189 = vmatpush3.msra.mxu0 %v25043_v6  ;;  %v19550_v12 = vpop.f32.mrf.mxu1  ;;  %v30445_v7 = vld [vmem:[#allocation21_spill] sm:$0xff] }
 0x272   :  { %19825 = vmatpush3.msra.mxu1 %v30415_v48  ;;  %20190 = vmatprep.subr.mxu0 %v30308_v15  ;;  %v25148_v20 = vpop.f32.mrf.mxu0 }
 0x273   :  { %19801 = vmatprep.mubr.msk.f32.mxu1 %vm22535_vm1, %v30308_v15  ;;  %20140 = vmatprep.mubr.msk.f32.mxu0 %vm22535_vm1, %v30308_v15  ;;  %v25154_v62 = vpop.f32.mrf.mxu1 }
 0x274   :  { %30416 = vst [vmem:[#allocation5_spill] sm:$0xff] %v25154_v62  ;;  %20191 = vmatpush3.msra.mxu0 %v25053_v44  ;;  %19802 = vmatmul.mubr.msk.f32.gmra.mxu1 %vm293_vm0, %v24391_v21  ;;  %v25159_v6 = vpop.f32.mrf.mxu0  ;;  %v25201_v62 = vld [vmem:[%s30083_s1 + $0x8] sm:$0xff] }
 0x275   :  { %20141 = vmatmul.mubr.msk.f32.gmra.mxu0 %vm293_vm0, %v24450_v41  ;;  %20192 = vmatprep.subr.mxu0 %v30308_v15  ;;  %v19569_v12 = vpop.f32.mrf.mxu1 }
 0x276   :  { %20193 = vmatpush3.msra.mxu0 %v25024_v39  ;;  %19804 = vmatprep.mubr.msk.f32.mxu1 %vm22535_vm1, %v30308_v15  ;;  %v25167_v48 = vpop.f32.mrf.mxu0  ;;  %v25182_v39 = vld [vmem:[%s30083_s1] sm:$0xff] }
 0x277   :  { %20194 = vmatprep.subr.mxu0 %v30308_v15  ;;  %20196 = vmatprep.mubr.msk.f32.mxu0 %vm22535_vm1, %v30308_v15  ;;  %v25172_v21 = vpop.f32.mrf.mxu1 }
 0x278   :  { %30417 = vst [vmem:[#allocation67_spill] sm:$0xff] %v25172_v21  ;;  %20195 = vmatpush3.msra.mxu0 %v25035_v18  ;;  %19805 = vmatmul.mubr.msk.f32.gmra.mxu1 %vm293_vm0, %v24421_v27  ;;  %v25177_v44 = vpop.f32.mrf.mxu0 }
 0x279   :  { %20197 = vmatmul.mubr.msk.f32.vlgmr.msra.gmra.mxu0 %vm293_vm0, %v25182_v39  ;;  %19807 = vmatprep.mubr.msk.f32.mxu1 %vm22535_vm1, %v30308_v15  ;;  %v19572_v12 = vpop.f32.mrf.mxu1 }
 0x27a   :  { %20199 = vmatprep.mubr.msk.f32.mxu0 %vm22535_vm1, %v30308_v15  ;;  %19847 = vmatprep.subr.mxu1 %v30308_v15  ;;  %v19252_v27 = vpop.f32.mrf.mxu0 }
 0x27b   :  { %v25191_v18 = vpop.f32.mrf.mxu1  ;;  %20254 = vmatprep.subr.mxu0 %v30308_v15 }
 0x27c   :  { %30418 = vst [vmem:[#allocation68_spill] sm:$0xff] %v25191_v18  ;;  %19808 = vmatmul.mubr.msk.f32.gmra.mxu1 %vm293_vm0, %v24450_v41  ;;  %v25196_v21 = vpop.f32.mrf.mxu0 }
 0x27d   :  { %20200 = vmatmul.mubr.msk.f32.gmra.mxu0 %vm293_vm0, %v25201_v62  ;;  %19826 = vmatprep.mubr.msk.f32.mxu1 %vm22535_vm1, %v30308_v15  ;;  %v19575_v12 = vpop.f32.mrf.mxu1 }
 0x27e   :  { %20202 = vmatprep.mubr.msk.f32.mxu0 %vm22535_vm1, %v30308_v15  ;;  %v19255_v18 = vpop.f32.mrf.mxu0 }
 0x27f   :  { %v25209_v35 = vpop.f32.mrf.mxu1  ;;  %20255 = vmatpush3.msra.mxu0 %v19255_v18 }
 0x280   :  { %30419 = vst [vmem:[#allocation69_spill] sm:$0xff] %v25209_v35  ;;  %19827 = vmatmul.mubr.msk.f32.vlgmr.msra.gmra.mxu1 %vm293_vm0, %v25182_v39  ;;  %v2150_v41 = vpop.f32.mrf.mxu0  ;;  %20256 = vmatprep.subr.mxu0 %v30308_v15  ;;  %v30423_v35 = vld [vmem:[#allocation15_spill] sm:$0xff] }
 0x281   :  { %19848 = vmatpush3.msra.mxu1 %v24471_v34  ;;  %20203 = vmatmul.mubr.msk.f32.gmra.mxu0 %vm293_vm0, %v25218_v58  ;;  %v19578_v12 = vpop.f32.mrf.mxu1 }
 0x282   :  { %19849 = vmatprep.subr.mxu1 %v30308_v15  ;;  %19829 = vmatprep.mubr.msk.f32.mxu1 %vm22535_vm1, %v30308_v15  ;;  %v25225_v18 = vpop.f32.mrf.mxu0 }
 0x283   :  { %30420 = vst [vmem:[#allocation70_spill] sm:$0xff] %v25225_v18  ;;  %19850 = vmatpush3.msra.mxu1 %v24480_v16  ;;  %20205 = vmatprep.mubr.msk.f32.mxu0 %vm22535_vm1, %v30308_v15  ;;  %v25230_v34 = vpop.f32.mrf.mxu1  ;;  %v25241_v18 = vld [vmem:[%s30083_s1 + $0x18] sm:$0xff] }
 0x284   :  { %30421 = vst [vmem:[#allocation71_spill] sm:$0xff] %v25230_v34  ;;  %19851 = vmatprep.subr.mxu1 %v30308_v15  ;;  %19830 = vmatmul.mubr.msk.f32.gmra.mxu1 %vm293_vm0, %v25201_v62  ;;  %v25235_v12 = vpop.f32.mrf.mxu0 }
 0x285   :  { %30422 = vst [vmem:[#allocation72_spill] sm:$0xff] %v25235_v12  ;;  %19852 = vmatpush3.msra.mxu1 %v30423_v35  ;;  %20206 = vmatmul.mubr.msk.f32.gmra.mxu0 %vm293_vm0, %v25241_v18  ;;  %v19581_v16 = vpop.f32.mrf.mxu1  ;;  %v30428_v12 = vld [vmem:[#allocation12_spill] sm:$0xff] }
 0x286   :  { %19853 = vmatprep.subr.mxu1 %v30308_v15  ;;  %19832 = vmatprep.mubr.msk.f32.mxu1 %vm22535_vm1, %v30308_v15  ;;  %v25248_v34 = vpop.f32.mrf.mxu0 }
 0x287   :  { %30424 = vst [vmem:[#allocation15_spill] sm:$0xff] %v25248_v34  ;;  %19854 = vmatpush3.msra.mxu1 %v30425_v54  ;;  %20208 = vmatprep.mubr.msk.f32.mxu0 %vm22535_vm1, %v30308_v15  ;;  %v25253_v35 = vpop.f32.mrf.mxu1  ;;  %v25264_v34 = vld [vmem:[%s30083_s1 + $0x20] sm:$0xff] }
 0x288   :  { %30426 = vst [vmem:[#allocation17_spill] sm:$0xff] %v25253_v35  ;;  %19855 = vmatprep.subr.mxu1 %v30308_v15  ;;  %19833 = vmatmul.mubr.msk.f32.gmra.mxu1 %vm293_vm0, %v25218_v58  ;;  %v25258_v16 = vpop.f32.mrf.mxu0 }
 0x289   :  { %30427 = vst [vmem:[#allocation73_spill] sm:$0xff] %v25258_v16  ;;  %19856 = vmatpush3.msra.mxu1 %v30428_v12  ;;  %20209 = vmatmul.mubr.msk.f32.gmra.mxu0 %vm293_vm0, %v25264_v34  ;;  %v19584_v54 = vpop.f32.mrf.mxu1 }
 0x28a   :  { %19857 = vmatprep.subr.mxu1 %v30308_v15  ;;  %19835 = vmatprep.mubr.msk.f32.mxu1 %vm22535_vm1, %v30308_v15  ;;  %v25271_v35 = vpop.f32.mrf.mxu0  ;;  %v25286_v54 = vld [vmem:[%s30083_s1 + $0x28] sm:$0xff] }
 0x28b   :  { %30429 = vst [vmem:[#allocation12_spill] sm:$0xff] %v25271_v35  ;;  %19858 = vmatpush3.msra.mxu1 %v30430_v60  ;;  %20211 = vmatprep.mubr.msk.f32.mxu0 %vm22535_vm1, %v30308_v15  ;;  %v25276_v12 = vpop.f32.mrf.mxu1  ;;  %v30433_v35 = vld [vmem:[#allocation9_spill] sm:$0xff] }
 0x28c   :  { %30431 = vst [vmem:[#allocation14_spill] sm:$0xff] %v25276_v12  ;;  %19859 = vmatprep.subr.mxu1 %v30308_v15  ;;  %20257 = vmatpush3.msra.mxu0 %v2150_v41  ;;  %v25279_v16 = vpop.f32.mrf.mxu0 }
 0x28d   :  { %30432 = vst [vmem:[#allocation74_spill] sm:$0xff] %v25279_v16  ;;  %19836 = vmatmul.mubr.msk.f32.gmra.mxu1 %vm293_vm0, %v25241_v18  ;;  %20212 = vmatmul.mubr.msk.f32.gmra.mxu0 %vm293_vm0, %v25286_v54  ;;  %v19587_v60 = vpop.f32.mrf.mxu1  ;;  %v30436_v16 = vld [vmem:[#allocation11_spill] sm:$0xff] }
 0x28e   :  { %19860 = vmatpush3.msra.mxu1 %v30433_v35  ;;  %20258 = vmatprep.subr.mxu0 %v30308_v15  ;;  %v25292_v12 = vpop.f32.mrf.mxu0 }
 0x28f   :  { %30434 = vst [vmem:[#allocation9_spill] sm:$0xff] %v25292_v12  ;;  %19861 = vmatprep.subr.mxu1 %v30308_v15  ;;  %20259 = vmatpush3.msra.mxu0 %v19252_v27  ;;  %v25295_v41 = vpop.f32.mrf.mxu1 }
 0x290   :  { %30435 = vst [vmem:[#allocation75_spill] sm:$0xff] %v25295_v41  ;;  %19862 = vmatpush3.msra.mxu1 %v30436_v16  ;;  %20260 = vmatprep.subr.mxu0 %v30308_v15  ;;  %v25299_v23 = vpop.f32.mrf.mxu0  ;;  %v25313_v16 = vld [vmem:[%s30083_s1 + $0x30] sm:$0x3f] }
 0x291   :  { %30437 = vst [vmem:[#allocation11_spill] sm:$0xff] %v25299_v23  ;;  %19838 = vmatprep.mubr.msk.f32.mxu1 %vm22535_vm1, %v30308_v15  ;;  %20214 = vmatprep.mubr.msk.f32.mxu0 %vm22535_vm1, %v30308_v15  ;;  %v19606_v35 = vpop.f32.mrf.mxu1 }
 0x292   :  { %20261 = vmatpush3.msra.mxu0 %v25196_v21  ;;  %19839 = vmatmul.mubr.msk.f32.gmra.mxu1 %vm293_vm0, %v25264_v34  ;;  %v25308_v27 = vpop.f32.mrf.mxu0 }
 0x293   :  { %20215 = vmatmul.mubr.msk.f32.gmra.mxu0 %vm293_vm0, %v25313_v16  ;;  %20262 = vmatprep.subr.mxu0 %v30308_v15  ;;  %v25318_v60 = vpop.f32.mrf.mxu1 }
 0x294   :  { %30438 = vst [vmem:[#allocation76_spill] sm:$0xff] %v25318_v60  ;;  %20263 = vmatpush3.msra.mxu0 %v25167_v48  ;;  %19841 = vmatprep.mubr.msk.f32.mxu1 %vm22535_vm1, %v30308_v15  ;;  %v25323_v21 = vpop.f32.mrf.mxu0 }
 0x295   :  { %20264 = vmatprep.subr.mxu0 %v30308_v15  ;;  %20270 = vmatprep.mubr.msk.f32.mxu0 %vm22535_vm1, %v30308_v15  ;;  %v19609_v35 = vpop.f32.mrf.mxu1 }
 0x296   :  { %20265 = vmatpush3.msra.mxu0 %v25177_v44  ;;  %19842 = vmatmul.mubr.msk.f32.gmra.mxu1 %vm293_vm0, %v25286_v54  ;;  %v25338_v23 = vpop.f32.mrf.mxu0 }
 0x297   :  { %20266 = vmatprep.subr.mxu0 %v30308_v15  ;;  %19844 = vmatprep.mubr.msk.f32.mxu1 %vm22535_vm1, %v30308_v15  ;;  %v25334_v48 = vpop.f32.mrf.mxu1 }
 0x298   :  { %30439 = vst [vmem:[#allocation77_spill] sm:$0xff] %v25334_v48  ;;  %20267 = vmatpush3.msra.mxu0 %v25148_v20  ;;  %19884 = vmatprep.subr.mxu1 %v30308_v15  ;;  %v25352_v20 = vpop.f32.mrf.mxu0 }
 0x299   :  { %20268 = vmatprep.subr.mxu0 %v30308_v15  ;;  %v19612_v35 = vpop.f32.mrf.mxu1 }
 0x29a   :  { %20269 = vmatpush3.msra.mxu0 %v25159_v6  ;;  %19845 = vmatmul.mubr.msk.f32.gmra.mxu1 %vm293_vm0, %v25313_v16  ;;  %v19276_v12 = vpop.f32.mrf.mxu0 }
 0x29b   :  { %20271 = vmatmul.mubr.msk.f32.vlgmr.msra.gmra.mxu0 %vm293_vm0, %v25182_v39  ;;  %19863 = vmatprep.mubr.msk.f32.mxu1 %vm22535_vm1, %v30308_v15  ;;  %v25348_v44 = vpop.f32.mrf.mxu1 }
 0x29c   :  { %30440 = vst [vmem:[#allocation78_spill] sm:$0xff] %v25348_v44  ;;  %20273 = vmatprep.mubr.msk.f32.mxu0 %vm22535_vm1, %v30308_v15  ;;  %20328 = vmatprep.subr.mxu0 %v30308_v15 }
 0x29d   :  { %v19615_v35 = vpop.f32.mrf.mxu1 }
 0x29e   :  { %19864 = vmatmul.mubr.msk.f32.vlgmr.msra.gmra.mxu1 %vm293_vm0, %v25182_v39 }
 0x29f   :  { %19885 = vmatpush3.msra.mxu1 %v24582_v42  ;;  %20274 = vmatmul.mubr.msk.f32.gmra.mxu0 %vm293_vm0, %v25201_v62  ;;  %v25360_v6 = vpop.f32.mrf.mxu1 }
 0x2a0   :  { %30441 = vst [vmem:[#allocation79_spill] sm:$0xff] %v25360_v6  ;;  %19886 = vmatprep.subr.mxu1 %v30308_v15  ;;  %19866 = vmatprep.mubr.msk.f32.mxu1 %vm22535_vm1, %v30308_v15 }
 0x2a1   :  { %19887 = vmatpush3.msra.mxu1 %v24596_v29  ;;  %20276 = vmatprep.mubr.msk.f32.mxu0 %vm22535_vm1, %v30308_v15  ;;  %v19618_v35 = vpop.f32.mrf.mxu1  ;;  %v2220_v29 = vpop.f32.mrf.mxu0 }
 0x2a2   :  { %19888 = vmatprep.subr.mxu1 %v30308_v15  ;;  %19867 = vmatmul.mubr.msk.f32.gmra.mxu1 %vm293_vm0, %v25201_v62 }
 0x2a3   :  { %19889 = vmatpush3.msra.mxu1 %v24554_v36  ;;  %20277 = vmatmul.mubr.msk.f32.gmra.mxu0 %vm293_vm0, %v25218_v58  ;;  %v25374_v42 = vpop.f32.mrf.mxu1 }
 0x2a4   :  { %19890 = vmatprep.subr.mxu1 %v30308_v15  ;;  %19869 = vmatprep.mubr.msk.f32.mxu1 %vm22535_vm1, %v30308_v15 }
 0x2a5   :  { %19891 = vmatpush3.msra.mxu1 %v24563_v63  ;;  %20279 = vmatprep.mubr.msk.f32.mxu0 %vm22535_vm1, %v30308_v15  ;;  %v19621_v35 = vpop.f32.mrf.mxu1  ;;  %v19279_v63 = vpop.f32.mrf.mxu0 }
 0x2a6   :  { %19892 = vmatprep.subr.mxu1 %v30308_v15  ;;  %19870 = vmatmul.mubr.msk.f32.gmra.mxu1 %vm293_vm0, %v25218_v58 }
 0x2a7   :  { %19893 = vmatpush3.msra.mxu1 %v24526_v52  ;;  %20280 = vmatmul.mubr.msk.f32.gmra.mxu0 %vm293_vm0, %v25241_v18  ;;  %v25388_v36 = vpop.f32.mrf.mxu1  ;;  %v30443_v52 = vld [vmem:[#allocation19_spill] sm:$0xff] }
 0x2a8   :  { %30442 = vst [vmem:[#allocation80_spill] sm:$0xff] %v25388_v36  ;;  %19894 = vmatprep.subr.mxu1 %v30308_v15  ;;  %19872 = vmatprep.mubr.msk.f32.mxu1 %vm22535_vm1, %v30308_v15 }
 0x2a9   :  { %19895 = vmatpush3.msra.mxu1 %v24535_v43  ;;  %20282 = vmatprep.mubr.msk.f32.mxu0 %vm22535_vm1, %v30308_v15  ;;  %v19624_v35 = vpop.f32.mrf.mxu1  ;;  %v2230_v43 = vpop.f32.mrf.mxu0 }
 0x2aa   :  { %19896 = vmatprep.subr.mxu1 %v30308_v15  ;;  %19873 = vmatmul.mubr.msk.f32.gmra.mxu1 %vm293_vm0, %v25241_v18 }
 0x2ab   :  { %19897 = vmatpush3.msra.mxu1 %v30443_v52  ;;  %20283 = vmatmul.mubr.msk.f32.gmra.mxu0 %vm293_vm0, %v25264_v34  ;;  %v25402_v46 = vpop.f32.mrf.mxu1 }
 0x2ac   :  { %30444 = vst [vmem:[#allocation19_spill] sm:$0xff] %v25402_v46  ;;  %19898 = vmatprep.subr.mxu1 %v30308_v15  ;;  %20329 = vmatpush3.msra.mxu0 %v19279_v63  ;;  %v25423_v63 = vpop.f32.mrf.mxu0 }
 0x2ad   :  { %19899 = vmatpush3.msra.mxu1 %v30445_v7  ;;  %20330 = vmatprep.subr.mxu0 %v30308_v15  ;;  %v19643_v35 = vpop.f32.mrf.mxu1  ;;  %30447 = vst [vmem:[#allocation81_spill] sm:$0xff] %v25423_v63 }
 0x2ae   :  { %19875 = vmatprep.mubr.msk.f32.mxu1 %vm22535_vm1, %v30308_v15  ;;  %20285 = vmatprep.mubr.msk.f32.mxu0 %vm22535_vm1, %v30308_v15 }
 0x2af   :  { %20331 = vmatpush3.msra.mxu0 %v2230_v43  ;;  %19876 = vmatmul.mubr.msk.f32.gmra.mxu1 %vm293_vm0, %v25264_v34  ;;  %v25413_v52 = vpop.f32.mrf.mxu1 }
 0x2b0   :  { %30446 = vst [vmem:[#allocation21_spill] sm:$0xff] %v25413_v52  ;;  %20286 = vmatmul.mubr.msk.f32.gmra.mxu0 %vm293_vm0, %v25286_v54  ;;  %20332 = vmatprep.subr.mxu0 %v30308_v15 }
 0x2b1   :  { %20333 = vmatpush3.msra.mxu0 %v19276_v12  ;;  %19878 = vmatprep.mubr.msk.f32.mxu1 %vm22535_vm1, %v30308_v15  ;;  %v19646_v7 = vpop.f32.mrf.mxu1 }
 0x2b2   :  { %20334 = vmatprep.subr.mxu0 %v30308_v15  ;;  %20288 = vmatprep.mubr.msk.f32.mxu0 %vm22535_vm1, %v30308_v15 }
 0x2b3   :  { %20335 = vmatpush3.msra.mxu0 %v2220_v29  ;;  %19879 = vmatmul.mubr.msk.f32.gmra.mxu1 %vm293_vm0, %v25286_v54  ;;  %v25427_v43 = vpop.f32.mrf.mxu1  ;;  %v25437_v29 = vpop.f32.mrf.mxu0 }
 0x2b4   :  { %30448 = vst [vmem:[#allocation82_spill] sm:$0xff] %v25427_v43  ;;  %20289 = vmatmul.mubr.msk.f32.gmra.mxu0 %vm293_vm0, %v25313_v16  ;;  %20336 = vmatprep.subr.mxu0 %v30308_v15  ;;  %30449 = vst [vmem:[#allocation83_spill] sm:$0xff] %v25437_v29 }
 0x2b5   :  { %20337 = vmatpush3.msra.mxu0 %v25338_v23  ;;  %19881 = vmatprep.mubr.msk.f32.mxu1 %vm22535_vm1, %v30308_v15  ;;  %v19649_v12 = vpop.f32.mrf.mxu1  ;;  %v25451_v7 = vpop.f32.mrf.mxu0 }
 0x2b6   :  { %20338 = vmatprep.subr.mxu0 %v30308_v15  ;;  %19921 = vmatprep.subr.mxu1 %v30308_v15  ;;  %30451 = vst [vmem:[#allocation85_spill] sm:$0xff] %v25451_v7 }
 0x2b7   :  { %20339 = vmatpush3.msra.mxu0 %v25352_v20  ;;  %19882 = vmatmul.mubr.msk.f32.gmra.mxu1 %vm293_vm0, %v25313_v16  ;;  %v25442_v35 = vpop.f32.mrf.mxu1 }
 0x2b8   :  { %30450 = vst [vmem:[#allocation84_spill] sm:$0xff] %v25442_v35  ;;  %20340 = vmatprep.subr.mxu0 %v30308_v15  ;;  %19900 = vmatprep.mubr.msk.f32.mxu1 %vm22535_vm1, %v30308_v15 }
 0x2b9   :  { %20341 = vmatpush3.msra.mxu0 %v25308_v27  ;;  %20344 = vmatprep.mubr.msk.f32.mxu0 %vm22535_vm1, %v30308_v15  ;;  %v19652_v23 = vpop.f32.mrf.mxu1 }
 0x2ba   :  { %20342 = vmatprep.subr.mxu0 %v30308_v15  ;;  %v30457_v23 = vld [vmem:[#allocation28_spill] sm:$0xff] }
 0x2bb   :  { %20343 = vmatpush3.msra.mxu0 %v25323_v21  ;;  %19901 = vmatmul.mubr.msk.f32.vlgmr.msra.gmra.mxu1 %vm293_vm0, %v25182_v39  ;;  %v25456_v20 = vpop.f32.mrf.mxu1  ;;  %v25467_v21 = vpop.f32.mrf.mxu0 }
 0x2bc   :  { %30452 = vst [vmem:[#allocation86_spill] sm:$0xff] %v25456_v20  ;;  %19922 = vmatpush3.msra.mxu1 %v24670_v19  ;;  %20345 = vmatmul.mubr.msk.f32.vlgmr.msra.gmra.mxu0 %vm293_vm0, %v25182_v39  ;;  %30453 = vst [vmem:[#allocation87_spill] sm:$0xff] %v25467_v21  ;;  %v6525_v21 = vld [vmem:[%s30084_s8] sm:$0xff] }
 0x2bd   :  { %19923 = vmatprep.subr.mxu1 %v30308_v15  ;;  %19903 = vmatprep.mubr.msk.f32.mxu1 %vm22535_vm1, %v30308_v15  ;;  %v19655_v27 = vpop.f32.mrf.mxu1  ;;  %v25483_v12 = vpop.f32.mrf.mxu0 }
 0x2be   :  { %19924 = vmatpush3.msra.mxu1 %v24679_v53  ;;  %20347 = vmatprep.mubr.msk.f32.mxu0 %vm22535_vm1, %v30308_v15  ;;  %30455 = vst [vmem:[#allocation89_spill] sm:$0xff] %v25483_v12  ;;  %v6532_v27 = vld [vmem:[%s30084_s8 + $0x38] sm:$0xff] }
 0x2bf   :  { %19925 = vmatprep.subr.mxu1 %v30308_v15  ;;  %19904 = vmatmul.mubr.msk.f32.gmra.mxu1 %vm293_vm0, %v25201_v62  ;;  %v25472_v19 = vpop.f32.mrf.mxu1 }
 0x2c0   :  { %30454 = vst [vmem:[#allocation88_spill] sm:$0xff] %v25472_v19  ;;  %19926 = vmatpush3.msra.mxu1 %v24655_v38  ;;  %20348 = vmatmul.mubr.msk.f32.gmra.mxu0 %vm293_vm0, %v25201_v62  ;;  %v30461_v19 = vld [vmem:[#allocation27_spill] sm:$0xff] }
 0x2c1   :  { %19927 = vmatprep.subr.mxu1 %v30308_v15  ;;  %19906 = vmatprep.mubr.msk.f32.mxu1 %vm22535_vm1, %v30308_v15  ;;  %v19658_v53 = vpop.f32.mrf.mxu1 }
 0x2c2   :  { %19928 = vmatpush3.msra.mxu1 %v24664_v37  ;;  %20350 = vmatprep.mubr.msk.f32.mxu0 %vm22535_vm1, %v30308_v15  ;;  %v25502_v53 = vpop.f32.mrf.mxu0 }
 0x2c3   :  { %19929 = vmatprep.subr.mxu1 %v30308_v15  ;;  %19907 = vmatmul.mubr.msk.f32.gmra.mxu1 %vm293_vm0, %v25218_v58  ;;  %v25488_v38 = vpop.f32.mrf.mxu1  ;;  %30458 = vst [vmem:[#allocation28_spill] sm:$0xff] %v25502_v53 }
 0x2c4   :  { %30456 = vst [vmem:[#allocation90_spill] sm:$0xff] %v25488_v38  ;;  %19930 = vmatpush3.msra.mxu1 %v30457_v23  ;;  %20351 = vmatmul.mubr.msk.f32.gmra.mxu0 %vm293_vm0, %v25218_v58  ;;  %v30460_v38 = vld [vmem:[#allocation25_spill] sm:$0xff]  ;;  %v25517_v20 = vpop.f32.mrf.mxu0 }
 0x2c5   :  { %19931 = vmatprep.subr.mxu1 %v30308_v15  ;;  %19909 = vmatprep.mubr.msk.f32.mxu1 %vm22535_vm1, %v30308_v15  ;;  %v19661_v37 = vpop.f32.mrf.mxu1  ;;  %30462 = vst [vmem:[#allocation25_spill] sm:$0xff] %v25517_v20 }
 0x2c6   :  { %19932 = vmatpush3.msra.mxu1 %v24645_v9  ;;  %20353 = vmatprep.mubr.msk.f32.mxu0 %vm22535_vm1, %v30308_v15  ;;  %v6531_v9 = vld [vmem:[%s30084_s8 + $0x30] sm:$0xff] }
 0x2c7   :  { %19933 = vmatprep.subr.mxu1 %v30308_v15  ;;  %19910 = vmatmul.mubr.msk.f32.gmra.mxu1 %vm293_vm0, %v25241_v18  ;;  %v25507_v23 = vpop.f32.mrf.mxu1 }
 0x2c8   :  { %30459 = vst [vmem:[#allocation91_spill] sm:$0xff] %v25507_v23  ;;  %19934 = vmatpush3.msra.mxu1 %v30460_v38  ;;  %20354 = vmatmul.mubr.msk.f32.gmra.mxu0 %vm293_vm0, %v25241_v18  ;;  %v6530_v38 = vld [vmem:[%s30084_s8 + $0x28] sm:$0xff] }
 0x2c9   :  { %20402 = vmatprep.subr.mxu0 %v6532_v27  ;;  %19935 = vmatprep.subr.mxu1 %v30308_v15  ;;  %v19680_v37 = vpop.f32.mrf.mxu1 }
 0x2ca   :  { %20403 = vmatpush3.msra.mxu0 %v6532_v27  ;;  %19936 = vmatpush3.msra.mxu1 %v30461_v19  ;;  %v6529_v19 = vld [vmem:[%s30084_s8 + $0x20] sm:$0xff]  ;;  %v25537_v37 = vpop.f32.mrf.mxu0 }
 0x2cb   :  { %20404 = vmatprep.subr.mxu0 %v6531_v9  ;;  %19912 = vmatprep.mubr.msk.f32.mxu1 %vm22535_vm1, %v30308_v15  ;;  %v25524_v35 = vpop.f32.mrf.mxu1  ;;  %30464 = vst [vmem:[#allocation92_spill] sm:$0xff] %v25537_v37 }
 0x2cc   :  { %30463 = vst [vmem:[#allocation27_spill] sm:$0xff] %v25524_v35  ;;  %20356 = vmatprep.mubr.msk.f32.mxu0 %vm22535_vm1, %v30308_v15  ;;  %20405 = vmatpush3.msra.mxu0 %v6531_v9  ;;  %v6528_v9 = vld [vmem:[%s30084_s8 + $0x18] sm:$0xff] }
 0x2cd   :  { %19913 = vmatmul.mubr.msk.f32.gmra.mxu1 %vm293_vm0, %v25264_v34  ;;  %20357 = vmatmul.mubr.msk.f32.gmra.mxu0 %vm293_vm0, %v25264_v34  ;;  %v19683_v27 = vpop.f32.mrf.mxu1 }
 0x2ce   :  { %20406 = vmatprep.subr.mxu0 %v6530_v38  ;;  %19915 = vmatprep.mubr.msk.f32.mxu1 %vm22535_vm1, %v30308_v15  ;;  %v25549_v27 = vmul.f32 %v25048_v61, %v25048_v61 }
 0x2cf   :  { %20407 = vmatpush3.msra.mxu0 %v6530_v38  ;;  %20359 = vmatprep.mubr.msk.f32.mxu0 %vm22535_vm1, %v30308_v15  ;;  %v6527_v38 = vld [vmem:[%s30084_s8 + $0x10] sm:$0xff] }
 0x2d0   :  { %20408 = vmatprep.subr.mxu0 %v6529_v19  ;;  %v25544_v43 = vpop.f32.mrf.mxu1  ;;  %19995 = vmatprep.subr.mxu1 %v30308_v15 }
 0x2d1   :  { %30465 = vst [vmem:[#allocation93_spill] sm:$0xff] %v25544_v43  ;;  %20409 = vmatpush3.msra.mxu0 %v6529_v19  ;;  %19916 = vmatmul.mubr.msk.f32.gmra.mxu1 %vm293_vm0, %v25286_v54  ;;  %v6526_v19 = vld [vmem:[%s30084_s8 + $0x8] sm:$0xff] }
 0x2d2   :  { %20360 = vmatmul.mubr.msk.f32.gmra.mxu0 %vm293_vm0, %v25286_v54  ;;  %20410 = vmatprep.subr.mxu0 %v6528_v9  ;;  %v19686_v52 = vpop.f32.mrf.mxu1  ;;  %v25558_v46 = vpop.f32.mrf.mxu0 }
 0x2d3   :  { %20411 = vmatpush3.msra.mxu0 %v6528_v9  ;;  %19918 = vmatprep.mubr.msk.f32.mxu1 %vm22535_vm1, %v30308_v15  ;;  %v25573_v9 = vmul.f32 %v25062_v50, %v25062_v50 }
 0x2d4   :  { %20412 = vmatprep.subr.mxu0 %v6527_v38  ;;  %20362 = vmatprep.mubr.msk.f32.mxu0 %vm22535_vm1, %v30308_v15  ;;  %v25569_v63 = vpop.f32.mrf.mxu1  ;;  %v19976_v52 = vpop.f32.mrf.mxu0 }
 0x2d5   :  { %30466 = vst [vmem:[#allocation94_spill] sm:$0xff] %v25569_v63  ;;  %20413 = vmatpush3.msra.mxu0 %v6527_v38  ;;  %19919 = vmatmul.mubr.msk.f32.gmra.mxu1 %vm293_vm0, %v25313_v16  ;;  %v22416_v52 = vld [vmem:[%s30082_s0] sm:$0xff] }
 0x2d6   :  { %20363 = vmatmul.mubr.msk.f32.gmra.mxu0 %vm293_vm0, %v25313_v16  ;;  %20414 = vmatprep.subr.mxu0 %v6526_v19  ;;  %v19689_v29 = vpop.f32.mrf.mxu1  ;;  %v25582_v7 = vpop.f32.mrf.mxu0 }
 0x2d7   :  { %20415 = vmatpush3.msra.mxu0 %v6526_v19  ;;  %19937 = vmatprep.mubr.msk.f32.mxu1 %vm22535_vm1, %v30308_v15  ;;  %v25596_v29 = vmul.f32 %v25073_v0, %v25073_v0  ;;  %v22417_v19 = vld [vmem:[%s30082_s0 + $0x8] sm:$0xff] }
 0x2d8   :  { %20416 = vmatprep.subr.mxu0 %v6525_v21  ;;  %20418 = vmatprep.mubr.msk.f32.mxu0 %vm293_vm0, %v22416_v52  ;;  %v25592_v53 = vpop.f32.mrf.mxu1  ;;  %v19979_v12 = vpop.f32.mrf.mxu0 }
 0x2d9   :  { %30467 = vst [vmem:[#allocation95_spill] sm:$0xff] %v25592_v53  ;;  %20417 = vmatpush3.msra.mxu0 %v6525_v21  ;;  %19938 = vmatmul.mubr.msk.f32.vlgmr.msra.gmra.mxu1 %vm293_vm0, %v25182_v39  ;;  %v22418_v12 = vld [vmem:[%s30082_s0 + $0x10] sm:$0xff] }
 0x2da   :  { %20419 = vmatmul.mubr.msk.f32.vlgmr.msra.gmra.mxu0 %vm293_vm0, %v22417_v19  ;;  %19940 = vmatprep.mubr.msk.f32.mxu1 %vm22535_vm1, %v30308_v15  ;;  %v19692_v52 = vpop.f32.mrf.mxu1  ;;  %v25606_v38 = vpop.f32.mrf.mxu0 }
 0x2db   :  { %20421 = vmatprep.mubr.msk.f32.mxu0 %vm293_vm0, %v22418_v12  ;;  %19996 = vmatpush3.msra.mxu1 %v24767_v47  ;;  %v25620_v52 = vmul.f32 %v25089_v26, %v25089_v26  ;;  %v22419_v12 = vld [vmem:[%s30082_s0 + $0x18] sm:$0xff] }
 0x2dc   :  { %19997 = vmatprep.subr.mxu1 %v30308_v15  ;;  %v25616_v19 = vpop.f32.mrf.mxu1  ;;  %v19982_v37 = vpop.f32.mrf.mxu0 }
 0x2dd   :  { %30468 = vst [vmem:[#allocation96_spill] sm:$0xff] %v25616_v19  ;;  %19941 = vmatmul.mubr.msk.f32.gmra.mxu1 %vm293_vm0, %v25201_v62  ;;  %v22420_v37 = vld [vmem:[%s30082_s0 + $0x20] sm:$0xff] }
 0x2de   :  { %20422 = vmatmul.mubr.msk.f32.gmra.mxu0 %vm293_vm0, %v22419_v12  ;;  %19943 = vmatprep.mubr.msk.f32.mxu1 %vm22535_vm1, %v30308_v15  ;;  %v19695_v47 = vpop.f32.mrf.mxu1  ;;  %v25630_v21 = vpop.f32.mrf.mxu0 }
 0x2df   :  { %20424 = vmatprep.mubr.msk.f32.mxu0 %vm293_vm0, %v22420_v37  ;;  %19998 = vmatpush3.msra.mxu1 %v24777_v3  ;;  %v25644_v47 = vmul.f32 %v25107_v31, %v25107_v31  ;;  %v22421_v37 = vld [vmem:[%s30082_s0 + $0x28] sm:$0xff] }
 0x2e0   :  { %19999 = vmatprep.subr.mxu1 %v30308_v15  ;;  %v25640_v12 = vpop.f32.mrf.mxu1  ;;  %v19985_v26 = vpop.f32.mrf.mxu0 }
 0x2e1   :  { %30469 = vst [vmem:[#allocation97_spill] sm:$0xff] %v25640_v12  ;;  %19944 = vmatmul.mubr.msk.f32.gmra.mxu1 %vm293_vm0, %v25218_v58  ;;  %v22422_v26 = vld [vmem:[%s30082_s0 + $0x30] sm:$0xff] }
 0x2e2   :  { %20425 = vmatmul.mubr.msk.f32.gmra.mxu0 %vm293_vm0, %v22421_v37  ;;  %19946 = vmatprep.mubr.msk.f32.mxu1 %vm22535_vm1, %v30308_v15  ;;  %v19698_v3 = vpop.f32.mrf.mxu1  ;;  %v25654_v20 = vpop.f32.mrf.mxu0 }
 0x2e3   :  { %20427 = vmatprep.mubr.msk.f32.mxu0 %vm293_vm0, %v22422_v26  ;;  %20000 = vmatpush3.msra.mxu1 %v24752_v49  ;;  %v25670_v3 = vmul.f32 %v25121_v13, %v25121_v13  ;;  %v22423_v26 = vld [vmem:[%s30082_s0 + $0x38] sm:$0xff]  ;;  %v22425_v13 = vld [vmem:[%s30082_s0 + $0x48] sm:$0xff] }
 0x2e4   :  { %20001 = vmatprep.subr.mxu1 %v30308_v15  ;;  %v25664_v37 = vpop.f32.mrf.mxu1  ;;  %v19988_v0 = vpop.f32.mrf.mxu0 }
 0x2e5   :  { %30470 = vst [vmem:[#allocation98_spill] sm:$0xff] %v25664_v37  ;;  %19947 = vmatmul.mubr.msk.f32.gmra.mxu1 %vm293_vm0, %v25241_v18  ;;  %v22424_v0 = vld [vmem:[%s30082_s0 + $0x40] sm:$0xff] }
 0x2e6   :  { %20428 = vmatmul.mubr.msk.f32.gmra.mxu0 %vm293_vm0, %v22423_v26  ;;  %19949 = vmatprep.mubr.msk.f32.mxu1 %vm22535_vm1, %v30308_v15  ;;  %v19717_v49 = vpop.f32.mrf.mxu1  ;;  %v22430_v26 = vld [vmem:[%s30082_s0 + $0x70] sm:$0xff] }
 0x2e7   :  { %20430 = vmatprep.mubr.msk.f32.mxu0 %vm293_vm0, %v22424_v0  ;;  %20002 = vmatpush3.msra.mxu1 %v24761_v59  ;;  %v25683_v31 = vpop.f32.mrf.mxu0  ;;  %v22426_v0 = vld [vmem:[%s30082_s0 + $0x50] sm:$0xff] }
 0x2e8   :  { %20003 = vmatprep.subr.mxu1 %v30308_v15  ;;  %v25686_v37 = vpop.f32.mrf.mxu1 }
 0x2e9   :  { %30471 = vst [vmem:[#allocation99_spill] sm:$0xff] %v25686_v37  ;;  %19950 = vmatmul.mubr.msk.f32.gmra.mxu1 %vm293_vm0, %v25264_v34  ;;  %v19991_v49 = vpop.f32.mrf.mxu0 }
 0x2ea   :  { %20431 = vmatmul.mubr.msk.f32.gmra.mxu0 %vm293_vm0, %v22425_v13  ;;  %19952 = vmatprep.mubr.msk.f32.mxu1 %vm22535_vm1, %v30308_v15  ;;  %v19720_v59 = vpop.f32.mrf.mxu1  ;;  %v22427_v13 = vld [vmem:[%s30082_s0 + $0x58] sm:$0xff] }
 0x2eb   :  { %20433 = vmatprep.mubr.msk.f32.mxu0 %vm293_vm0, %v22426_v0  ;;  %20004 = vmatpush3.msra.mxu1 %v24737_v40  ;;  %v22428_v40 = vld [vmem:[%s30082_s0 + $0x60] sm:$0xff] }
 0x2ec   :  { %20005 = vmatprep.subr.mxu1 %v30308_v15  ;;  %v25704_v49 = vpop.f32.mrf.mxu1 }
 0x2ed   :  { %30472 = vst [vmem:[#allocation100_spill] sm:$0xff] %v25704_v49  ;;  %19953 = vmatmul.mubr.msk.f32.gmra.mxu1 %vm293_vm0, %v25286_v54  ;;  %v25787_v49 = vmul.f32 %v25318_v60, %v25318_v60 }
 0x2ee   :  { %20434 = vmatmul.mubr.msk.f32.gmra.mxu0 %vm293_vm0, %v22427_v13  ;;  %19955 = vmatprep.mubr.msk.f32.mxu1 %vm22535_vm1, %v30308_v15  ;;  %v19723_v59 = vpop.f32.mrf.mxu1  ;;  %v25726_v13 = vmul.f32 %v25138_v33, %v25138_v33 }
 0x2ef   :  { %20006 = vmatpush3.msra.mxu1 %v24745_v8  ;;  %20436 = vmatprep.mubr.msk.f32.mxu0 %vm293_vm0, %v22428_v40  ;;  %v22429_v8 = vld [vmem:[%s30082_s0 + $0x68] sm:$0xff] }
 0x2f0   :  { %20007 = vmatprep.subr.mxu1 %v30308_v15  ;;  %v25720_v0 = vpop.f32.mrf.mxu1 }
 0x2f1   :  { %30473 = vst [vmem:[#allocation101_spill] sm:$0xff] %v25720_v0  ;;  %19956 = vmatmul.mubr.msk.f32.gmra.mxu1 %vm293_vm0, %v25313_v16 }
 0x2f2   :  { %20437 = vmatmul.mubr.msk.f32.gmra.mxu0 %vm293_vm0, %v22429_v8  ;;  %20008 = vmatpush3.msra.mxu1 %v24725_v11  ;;  %v19726_v59 = vpop.f32.mrf.mxu1 }
 0x2f3   :  { %20009 = vmatprep.subr.mxu1 %v30308_v15  ;;  %20011 = vmatprep.mubr.msk.f32.mxu1 %vm22535_vm1, %v30308_v15  ;;  %v25736_v40 = vpop.f32.mrf.mxu0  ;;  %v22432_v59 = vld [vmem:[%s30082_s0 + $0x80] sm:$0xff] }
 0x2f4   :  { %20010 = vmatpush3.msra.mxu1 %v24732_v56  ;;  %20439 = vmatprep.mubr.msk.f32.mxu0 %vm293_vm0, %v22430_v26  ;;  %v25743_v0 = vpop.f32.mrf.mxu1  ;;  %v22431_v56 = vld [vmem:[%s30082_s0 + $0x78] sm:$0xff] }
 0x2f5   :  { %30474 = vst [vmem:[#allocation102_spill] sm:$0xff] %v25743_v0  ;;  %20012 = vmatmul.mubr.msk.f32.vlgmr.msra.gmra.mxu1 %vm293_vm0, %v25182_v39  ;;  %20069 = vmatprep.subr.mxu1 %v30308_v15  ;;  %v19994_v8 = vpop.f32.mrf.mxu0 }
 0x2f6   :  { %20440 = vmatmul.mubr.msk.f32.gmra.mxu0 %vm293_vm0, %v22431_v56  ;;  %20014 = vmatprep.mubr.msk.f32.mxu1 %vm22535_vm1, %v30308_v15  ;;  %v19729_v26 = vpop.f32.mrf.mxu1  ;;  %v25763_v8 = vmul.f32 %v25295_v41, %v25295_v41  ;;  %v25859_v41 = vmul.f32 %v25360_v6, %v25360_v6 }
 0x2f7   :  { %20442 = vmatprep.mubr.msk.f32.mxu0 %vm293_vm0, %v22432_v59  ;;  %20070 = vmatpush3.msra.mxu1 %v24886_v10  ;;  %v22433_v26 = vld [vmem:[%s30082_s0 + $0x88] sm:$0xff]  ;;  %v25806_v10 = vmul.f32 %v25334_v48, %v25334_v48 }
 0x2f8   :  { %20071 = vmatprep.subr.mxu1 %v30308_v15  ;;  %v25766_v11 = vpop.f32.mrf.mxu1  ;;  %v25768_v56 = vpop.f32.mrf.mxu0 }
 0x2f9   :  { %30475 = vst [vmem:[#allocation103_spill] sm:$0xff] %v25766_v11  ;;  %20015 = vmatmul.mubr.msk.f32.gmra.mxu1 %vm293_vm0, %v25201_v62  ;;  %v22434_v11 = vld [vmem:[%s30082_s0 + $0x90] sm:$0xff] }
 0x2fa   :  { %20443 = vmatmul.mubr.msk.f32.gmra.mxu0 %vm293_vm0, %v22433_v26  ;;  %20017 = vmatprep.mubr.msk.f32.mxu1 %vm22535_vm1, %v30308_v15  ;;  %v19732_v59 = vpop.f32.mrf.mxu1  ;;  %v20050_v0 = vpop.f32.mrf.mxu0 }
 0x2fb   :  { %20445 = vmatprep.mubr.msk.f32.mxu0 %vm293_vm0, %v22434_v11  ;;  %20072 = vmatpush3.msra.mxu1 %v24897_v30  ;;  %v22435_v0 = vld [vmem:[%s30082_s0 + $0x98] sm:$0xff]  ;;  %v22438_v30 = vld [vmem:[%s30082_s0 + $0xb0] sm:$0xff] }
 0x2fc   :  { %20073 = vmatprep.subr.mxu1 %v30308_v15  ;;  %v25790_v26 = vpop.f32.mrf.mxu1  ;;  %v25792_v37 = vpop.f32.mrf.mxu0 }
 0x2fd   :  { %30476 = vst [vmem:[#allocation104_spill] sm:$0xff] %v25790_v26  ;;  %20018 = vmatmul.mubr.msk.f32.gmra.mxu1 %vm293_vm0, %v25218_v58  ;;  %v22436_v26 = vld [vmem:[%s30082_s0 + $0xa0] sm:$0xff] }
 0x2fe   :  { %20446 = vmatmul.mubr.msk.f32.gmra.mxu0 %vm293_vm0, %v22435_v0  ;;  %20020 = vmatprep.mubr.msk.f32.mxu1 %vm22535_vm1, %v30308_v15  ;;  %v19735_v11 = vpop.f32.mrf.mxu1  ;;  %v20053_v59 = vpop.f32.mrf.mxu0 }
 0x2ff   :  { %20448 = vmatprep.mubr.msk.f32.mxu0 %vm293_vm0, %v22436_v26  ;;  %20074 = vmatpush3.msra.mxu1 %v24871_v32  ;;  %v22437_v59 = vld [vmem:[%s30082_s0 + $0xa8] sm:$0xff]  ;;  %v25835_v11 = vmul.f32 %v25348_v44, %v25348_v44  ;;  %v22440_v44 = vld [vmem:[%s30082_s0 + $0xc0] sm:$0xff] }
 0x300   :  { %20075 = vmatprep.subr.mxu1 %v30308_v15  ;;  %v25814_v0 = vpop.f32.mrf.mxu1  ;;  %v25816_v60 = vpop.f32.mrf.mxu0 }
 0x301   :  { %20021 = vmatmul.mubr.msk.f32.gmra.mxu1 %vm293_vm0, %v25241_v18 }
 0x302   :  { %20449 = vmatmul.mubr.msk.f32.gmra.mxu0 %vm293_vm0, %v22437_v59  ;;  %20023 = vmatprep.mubr.msk.f32.mxu1 %vm22535_vm1, %v30308_v15  ;;  %v19754_v32 = vpop.f32.mrf.mxu1  ;;  %v20056_v26 = vpop.f32.mrf.mxu0 }
 0x303   :  { %20451 = vmatprep.mubr.msk.f32.mxu0 %vm293_vm0, %v22438_v30  ;;  %20076 = vmatpush3.msra.mxu1 %v24880_v22  ;;  %v22439_v26 = vld [vmem:[%s30082_s0 + $0xb8] sm:$0xff] }
 0x304   :  { %20077 = vmatprep.subr.mxu1 %v30308_v15  ;;  %v25838_v59 = vpop.f32.mrf.mxu1 }
 0x305   :  { %20024 = vmatmul.mubr.msk.f32.gmra.mxu1 %vm293_vm0, %v25264_v34  ;;  %v25842_v32 = vpop.f32.mrf.mxu0 }
 0x306   :  { %20452 = vmatmul.mubr.msk.f32.gmra.mxu0 %vm293_vm0, %v22439_v26  ;;  %20026 = vmatprep.mubr.msk.f32.mxu1 %vm22535_vm1, %v30308_v15  ;;  %v19757_v30 = vpop.f32.mrf.mxu1 }
 0x307   :  { %20454 = vmatprep.mubr.msk.f32.mxu0 %vm293_vm0, %v22440_v44  ;;  %20078 = vmatpush3.msra.mxu1 %v24855_v1  ;;  %v20059_v48 = vpop.f32.mrf.mxu0  ;;  %v22441_v44 = vld [vmem:[%s30082_s0 + $0xc8] sm:$0xff] }
 0x308   :  { %20079 = vmatprep.subr.mxu1 %v30308_v15  ;;  %v22442_v48 = vld [vmem:[%s30082_s0 + $0xd0] sm:$0xff] }
 0x309   :  { %20027 = vmatmul.mubr.msk.f32.gmra.mxu1 %vm293_vm0, %v25286_v54  ;;  %v25864_v26 = vpop.f32.mrf.mxu1  ;;  %v25866_v30 = vpop.f32.mrf.mxu0 }
 0x30a   :  { %20455 = vmatmul.mubr.msk.f32.gmra.mxu0 %vm293_vm0, %v22441_v44  ;;  %20029 = vmatprep.mubr.msk.f32.mxu1 %vm22535_vm1, %v30308_v15  ;;  %v25886_v44 = vmul.f32 %v25374_v42, %v25374_v42 }
 0x30b   :  { %20080 = vmatpush3.msra.mxu1 %v24865_v51  ;;  %20457 = vmatprep.mubr.msk.f32.mxu0 %vm293_vm0, %v22442_v48  ;;  %v19760_v22 = vpop.f32.mrf.mxu1  ;;  %v20062_v6 = vpop.f32.mrf.mxu0  ;;  %v22443_v51 = vld [vmem:[%s30082_s0 + $0xd8] sm:$0xff]  ;;  %v22444_v48 = vld [vmem:[%s30082_s0 + $0xe0] sm:$0xff] }
 0x30c   :  { %20081 = vmatprep.subr.mxu1 %v30308_v15 }
 0x30d   :  { %20030 = vmatmul.mubr.msk.f32.gmra.mxu1 %vm293_vm0, %v25313_v16 }
 0x30e   :  { %20458 = vmatmul.mubr.msk.f32.gmra.mxu0 %vm293_vm0, %v22443_v51  ;;  %20082 = vmatpush3.msra.mxu1 %v24837_v2  ;;  %v22448_v2 = vld [vmem:[%s30082_s0 + $0x100] sm:$0xff] }
 0x30f   :  { %20083 = vmatprep.subr.mxu1 %v30308_v15  ;;  %20085 = vmatprep.mubr.msk.f32.mxu1 %vm22535_vm1, %v30308_v15  ;;  %v25896_v6 = vpop.f32.mrf.mxu1  ;;  %v25898_v22 = vpop.f32.mrf.mxu0 }
 0x310   :  { %20084 = vmatpush3.msra.mxu1 %v24848_v57  ;;  %20460 = vmatprep.mubr.msk.f32.mxu0 %vm293_vm0, %v22444_v48  ;;  %v22445_v57 = vld [vmem:[%s30082_s0 + $0xe8] sm:$0xff]  ;;  %v22446_v48 = vld [vmem:[%s30082_s0 + $0xf0] sm:$0xff] }
 0x311   :  { %20086 = vmatmul.mubr.msk.f32.vlgmr.msra.gmra.mxu1 %vm293_vm0, %v25182_v39  ;;  %v19763_v51 = vpop.f32.mrf.mxu1  ;;  %v20065_v1 = vpop.f32.mrf.mxu0  ;;  %20143 = vmatprep.subr.mxu1 %v30308_v15  ;;  %v25923_v39 = vmul.f32 %v25388_v36, %v25388_v36  ;;  %v25947_v36 = vmul.f32 %v25507_v23, %v25507_v23  ;;  %v25971_v23 = vmul.f32 %v25524_v35, %v25524_v35 }
 0x312   :  { %20461 = vmatmul.mubr.msk.f32.gmra.mxu0 %vm293_vm0, %v22445_v57  ;;  %20088 = vmatprep.mubr.msk.f32.mxu1 %vm22535_vm1, %v30308_v15  ;;  %v22447_v57 = vld [vmem:[%s30082_s0 + $0xf8] sm:$0xff]  ;;  %v25995_v35 = vmul.f32 %v25544_v43, %v25544_v43 }
 0x313   :  { %20463 = vmatprep.mubr.msk.f32.mxu0 %vm293_vm0, %v22446_v48  ;;  %20144 = vmatpush3.msra.mxu1 %v25008_v25  ;;  %v22450_v25 = vld [vmem:[%s30082_s0 + $0x110] sm:$0xff] }
 0x314   :  { %v25925_v1 = vpop.f32.mrf.mxu1  ;;  %20145 = vmatprep.subr.mxu1 %v30308_v15 }
 0x315   :  { %20089 = vmatmul.mubr.msk.f32.gmra.mxu1 %vm293_vm0, %v25201_v62  ;;  %v25930_v51 = vpop.f32.mrf.mxu0 }
 0x316   :  { %20464 = vmatmul.mubr.msk.f32.gmra.mxu0 %vm293_vm0, %v22447_v57  ;;  %20091 = vmatprep.mubr.msk.f32.mxu1 %vm22535_vm1, %v30308_v15  ;;  %v19766_v48 = vpop.f32.mrf.mxu1 }
 0x317   :  { %20466 = vmatprep.mubr.msk.f32.mxu0 %vm293_vm0, %v22448_v2  ;;  %v20068_v62 = vpop.f32.mrf.mxu0  ;;  %20146 = vmatpush3.msra.mxu1 %v25018_v45  ;;  %v22449_v2 = vld [vmem:[%s30082_s0 + $0x108] sm:$0xff]  ;;  %v22452_v45 = vld [vmem:[%s30082_s0 + $0x120] sm:$0xff] }
 0x318   :  { %v25949_v57 = vpop.f32.mrf.mxu1  ;;  %20147 = vmatprep.subr.mxu1 %v30308_v15 }
 0x319   :  { %20092 = vmatmul.mubr.msk.f32.gmra.mxu1 %vm293_vm0, %v25218_v58  ;;  %v25954_v48 = vpop.f32.mrf.mxu0 }
 0x31a   :  { %20467 = vmatmul.mubr.msk.f32.gmra.mxu0 %vm293_vm0, %v22449_v2  ;;  %20094 = vmatprep.mubr.msk.f32.mxu1 %vm22535_vm1, %v30308_v15  ;;  %v19769_v62 = vpop.f32.mrf.mxu1 }
 0x31b   :  { %20469 = vmatprep.mubr.msk.f32.mxu0 %vm293_vm0, %v22450_v25  ;;  %20148 = vmatpush3.msra.mxu1 %v24994_v5  ;;  %v20124_v58 = vpop.f32.mrf.mxu0  ;;  %v22451_v25 = vld [vmem:[%s30082_s0 + $0x118] sm:$0xff]  ;;  %v22454_v5 = vld [vmem:[%s30082_s0 + $0x130] sm:$0xff] }
 0x31c   :  { %20149 = vmatprep.subr.mxu1 %v30308_v15  ;;  %v25974_v2 = vpop.f32.mrf.mxu1 }
 0x31d   :  { %20095 = vmatmul.mubr.msk.f32.gmra.mxu1 %vm293_vm0, %v25241_v18  ;;  %v25978_v62 = vpop.f32.mrf.mxu0 }
 0x31e   :  { %30477 = vst [vmem:[#allocation105_spill] sm:$0xff] %v25978_v62  ;;  %20470 = vmatmul.mubr.msk.f32.gmra.mxu0 %vm293_vm0, %v22451_v25  ;;  %20097 = vmatprep.mubr.msk.f32.mxu1 %vm22535_vm1, %v30308_v15  ;;  %v19772_v58 = vpop.f32.mrf.mxu1  ;;  %v26049_v62 = vmul.f32 %v25592_v53, %v25592_v53  ;;  %v30513_v53 = vld [vmem:[#allocation63_spill] sm:$0xff] }
 0x31f   :  { %20472 = vmatprep.mubr.msk.f32.mxu0 %vm293_vm0, %v22452_v45  ;;  %20150 = vmatpush3.msra.mxu1 %v25001_v17  ;;  %v20127_v18 = vpop.f32.mrf.mxu0  ;;  %v22453_v45 = vld [vmem:[%s30082_s0 + $0x128] sm:$0xff] }
 0x320   :  { %20151 = vmatprep.subr.mxu1 %v30308_v15  ;;  %v25998_v25 = vpop.f32.mrf.mxu1 }
 0x321   :  { %30478 = vst [vmem:[#allocation106_spill] sm:$0xff] %v25998_v25  ;;  %20098 = vmatmul.mubr.msk.f32.gmra.mxu1 %vm293_vm0, %v25264_v34  ;;  %v26002_v58 = vpop.f32.mrf.mxu0  ;;  %v30480_v25 = vld [vmem:[#allocation2_spill] sm:$0xff] }
 0x322   :  { %30479 = vst [vmem:[#allocation107_spill] sm:$0xff] %v26002_v58  ;;  %20473 = vmatmul.mubr.msk.f32.gmra.mxu0 %vm293_vm0, %v22453_v45  ;;  %20100 = vmatprep.mubr.msk.f32.mxu1 %vm22535_vm1, %v30308_v15  ;;  %v19791_v18 = vpop.f32.mrf.mxu1  ;;  %v5300_v43 = vmul.f32 %v30480_v25, %v30480_v25  ;;  %v26021_v45 = vmul.f32 %v25569_v63, %v25569_v63  ;;  %v30482_v63 = vld [vmem:[#allocation4_spill] sm:$0xff] }
 0x323   :  { %20475 = vmatprep.mubr.msk.f32.mxu0 %vm293_vm0, %v22454_v5  ;;  %20152 = vmatpush3.msra.mxu1 %v24978_v24  ;;  %v20130_v34 = vpop.f32.mrf.mxu0  ;;  %v22455_v24 = vld [vmem:[%s30082_s0 + $0x138] sm:$0xff]  ;;  %v5301_v58 = vmul.f32 %v30482_v63, %v30482_v63 }
 0x324   :  { %20153 = vmatprep.subr.mxu1 %v30308_v15  ;;  %v26024_v17 = vpop.f32.mrf.mxu1  ;;  %v5426_v5 = vsub.f32 %v25814_v0, %v5300_v43 }
 0x325   :  { %30481 = vst [vmem:[#allocation2_spill] sm:$0xff] %v26024_v17  ;;  %20101 = vmatmul.mubr.msk.f32.gmra.mxu1 %vm293_vm0, %v25286_v54  ;;  %v26028_v18 = vpop.f32.mrf.mxu0  ;;  %v22456_v54 = vld [vmem:[%s30082_s0 + $0x140] sm:$0xff]  ;;  %v5427_v34 = vsub.f32 %v25838_v59, %v5301_v58 }
 0x326   :  { %20476 = vmatmul.mubr.msk.f32.gmra.mxu0 %vm293_vm0, %v22455_v24  ;;  %20103 = vmatprep.mubr.msk.f32.mxu1 %vm22535_vm1, %v30308_v15  ;;  %v19794_v17 = vpop.f32.mrf.mxu1  ;;  %v5888_v24 = vadd.f32 %v25549_v27, %v5300_v43  ;;  %v22457_v43 = vld [vmem:[%s30082_s0 + $0x148] sm:$0xff] }
 0x327   :  { %20154 = vmatpush3.msra.mxu1 %v24986_v28  ;;  %20478 = vmatprep.mubr.msk.f32.mxu0 %vm293_vm0, %v22456_v54  ;;  %v20133_v0 = vpop.f32.mrf.mxu0  ;;  %v30485_v54 = vsub.f32 %v25558_v46, %v25549_v27 }
 0x328   :  { %20155 = vmatprep.subr.mxu1 %v30308_v15 }
 0x329   :  { %20104 = vmatmul.mubr.msk.f32.gmra.mxu1 %vm293_vm0, %v25313_v16  ;;  %v26054_v28 = vpop.f32.mrf.mxu1  ;;  %v26056_v17 = vpop.f32.mrf.mxu0  ;;  %v5636_v0 = vadd.f32 %v30485_v54, %v5426_v5  ;;  %v30486_v5 = vld [vmem:[#allocation6_spill] sm:$0xff]  ;;  %v5930_v54 = vadd.f32 0.0001, %v5888_v24  ;;  %v30488_v24 = vsub.f32 %v25582_v7, %v25573_v9  ;;  %v30489_v16 = vld [vmem:[#allocation7_spill] sm:$0xff] }
 0x32a   :  { %30483 = vst [vmem:[#allocation4_spill] sm:$0xff] %v26054_v28  ;;  %30484 = vst [vmem:[#allocation108_spill] sm:$0xff] %v26056_v17  ;;  %20479 = vmatmul.mubr.msk.f32.gmra.mxu0 %vm293_vm0, %v22457_v43  ;;  %20156 = vmatpush3.msra.mxu1 %v24961_v55  ;;  %v5302_v59 = vmul.f32 %v30486_v5, %v30486_v5  ;;  %v5889_v28 = vadd.f32 %v25573_v9, %v5301_v58  ;;  %v22458_v55 = vld [vmem:[%s30082_s0 + $0x150] sm:$0xff]  ;;  %v26083_v43 = vld [vmem:[%s30083_s1] sm:$0xff] }
 0x32b   :  { %20157 = vmatprep.subr.mxu1 %v30308_v15  ;;  %20159 = vmatprep.mubr.msk.f32.mxu1 %vm22535_vm1, %v30308_v15  ;;  %v19797_v46 = vpop.f32.mrf.mxu1  ;;  %v20136_v27 = vpop.f32.mrf.mxu0  ;;  %v26090_v58 = vmul.f32 %v25616_v19, %v25616_v19  ;;  %v5303_v19 = vmul.f32 %v30489_v16, %v30489_v16  ;;  %22042 = vrcp.f32 %v5930_v54 }
 0x32c   :  { %20158 = vmatpush3.msra.mxu1 %v24970_v4  ;;  %20481 = vmatprep.mubr.msk.f32.mxu0 %vm293_vm0, %v22458_v55  ;;  %v5678_v4 = vadd.f32 0.0009, %v5636_v0  ;;  %v5637_v46 = vadd.f32 %v30488_v24, %v5427_v34  ;;  %v5428_v27 = vsub.f32 %v25864_v26, %v5302_v59  ;;  %v22460_v55 = vld [vmem:[%s30082_s0 + $0x158] sm:$0xff]  ;;  %v22461_v0 = vld [vmem:[%s30082_s0 + $0x160] sm:$0xff]  ;;  %v5931_v26 = vadd.f32 0.0001, %v5889_v28 }
 0x32d   :  { %20160 = vmatmul.mubr.msk.f32.vlgmr.msra.gmra.mxu1 %vm293_vm0, %v26083_v43  ;;  %20217 = vmatprep.subr.mxu1 %v30308_v15  ;;  %30487 = vst [vmem:[#allocation6_spill] sm:$0xff] %v26090_v58  ;;  %v5890_v34 = vadd.f32 %v25596_v29, %v5302_v59  ;;  %v30492_v28 = vsub.f32 %v25606_v38, %v25596_v29  ;;  %v22463_v24 = vld [vmem:[%s30082_s0 + $0x168] sm:$0xff] }
 0x32e   :  { %20482 = vmatmul.mubr.msk.f32.gmra.mxu0 %vm293_vm0, %v22460_v55  ;;  %20162 = vmatprep.mubr.msk.f32.mxu1 %vm22535_vm1, %v30308_v15  ;;  %v26120_v55 = vld [vmem:[%s30083_s1 + $0x8] sm:$0xff]  ;;  %22044 = vrcp.f32 %v5678_v4  ;;  %v5429_v54 = vsub.f32 %v25896_v6, %v5303_v19  ;;  %v22464_v4 = vld [vmem:[%s30082_s0 + $0x170] sm:$0xff]  ;;  %v26143_v6 = vmul.f32 %v25640_v12, %v25640_v12 }
 0x32f   :  { %20484 = vmatprep.mubr.msk.f32.mxu0 %vm293_vm0, %v22461_v0  ;;  %v26108_v7 = vpop.f32.mrf.mxu1  ;;  %v26110_v9 = vpop.f32.mrf.mxu0  ;;  %20218 = vmatpush3.msra.mxu1 %v25132_v14  ;;  %v5679_v14 = vadd.f32 0.0009, %v5637_v46  ;;  %v5638_v59 = vadd.f32 %v30492_v28, %v5428_v27  ;;  %v30494_v38 = vld [vmem:[#allocation3_spill] sm:$0xff]  ;;  %22046 = vrcp.f32 %v5931_v26  ;;  %v5932_v29 = vadd.f32 0.0001, %v5890_v34  ;;  %v26159_v34 = vld [vmem:[%s30083_s1 + $0x10] sm:$0xff] }
 0x330   :  { %30490 = vst [vmem:[#allocation7_spill] sm:$0xff] %v26108_v7  ;;  %30491 = vst [vmem:[#allocation109_spill] sm:$0xff] %v26110_v9  ;;  %20219 = vmatprep.subr.mxu1 %v30308_v15  ;;  %v30493_v9 = vld [vmem:[#allocation8_spill] sm:$0xff]  ;;  %v5384_v27 = vmul.f32 %v25048_v61, %v30480_v25 }
 0x331   :  { %20163 = vmatmul.mubr.msk.f32.gmra.mxu1 %vm293_vm0, %v26120_v55  ;;  %v19800_v0 = vpop.f32.mrf.mxu1  ;;  %v20139_v7 = vpop.f32.mrf.mxu0  ;;  %30495 = vst [vmem:[#allocation8_spill] sm:$0xff] %v26143_v6  ;;  %22048 = vrcp.f32 %v5679_v14  ;;  %v5680_v61 = vadd.f32 0.0009, %v5638_v59 }
 0x332   :  { %20485 = vmatmul.mubr.msk.f32.gmra.mxu0 %vm293_vm0, %v22463_v24  ;;  %20165 = vmatprep.mubr.msk.f32.mxu1 %vm22535_vm1, %v30308_v15  ;;  %v5304_v7 = vmul.f32 %v30493_v9, %v30493_v9  ;;  %v26152_v24 = vmul.f32 %v25062_v50, %v30482_v63  ;;  %v5891_v0 = vadd.f32 %v25620_v52, %v5303_v19  ;;  %v22466_v19 = vld [vmem:[%s30082_s0 + $0x178] sm:$0xff]  ;;  %22050 = vrcp.f32 %v5932_v29 }
 0x333   :  { %20487 = vmatprep.mubr.msk.f32.mxu0 %vm293_vm0, %v22464_v4  ;;  %20220 = vmatpush3.msra.mxu1 %v30494_v38  ;;  %v30498_v50 = vsub.f32 %v25630_v21, %v25620_v52  ;;  %v30499_v4 = vld [vmem:[#allocation10_spill] sm:$0xff]  ;;  %22052 = vrcp.f32 %v5680_v61 }
 0x334   :  { %v26145_v46 = vpop.f32.mrf.mxu1  ;;  %20221 = vmatprep.subr.mxu1 %v30308_v15  ;;  %v5430_v26 = vsub.f32 %v25925_v1, %v5304_v7  ;;  %v5305_v14 = vmul.f32 %v30499_v4, %v30499_v4  ;;  %v5892_v59 = vadd.f32 %v25644_v47, %v5304_v7  ;;  %v22467_v21 = vld [vmem:[%s30082_s0 + $0x180] sm:$0xff] }
 0x335   :  { %30496 = vst [vmem:[#allocation3_spill] sm:$0xff] %v26145_v46  ;;  %20166 = vmatmul.mubr.msk.f32.gmra.mxu1 %vm293_vm0, %v26159_v34  ;;  %v26163_v28 = vpop.f32.mrf.mxu0  ;;  %v5639_v63 = vadd.f32 %v30498_v50, %v5429_v54  ;;  %v30500_v54 = vld [vmem:[#allocation64_spill] sm:$0xff]  ;;  %v5804_v50 = vmul.f32 2.0, %v5384_v27  ;;  %v30505_v46 = vld [vmem:[#allocation57_spill] sm:$0xff] }
 0x336   :  { %30497 = vst [vmem:[#allocation110_spill] sm:$0xff] %v26163_v28  ;;  %20488 = vmatmul.mubr.msk.f32.gmra.mxu0 %vm293_vm0, %v22466_v19  ;;  %20168 = vmatprep.mubr.msk.f32.mxu1 %vm22535_vm1, %v30308_v15  ;;  %v19803_v25 = vpop.f32.mrf.mxu1  ;;  %v5933_v19 = vadd.f32 0.0001, %v5891_v0  ;;  %v5431_v1 = vsub.f32 %v25949_v57, %v5305_v14  ;;  %v5934_v0 = vadd.f32 0.0001, %v5892_v59  ;;  %v5386_v12 = vmul.f32 %v30505_v46, %v30486_v5 }
 0x337   :  { %20490 = vmatprep.mubr.msk.f32.mxu0 %vm293_vm0, %v22467_v21  ;;  %v20142_v52 = vpop.f32.mrf.mxu0  ;;  %20222 = vmatpush3.msra.mxu1 %v30500_v54  ;;  %v30502_v25 = vsub.f32 %v25654_v20, %v25644_v47  ;;  %v26194_v21 = vld [vmem:[%s30083_s1 + $0x18] sm:$0xff]  ;;  %v5681_v54 = vadd.f32 0.0009, %v5639_v63  ;;  %v22469_v20 = vld [vmem:[%s30082_s0 + $0x188] sm:$0xff]  ;;  %v30503_v63 = vld [vmem:[#allocation66_spill] sm:$0xff] }
 0x338   :  { %v26184_v38 = vpop.f32.mrf.mxu1  ;;  %20223 = vmatprep.subr.mxu1 %v30308_v15  ;;  %v5805_v52 = vmul.f32 2.0, %v26152_v24  ;;  %v5846_v59 = vadd.f32 0.0001, %v5804_v50  ;;  %22054 = vrcp.f32 %v5933_v19  ;;  %v22472_v50 = vld [vmem:[%s30082_s0 + $0x198] sm:$0xff] }
 0x339   :  { %30501 = vst [vmem:[#allocation10_spill] sm:$0xff] %v26184_v38  ;;  %v5640_v7 = vadd.f32 %v30502_v25, %v5430_v26  ;;  %20169 = vmatmul.mubr.msk.f32.gmra.mxu1 %vm293_vm0, %v26194_v21  ;;  %v4766_v29 = vpop.f32.mrf.mxu0  ;;  %v5893_v26 = vadd.f32 %v25670_v3, %v5305_v14  ;;  %v22470_v25 = vld [vmem:[%s30082_s0 + $0x190] sm:$0xff]  ;;  %v30504_v38 = vld [vmem:[#allocation13_spill] sm:$0xff]  ;;  %v22043_v14 = vpop.eup %22042  ;;  %22056 = vrcp.f32 %v5681_v54 }
 0x33a   :  { %20491 = vmatmul.mubr.msk.f32.gmra.mxu0 %vm293_vm0, %v22469_v20  ;;  %20171 = vmatprep.mubr.msk.f32.mxu1 %vm22535_vm1, %v30308_v15  ;;  %v5510_v47 = vsub.f32 %v4766_v29, %v5384_v27  ;;  %v19806_v57 = vpop.f32.mrf.mxu1  ;;  %v5306_v20 = vmul.f32 %v30504_v38, %v30504_v38  ;;  %v5847_v46 = vadd.f32 0.0001, %v5805_v52  ;;  %22058 = vrcp.f32 %v5934_v0  ;;  %v22473_v52 = vld [vmem:[%s30082_s0 + $0x1a0] sm:$0xff]  ;;  %v30508_v54 = vld [vmem:[#allocation61_spill] sm:$0xff] }
 0x33b   :  { %20493 = vmatprep.mubr.msk.f32.mxu0 %vm293_vm0, %v22470_v25  ;;  %v20198_v61 = vpop.f32.mrf.mxu0  ;;  %20224 = vmatpush3.msra.mxu1 %v30503_v63  ;;  %v5682_v57 = vadd.f32 0.0009, %v5640_v7  ;;  %v30507_v25 = vsub.f32 %v25683_v31, %v25670_v3  ;;  %v26224_v63 = vld [vmem:[%s30083_s1 + $0x20] sm:$0xff]  ;;  %v5935_v19 = vadd.f32 0.0001, %v5893_v26  ;;  %v5973_v26 = vmul.f32 %v22043_v14, %v5846_v59  ;;  %v22475_v14 = vld [vmem:[%s30082_s0 + $0x1a8] sm:$0xff] }
 0x33c   :  { %v5552_v27 = vmul.f32 2.0, %v5510_v47  ;;  %v26215_v29 = vpop.f32.mrf.mxu1  ;;  %20225 = vmatprep.subr.mxu1 %v30308_v15  ;;  %v5432_v7 = vsub.f32 %v25974_v2, %v5306_v20  ;;  %v30509_v2 = vld [vmem:[#allocation59_spill] sm:$0xff] }
 0x33d   :  { %30506 = vst [vmem:[#allocation64_spill] sm:$0xff] %v26215_v29  ;;  %v5641_v61 = vadd.f32 %v30507_v25, %v5431_v1  ;;  %20172 = vmatmul.mubr.msk.f32.gmra.mxu1 %vm293_vm0, %v26224_v63  ;;  %v4771_v5 = vpop.f32.mrf.mxu0  ;;  %v22045_v1 = vpop.eup %22044  ;;  %v5806_v25 = vmul.f32 2.0, %v5386_v12  ;;  %v5894_v29 = vadd.f32 %v25726_v13, %v5306_v20  ;;  %22060 = vrcp.f32 %v5682_v57 }
 0x33e   :  { %v5594_v47 = vadd.f32 0.0009, %v5552_v27  ;;  %20494 = vmatmul.mubr.msk.f32.gmra.mxu0 %vm293_vm0, %v22472_v50  ;;  %20174 = vmatprep.mubr.msk.f32.mxu1 %vm22535_vm1, %v30308_v15  ;;  %v5511_v31 = vsub.f32 %v4771_v5, %v26152_v24  ;;  %v19809_v3 = vpop.f32.mrf.mxu1  ;;  %v22047_v5 = vpop.eup %22046  ;;  %22062 = vrcp.f32 %v5935_v19 }
 0x33f   :  { %20496 = vmatprep.mubr.msk.f32.mxu0 %vm293_vm0, %v22473_v52  ;;  %20226 = vmatpush3.msra.mxu1 %v30508_v54  ;;  %v20201_v27 = vpop.f32.mrf.mxu0  ;;  %v5387_v3 = vmul.f32 %v30509_v2, %v30489_v16  ;;  %v5683_v52 = vadd.f32 0.0009, %v5641_v61  ;;  %v26250_v54 = vld [vmem:[%s30083_s1 + $0x28] sm:$0xff]  ;;  %v22049_v61 = vpop.eup %22048 }
 0x340   :  { %v5553_v50 = vmul.f32 2.0, %v5511_v31  ;;  %20227 = vmatprep.subr.mxu1 %v30308_v15  ;;  %v26242_v24 = vpop.f32.mrf.mxu1  ;;  %v5721_v0 = vmul.f32 %v22045_v1, %v5594_v47  ;;  %v30510_v47 = vld [vmem:[#allocation29_spill] sm:$0xff] }
 0x341   :  { %20175 = vmatmul.mubr.msk.f32.gmra.mxu1 %vm293_vm0, %v26250_v54  ;;  %v4776_v31 = vpop.f32.mrf.mxu0  ;;  %v26263_v1 = vmul.f32 %v30510_v47, %v30510_v47  ;;  %22064 = vrcp.f32 %v5683_v52 }
 0x342   :  { %v5595_v27 = vadd.f32 0.0009, %v5553_v50  ;;  %20497 = vmatmul.mubr.msk.f32.gmra.mxu0 %vm293_vm0, %v22475_v14  ;;  %20177 = vmatprep.mubr.msk.f32.mxu1 %vm22535_vm1, %v30308_v15  ;;  %v5512_v16 = vsub.f32 %v4776_v31, %v5386_v12  ;;  %v19828_v20 = vpop.f32.mrf.mxu1  ;;  %v6311_v59 = vsel %vm6098_vm2, %v5721_v0, 0.0  ;;  %v6056_v57 = vmul.f32 %v5973_v26, %v5721_v0  ;;  %v30511_v50 = vld [vmem:[#allocation62_spill] sm:$0xff]  ;;  %v22476_v12 = vld [vmem:[%s30082_s0 + $0x1b0] sm:$0xff] }
 0x343   :  { %v26267_v2 = vmul.f32 %v30511_v50, %v30493_v9  ;;  %v30512_v14 = vsub.f32 %v25736_v40, %v25726_v13  ;;  %20228 = vmatpush3.msra.mxu1 %v30513_v53  ;;  %20499 = vmatprep.mubr.msk.f32.mxu0 %vm293_vm0, %v22476_v12  ;;  %v20204_v0 = vpop.f32.mrf.mxu0  ;;  %v30514_v26 = vld [vmem:[#allocation30_spill] sm:$0xff]  ;;  %v5975_v40 = vmul.f32 %v22047_v5, %v5847_v46  ;;  %v22051_v53 = vpop.eup %22050  ;;  %v5807_v20 = vmul.f32 2.0, %v5387_v3  ;;  %v30515_v50 = vld [vmem:[#allocation65_spill] sm:$0xff] }
 0x344   :  { %v26279_v31 = vmul.f32 %v30514_v26, %v30514_v26  ;;  %v5554_v9 = vmul.f32 2.0, %v5512_v16  ;;  %20229 = vmatprep.subr.mxu1 %v30308_v15  ;;  %6312 = vadd.xlane.f32.xlu0 %v6311_v59  ;;  %v26282_v19 = vpop.f32.mrf.mxu1  ;;  %v5723_v13 = vmul.f32 %v22049_v61, %v5595_v27  ;;  %v5936_v12 = vadd.f32 0.0001, %v5894_v29  ;;  %v26291_v0 = vld [vmem:[%s30083_s1 + $0x30] sm:$0x3f]  ;;  %v22478_v46 = vld [vmem:[%s30082_s0 + $0x1b8] sm:$0xff]  ;;  %v22053_v59 = vpop.eup %22052 }
 0x345   :  { %v5642_v28 = vadd.f32 %v30512_v14, %v5432_v7  ;;  %v5848_v7 = vadd.f32 0.0001, %v5806_v25  ;;  %v26286_v14 = vmul.f32 %v30515_v50, %v30499_v4  ;;  %20178 = vmatmul.mubr.msk.f32.gmra.mxu1 %vm293_vm0, %v26291_v0  ;;  %v4781_v16 = vpop.f32.mrf.mxu0  ;;  %v30516_v4 = vld [vmem:[#allocation58_spill] sm:$0xff]  ;;  %v5808_v61 = vmul.f32 2.0, %v26267_v2 }
 0x346   :  { %v5596_v27 = vadd.f32 0.0009, %v5554_v9  ;;  %20500 = vmatmul.mubr.msk.f32.gmra.mxu0 %vm293_vm0, %v22478_v46  ;;  %20230 = vmatpush3.msra.mxu1 %v30516_v4  ;;  %v5513_v29 = vsub.f32 %v4781_v16, %v5387_v3  ;;  %v19831_v25 = vpop.f32.mrf.mxu1  ;;  %v6057_v5 = vmul.f32 %v5975_v40, %v5723_v13  ;;  %v5440_v6 = vsub.f32 %v26242_v24, %v26263_v1  ;;  %v30517_v3 = vld [vmem:[#allocation60_spill] sm:$0xff]  ;;  %v22479_v40 = vld [vmem:[%s30082_s0 + $0x1c0] sm:$0xff] }
 0x347   :  { %v5684_v50 = vadd.f32 0.0009, %v5642_v28  ;;  %20231 = vmatprep.subr.mxu1 %v30308_v15  ;;  %20233 = vmatprep.mubr.msk.f32.mxu1 %vm22535_vm1, %v30308_v15  ;;  %v6314_v52 = vsel %vm6098_vm2, %v5723_v13, 0.0  ;;  %v20207_v9 = vpop.f32.mrf.mxu0  ;;  %v6099_v24 = vsel %vm6098_vm2, %v6056_v57, 0.0  ;;  %v5977_v4 = vmul.f32 %v22051_v53, %v5848_v7  ;;  %v30518_v25 = vld [vmem:[#allocation31_spill] sm:$0xff] }
 0x348   :  { %v26307_v46 = vmul.f32 %v22053_v59, %v5596_v27  ;;  %20232 = vmatpush3.msra.mxu1 %v30517_v3  ;;  %20502 = vmatprep.mubr.msk.f32.mxu0 %vm293_vm0, %v22479_v40  ;;  %v5555_v28 = vmul.f32 2.0, %v5513_v29  ;;  %v26315_v16 = vpop.f32.mrf.mxu1  ;;  %v26319_v13 = vmul.f32 %v30518_v25, %v30518_v25  ;;  %v5849_v27 = vadd.f32 0.0001, %v5807_v20  ;;  %v22055_v29 = vpop.eup %22054  ;;  %v22480_v53 = vld [vmem:[%s30082_s0 + $0x1c8] sm:$0xff] }
 0x349   :  { %22066 = vrcp.f32 %v5936_v12  ;;  %v5902_v59 = vadd.f32 %v25763_v8, %v26263_v1  ;;  %20234 = vmatmul.mubr.msk.f32.vlgmr.msra.gmra.mxu1 %vm293_vm0, %v26083_v43  ;;  %6100 = vadd.xlane.f32.xlu0 %v6099_v24  ;;  %v4786_v9 = vpop.f32.mrf.mxu0  ;;  %v5809_v57 = vmul.f32 2.0, %v26286_v14  ;;  %v22057_v12 = vpop.eup %22056  ;;  %v5850_v40 = vadd.f32 0.0001, %v5808_v61 }
 0x34a   :  { %v5597_v3 = vadd.f32 0.0009, %v5555_v28  ;;  %20503 = vmatmul.mubr.msk.f32.gmra.mxu0 %vm293_vm0, %v22480_v53  ;;  %6315 = vadd.xlane.f32.xlu1 %v6314_v52  ;;  %v5514_v7 = vsub.f32 %v4786_v9, %v26267_v2  ;;  %v19834_v20 = vpop.f32.mrf.mxu1  ;;  %v6058_v1 = vmul.f32 %v5977_v4, %v26307_v46  ;;  %22068 = vrcp.f32 %v5684_v50  ;;  %v22481_v2 = vld [vmem:[%s30082_s0 + $0x1d0] sm:$0xff]  ;;  %v22059_v4 = vpop.eup %22058 }
 0x34b   :  { %v30519_v24 = vsub.f32 %v25768_v56, %v25763_v8  ;;  %v5441_v28 = vsub.f32 %v26282_v19, %v26279_v31  ;;  %20236 = vmatprep.mubr.msk.f32.mxu1 %vm22535_vm1, %v30308_v15  ;;  %20505 = vmatprep.mubr.msk.f32.mxu0 %vm293_vm0, %v22481_v2  ;;  %v20210_v52 = vpop.f32.mrf.mxu0  ;;  %v6102_v50 = vsel %vm6098_vm2, %v6057_v5, 0.0  ;;  %v5944_v19 = vadd.f32 0.0001, %v5902_v59  ;;  %v22061_v20 = vpop.eup %22060 }
 0x34c   :  { %v5556_v61 = vmul.f32 2.0, %v5514_v7  ;;  %v6105_v8 = vsel %vm6098_vm2, %v6058_v1, 0.0  ;;  %20291 = vmatprep.subr.mxu1 %v30308_v15  ;;  %v5727_v56 = vmul.f32 %v22057_v12, %v5597_v3  ;;  %v5903_v9 = vadd.f32 %v25787_v49, %v26279_v31  ;;  %v30520_v1 = vld [vmem:[#allocation32_spill] sm:$0xff] }
 0x34d   :  { %v5650_v17 = vadd.f32 %v30519_v24, %v5440_v6  ;;  %v26348_v6 = vmul.f32 %v25138_v33, %v30504_v38  ;;  %20237 = vmatmul.mubr.msk.f32.gmra.mxu1 %vm293_vm0, %v26120_v55  ;;  %6103 = vadd.xlane.f32.xlu0 %v6102_v50  ;;  %v26354_v53 = vpop.f32.mrf.mxu1  ;;  %v4791_v5 = vpop.f32.mrf.mxu0  ;;  %v5979_v7 = vmul.f32 %v22055_v29, %v5849_v27  ;;  %v5851_v12 = vadd.f32 0.0001, %v5809_v57  ;;  %v22482_v38 = vld [vmem:[%s30082_s0 + $0x1d8] sm:$0xff]  ;;  %v22483_v29 = vld [vmem:[%s30082_s0 + $0x1e0] sm:$0xff] }
 0x34e   :  { %v26358_v3 = vmul.f32 %v30520_v1, %v30520_v1  ;;  %v5598_v33 = vadd.f32 0.0009, %v5556_v61  ;;  %20506 = vmatmul.mubr.msk.f32.gmra.mxu0 %vm293_vm0, %v22482_v38  ;;  %20239 = vmatprep.mubr.msk.f32.mxu1 %vm22535_vm1, %v30308_v15  ;;  %v5515_v31 = vsub.f32 %v4791_v5, %v26286_v14  ;;  %v5442_v27 = vsub.f32 %v26315_v16, %v26319_v13  ;;  %v22063_v61 = vpop.eup %22062  ;;  %v30522_v5 = vld [vmem:[#allocation9_spill] sm:$0xff] }
 0x34f   :  { %v5692_v59 = vadd.f32 0.0009, %v5650_v17  ;;  %20508 = vmatprep.mubr.msk.f32.mxu0 %vm293_vm0, %v22483_v29  ;;  %6106 = vadd.xlane.f32.xlu1 %v6105_v8  ;;  %v19837_v57 = vpop.f32.mrf.mxu1  ;;  %v20213_v24 = vpop.f32.mrf.mxu0  ;;  %v6059_v2 = vmul.f32 %v5979_v7, %v5727_v56  ;;  %v5981_v52 = vmul.f32 %v22059_v4, %v5850_v40  ;;  %v30521_v50 = vsub.f32 %v25792_v37, %v25787_v49  ;;  %v22484_v37 = vld [vmem:[%s30082_s0 + $0x1e8] sm:$0xff] }
 0x350   :  { %v5557_v17 = vmul.f32 2.0, %v5515_v31  ;;  %v6317_v16 = vsel %vm6098_vm2, %v26307_v46, 0.0  ;;  %20292 = vmatpush3.msra.mxu1 %v30522_v5  ;;  %v5729_v38 = vmul.f32 %v22061_v20, %v5598_v33  ;;  %v5810_v58 = vmul.f32 2.0, %v26348_v6  ;;  %v22065_v4 = vpop.eup %22064  ;;  %v22485_v33 = vld [vmem:[%s30082_s0 + $0x1f0] sm:$0xff] }
 0x351   :  { %v5651_v14 = vadd.f32 %v30521_v50, %v5441_v28  ;;  %22070 = vrcp.f32 %v5944_v19  ;;  %v5945_v8 = vadd.f32 0.0001, %v5903_v9  ;;  %v5904_v7 = vadd.f32 %v25806_v10, %v26319_v13  ;;  %20240 = vmatmul.mubr.msk.f32.gmra.mxu1 %vm293_vm0, %v26159_v34  ;;  %6318 = vadd.xlane.f32.xlu0 %v6317_v16 }
 0x352   :  { %20509 = vmatmul.mubr.msk.f32.gmra.mxu0 %vm293_vm0, %v22484_v37  ;;  %v5599_v49 = vadd.f32 0.0009, %v5557_v17  ;;  %20242 = vmatprep.mubr.msk.f32.mxu1 %vm22535_vm1, %v30308_v15  ;;  %v26390_v46 = vpop.f32.mrf.mxu1  ;;  %v6320_v40 = vsel %vm6098_vm2, %v5727_v56, 0.0  ;;  %v6323_v13 = vsel %vm6098_vm2, %v5729_v38, 0.0  ;;  %v6060_v28 = vmul.f32 %v5981_v52, %v5729_v38  ;;  %v30525_v17 = vld [vmem:[#allocation75_spill] sm:$0xff] }
 0x353   :  { %v30523_v19 = vsub.f32 %v25816_v60, %v25806_v10  ;;  %v5443_v20 = vsub.f32 %v26354_v53, %v26358_v3  ;;  %20511 = vmatprep.mubr.msk.f32.mxu0 %vm293_vm0, %v22485_v33  ;;  %6321 = vadd.xlane.f32.xlu1 %v6320_v40  ;;  %v4796_v31 = vpop.f32.mrf.mxu0  ;;  %v5983_v56 = vmul.f32 %v22063_v61, %v5851_v12  ;;  %22072 = vrcp.f32 %v5692_v59  ;;  %v30524_v10 = vld [vmem:[#allocation33_spill] sm:$0xff]  ;;  %v30530_v33 = vld [vmem:[#allocation34_spill] sm:$0xff] }
 0x354   :  { %v5693_v29 = vadd.f32 0.0009, %v5651_v14  ;;  %v5516_v57 = vsub.f32 %v4796_v31, %v26348_v6  ;;  %v19840_v24 = vpop.f32.mrf.mxu1  ;;  %20293 = vmatprep.subr.mxu1 %v30308_v15  ;;  %v26405_v60 = vmul.f32 %v22065_v4, %v5599_v49  ;;  %v5318_v53 = vmul.f32 %v30524_v10, %v30524_v10  ;;  %v22486_v61 = vld [vmem:[%s30082_s0 + $0x1f8] sm:$0xff] }
 0x355   :  { %v5652_v9 = vadd.f32 %v30523_v19, %v5442_v27  ;;  %v5852_v27 = vadd.f32 0.0001, %v5810_v58  ;;  %22074 = vrcp.f32 %v5945_v8  ;;  %20243 = vmatmul.mubr.msk.f32.gmra.mxu1 %vm293_vm0, %v26194_v21  ;;  %6324 = vadd.xlane.f32.xlu0 %v6323_v13  ;;  %v20216_v52 = vpop.f32.mrf.mxu0  ;;  %v5946_v59 = vadd.f32 0.0001, %v5904_v7  ;;  %v30527_v8 = vld [vmem:[#allocation11_spill] sm:$0xff]  ;;  %v22487_v7 = vld [vmem:[%s30082_s0 + $0x200] sm:$0xff] }
 0x356   :  { %v22067_v12 = vpop.eup %22066  ;;  %v5905_v6 = vadd.f32 %v25835_v11, %v26358_v3  ;;  %20512 = vmatmul.mubr.msk.f32.gmra.mxu0 %vm293_vm0, %v22486_v61  ;;  %v5558_v50 = vmul.f32 2.0, %v5516_v57  ;;  %20245 = vmatprep.mubr.msk.f32.mxu1 %vm22535_vm1, %v30308_v15  ;;  %v26419_v58 = vpop.f32.mrf.mxu1  ;;  %v26422_v14 = vmul.f32 %v5983_v56, %v26405_v60  ;;  %v5398_v16 = vmul.f32 %v30525_v17, %v30510_v47  ;;  %v30528_v13 = vld [vmem:[#allocation76_spill] sm:$0xff] }
 0x357   :  { %v5694_v5 = vadd.f32 0.0009, %v5652_v9  ;;  %v30526_v3 = vsub.f32 %v25842_v32, %v25835_v11  ;;  %20294 = vmatpush3.msra.mxu1 %v30527_v8  ;;  %20514 = vmatprep.mubr.msk.f32.mxu0 %vm293_vm0, %v22487_v7  ;;  %v6108_v37 = vsel %vm6098_vm2, %v6059_v2, 0.0  ;;  %v22069_v49 = vpop.eup %22068  ;;  %22076 = vrcp.f32 %v5693_v29  ;;  %v22488_v9 = vld [vmem:[%s30082_s0 + $0x208] sm:$0xff]  ;;  %v22489_v52 = vld [vmem:[%s30082_s0 + $0x210] sm:$0xff]  ;;  %v22490_v8 = vld [vmem:[%s30082_s0 + $0x218] sm:$0xff] }
 0x358   :  { %v5444_v40 = vsub.f32 %v26390_v46, %v5318_v53  ;;  %v5600_v47 = vadd.f32 0.0009, %v5558_v50  ;;  %20295 = vmatprep.subr.mxu1 %v30308_v15  ;;  %6109 = vadd.xlane.f32.xlu1 %v6108_v37  ;;  %v19843_v11 = vpop.f32.mrf.mxu1  ;;  %v6111_v32 = vsel %vm6098_vm2, %v6060_v28, 0.0  ;;  %v26440_v4 = vmul.f32 %v30528_v13, %v30514_v26  ;;  %v30529_v28 = vld [vmem:[#allocation12_spill] sm:$0xff] }
 0x359   :  { %v5653_v38 = vadd.f32 %v30526_v3, %v5443_v20  ;;  %20246 = vmatmul.mubr.msk.f32.gmra.mxu1 %vm293_vm0, %v26224_v63  ;;  %6112 = vadd.xlane.f32.xlu0 %v6111_v32  ;;  %v5985_v2 = vmul.f32 %v22067_v12, %v5852_v27  ;;  %22078 = vrcp.f32 %v5946_v59  ;;  %v5947_v19 = vadd.f32 0.0001, %v5905_v6  ;;  %v30532_v27 = vld [vmem:[#allocation74_spill] sm:$0xff]  ;;  %v30533_v3 = vld [vmem:[#allocation35_spill] sm:$0xff] }
 0x35a   :  { %v5906_v46 = vadd.f32 %v25859_v41, %v5318_v53  ;;  %20515 = vmatmul.mubr.msk.f32.gmra.mxu0 %vm293_vm0, %v22488_v9  ;;  %20296 = vmatpush3.msra.mxu1 %v30529_v28  ;;  %v26450_v26 = vpop.f32.mrf.mxu1  ;;  %v5733_v20 = vmul.f32 %v22069_v49, %v5600_v47  ;;  %v5319_v31 = vmul.f32 %v30530_v33, %v30530_v33  ;;  %v5818_v56 = vmul.f32 2.0, %v5398_v16  ;;  %v30536_v32 = vld [vmem:[#allocation15_spill] sm:$0xff] }
 0x35b   :  { %22080 = vrcp.f32 %v5694_v5  ;;  %v5695_v29 = vadd.f32 0.0009, %v5653_v38  ;;  %20297 = vmatprep.subr.mxu1 %v30308_v15  ;;  %20248 = vmatprep.mubr.msk.f32.mxu1 %vm22535_vm1, %v30308_v15  ;;  %v4966_v57 = vpop.f32.mrf.mxu0  ;;  %v30531_v24 = vsub.f32 %v25866_v30, %v25859_v41  ;;  %v5819_v50 = vmul.f32 2.0, %v26440_v4 }
 0x35c   :  { %20298 = vmatpush3.msra.mxu1 %v30532_v27  ;;  %20517 = vmatprep.mubr.msk.f32.mxu0 %vm293_vm0, %v22489_v52  ;;  %v5524_v12 = vsub.f32 %v4966_v57, %v5398_v16  ;;  %v19846_v59 = vpop.f32.mrf.mxu1  ;;  %v6329_v6 = vsel %vm6117_vm3, %v5733_v20, 0.0  ;;  %v6062_v61 = vmul.f32 %v5985_v2, %v5733_v20  ;;  %v5445_v17 = vsub.f32 %v26419_v58, %v5319_v31 }
 0x35d   :  { %v5654_v53 = vadd.f32 %v30531_v24, %v5444_v40  ;;  %20249 = vmatmul.mubr.msk.f32.gmra.mxu1 %vm293_vm0, %v26250_v54  ;;  %20299 = vmatprep.subr.mxu1 %v30308_v15  ;;  %v6326_v41 = vsel %vm6098_vm2, %v26405_v60, 0.0  ;;  %v20272_v30 = vpop.f32.mrf.mxu0  ;;  %v5320_v16 = vmul.f32 %v30533_v3, %v30533_v3  ;;  %22082 = vrcp.f32 %v5947_v19  ;;  %v30534_v60 = vld [vmem:[#allocation77_spill] sm:$0xff]  ;;  %v30535_v40 = vld [vmem:[#allocation78_spill] sm:$0xff]  ;;  %v22492_v59 = vld [vmem:[%s30082_s0 + $0x228] sm:$0xff] }
 0x35e   :  { %v22071_v5 = vpop.eup %22070  ;;  %v5948_v38 = vadd.f32 0.0001, %v5906_v46  ;;  %20518 = vmatmul.mubr.msk.f32.gmra.mxu0 %vm293_vm0, %v22490_v8  ;;  %6327 = vadd.xlane.f32.xlu1 %v6326_v41  ;;  %v5566_v58 = vmul.f32 2.0, %v5524_v12  ;;  %v26479_v7 = vpop.f32.mrf.mxu1  ;;  %v5860_v37 = vadd.f32 0.0001, %v5818_v56  ;;  %v5400_v49 = vmul.f32 %v30534_v60, %v30518_v25  ;;  %v30538_v56 = vld [vmem:[#allocation73_spill] sm:$0xff] }
 0x35f   :  { %v26485_v47 = vmul.f32 %v30535_v40, %v30520_v1  ;;  %v5907_v11 = vadd.f32 %v25886_v44, %v5319_v31  ;;  %20300 = vmatpush3.msra.mxu1 %v30536_v32  ;;  %6330 = vadd.xlane.f32.xlu0 %v6329_v6  ;;  %v4971_v13 = vpop.f32.mrf.mxu0  ;;  %22084 = vrcp.f32 %v5695_v29  ;;  %v5696_v2 = vadd.f32 0.0009, %v5654_v53  ;;  %v22491_v29 = vld [vmem:[%s30082_s0 + $0x220] sm:$0xff]  ;;  %v30541_v40 = vld [vmem:[#allocation72_spill] sm:$0xff] }
 0x360   :  { %v5608_v19 = vadd.f32 0.0009, %v5566_v58  ;;  %20301 = vmatprep.subr.mxu1 %v30308_v15  ;;  %20251 = vmatprep.mubr.msk.f32.mxu1 %vm22535_vm1, %v30308_v15  ;;  %v5525_v25 = vsub.f32 %v4971_v13, %v26440_v4  ;;  %v19865_v46 = vpop.f32.mrf.mxu1  ;;  %v22073_v9 = vpop.eup %22072  ;;  %v5861_v1 = vadd.f32 0.0001, %v5819_v50  ;;  %v30537_v28 = vsub.f32 %v25898_v22, %v25886_v44 }
 0x361   :  { %v5446_v31 = vsub.f32 %v26450_v26, %v5320_v16  ;;  %20302 = vmatpush3.msra.mxu1 %v30538_v56  ;;  %20520 = vmatprep.mubr.msk.f32.mxu0 %vm293_vm0, %v22491_v29  ;;  %v20275_v57 = vpop.f32.mrf.mxu0  ;;  %v6001_v24 = vmul.f32 %v22071_v5, %v5860_v37  ;;  %22086 = vrcp.f32 %v5948_v38  ;;  %v6114_v44 = vsel %vm6098_vm2, %v26422_v14, 0.0 }
 0x362   :  { %v5655_v20 = vadd.f32 %v30537_v28, %v5445_v17  ;;  %v22075_v4 = vpop.eup %22074  ;;  %20252 = vmatmul.mubr.msk.f32.gmra.mxu1 %vm293_vm0, %v26291_v0  ;;  %20303 = vmatprep.subr.mxu1 %v30308_v15  ;;  %v5567_v22 = vmul.f32 2.0, %v5525_v25  ;;  %v26507_v26 = vpop.f32.mrf.mxu1  ;;  %v5749_v53 = vmul.f32 %v22073_v9, %v5608_v19  ;;  %v5820_v27 = vmul.f32 2.0, %v5400_v49  ;;  %v30539_v17 = vld [vmem:[#allocation70_spill] sm:$0xff]  ;;  %v30542_v19 = vld [vmem:[#allocation79_spill] sm:$0xff]  ;;  %v22494_v9 = vld [vmem:[%s30082_s0 + $0x238] sm:$0xff] }
 0x363   :  { %v5949_v52 = vadd.f32 0.0001, %v5907_v11  ;;  %v5908_v12 = vadd.f32 %v25923_v39, %v5320_v16  ;;  %20521 = vmatmul.mubr.msk.f32.gmra.mxu0 %vm293_vm0, %v22492_v59  ;;  %6115 = vadd.xlane.f32.xlu1 %v6114_v44  ;;  %v6118_v6 = vsel %vm6117_vm3, %v6062_v61, 0.0  ;;  %v4976_v50 = vpop.f32.mrf.mxu0  ;;  %22088 = vrcp.f32 %v5696_v2  ;;  %v22495_v57 = vld [vmem:[%s30082_s0 + $0x240] sm:$0xff]  ;;  %v22496_v59 = vld [vmem:[%s30082_s0 + $0x248] sm:$0xff] }
 0x364   :  { %v5609_v14 = vadd.f32 0.0009, %v5567_v22  ;;  %20304 = vmatpush3.msra.mxu1 %v30539_v17  ;;  %6119 = vadd.xlane.f32.xlu0 %v6118_v6  ;;  %v5526_v41 = vsub.f32 %v4976_v50, %v5400_v49  ;;  %v19868_v30 = vpop.f32.mrf.mxu1  ;;  %v6070_v5 = vmul.f32 %v6001_v24, %v5749_v53  ;;  %v22077_v38 = vpop.eup %22076  ;;  %v5697_v16 = vadd.f32 0.0009, %v5655_v20  ;;  %v22493_v49 = vld [vmem:[%s30082_s0 + $0x230] sm:$0xff] }
 0x365   :  { %v30540_v8 = vsub.f32 %v25930_v51, %v25923_v39  ;;  %20305 = vmatprep.subr.mxu1 %v30308_v15  ;;  %20307 = vmatprep.mubr.msk.f32.mxu1 %vm22535_vm1, %v30308_v15  ;;  %v6353_v61 = vsel %vm6098_vm2, %v5749_v53, 0.0  ;;  %v20278_v37 = vpop.f32.mrf.mxu0  ;;  %v5821_v60 = vmul.f32 2.0, %v26485_v47  ;;  %v6003_v32 = vmul.f32 %v22075_v4, %v5861_v1  ;;  %v22497_v30 = vld [vmem:[%s30082_s0 + $0x250] sm:$0xff] }
 0x366   :  { %20306 = vmatpush3.msra.mxu1 %v30541_v40  ;;  %20523 = vmatprep.mubr.msk.f32.mxu0 %vm293_vm0, %v22493_v49  ;;  %v5568_v39 = vmul.f32 2.0, %v5526_v41  ;;  %v26529_v51 = vpop.f32.mrf.mxu1  ;;  %v5751_v11 = vmul.f32 %v22077_v38, %v5609_v14  ;;  %v22079_v13 = vpop.eup %22078  ;;  %v5862_v2 = vadd.f32 0.0001, %v5820_v27  ;;  %v5402_v25 = vmul.f32 %v30542_v19, %v30524_v10  ;;  %v22498_v49 = vld [vmem:[%s30082_s0 + $0x258] sm:$0xff] }
 0x367   :  { %v5656_v58 = vadd.f32 %v30540_v8, %v5446_v31  ;;  %22090 = vrcp.f32 %v5949_v52  ;;  %v5950_v46 = vadd.f32 0.0001, %v5908_v12  ;;  %20308 = vmatmul.mubr.msk.f32.vlgmr.msra.gmra.mxu1 %vm293_vm0, %v26083_v43  ;;  %20524 = vmatmul.mubr.msk.f32.gmra.mxu0 %vm293_vm0, %v22494_v9  ;;  %v4981_v28 = vpop.f32.mrf.mxu0  ;;  %v5863_v4 = vadd.f32 0.0001, %v5821_v60  ;;  %v30543_v8 = vld [vmem:[#allocation25_spill] sm:$0xff] }
 0x368   :  { %v22081_v20 = vpop.eup %22080  ;;  %v5610_v31 = vadd.f32 0.0009, %v5568_v39  ;;  %6354 = vadd.xlane.f32.xlu0 %v6353_v61  ;;  %20310 = vmatprep.mubr.msk.f32.mxu1 %vm22535_vm1, %v30308_v15  ;;  %v5527_v10 = vsub.f32 %v4981_v28, %v26485_v47  ;;  %v19871_v1 = vpop.f32.mrf.mxu1  ;;  %v6356_v56 = vsel %vm6098_vm2, %v5751_v11, 0.0  ;;  %v6071_v29 = vmul.f32 %v6003_v32, %v5751_v11  ;;  %v30544_v11 = vld [vmem:[#allocation80_spill] sm:$0xff] }
 0x369   :  { %22092 = vrcp.f32 %v5697_v16  ;;  %v5698_v43 = vadd.f32 0.0009, %v5656_v58  ;;  %20526 = vmatprep.mubr.msk.f32.mxu0 %vm293_vm0, %v22495_v57  ;;  %6357 = vadd.xlane.f32.xlu1 %v6356_v56  ;;  %v20281_v24 = vpop.f32.mrf.mxu0  ;;  %v6005_v47 = vmul.f32 %v22079_v13, %v5862_v2  ;;  %v5822_v52 = vmul.f32 2.0, %v5402_v25  ;;  %v22500_v56 = vld [vmem:[%s30082_s0 + $0x268] sm:$0xff] }
 0x36a   :  { %v5569_v44 = vmul.f32 2.0, %v5527_v10  ;;  %v26547_v22 = vpop.f32.mrf.mxu1  ;;  %v5753_v53 = vmul.f32 %v22081_v20, %v5610_v31  ;;  %20365 = vmatprep.subr.mxu1 %v30308_v15  ;;  %v22083_v27 = vpop.eup %22082  ;;  %v5403_v12 = vmul.f32 %v25374_v42, %v30530_v33  ;;  %22094 = vrcp.f32 %v5950_v46  ;;  %v22499_v46 = vld [vmem:[%s30082_s0 + $0x260] sm:$0xff]  ;;  %v30545_v20 = vld [vmem:[#allocation92_spill] sm:$0xff]  ;;  %v30546_v24 = vld [vmem:[#allocation43_spill] sm:$0xff] }
 0x36b   :  { %20311 = vmatmul.mubr.msk.f32.gmra.mxu1 %vm293_vm0, %v26120_v55  ;;  %20527 = vmatmul.mubr.msk.f32.gmra.mxu0 %vm293_vm0, %v22496_v59  ;;  %v6142_v6 = vsel %vm6098_vm2, %v6070_v5, 0.0  ;;  %v4986_v50 = vpop.f32.mrf.mxu0  ;;  %v6145_v33 = vsel %vm6098_vm2, %v6071_v29, 0.0  ;;  %22096 = vrcp.f32 %v5698_v43  ;;  %v6007_v61 = vmul.f32 %v22083_v27, %v5863_v4 }
 0x36c   :  { %v5611_v14 = vadd.f32 0.0009, %v5569_v44  ;;  %6143 = vadd.xlane.f32.xlu0 %v6142_v6  ;;  %20313 = vmatprep.mubr.msk.f32.mxu1 %vm22535_vm1, %v30308_v15  ;;  %v5528_v17 = vsub.f32 %v4986_v50, %v5402_v25  ;;  %v19874_v42 = vpop.f32.mrf.mxu1  ;;  %v6072_v41 = vmul.f32 %v6005_v47, %v5753_v53  ;;  %v22085_v55 = vpop.eup %22084  ;;  %v6359_v5 = vsel %vm6098_vm2, %v5753_v53, 0.0 }
 0x36d   :  { %20529 = vmatprep.mubr.msk.f32.mxu0 %vm293_vm0, %v22497_v30  ;;  %6146 = vadd.xlane.f32.xlu1 %v6145_v33  ;;  %v20284_v38 = vpop.f32.mrf.mxu0  ;;  %v5864_v60 = vadd.f32 0.0001, %v5822_v52  ;;  %v5823_v40 = vmul.f32 2.0, %v5403_v12  ;;  %v5404_v32 = vmul.f32 %v30544_v11, %v30533_v3  ;;  %v26598_v4 = vmul.f32 %v30546_v24, %v30546_v24  ;;  %v22501_v52 = vld [vmem:[%s30082_s0 + $0x270] sm:$0xff]  ;;  %v22503_v11 = vld [vmem:[%s30082_s0 + $0x280] sm:$0xff] }
 0x36e   :  { %v5570_v16 = vmul.f32 2.0, %v5528_v17  ;;  %20366 = vmatpush3.msra.mxu1 %v30543_v8  ;;  %v5755_v58 = vmul.f32 %v22085_v55, %v5611_v14  ;;  %v22087_v37 = vpop.eup %22086  ;;  %v6148_v29 = vsel %vm6098_vm2, %v6072_v41, 0.0  ;;  %v30547_v17 = vld [vmem:[#allocation89_spill] sm:$0xff] }
 0x36f   :  { %20314 = vmatmul.mubr.msk.f32.gmra.mxu1 %vm293_vm0, %v26159_v34  ;;  %20530 = vmatmul.mubr.msk.f32.gmra.mxu0 %vm293_vm0, %v22498_v49  ;;  %v26574_v39 = vpop.f32.mrf.mxu1  ;;  %v6009_v10 = vmul.f32 %v22087_v37, %v5864_v60  ;;  %v5865_v44 = vadd.f32 0.0001, %v5823_v40  ;;  %v5824_v53 = vmul.f32 2.0, %v5404_v32  ;;  %v5916_v33 = vadd.f32 %v25947_v36, %v26598_v4  ;;  %v22502_v55 = vld [vmem:[%s30082_s0 + $0x278] sm:$0xff]  ;;  %v30549_v40 = vld [vmem:[#allocation44_spill] sm:$0xff] }
 0x370   :  { %v5612_v13 = vadd.f32 0.0009, %v5570_v16  ;;  %6360 = vadd.xlane.f32.xlu0 %v6359_v5  ;;  %20316 = vmatprep.mubr.msk.f32.mxu1 %vm22535_vm1, %v30308_v15  ;;  %v4991_v2 = vpop.f32.mrf.mxu0  ;;  %v6362_v19 = vsel %vm6098_vm2, %v5755_v58, 0.0  ;;  %v6073_v34 = vmul.f32 %v6007_v61, %v5755_v58  ;;  %v22089_v25 = vpop.eup %22088  ;;  %v5329_v49 = vmul.f32 %v30549_v40, %v30549_v40 }
 0x371   :  { %20532 = vmatprep.mubr.msk.f32.mxu0 %vm293_vm0, %v22499_v46  ;;  %v5529_v9 = vsub.f32 %v4991_v2, %v5403_v12  ;;  %v19877_v28 = vpop.f32.mrf.mxu1  ;;  %20367 = vmatprep.subr.mxu1 %v30308_v15  ;;  %v5866_v8 = vadd.f32 0.0001, %v5824_v53  ;;  %v22504_v2 = vld [vmem:[%s30082_s0 + $0x288] sm:$0xff]  ;;  %v22505_v53 = vld [vmem:[%s30082_s0 + $0x290] sm:$0xff] }
 0x372   :  { %6363 = vadd.xlane.f32.xlu1 %v6362_v19  ;;  %v20287_v3 = vpop.f32.mrf.mxu0  ;;  %20368 = vmatpush3.msra.mxu1 %v30545_v20  ;;  %v5757_v31 = vmul.f32 %v22089_v25, %v5612_v13  ;;  %v6151_v6 = vsel %vm6098_vm2, %v6073_v34, 0.0  ;;  %v5958_v13 = vadd.f32 0.0001, %v5916_v33  ;;  %v30550_v28 = vld [vmem:[#allocation85_spill] sm:$0xff] }
 0x373   :  { %v5571_v1 = vmul.f32 2.0, %v5529_v9  ;;  %20317 = vmatmul.mubr.msk.f32.gmra.mxu1 %vm293_vm0, %v26194_v21  ;;  %20533 = vmatmul.mubr.msk.f32.gmra.mxu0 %vm293_vm0, %v22500_v56  ;;  %v26594_v43 = vpop.f32.mrf.mxu1  ;;  %v5917_v9 = vadd.f32 %v25971_v23, %v5329_v49  ;;  %v30552_v56 = vld [vmem:[#allocation87_spill] sm:$0xff] }
 0x374   :  { %v22091_v57 = vpop.eup %22090  ;;  %6149 = vadd.xlane.f32.xlu0 %v6148_v29  ;;  %20319 = vmatprep.mubr.msk.f32.mxu1 %vm22535_vm1, %v30308_v15  ;;  %v4996_v21 = vpop.f32.mrf.mxu0  ;;  %v6074_v47 = vmul.f32 %v6009_v10, %v5757_v31  ;;  %v6365_v50 = vsel %vm6098_vm2, %v5757_v31, 0.0  ;;  %v30553_v29 = vsub.f32 %v25954_v48, %v25947_v36  ;;  %22098 = vrcp.f32 %v5958_v13  ;;  %v22506_v36 = vld [vmem:[%s30082_s0 + $0x298] sm:$0xff]  ;;  %v22510_v13 = vld [vmem:[%s30082_s0 + $0x2b0] sm:$0xff] }
 0x375   :  { %v5613_v27 = vadd.f32 0.0009, %v5571_v1  ;;  %20535 = vmatprep.mubr.msk.f32.mxu0 %vm293_vm0, %v22501_v52  ;;  %v5530_v12 = vsub.f32 %v4996_v21, %v5404_v32  ;;  %20369 = vmatprep.subr.mxu1 %v30308_v15  ;;  %v19880_v59 = vpop.f32.mrf.mxu1  ;;  %v6011_v38 = vmul.f32 %v22091_v57, %v5865_v44 }
 0x376   :  { %v22093_v14 = vpop.eup %22092  ;;  %20370 = vmatpush3.msra.mxu1 %v30547_v17  ;;  %6152 = vadd.xlane.f32.xlu1 %v6151_v6  ;;  %v20290_v42 = vpop.f32.mrf.mxu0  ;;  %v6154_v19 = vsel %vm6098_vm2, %v6074_v47, 0.0  ;;  %v30554_v6 = vld [vmem:[#allocation46_spill] sm:$0xff]  ;;  %v30556_v17 = vld [vmem:[#allocation105_spill] sm:$0xff] }
 0x377   :  { %v5572_v41 = vmul.f32 2.0, %v5530_v12  ;;  %20320 = vmatmul.mubr.msk.f32.gmra.mxu1 %vm293_vm0, %v26224_v63  ;;  %20536 = vmatmul.mubr.msk.f32.gmra.mxu0 %vm293_vm0, %v22502_v55  ;;  %v26618_v30 = vpop.f32.mrf.mxu1  ;;  %v5759_v5 = vmul.f32 %v22093_v14, %v5613_v27  ;;  %v22095_v16 = vpop.eup %22094  ;;  %v30548_v63 = vld [vmem:[#allocation28_spill] sm:$0xff]  ;;  %v5959_v27 = vadd.f32 0.0001, %v5917_v9  ;;  %v30557_v42 = vsub.f32 %v30556_v17, %v25971_v23 }
 0x378   :  { %20371 = vmatprep.subr.mxu1 %v30308_v15  ;;  %6366 = vadd.xlane.f32.xlu0 %v6365_v50  ;;  %v22097_v60 = vpop.eup %22096  ;;  %v6013_v46 = vmul.f32 %v22095_v16, %v5866_v8  ;;  %v30555_v50 = vld [vmem:[#allocation81_spill] sm:$0xff]  ;;  %v30559_v8 = vld [vmem:[#allocation91_spill] sm:$0xff] }
 0x379   :  { %v5614_v58 = vadd.f32 0.0009, %v5572_v41  ;;  %20322 = vmatprep.mubr.msk.f32.mxu1 %vm22535_vm1, %v30308_v15  ;;  %20372 = vmatpush3.msra.mxu1 %v30548_v63  ;;  %v19883_v61 = vpop.f32.mrf.mxu1  ;;  %v6075_v37 = vmul.f32 %v6011_v38, %v5759_v5  ;;  %v6368_v32 = vsel %vm6098_vm2, %v5759_v5, 0.0  ;;  %v30558_v38 = vld [vmem:[#allocation83_spill] sm:$0xff]  ;;  %v22507_v63 = vld [vmem:[%s30082_s0 + $0x2a0] sm:$0xff] }
 0x37a   :  { %20538 = vmatprep.mubr.msk.f32.mxu0 %vm293_vm0, %v22503_v11  ;;  %20373 = vmatprep.subr.mxu1 %v30308_v15  ;;  %v22508_v61 = vld [vmem:[%s30083_s1] sm:$0xff] }
 0x37b   :  { %20323 = vmatmul.mubr.msk.f32.gmra.mxu1 %vm293_vm0, %v26250_v54  ;;  %20539 = vmatmul.mubr.msk.f32.gmra.mxu0 %vm293_vm0, %v22504_v2  ;;  %v3966_v34 = vpop.f32.mrf.mxu1  ;;  %v5761_v25 = vmul.f32 %v22097_v60, %v5614_v58  ;;  %v30551_v54 = vld [vmem:[#allocation45_spill] sm:$0xff]  ;;  %v6157_v48 = vsel %vm6098_vm2, %v6075_v37, 0.0  ;;  %v5412_v58 = vmul.f32 %v30559_v8, %v30546_v24  ;;  %v22509_v24 = vld [vmem:[%s30082_s0 + $0x2a8] sm:$0xff] }
 0x37c   :  { %20374 = vmatpush3.msra.mxu1 %v30550_v28  ;;  %6155 = vadd.xlane.f32.xlu0 %v6154_v19  ;;  %v5454_v3 = vsub.f32 %v3966_v34, %v26598_v4  ;;  %v26642_v20 = vpop.f32.mrf.mxu0  ;;  %v5330_v31 = vmul.f32 %v30551_v54, %v30551_v54  ;;  %v30560_v2 = vld [vmem:[#allocation107_spill] sm:$0xff] }
 0x37d   :  { %20375 = vmatprep.subr.mxu1 %v30308_v15  ;;  %6369 = vadd.xlane.f32.xlu1 %v6368_v32  ;;  %v19902_v10 = vpop.f32.mrf.mxu1  ;;  %v6076_v1 = vmul.f32 %v6013_v46, %v5761_v25  ;;  %v6371_v21 = vsel %vm6117_vm3, %v5761_v25, 0.0  ;;  %v5538_v32 = vsub.f32 %v26642_v20, %v5412_v58  ;;  %v30561_v19 = vsub.f32 %v30560_v2, %v25995_v35  ;;  %v30562_v46 = vld [vmem:[#allocation47_spill] sm:$0xff] }
 0x37e   :  { %20325 = vmatprep.mubr.msk.f32.mxu1 %vm22535_vm1, %v30308_v15  ;;  %20376 = vmatpush3.msra.mxu1 %v30552_v56  ;;  %v5664_v57 = vadd.f32 %v30553_v29, %v5454_v3  ;;  %v20346_v4 = vpop.f32.mrf.mxu0  ;;  %v5918_v44 = vadd.f32 %v25995_v35, %v5330_v31  ;;  %v5332_v9 = vmul.f32 %v30562_v46, %v30562_v46  ;;  %v30563_v28 = vld [vmem:[#allocation27_spill] sm:$0xff]  ;;  %v30564_v10 = vld [vmem:[#allocation93_spill] sm:$0xff] }
 0x37f   :  { %20541 = vmatprep.mubr.msk.f32.mxu0 %vm293_vm0, %v22505_v53  ;;  %20326 = vmatmul.mubr.msk.f32.gmra.mxu1 %vm293_vm0, %v26291_v0  ;;  %v3971_v47 = vpop.f32.mrf.mxu1  ;;  %v5331_v0 = vmul.f32 %v30554_v6, %v30554_v6  ;;  %v5413_v3 = vmul.f32 %v30563_v28, %v30549_v40  ;;  %v22511_v29 = vld [vmem:[%s30083_s1 + $0x8] sm:$0xff]  ;;  %v30565_v4 = vld [vmem:[#allocation48_spill] sm:$0xff]  ;;  %v5832_v40 = vmul.f32 2.0, %v5412_v58 }
 0x380   :  { %v5706_v52 = vadd.f32 0.0009, %v5664_v57  ;;  %20377 = vmatprep.subr.mxu1 %v30308_v15  ;;  %20542 = vmatmul.mubr.msk.f32.gmra.mxu0 %vm293_vm0, %v22506_v36  ;;  %v5455_v12 = vsub.f32 %v3971_v47, %v5329_v49  ;;  %v26667_v59 = vpop.f32.mrf.mxu0  ;;  %v5960_v55 = vadd.f32 0.0001, %v5918_v44  ;;  %v6160_v49 = vsel %vm6117_vm3, %v6076_v1, 0.0  ;;  %v22516_v58 = vld [vmem:[%s30082_s0 + $0x2d0] sm:$0xff] }
 0x381   :  { %20378 = vmatpush3.msra.mxu1 %v30555_v50  ;;  %6158 = vadd.xlane.f32.xlu1 %v6157_v48  ;;  %v19905_v14 = vpop.f32.mrf.mxu1  ;;  %v5919_v5 = vadd.f32 %v26021_v45, %v5331_v0  ;;  %v5414_v1 = vmul.f32 %v30564_v10, %v30551_v54  ;;  %v26721_v44 = vmul.f32 %v30565_v4, %v30565_v4  ;;  %v22512_v54 = vld [vmem:[%s30082_s0 + $0x2b8] sm:$0xff]  ;;  %v5580_v47 = vmul.f32 2.0, %v5538_v32  ;;  %v30567_v50 = vld [vmem:[#allocation6_spill] sm:$0xff]  ;;  %v22099_v17 = vpop.eup %22098 }
 0x382   :  { %22100 = vrcp.f32 %v5706_v52  ;;  %20379 = vmatprep.subr.mxu1 %v30308_v15  ;;  %6372 = vadd.xlane.f32.xlu0 %v6371_v21  ;;  %v5665_v33 = vadd.f32 %v30557_v42, %v5455_v12  ;;  %v20349_v41 = vpop.f32.mrf.mxu0  ;;  %v5920_v53 = vadd.f32 %v26049_v62, %v5332_v9  ;;  %v22513_v52 = vld [vmem:[%s30082_s0 + $0x2c0] sm:$0xff]  ;;  %v30566_v36 = vsub.f32 %v26028_v18, %v26021_v45  ;;  %v22515_v18 = vld [vmem:[%s30082_s0 + $0x2c8] sm:$0xff] }
 0x383   :  { %20380 = vmatpush3.msra.mxu1 %v30558_v38  ;;  %20381 = vmatprep.mubr.msk.f32.mxu1 %vm22535_vm1, %v30308_v15  ;;  %v3976_v16 = vpop.f32.mrf.mxu1  ;;  %22102 = vrcp.f32 %v5959_v27  ;;  %v5961_v20 = vadd.f32 0.0001, %v5919_v5  ;;  %v5539_v27 = vsub.f32 %v26667_v59, %v5413_v3  ;;  %v5921_v14 = vadd.f32 %v30567_v50, %v26721_v44 }
 0x384   :  { %20544 = vmatprep.mubr.msk.f32.mxu0 %vm293_vm0, %v22507_v63  ;;  %v5707_v23 = vadd.f32 0.0009, %v5665_v33  ;;  %20382 = vmatmul.mubr.msk.f32.vlgmr.msra.gmra.mxu1 %vm293_vm0, %v22508_v61  ;;  %v5456_v37 = vsub.f32 %v3976_v16, %v5330_v31  ;;  %v26690_v60 = vpop.f32.mrf.mxu0  ;;  %v5834_v42 = vmul.f32 2.0, %v5414_v1  ;;  %v22514_v33 = vld [vmem:[%s30083_s1 + $0x10] sm:$0xff]  ;;  %v5874_v41 = vadd.f32 0.0001, %v5832_v40 }
 0x385   :  { %20545 = vmatmul.mubr.msk.f32.gmra.mxu0 %vm293_vm0, %v22509_v24  ;;  %20384 = vmatprep.mubr.msk.f32.mxu1 %vm22535_vm1, %v30308_v15  ;;  %v19908_v11 = vpop.f32.mrf.mxu1  ;;  %v5540_v45 = vsub.f32 %v26690_v60, %v5414_v1  ;;  %v5622_v16 = vadd.f32 0.0009, %v5580_v47  ;;  %v5581_v8 = vmul.f32 2.0, %v5539_v27  ;;  %v30568_v61 = vld [vmem:[#allocation49_spill] sm:$0xff]  ;;  %v30569_v24 = vld [vmem:[#allocation94_spill] sm:$0xff]  ;;  %v30573_v27 = vld [vmem:[#allocation95_spill] sm:$0xff] }
 0x386   :  { %22104 = vrcp.f32 %v5707_v23  ;;  %6161 = vadd.xlane.f32.xlu0 %v6160_v49  ;;  %20547 = vmatprep.mubr.msk.f32.mxu0 %vm293_vm0, %v22510_v13  ;;  %v5666_v34 = vadd.f32 %v30561_v19, %v5456_v37  ;;  %v20352_v25 = vpop.f32.mrf.mxu0  ;;  %v26759_v37 = vmul.f32 %v30568_v61, %v30568_v61  ;;  %v5415_v49 = vmul.f32 %v30569_v24, %v30554_v6  ;;  %v30570_v19 = vld [vmem:[#allocation108_spill] sm:$0xff]  ;;  %v22519_v40 = vld [vmem:[%s30082_s0 + $0x2e0] sm:$0xff] }
 0x387   :  { %22106 = vrcp.f32 %v5960_v55  ;;  %v3981_v31 = vpop.f32.mrf.mxu1  ;;  %v5962_v55 = vadd.f32 0.0001, %v5920_v53  ;;  %v5963_v11 = vadd.f32 0.0001, %v5921_v14  ;;  %v5876_v2 = vadd.f32 0.0001, %v5834_v42 }
 0x388   :  { %v5708_v56 = vadd.f32 0.0009, %v5666_v34  ;;  %20385 = vmatmul.mubr.msk.f32.gmra.mxu1 %vm293_vm0, %v22511_v29  ;;  %v5457_v35 = vsub.f32 %v3981_v31, %v5331_v0  ;;  %v26717_v57 = vpop.f32.mrf.mxu0  ;;  %v5833_v0 = vmul.f32 2.0, %v5413_v3  ;;  %v30571_v34 = vsub.f32 %v30570_v19, %v26049_v62  ;;  %v30572_v6 = vld [vmem:[#allocation8_spill] sm:$0xff]  ;;  %v22518_v62 = vld [vmem:[%s30082_s0 + $0x2d8] sm:$0xff] }
 0x389   :  { %20548 = vmatmul.mubr.msk.f32.gmra.mxu0 %vm293_vm0, %v22512_v54  ;;  %20387 = vmatprep.mubr.msk.f32.mxu1 %vm22535_vm1, %v30308_v15  ;;  %v19911_v21 = vpop.f32.mrf.mxu1  ;;  %v6029_v3 = vmul.f32 %v22099_v17, %v5874_v41  ;;  %v5922_v31 = vadd.f32 %v30572_v6, %v26759_v37  ;;  %v5582_v10 = vmul.f32 2.0, %v5540_v45  ;;  %v5541_v1 = vsub.f32 %v26717_v57, %v5415_v49  ;;  %v22520_v17 = vld [vmem:[%s30083_s1 + $0x20] sm:$0xff]  ;;  %v22521_v45 = vld [vmem:[%s30082_s0 + $0x2e8] sm:$0xff] }
 0x38a   :  { %22108 = vrcp.f32 %v5708_v56  ;;  %20550 = vmatprep.mubr.msk.f32.mxu0 %vm293_vm0, %v22513_v52  ;;  %v5667_v48 = vadd.f32 %v30566_v36, %v5457_v35  ;;  %v20355_v12 = vpop.f32.mrf.mxu0  ;;  %v5875_v60 = vadd.f32 0.0001, %v5833_v0  ;;  %v5623_v29 = vadd.f32 0.0009, %v5581_v8  ;;  %v30574_v0 = vld [vmem:[#allocation109_spill] sm:$0xff] }
 0x38b   :  { %22110 = vrcp.f32 %v5961_v20  ;;  %v5835_v47 = vmul.f32 2.0, %v5415_v49  ;;  %v26789_v52 = vmul.f32 %v30573_v27, %v30562_v46  ;;  %v30575_v14 = vsub.f32 %v30574_v0, %v30567_v50 }
 0x38c   :  { %v5709_v59 = vadd.f32 0.0009, %v5667_v48  ;;  %20388 = vmatmul.mubr.msk.f32.gmra.mxu1 %vm293_vm0, %v22514_v33  ;;  %v5964_v33 = vadd.f32 0.0001, %v5922_v31  ;;  %v5624_v41 = vadd.f32 0.0009, %v5582_v10 }
 0x38d   :  { %20551 = vmatmul.mubr.msk.f32.gmra.mxu0 %vm293_vm0, %v22515_v18  ;;  %20390 = vmatprep.mubr.msk.f32.mxu1 %vm22535_vm1, %v30308_v15  ;;  %v3986_v5 = vpop.f32.mrf.mxu1  ;;  %v26751_v38 = vpop.f32.mrf.mxu0  ;;  %v26835_v31 = vld [vmem:[%s30085_s7] sm:$0xff] }
 0x38e   :  { %22112 = vrcp.f32 %v5709_v59  ;;  %20553 = vmatprep.mubr.msk.f32.mxu0 %vm293_vm0, %v22516_v58  ;;  %v5458_v63 = vsub.f32 %v3986_v5, %v5332_v9  ;;  %v22517_v9 = vld [vmem:[%s30083_s1 + $0x18] sm:$0xff] }
 0x38f   :  { %v22101_v23 = vpop.eup %22100  ;;  %v19914_v32 = vpop.f32.mrf.mxu1  ;;  %22114 = vrcp.f32 %v5962_v55  ;;  %v5583_v55 = vmul.f32 2.0, %v5541_v1 }
 0x390   :  { %v20358_v13 = vpop.f32.mrf.mxu0  ;;  %v5668_v25 = vadd.f32 %v30571_v34, %v5458_v63  ;;  %20391 = vmatmul.mubr.msk.f32.gmra.mxu1 %vm293_vm0, %v22517_v9  ;;  %v5777_v28 = vmul.f32 %v22101_v23, %v5622_v16  ;;  %v22103_v20 = vpop.eup %22102  ;;  %22116 = vrcp.f32 %v5963_v11  ;;  %v22522_v16 = vld [vmem:[%s30082_s0 + $0x2f0] sm:$0xff]  ;;  %v5542_v32 = vsub.f32 %v26751_v38, %v26789_v52  ;;  %v22524_v38 = vld [vmem:[%s30082_s0 + $0x2f8] sm:$0xff] }
 0x391   :  { %20554 = vmatmul.mubr.msk.f32.gmra.mxu0 %vm293_vm0, %v22518_v62  ;;  %20393 = vmatprep.mubr.msk.f32.mxu1 %vm22535_vm1, %v30308_v15  ;;  %v3991_v56 = vpop.f32.mrf.mxu1  ;;  %v6031_v46 = vmul.f32 %v22103_v20, %v5875_v60  ;;  %v30576_v13 = vld [vmem:[#allocation110_spill] sm:$0xff]  ;;  %v5625_v20 = vadd.f32 0.0009, %v5583_v55 }
 0x392   :  { %v5710_v35 = vadd.f32 0.0009, %v5668_v25  ;;  %20556 = vmatprep.mubr.msk.f32.mxu0 %vm293_vm0, %v22519_v40  ;;  %v5459_v57 = vsub.f32 %v3991_v56, %v26721_v44  ;;  %v26784_v53 = vpop.f32.mrf.mxu0  ;;  %v6395_v54 = vsel %vm6098_vm2, %v5777_v28, 0.0  ;;  %v6084_v48 = vmul.f32 %v6029_v3, %v5777_v28 }
 0x393   :  { %v22105_v21 = vpop.eup %22104  ;;  %v19917_v36 = vpop.f32.mrf.mxu1  ;;  %6396 = vadd.xlane.f32.xlu0 %v6395_v54  ;;  %v30577_v19 = vsub.f32 %v30576_v13, %v30572_v6  ;;  %v5877_v28 = vadd.f32 0.0001, %v5835_v47  ;;  %v5584_v54 = vmul.f32 2.0, %v5542_v32  ;;  %v22525_v47 = vld [vmem:[%s30083_s1 + $0x30] sm:$0x3f] }
 0x394   :  { %v22107_v12 = vpop.eup %22106  ;;  %22118 = vrcp.f32 %v5710_v35  ;;  %v5669_v44 = vadd.f32 %v30575_v14, %v5459_v57  ;;  %20394 = vmatmul.mubr.msk.f32.gmra.mxu1 %vm293_vm0, %v22520_v17  ;;  %v20361_v42 = vpop.f32.mrf.mxu0  ;;  %v5779_v59 = vmul.f32 %v22105_v21, %v5623_v29  ;;  %v6184_v18 = vsel %vm6098_vm2, %v6084_v48, 0.0 }
 0x395   :  { %20557 = vmatmul.mubr.msk.f32.gmra.mxu0 %vm293_vm0, %v22521_v45  ;;  %20396 = vmatprep.mubr.msk.f32.mxu1 %vm22535_vm1, %v30308_v15  ;;  %v3996_v50 = vpop.f32.mrf.mxu1  ;;  %v6033_v49 = vmul.f32 %v22107_v12, %v5876_v2  ;;  %v30578_v2 = vld [vmem:[#allocation96_spill] sm:$0xff]  ;;  %v5836_v35 = vmul.f32 2.0, %v26789_v52  ;;  %v30579_v12 = vld [vmem:[#allocation97_spill] sm:$0xff] }
 0x396   :  { %v5711_v5 = vadd.f32 0.0009, %v5669_v44  ;;  %20559 = vmatprep.mubr.msk.f32.mxu0 %vm293_vm0, %v22522_v16  ;;  %v5460_v8 = vsub.f32 %v3996_v50, %v26759_v37  ;;  %v26810_v58 = vpop.f32.mrf.mxu0  ;;  %v6398_v63 = vsel %vm6098_vm2, %v5779_v59, 0.0  ;;  %v6085_v23 = vmul.f32 %v6031_v46, %v5779_v59  ;;  %v22523_v37 = vld [vmem:[%s30083_s1 + $0x28] sm:$0xff] }
 0x397   :  { %v22109_v60 = vpop.eup %22108  ;;  %v19920_v24 = vpop.f32.mrf.mxu1  ;;  %6185 = vadd.xlane.f32.xlu0 %v6184_v18  ;;  %6399 = vadd.xlane.f32.xlu1 %v6398_v63  ;;  %v5417_v3 = vmul.f32 %v30578_v2, %v30565_v4  ;;  %v5418_v0 = vmul.f32 %v30579_v12, %v30568_v61 }
 0x398   :  { %v22111_v11 = vpop.eup %22110  ;;  %22120 = vrcp.f32 %v5711_v5  ;;  %v5670_v34 = vadd.f32 %v30577_v19, %v5460_v8  ;;  %20397 = vmatmul.mubr.msk.f32.gmra.mxu1 %vm293_vm0, %v22523_v37  ;;  %v20364_v25 = vpop.f32.mrf.mxu0  ;;  %v5781_v9 = vmul.f32 %v22109_v60, %v5624_v41  ;;  %v6187_v1 = vsel %vm6098_vm2, %v6085_v23, 0.0 }
 0x399   :  { %22122 = vrcp.f32 %v5964_v33  ;;  %20560 = vmatmul.mubr.msk.f32.gmra.mxu0 %vm293_vm0, %v22524_v38  ;;  %20399 = vmatprep.mubr.msk.f32.mxu1 %vm22535_vm1, %v30308_v15  ;;  %v26830_v6 = vpop.f32.mrf.mxu1  ;;  %v6035_v57 = vmul.f32 %v22111_v11, %v5877_v28  ;;  %v5543_v21 = vsub.f32 %v26784_v53, %v5417_v3  ;;  %v5837_v42 = vmul.f32 2.0, %v5417_v3  ;;  %v30601_v15 = vld [vmem:[#allocation14_spill] sm:$0xff] }
 0x39a   :  { %v5712_v10 = vadd.f32 0.0009, %v5670_v34  ;;  %v26837_v4 = vpop.f32.mrf.mxu0  ;;  %v6401_v62 = vsel %vm6098_vm2, %v5781_v9, 0.0  ;;  %v6086_v56 = vmul.f32 %v6033_v49, %v5781_v9  ;;  %20820 = vmatprep.mubr.msk.f32.mxu0 %vm293_vm0, %v26835_v31  ;;  %v5878_v33 = vadd.f32 0.0001, %v5836_v35 }
 0x39b   :  { %v22113_v29 = vpop.eup %22112  ;;  %v19939_v40 = vpop.f32.mrf.mxu1  ;;  %6188 = vadd.xlane.f32.xlu1 %v6187_v1  ;;  %6402 = vadd.xlane.f32.xlu0 %v6401_v62  ;;  %v5626_v41 = vadd.f32 0.0009, %v5584_v54  ;;  %v5585_v55 = vmul.f32 2.0, %v5543_v21  ;;  %v5544_v45 = vsub.f32 %v26810_v58, %v5418_v0  ;;  %v5879_v23 = vadd.f32 0.0001, %v5837_v42 }
 0x39c   :  { %22124 = vrcp.f32 %v5712_v10  ;;  %20400 = vmatmul.mubr.msk.f32.gmra.mxu1 %vm293_vm0, %v22525_v47  ;;  %v26849_v27 = vpop.f32.mrf.mxu0  ;;  %v5783_v36 = vmul.f32 %v22113_v29, %v5625_v20  ;;  %v22115_v52 = vpop.eup %22114  ;;  %v6190_v14 = vsel %vm6098_vm2, %v6086_v56, 0.0  ;;  %v5838_v60 = vmul.f32 2.0, %v5418_v0 }
 0x39d   :  { %v26851_v48 = vpop.f32.mrf.mxu1  ;;  %20578 = vmatprep.mubr.msk.f32.mxu1 %vm293_vm0, %v26835_v31  ;;  %v22117_v46 = vpop.eup %22116  ;;  %v6037_v63 = vmul.f32 %v22115_v52, %v5878_v33  ;;  %v5627_v49 = vadd.f32 0.0009, %v5585_v55  ;;  %v5586_v11 = vmul.f32 2.0, %v5544_v45  ;;  %v30580_v33 = vld [vmem:[#allocation16_spill] sm:$0xff]  ;;  %v30581_v55 = vld [vmem:[#allocation5_spill] sm:$0xff] }
 0x39e   :  { %v26857_v53 = vpop.f32.mrf.mxu0  ;;  %v6404_v44 = vsel %vm6098_vm2, %v5783_v36, 0.0  ;;  %v6087_v17 = vmul.f32 %v6035_v57, %v5783_v36  ;;  %v6039_v28 = vmul.f32 %v22117_v46, %v5879_v23  ;;  %v5880_v2 = vadd.f32 0.0001, %v5838_v60  ;;  %v26909_v23 = vld [vmem:[%s30085_s7 + $0x8] sm:$0xff] }
 0x39f   :  { %v19942_v59 = vpop.f32.mrf.mxu1  ;;  %6191 = vadd.xlane.f32.xlu0 %v6190_v14  ;;  %6405 = vadd.xlane.f32.xlu1 %v6404_v44  ;;  %v5628_v20 = vadd.f32 0.0009, %v5586_v11  ;;  %v26898_v45 = vmul.f32 %v30581_v55, %v30581_v55  ;;  %v30584_v11 = vld [vmem:[#allocation67_spill] sm:$0xff] }
 0x3a0   :  { %v26862_v50 = vpop.f32.mrf.mxu0  ;;  %v6193_v16 = vsel %vm6098_vm2, %v6087_v17, 0.0 }
 0x3a1   :  { %v22119_v61 = vpop.eup %22118  ;;  %v26864_v18 = vpop.f32.mrf.mxu1 }
 0x3a2   :  { %v20426_v5 = vpop.f32.mrf.mxu0  ;;  %v5785_v8 = vmul.f32 %v22119_v61, %v5626_v41  ;;  %v26894_v41 = vmul.f32 %v30580_v33, %v30580_v33 }
 0x3a3   :  { %v19945_v24 = vpop.f32.mrf.mxu1  ;;  %6194 = vadd.xlane.f32.xlu1 %v6193_v16  ;;  %v30582_v16 = vld [vmem:[#allocation106_spill] sm:$0xff] }
 0x3a4   :  { %v6619_v32 = vpop.f32.mrf.mxu0  ;;  %v6407_v13 = vsel %vm6098_vm2, %v5785_v8, 0.0  ;;  %v6088_v58 = vmul.f32 %v6037_v63, %v5785_v8  ;;  %v30583_v24 = vld [vmem:[#allocation18_spill] sm:$0xff] }
 0x3a5   :  { %v22121_v19 = vpop.eup %22120  ;;  %v26868_v34 = vpop.f32.mrf.mxu1  ;;  %6408 = vadd.xlane.f32.xlu0 %v6407_v13 }
 0x3a6   :  { %v22123_v37 = vpop.eup %22122  ;;  %v20429_v25 = vpop.f32.mrf.mxu0  ;;  %v5787_v9 = vmul.f32 %v22121_v19, %v5627_v49  ;;  %v6196_v10 = vsel %vm6098_vm2, %v6088_v58, 0.0  ;;  %v26919_v49 = vmul.f32 %v30583_v24, %v30583_v24  ;;  %v30585_v19 = vld [vmem:[#allocation2_spill] sm:$0xff] }
 0x3a7   :  { %v19948_v3 = vpop.f32.mrf.mxu1  ;;  %20562 = vmatprep.subr.mxu1 %v20429_v25  ;;  %v6041_v57 = vmul.f32 %v22123_v37, %v5880_v2  ;;  %v30586_v2 = vld [vmem:[#allocation20_spill] sm:$0xff] }
 0x3a8   :  { %v6629_v38 = vpop.f32.mrf.mxu0  ;;  %v6410_v1 = vsel %vm6098_vm2, %v5787_v9, 0.0  ;;  %20563 = vmatpush3.msra.mxu1 %v20429_v25  ;;  %v6089_v62 = vmul.f32 %v6039_v28, %v5787_v9  ;;  %v5434_v37 = vsub.f32 %v30585_v19, %v26919_v49  ;;  %v26944_v3 = vmul.f32 %v30586_v2, %v30586_v2  ;;  %v30593_v19 = vld [vmem:[#allocation71_spill] sm:$0xff] }
 0x3a9   :  { %v22125_v56 = vpop.eup %22124  ;;  %v26872_v29 = vpop.f32.mrf.mxu1  ;;  %6197 = vadd.xlane.f32.xlu0 %v6196_v10  ;;  %6411 = vadd.xlane.f32.xlu1 %v6410_v1 }
 0x3aa   :  { %v26874_v35 = vpop.f32.mrf.mxu0  ;;  %20564 = vmatprep.subr.mxu1 %v6629_v38  ;;  %v5789_v40 = vmul.f32 %v22125_v56, %v5628_v20  ;;  %v6199_v47 = vsel %vm6098_vm2, %v6089_v62, 0.0  ;;  %v30587_v20 = vld [vmem:[#allocation68_spill] sm:$0xff] }
 0x3ab   :  { %v19951_v54 = vpop.f32.mrf.mxu1  ;;  %20565 = vmatpush3.msra.mxu1 %v6629_v38  ;;  %v26948_v38 = vmul.f32 %v30587_v20, %v30587_v20  ;;  %v30588_v56 = vld [vmem:[#allocation4_spill] sm:$0xff] }
 0x3ac   :  { %v26876_v21 = vpop.f32.mrf.mxu0  ;;  %v6413_v36 = vsel %vm6117_vm3, %v5789_v40, 0.0  ;;  %20566 = vmatprep.subr.mxu1 %v20426_v5  ;;  %v6090_v52 = vmul.f32 %v6041_v57, %v5789_v40  ;;  %v5435_v40 = vsub.f32 %v30588_v56, %v26944_v3 }
 0x3ad   :  { %v26880_v12 = vpop.f32.mrf.mxu1  ;;  %6200 = vadd.xlane.f32.xlu1 %v6199_v47  ;;  %6414 = vadd.xlane.f32.xlu0 %v6413_v36  ;;  %v30589_v36 = vld [vmem:[#allocation22_spill] sm:$0xff] }
 0x3ae   :  { %v26882_v0 = vpop.f32.mrf.mxu0  ;;  %20567 = vmatpush3.msra.mxu1 %v20426_v5  ;;  %v6202_v17 = vsel %vm6117_vm3, %v6090_v52, 0.0  ;;  %v26965_v52 = vmul.f32 %v30589_v36, %v30589_v36 }
 0x3af   :  { %v19954_v14 = vpop.f32.mrf.mxu1  ;;  %20568 = vmatprep.subr.mxu1 %v6619_v32 }
 0x3b0   :  { %v26884_v44 = vpop.f32.mrf.mxu0  ;;  %20569 = vmatpush3.msra.mxu1 %v6619_v32  ;;  %v30590_v14 = vld [vmem:[#allocation69_spill] sm:$0xff] }
 0x3b1   :  { %v26887_v42 = vpop.f32.mrf.mxu1  ;;  %6203 = vadd.xlane.f32.xlu0 %v6202_v17  ;;  %20570 = vmatprep.subr.mxu1 %v26857_v53  ;;  %v26969_v17 = vmul.f32 %v30590_v14, %v30590_v14 }
 0x3b2   :  { %v20438_v59 = vpop.f32.mrf.mxu0  ;;  %20571 = vmatpush3.msra.mxu1 %v26857_v53  ;;  %v5433_v53 = vsub.f32 %v30582_v16, %v26894_v41 }
 0x3b3   :  { %v19957_v46 = vpop.f32.mrf.mxu1  ;;  %20572 = vmatprep.subr.mxu1 %v26862_v50 }
 0x3b4   :  { %v6659_v61 = vpop.f32.mrf.mxu0  ;;  %20573 = vmatpush3.msra.mxu1 %v26862_v50  ;;  %v26915_v50 = vld [vmem:[%s30085_s7 + $0x10] sm:$0xff] }
 0x3b5   :  { %v4266_v5 = vpop.f32.mrf.mxu1  ;;  %20574 = vmatprep.subr.mxu1 %v26837_v4 }
 0x3b6   :  { %v5475_v8 = vsub.f32 %v4266_v5, %v26898_v45  ;;  %v20441_v63 = vpop.f32.mrf.mxu0  ;;  %20575 = vmatpush3.msra.mxu1 %v26837_v4  ;;  %v26923_v4 = vmul.f32 %v30584_v11, %v30584_v11 }
 0x3b7   :  { %v20013_v60 = vpop.f32.mrf.mxu1  ;;  %20576 = vmatprep.subr.mxu1 %v26849_v27 }
 0x3b8   :  { %v26925_v32 = vadd.f32 %v5475_v8, %v5433_v53  ;;  %v6669_v13 = vpop.f32.mrf.mxu0  ;;  %20577 = vmatpush3.msra.mxu1 %v26849_v27  ;;  %v26940_v27 = vld [vmem:[%s30085_s7 + $0x18] sm:$0xff] }
 0x3b9   :  { %v4271_v58 = vpop.f32.mrf.mxu1  ;;  %20584 = vmatprep.subr.mxu1 %v20441_v63  ;;  %20579 = vmatmul.mubr.msk.f32.vlgmr.msra.gmra.mxu1 %vm293_vm0, %v26909_v23 }
 0x3ba   :  { %v5476_v25 = vsub.f32 %v4271_v58, %v26923_v4  ;;  %v26933_v9 = vpop.f32.mrf.mxu0  ;;  %20585 = vmatpush3.msra.mxu1 %v20441_v63  ;;  %20581 = vmatprep.mubr.msk.f32.mxu1 %vm293_vm0, %v26915_v50 }
 0x3bb   :  { %v20016_v28 = vpop.f32.mrf.mxu1  ;;  %20586 = vmatprep.subr.mxu1 %v6669_v13 }
 0x3bc   :  { %v26950_v10 = vadd.f32 %v5476_v25, %v5434_v37  ;;  %v26952_v1 = vpop.f32.mrf.mxu0  ;;  %20587 = vmatpush3.msra.mxu1 %v6669_v13  ;;  %v30592_v13 = vld [vmem:[#allocation23_spill] sm:$0xff] }
 0x3bd   :  { %v4276_v62 = vpop.f32.mrf.mxu1  ;;  %20588 = vmatprep.subr.mxu1 %v20438_v59  ;;  %20582 = vmatmul.mubr.msk.f32.gmra.mxu1 %vm293_vm0, %v26940_v27  ;;  %v26983_v58 = vmul.f32 %v30592_v13, %v30592_v13 }
 0x3be   :  { %v5477_v57 = vsub.f32 %v4276_v62, %v26948_v38  ;;  %v26959_v54 = vpop.f32.mrf.mxu0  ;;  %20589 = vmatpush3.msra.mxu1 %v20438_v59  ;;  %20600 = vmatprep.mubr.msk.f32.mxu1 %vm293_vm0, %v26835_v31  ;;  %v30591_v59 = vld [vmem:[#allocation7_spill] sm:$0xff] }
 0x3bf   :  { %v20019_v47 = vpop.f32.mrf.mxu1  ;;  %20590 = vmatprep.subr.mxu1 %v6659_v61  ;;  %v5436_v53 = vsub.f32 %v30591_v59, %v26965_v52  ;;  %v30597_v59 = vld [vmem:[#allocation17_spill] sm:$0xff] }
 0x3c0   :  { %v26971_v46 = vadd.f32 %v5477_v57, %v5435_v40  ;;  %v26973_v5 = vpop.f32.mrf.mxu0  ;;  %20591 = vmatpush3.msra.mxu1 %v6659_v61  ;;  %v26987_v61 = vmul.f32 %v30593_v19, %v30593_v19  ;;  %v30596_v47 = vld [vmem:[#allocation24_spill] sm:$0xff] }
 0x3c1   :  { %v4281_v16 = vpop.f32.mrf.mxu1  ;;  %20592 = vmatprep.subr.mxu1 %v26882_v0 }
 0x3c2   :  { %v5478_v8 = vsub.f32 %v4281_v16, %v26969_v17  ;;  %v20450_v63 = vpop.f32.mrf.mxu0  ;;  %20593 = vmatpush3.msra.mxu1 %v26882_v0  ;;  %v30595_v0 = vld [vmem:[#allocation3_spill] sm:$0xff]  ;;  %v27000_v16 = vmul.f32 %v30596_v47, %v30596_v47 }
 0x3c3   :  { %v20022_v60 = vpop.f32.mrf.mxu1  ;;  %20594 = vmatprep.subr.mxu1 %v26884_v44  ;;  %v5437_v62 = vsub.f32 %v30595_v0, %v26983_v58 }
 0x3c4   :  { %v26989_v37 = vadd.f32 %v5478_v8, %v5436_v53  ;;  %v6699_v25 = vpop.f32.mrf.mxu0  ;;  %20595 = vmatpush3.msra.mxu1 %v26884_v44  ;;  %v27004_v44 = vmul.f32 %v30597_v59, %v30597_v59 }
 0x3c5   :  { %v4286_v28 = vpop.f32.mrf.mxu1  ;;  %20596 = vmatprep.subr.mxu1 %v26874_v35 }
 0x3c6   :  { %30594 = vst [vmem:[#allocation66_spill] sm:$0xff] %v26989_v37  ;;  %v5479_v56 = vsub.f32 %v4286_v28, %v26987_v61  ;;  %v20453_v40 = vpop.f32.mrf.mxu0  ;;  %20597 = vmatpush3.msra.mxu1 %v26874_v35  ;;  %v30599_v35 = vld [vmem:[#allocation10_spill] sm:$0xff] }
 0x3c7   :  { %v20025_v57 = vpop.f32.mrf.mxu1  ;;  %20598 = vmatprep.subr.mxu1 %v26876_v21  ;;  %v5438_v28 = vsub.f32 %v30599_v35, %v27000_v16 }
 0x3c8   :  { %v27006_v53 = vadd.f32 %v5479_v56, %v5437_v62  ;;  %v6709_v8 = vpop.f32.mrf.mxu0  ;;  %20599 = vmatpush3.msra.mxu1 %v26876_v21  ;;  %v30600_v56 = vld [vmem:[#allocation26_spill] sm:$0xff] }
 0x3c9   :  { %v4291_v60 = vpop.f32.mrf.mxu1  ;;  %20606 = vmatprep.subr.mxu1 %v20453_v40  ;;  %20601 = vmatmul.mubr.msk.f32.vlgmr.msra.gmra.mxu1 %vm293_vm0, %v26909_v23  ;;  %v27020_v21 = vmul.f32 %v30600_v56, %v30600_v56 }
 0x3ca   :  { %30598 = vst [vmem:[#allocation13_spill] sm:$0xff] %v27006_v53  ;;  %v5480_v0 = vsub.f32 %v4291_v60, %v27004_v44  ;;  %v27014_v57 = vpop.f32.mrf.mxu0  ;;  %20607 = vmatpush3.msra.mxu1 %v20453_v40  ;;  %20603 = vmatprep.mubr.msk.f32.mxu1 %vm293_vm0, %v26915_v50  ;;  %v27024_v53 = vmul.f32 %v30601_v15, %v30601_v15 }
 0x3cb   :  { %v20028_v62 = vpop.f32.mrf.mxu1  ;;  %20608 = vmatprep.subr.mxu1 %v6709_v8 }
 0x3cc   :  { %v27026_v37 = vadd.f32 %v5480_v0, %v5438_v28  ;;  %v27028_v35 = vpop.f32.mrf.mxu0  ;;  %20609 = vmatpush3.msra.mxu1 %v6709_v8  ;;  %v30604_v62 = vld [vmem:[#allocation64_spill] sm:$0xff] }
 0x3cd   :  { %v4296_v60 = vpop.f32.mrf.mxu1  ;;  %20610 = vmatprep.subr.mxu1 %v20450_v63  ;;  %v27030_v40 = vpop.xlane.xlu0 %6312  ;;  %20604 = vmatmul.mubr.msk.f32.gmra.mxu1 %vm293_vm0, %v26940_v27  ;;  %v5439_v56 = vsub.f32 %v30604_v62, %v27020_v21  ;;  %v30605_v8 = vld [vmem:[#allocation36_spill] sm:$0xff] }
 0x3ce   :  { %30602 = vst [vmem:[#allocation57_spill] sm:$0xff] %v27026_v37  ;;  %30603 = vst [vmem:[#allocation61_spill] sm:$0xff] %v27030_v40  ;;  %v5481_v59 = vsub.f32 %v4296_v60, %v27024_v53  ;;  %v27037_v47 = vpop.f32.mrf.mxu0  ;;  %20611 = vmatpush3.msra.mxu1 %v20450_v63  ;;  %20622 = vmatprep.mubr.msk.f32.mxu1 %vm293_vm0, %v26835_v31  ;;  %v27043_v0 = vmul.f32 %v30605_v8, %v30605_v8  ;;  %v30606_v40 = vld [vmem:[#allocation19_spill] sm:$0xff] }
 0x3cf   :  { %v20031_v28 = vpop.f32.mrf.mxu1  ;;  %20612 = vmatprep.subr.mxu1 %v6699_v25  ;;  %v27047_v37 = vmul.f32 %v30606_v40, %v30606_v40 }
 0x3d0   :  { %v27049_v15 = vadd.f32 %v5481_v59, %v5439_v56  ;;  %v27051_v62 = vpop.f32.mrf.mxu0  ;;  %20613 = vmatpush3.msra.mxu1 %v6699_v25  ;;  %v5447_v63 = vsub.f32 %v26479_v7, %v27043_v0  ;;  %v30610_v59 = vld [vmem:[#allocation37_spill] sm:$0xff] }
 0x3d1   :  { %30607 = vst [vmem:[#allocation59_spill] sm:$0xff] %v27047_v37  ;;  %v4466_v60 = vpop.f32.mrf.mxu1  ;;  %20614 = vmatprep.subr.mxu1 %v26959_v54  ;;  %v27063_v56 = vmul.f32 %v30610_v59, %v30610_v59  ;;  %v30611_v25 = vld [vmem:[#allocation21_spill] sm:$0xff] }
 0x3d2   :  { %30608 = vst [vmem:[#allocation29_spill] sm:$0xff] %v27049_v15  ;;  %v5489_v28 = vsub.f32 %v4466_v60, %v27047_v37  ;;  %v20462_v19 = vpop.f32.mrf.mxu0  ;;  %20615 = vmatpush3.msra.mxu1 %v26959_v54  ;;  %v27058_v8 = vpop.xlane.xlu0 %6100  ;;  %v27067_v15 = vmul.f32 %v30611_v25, %v30611_v25 }
 0x3d3   :  { %30609 = vst [vmem:[#allocation62_spill] sm:$0xff] %v27058_v8  ;;  %v20087_v40 = vpop.f32.mrf.mxu1  ;;  %20616 = vmatprep.subr.mxu1 %v26973_v5  ;;  %v5448_v54 = vsub.f32 %v26507_v26, %v27063_v56 }
 0x3d4   :  { %v27069_v13 = vadd.f32 %v5489_v28, %v5447_v63  ;;  %v6739_v7 = vpop.f32.mrf.mxu0  ;;  %20617 = vmatpush3.msra.mxu1 %v26973_v5  ;;  %v30614_v63 = vld [vmem:[#allocation38_spill] sm:$0xff] }
 0x3d5   :  { %v4471_v60 = vpop.f32.mrf.mxu1  ;;  %20618 = vmatprep.subr.mxu1 %v26933_v9  ;;  %v27082_v28 = vmul.f32 %v30614_v63, %v30614_v63  ;;  %v30615_v5 = vld [vmem:[#allocation82_spill] sm:$0xff] }
 0x3d6   :  { %30612 = vst [vmem:[#allocation63_spill] sm:$0xff] %v27069_v13  ;;  %v5490_v40 = vsub.f32 %v4471_v60, %v27067_v15  ;;  %v20465_v8 = vpop.f32.mrf.mxu0  ;;  %20619 = vmatpush3.msra.mxu1 %v26933_v9  ;;  %v27077_v59 = vpop.xlane.xlu0 %6103  ;;  %v27086_v13 = vmul.f32 %v30615_v5, %v30615_v5 }
 0x3d7   :  { %30613 = vst [vmem:[#allocation30_spill] sm:$0xff] %v27077_v59  ;;  %v20090_v25 = vpop.f32.mrf.mxu1  ;;  %20620 = vmatprep.subr.mxu1 %v26952_v1  ;;  %v5449_v9 = vsub.f32 %v26529_v51, %v27082_v28 }
 0x3d8   :  { %30616 = vst [vmem:[#allocation65_spill] sm:$0xff] %v27086_v13  ;;  %v27088_v37 = vadd.f32 %v5490_v40, %v5448_v54  ;;  %v6749_v26 = vpop.f32.mrf.mxu0  ;;  %20621 = vmatpush3.msra.mxu1 %v26952_v1  ;;  %v30619_v1 = vld [vmem:[#allocation39_spill] sm:$0xff] }
 0x3d9   :  { %v4476_v60 = vpop.f32.mrf.mxu1  ;;  %20628 = vmatprep.subr.mxu1 %v20465_v8  ;;  %20623 = vmatmul.mubr.msk.f32.vlgmr.msra.gmra.mxu1 %vm293_vm0, %v26909_v23  ;;  %v27104_v40 = vmul.f32 %v30619_v1, %v30619_v1 }
 0x3da   :  { %30617 = vst [vmem:[#allocation58_spill] sm:$0xff] %v27088_v37  ;;  %v5491_v25 = vsub.f32 %v4476_v60, %v27086_v13  ;;  %v27096_v59 = vpop.f32.mrf.mxu0  ;;  %20629 = vmatpush3.msra.mxu1 %v20465_v8  ;;  %v27098_v5 = vpop.xlane.xlu0 %6318  ;;  %20625 = vmatprep.mubr.msk.f32.mxu1 %vm293_vm0, %v26915_v50  ;;  %v30621_v37 = vld [vmem:[#allocation84_spill] sm:$0xff] }
 0x3db   :  { %30618 = vst [vmem:[#allocation60_spill] sm:$0xff] %v27098_v5  ;;  %v20093_v54 = vpop.f32.mrf.mxu1  ;;  %20630 = vmatprep.subr.mxu1 %v6749_v26  ;;  %30620 = vst [vmem:[#allocation31_spill] sm:$0xff] %v27104_v40  ;;  %v27108_v63 = vmul.f32 %v30621_v37, %v30621_v37  ;;  %v27114_v8 = vpop.xlane.xlu1 %6315 }
 0x3dc   :  { %v27110_v51 = vadd.f32 %v5491_v25, %v5449_v9  ;;  %v27112_v60 = vpop.f32.mrf.mxu0  ;;  %20631 = vmatpush3.msra.mxu1 %v6749_v26  ;;  %30624 = vst [vmem:[#allocation33_spill] sm:$0xff] %v27114_v8  ;;  %v5450_v54 = vsub.f32 %v26547_v22, %v27104_v40  ;;  %v30626_v25 = vld [vmem:[#allocation40_spill] sm:$0xff] }
 0x3dd   :  { %30622 = vst [vmem:[#allocation32_spill] sm:$0xff] %v27108_v63  ;;  %v4481_v5 = vpop.f32.mrf.mxu1  ;;  %20632 = vmatprep.subr.mxu1 %v20462_v19  ;;  %20626 = vmatmul.mubr.msk.f32.gmra.mxu1 %vm293_vm0, %v26940_v27  ;;  %v27129_v8 = vmul.f32 %v30626_v25, %v30626_v25 }
 0x3de   :  { %30623 = vst [vmem:[#allocation9_spill] sm:$0xff] %v27110_v51  ;;  %v5492_v1 = vsub.f32 %v4481_v5, %v27108_v63  ;;  %v27121_v13 = vpop.f32.mrf.mxu0  ;;  %20633 = vmatpush3.msra.mxu1 %v20462_v19  ;;  %v27123_v9 = vpop.xlane.xlu0 %6324  ;;  %20644 = vmatprep.mubr.msk.f32.mxu1 %vm293_vm0, %v26835_v31  ;;  %v30627_v51 = vld [vmem:[#allocation86_spill] sm:$0xff] }
 0x3df   :  { %30625 = vst [vmem:[#allocation75_spill] sm:$0xff] %v27123_v9  ;;  %v20096_v26 = vpop.f32.mrf.mxu1  ;;  %20634 = vmatprep.subr.mxu1 %v6739_v7  ;;  %v27133_v37 = vmul.f32 %v30627_v51, %v30627_v51  ;;  %v27139_v19 = vpop.xlane.xlu1 %6106 }
 0x3e0   :  { %v27135_v22 = vadd.f32 %v5492_v1, %v5450_v54  ;;  %v27137_v5 = vpop.f32.mrf.mxu0  ;;  %20635 = vmatpush3.msra.mxu1 %v6739_v7  ;;  %30630 = vst [vmem:[#allocation12_spill] sm:$0xff] %v27139_v19  ;;  %v5451_v26 = vsub.f32 %v26574_v39, %v27129_v8  ;;  %v30632_v54 = vld [vmem:[#allocation41_spill] sm:$0xff]  ;;  %v30633_v19 = vld [vmem:[#allocation88_spill] sm:$0xff] }
 0x3e1   :  { %30628 = vst [vmem:[#allocation11_spill] sm:$0xff] %v27133_v37  ;;  %v4486_v9 = vpop.f32.mrf.mxu1  ;;  %20636 = vmatprep.subr.mxu1 %v27037_v47  ;;  %v27151_v7 = vmul.f32 %v30632_v54, %v30632_v54 }
 0x3e2   :  { %30629 = vst [vmem:[#allocation76_spill] sm:$0xff] %v27135_v22  ;;  %v5493_v25 = vsub.f32 %v4486_v9, %v27133_v37  ;;  %v20474_v63 = vpop.f32.mrf.mxu0  ;;  %20637 = vmatpush3.msra.mxu1 %v27037_v47  ;;  %v27146_v51 = vpop.xlane.xlu0 %6112  ;;  %v27155_v22 = vmul.f32 %v30633_v19, %v30633_v19 }
 0x3e3   :  { %30631 = vst [vmem:[#allocation34_spill] sm:$0xff] %v27146_v51  ;;  %v20099_v1 = vpop.f32.mrf.mxu1  ;;  %20638 = vmatprep.subr.mxu1 %v27051_v62  ;;  %v5452_v47 = vsub.f32 %v26594_v43, %v27151_v7  ;;  %v27165_v54 = vpop.xlane.xlu1 %6321 }
 0x3e4   :  { %v27157_v40 = vadd.f32 %v5493_v25, %v5451_v26  ;;  %v6779_v39 = vpop.f32.mrf.mxu0  ;;  %20639 = vmatpush3.msra.mxu1 %v27051_v62  ;;  %30635 = vst [vmem:[#allocation35_spill] sm:$0xff] %v27165_v54  ;;  %v30636_v25 = vld [vmem:[#allocation42_spill] sm:$0xff] }
 0x3e5   :  { %v4491_v9 = vpop.f32.mrf.mxu1  ;;  %20640 = vmatprep.subr.mxu1 %v27014_v57  ;;  %v27170_v26 = vmul.f32 %v30636_v25, %v30636_v25  ;;  %v30637_v62 = vld [vmem:[#allocation90_spill] sm:$0xff] }
 0x3e6   :  { %30634 = vst [vmem:[#allocation74_spill] sm:$0xff] %v27157_v40  ;;  %v5494_v1 = vsub.f32 %v4491_v9, %v27155_v22  ;;  %v20477_v51 = vpop.f32.mrf.mxu0  ;;  %20641 = vmatpush3.msra.mxu1 %v27014_v57  ;;  %v27174_v40 = vmul.f32 %v30637_v62, %v30637_v62 }
 0x3e7   :  { %v20102_v19 = vpop.f32.mrf.mxu1  ;;  %20642 = vmatprep.subr.mxu1 %v27028_v35 }
 0x3e8   :  { %30638 = vst [vmem:[#allocation77_spill] sm:$0xff] %v27174_v40  ;;  %v27176_v37 = vadd.f32 %v5494_v1, %v5452_v47  ;;  %v6789_v43 = vpop.f32.mrf.mxu0  ;;  %v27178_v9 = vpop.xlane.xlu0 %6330  ;;  %20643 = vmatpush3.msra.mxu1 %v27028_v35  ;;  %v5453_v19 = vsub.f32 %v26618_v30, %v27170_v26  ;;  %v30641_v1 = vld [vmem:[#allocation50_spill] sm:$0xff] }
 0x3e9   :  { %30640 = vst [vmem:[#allocation15_spill] sm:$0xff] %v27178_v9  ;;  %v4496_v57 = vpop.f32.mrf.mxu1  ;;  %20650 = vmatprep.subr.mxu1 %v20477_v51  ;;  %20645 = vmatmul.mubr.msk.f32.vlgmr.msra.gmra.mxu1 %vm293_vm0, %v26909_v23  ;;  %v27192_v35 = vmul.f32 %v30641_v1, %v30641_v1  ;;  %v30643_v9 = vld [vmem:[#allocation98_spill] sm:$0xff]  ;;  %v27208_v1 = vpop.xlane.xlu1 %6109 }
 0x3ea   :  { %30639 = vst [vmem:[#allocation78_spill] sm:$0xff] %v27176_v37  ;;  %v5495_v54 = vsub.f32 %v4496_v57, %v27174_v40  ;;  %v27186_v25 = vpop.f32.mrf.mxu0  ;;  %20651 = vmatpush3.msra.mxu1 %v20477_v51  ;;  %20647 = vmatprep.mubr.msk.f32.mxu1 %vm293_vm0, %v26915_v50  ;;  %v27196_v37 = vmul.f32 %v30643_v9, %v30643_v9  ;;  %30647 = vst [vmem:[#allocation25_spill] sm:$0xff] %v27208_v1 }
 0x3eb   :  { %v20105_v47 = vpop.f32.mrf.mxu1  ;;  %20652 = vmatprep.subr.mxu1 %v6789_v43  ;;  %30642 = vst [vmem:[#allocation73_spill] sm:$0xff] %v27192_v35 }
 0x3ec   :  { %30644 = vst [vmem:[#allocation70_spill] sm:$0xff] %v27196_v37  ;;  %v27198_v62 = vadd.f32 %v5495_v54, %v5453_v19  ;;  %v27200_v30 = vpop.f32.mrf.mxu0  ;;  %20653 = vmatpush3.msra.mxu1 %v6789_v43  ;;  %v5461_v47 = vsub.f32 %v26830_v6, %v27192_v35  ;;  %v30648_v43 = vld [vmem:[#allocation51_spill] sm:$0xff] }
 0x3ed   :  { %v27202_v57 = vpop.xlane.xlu0 %6119  ;;  %v4666_v51 = vpop.f32.mrf.mxu1  ;;  %20654 = vmatprep.subr.mxu1 %v20474_v63  ;;  %20648 = vmatmul.mubr.msk.f32.gmra.mxu1 %vm293_vm0, %v26940_v27  ;;  %v27217_v19 = vmul.f32 %v30648_v43, %v30648_v43 }
 0x3ee   :  { %30645 = vst [vmem:[#allocation72_spill] sm:$0xff] %v27198_v62  ;;  %30646 = vst [vmem:[#allocation79_spill] sm:$0xff] %v27202_v57  ;;  %v5503_v9 = vsub.f32 %v4666_v51, %v27196_v37  ;;  %v27211_v40 = vpop.f32.mrf.mxu0  ;;  %20655 = vmatpush3.msra.mxu1 %v20474_v63  ;;  %20666 = vmatprep.mubr.msk.f32.mxu1 %vm293_vm0, %v26835_v31  ;;  %v30649_v57 = vld [vmem:[#allocation99_spill] sm:$0xff] }
 0x3ef   :  { %v20161_v54 = vpop.f32.mrf.mxu1  ;;  %20656 = vmatprep.subr.mxu1 %v6779_v39  ;;  %v27221_v62 = vmul.f32 %v30649_v57, %v30649_v57 }
 0x3f0   :  { %v27223_v6 = vadd.f32 %v5503_v9, %v5461_v47  ;;  %v27225_v1 = vpop.f32.mrf.mxu0  ;;  %20657 = vmatpush3.msra.mxu1 %v6779_v39  ;;  %v5462_v54 = vsub.f32 %v26851_v48, %v27217_v19  ;;  %v30652_v9 = vld [vmem:[#allocation52_spill] sm:$0xff] }
 0x3f1   :  { %v27227_v51 = vpop.xlane.xlu0 %6354  ;;  %v4671_v63 = vpop.f32.mrf.mxu1  ;;  %20658 = vmatprep.subr.mxu1 %v27121_v13  ;;  %v27237_v47 = vmul.f32 %v30652_v9, %v30652_v9  ;;  %v30653_v39 = vld [vmem:[#allocation100_spill] sm:$0xff] }
 0x3f2   :  { %30650 = vst [vmem:[#allocation80_spill] sm:$0xff] %v27223_v6  ;;  %30651 = vst [vmem:[#allocation92_spill] sm:$0xff] %v27227_v51  ;;  %v5504_v43 = vsub.f32 %v4671_v63, %v27221_v62  ;;  %v20486_v37 = vpop.f32.mrf.mxu0  ;;  %20659 = vmatpush3.msra.mxu1 %v27121_v13  ;;  %v27241_v51 = vmul.f32 %v30653_v39, %v30653_v39  ;;  %v27243_v6 = vpop.xlane.xlu1 %6327  ;;  %v5895_v63 = vadd.f32 %v26898_v45, %v26894_v41  ;;  %v30657_v45 = vld [vmem:[#allocation101_spill] sm:$0xff] }
 0x3f3   :  { %v20164_v57 = vpop.f32.mrf.mxu1  ;;  %20660 = vmatprep.subr.mxu1 %v27137_v5  ;;  %30654 = vst [vmem:[#allocation43_spill] sm:$0xff] %v27243_v6  ;;  %v5463_v39 = vsub.f32 %v26864_v18, %v27237_v47  ;;  %v5897_v41 = vadd.f32 %v26948_v38, %v26944_v3  ;;  %v27270_v18 = vmul.f32 %v30657_v45, %v30657_v45  ;;  %v30661_v45 = vld [vmem:[#allocation54_spill] sm:$0xff] }
 0x3f4   :  { %v27245_v35 = vadd.f32 %v5504_v43, %v5462_v54  ;;  %v27247_v48 = vpop.f32.mrf.mxu0  ;;  %20661 = vmatpush3.msra.mxu1 %v27137_v5  ;;  %v5896_v43 = vadd.f32 %v26923_v4, %v26919_v49  ;;  %v30656_v54 = vld [vmem:[#allocation53_spill] sm:$0xff]  ;;  %v5898_v49 = vadd.f32 %v26969_v17, %v26965_v52  ;;  %v5899_v17 = vadd.f32 %v26987_v61, %v26983_v58 }
 0x3f5   :  { %v27250_v13 = vpop.xlane.xlu0 %6143  ;;  %v4676_v57 = vpop.f32.mrf.mxu1  ;;  %20662 = vmatprep.subr.mxu1 %v27096_v59  ;;  %v5900_v58 = vadd.f32 %v27004_v44, %v27000_v16  ;;  %v5901_v44 = vadd.f32 %v27024_v53, %v27020_v21 }
 0x3f6   :  { %30655 = vst [vmem:[#allocation89_spill] sm:$0xff] %v27250_v13  ;;  %v5505_v9 = vsub.f32 %v4676_v57, %v27241_v51  ;;  %v20489_v6 = vpop.f32.mrf.mxu0  ;;  %20663 = vmatpush3.msra.mxu1 %v27096_v59  ;;  %v27264_v13 = vmul.f32 %v30656_v54, %v30656_v54  ;;  %v5938_v52 = vadd.f32 0.0001, %v5896_v43  ;;  %v5940_v43 = vadd.f32 0.0001, %v5898_v49 }
 0x3f7   :  { %v20167_v5 = vpop.f32.mrf.mxu1  ;;  %20664 = vmatprep.subr.mxu1 %v27112_v60  ;;  %v5941_v16 = vadd.f32 0.0001, %v5899_v17  ;;  %v5942_v53 = vadd.f32 0.0001, %v5900_v58 }
 0x3f8   :  { %v27272_v57 = vadd.f32 %v5505_v9, %v5463_v39  ;;  %v6829_v59 = vpop.f32.mrf.mxu0  ;;  %20665 = vmatpush3.msra.mxu1 %v27112_v60  ;;  %v5937_v5 = vadd.f32 0.0001, %v5895_v63  ;;  %v5464_v3 = vsub.f32 %v26868_v34, %v27264_v13  ;;  %v27290_v60 = vpop.xlane.xlu1 %6115  ;;  %v27294_v34 = vmul.f32 %v30661_v45, %v30661_v45 }
 0x3f9   :  { %v4681_v4 = vpop.f32.mrf.mxu1  ;;  %20672 = vmatprep.subr.mxu1 %v20489_v6  ;;  %20667 = vmatmul.mubr.msk.f32.vlgmr.msra.gmra.mxu1 %vm293_vm0, %v26909_v23  ;;  %v27281_v38 = vpop.xlane.xlu0 %6360  ;;  %30660 = vst [vmem:[#allocation85_spill] sm:$0xff] %v27290_v60 }
 0x3fa   :  { %30658 = vst [vmem:[#allocation28_spill] sm:$0xff] %v27272_v57  ;;  %30659 = vst [vmem:[#allocation44_spill] sm:$0xff] %v27281_v38  ;;  %v5506_v9 = vsub.f32 %v4681_v4, %v27270_v18  ;;  %v27284_v39 = vpop.f32.mrf.mxu0  ;;  %20673 = vmatpush3.msra.mxu1 %v20489_v6  ;;  %20669 = vmatprep.mubr.msk.f32.mxu1 %vm293_vm0, %v26915_v50  ;;  %v5939_v38 = vadd.f32 0.0001, %v5897_v41  ;;  %v30662_v4 = vld [vmem:[#allocation102_spill] sm:$0xff]  ;;  %22126 = vrcp.f32 %v5937_v5  ;;  %v30665_v5 = vld [vmem:[#allocation103_spill] sm:$0xff] }
 0x3fb   :  { %v20170_v63 = vpop.f32.mrf.mxu1  ;;  %20674 = vmatprep.subr.mxu1 %v6829_v59  ;;  %v27298_v54 = vmul.f32 %v30662_v4, %v30662_v4  ;;  %v5465_v41 = vsub.f32 %v26872_v29, %v27294_v34  ;;  %22128 = vrcp.f32 %v5938_v52  ;;  %v30664_v29 = vld [vmem:[#allocation55_spill] sm:$0xff]  ;;  %v30685_v4 = vld [vmem:[#allocation13_spill] sm:$0xff] }
 0x3fc   :  { %v27300_v6 = vadd.f32 %v5506_v9, %v5464_v3  ;;  %v27302_v57 = vpop.f32.mrf.mxu0  ;;  %20675 = vmatpush3.msra.mxu1 %v6829_v59  ;;  %v5685_v63 = vadd.f32 0.0009, %v26925_v32  ;;  %v27318_v59 = vpop.xlane.xlu1 %6357  ;;  %v27323_v32 = vmul.f32 %v30664_v29, %v30664_v29  ;;  %22130 = vrcp.f32 %v5939_v38 }
 0x3fd   :  { %v4686_v61 = vpop.f32.mrf.mxu1  ;;  %20676 = vmatprep.subr.mxu1 %v20486_v37  ;;  %20670 = vmatmul.mubr.msk.f32.gmra.mxu1 %vm293_vm0, %v26940_v27  ;;  %30663 = vst [vmem:[#allocation45_spill] sm:$0xff] %v27318_v59  ;;  %22132 = vrcp.f32 %v5940_v43  ;;  %v30668_v43 = vld [vmem:[#allocation56_spill] sm:$0xff]  ;;  %v5689_v45 = vadd.f32 0.0009, %v30685_v4 }
 0x3fe   :  { %v5507_v3 = vsub.f32 %v4686_v61, %v27298_v54  ;;  %v27312_v9 = vpop.f32.mrf.mxu0  ;;  %20677 = vmatpush3.msra.mxu1 %v20486_v37  ;;  %20688 = vmatprep.mubr.msk.f32.mxu1 %vm293_vm0, %v26835_v31  ;;  %v27327_v37 = vmul.f32 %v30665_v5, %v30665_v5  ;;  %v27329_v61 = vpop.xlane.xlu0 %6149  ;;  %v5466_v38 = vsub.f32 %v26880_v12, %v27323_v32  ;;  %22134 = vrcp.f32 %v5685_v63 }
 0x3ff   :  { %v20173_v49 = vpop.f32.mrf.mxu1  ;;  %20678 = vmatprep.subr.mxu1 %v27247_v48  ;;  %30666 = vst [vmem:[#allocation87_spill] sm:$0xff] %v27329_v61  ;;  %22136 = vrcp.f32 %v5941_v16  ;;  %v27347_v58 = vmul.f32 %v30668_v43, %v30668_v43  ;;  %v27362_v16 = vmul.f32 %v30584_v11, %v30583_v24 }
 0x400   :  { %v27331_v52 = vadd.f32 %v5507_v3, %v5465_v41  ;;  %v27333_v17 = vpop.f32.mrf.mxu0  ;;  %20679 = vmatpush3.msra.mxu1 %v27247_v48  ;;  %v5686_v49 = vadd.f32 0.0009, %v26950_v10  ;;  %v5943_v41 = vadd.f32 0.0001, %v5901_v44  ;;  %v30670_v3 = vld [vmem:[#allocation104_spill] sm:$0xff]  ;;  %v27366_v44 = vmul.f32 %v30587_v20, %v30586_v2  ;;  %v30675_v20 = vld [vmem:[#allocation23_spill] sm:$0xff] }
 0x401   :  { %v4691_v21 = vpop.f32.mrf.mxu1  ;;  %20680 = vmatprep.subr.mxu1 %v27211_v40  ;;  %30669 = vst [vmem:[#allocation81_spill] sm:$0xff] %v27347_v58  ;;  %v27351_v12 = vmul.f32 %v30670_v3, %v30670_v3  ;;  %22138 = vrcp.f32 %v5942_v53  ;;  %v27380_v2 = vmul.f32 %v30590_v14, %v30589_v36  ;;  %v30676_v53 = vld [vmem:[#allocation71_spill] sm:$0xff]  ;;  %v5812_v36 = vmul.f32 2.0, %v27362_v16 }
 0x402   :  { %30667 = vst [vmem:[#allocation46_spill] sm:$0xff] %v27331_v52  ;;  %v5508_v59 = vsub.f32 %v4691_v21, %v27327_v37  ;;  %v27341_v61 = vpop.f32.mrf.mxu0  ;;  %20681 = vmatpush3.msra.mxu1 %v27211_v40  ;;  %v5391_v40 = vmul.f32 %v30581_v55, %v30580_v33  ;;  %v27368_v21 = vpop.xlane.xlu1 %6146  ;;  %22140 = vrcp.f32 %v5686_v49  ;;  %v5687_v33 = vadd.f32 0.0009, %v26971_v46  ;;  %v30677_v46 = vld [vmem:[#allocation24_spill] sm:$0xff]  ;;  %v30678_v49 = vld [vmem:[#allocation17_spill] sm:$0xff] }
 0x403   :  { %v20176_v48 = vpop.f32.mrf.mxu1  ;;  %20682 = vmatprep.subr.mxu1 %v27225_v1  ;;  %30671 = vst [vmem:[#allocation105_spill] sm:$0xff] %v27351_v12  ;;  %30673 = vst [vmem:[#allocation91_spill] sm:$0xff] %v27368_v21  ;;  %v27374_v55 = vpop.xlane.xlu0 %6366  ;;  %22142 = vrcp.f32 %v5943_v41  ;;  %v5813_v41 = vmul.f32 2.0, %v27366_v44  ;;  %v30682_v21 = vld [vmem:[#allocation14_spill] sm:$0xff] }
 0x404   :  { %v27353_v10 = vadd.f32 %v5508_v59, %v5466_v38  ;;  %v27355_v63 = vpop.f32.mrf.mxu0  ;;  %20683 = vmatpush3.msra.mxu1 %v27225_v1  ;;  %v5467_v1 = vsub.f32 %v26887_v42, %v27347_v58  ;;  %30674 = vst [vmem:[#allocation107_spill] sm:$0xff] %v27374_v55  ;;  %v27384_v38 = vmul.f32 %v30676_v53, %v30675_v20  ;;  %22144 = vrcp.f32 %v5687_v33  ;;  %v30680_v20 = vld [vmem:[#allocation66_spill] sm:$0xff] }
 0x405   :  { %v4696_v59 = vpop.f32.mrf.mxu1  ;;  %20684 = vmatprep.subr.mxu1 %v27186_v25  ;;  %v27389_v48 = vmul.f32 %v30678_v49, %v30677_v46  ;;  %v5688_v53 = vadd.f32 0.0009, %v30680_v20  ;;  %v30681_v49 = vld [vmem:[#allocation26_spill] sm:$0xff] }
 0x406   :  { %30672 = vst [vmem:[#allocation83_spill] sm:$0xff] %v27353_v10  ;;  %v5509_v24 = vsub.f32 %v4696_v59, %v27351_v12  ;;  %v20501_v11 = vpop.f32.mrf.mxu0  ;;  %20685 = vmatpush3.msra.mxu1 %v27186_v25  ;;  %v5811_v25 = vmul.f32 2.0, %v5391_v40  ;;  %v27407_v60 = vmul.f32 %v30682_v21, %v30681_v49  ;;  %v27409_v3 = vpop.xlane.xlu1 %6363 }
 0x407   :  { %v20179_v42 = vpop.f32.mrf.mxu1  ;;  %20686 = vmatprep.subr.mxu1 %v27200_v30  ;;  %30683 = vst [vmem:[#allocation27_spill] sm:$0xff] %v27409_v3  ;;  %22146 = vrcp.f32 %v5688_v53 }
 0x408   :  { %v27391_v59 = vadd.f32 %v5509_v24, %v5467_v1  ;;  %v6869_v55 = vpop.f32.mrf.mxu0  ;;  %20687 = vmatpush3.msra.mxu1 %v27200_v30  ;;  %v22127_v30 = vpop.eup %22126  ;;  %v5814_v1 = vmul.f32 2.0, %v27380_v2  ;;  %v5815_v24 = vmul.f32 2.0, %v27384_v38  ;;  %v5853_v29 = vadd.f32 0.0001, %v5811_v25 }
 0x409   :  { %v4866_v14 = vpop.f32.mrf.mxu1  ;;  %20694 = vmatprep.subr.mxu1 %v20501_v11  ;;  %20689 = vmatmul.mubr.msk.f32.vlgmr.msra.gmra.mxu1 %vm293_vm0, %v26909_v23  ;;  %22148 = vrcp.f32 %v5689_v45 }
 0x40a   :  { %30679 = vst [vmem:[#allocation47_spill] sm:$0xff] %v27391_v59  ;;  %v5517_v42 = vsub.f32 %v4866_v14, %v5391_v40  ;;  %v27399_v46 = vpop.f32.mrf.mxu0  ;;  %20695 = vmatpush3.msra.mxu1 %v20501_v11  ;;  %20691 = vmatprep.mubr.msk.f32.mxu1 %vm293_vm0, %v26915_v50  ;;  %v22129_v40 = vpop.eup %22128  ;;  %v5816_v14 = vmul.f32 2.0, %v27389_v48  ;;  %v5854_v59 = vadd.f32 0.0001, %v5812_v36  ;;  %v5857_v25 = vadd.f32 0.0001, %v5815_v24 }
 0x40b   :  { %v20235_v33 = vpop.f32.mrf.mxu1  ;;  %20696 = vmatprep.subr.mxu1 %v6869_v55  ;;  %v27412_v11 = vpop.xlane.xlu0 %6155  ;;  %v5817_v36 = vmul.f32 2.0, %v27407_v60 }
 0x40c   :  { %30684 = vst [vmem:[#allocation93_spill] sm:$0xff] %v27412_v11  ;;  %v5559_v20 = vmul.f32 2.0, %v5517_v42  ;;  %v27414_v43 = vpop.f32.mrf.mxu0  ;;  %20697 = vmatpush3.msra.mxu1 %v6869_v55  ;;  %v22131_v5 = vpop.eup %22130  ;;  %v5855_v33 = vadd.f32 0.0001, %v5813_v41  ;;  %v5856_v55 = vadd.f32 0.0001, %v5814_v1  ;;  %v5987_v41 = vmul.f32 %v22127_v30, %v5853_v29 }
 0x40d   :  { %v4871_v21 = vpop.f32.mrf.mxu1  ;;  %20698 = vmatprep.subr.mxu1 %v27341_v61  ;;  %20692 = vmatmul.mubr.msk.f32.gmra.mxu1 %vm293_vm0, %v26940_v27  ;;  %v22133_v49 = vpop.eup %22132  ;;  %v30687_v1 = vld [vmem:[#allocation57_spill] sm:$0xff]  ;;  %v5989_v30 = vmul.f32 %v22129_v40, %v5854_v59  ;;  %v5859_v45 = vadd.f32 0.0001, %v5817_v36 }
 0x40e   :  { %v5601_v3 = vadd.f32 0.0009, %v5559_v20  ;;  %v5518_v42 = vsub.f32 %v4871_v21, %v27362_v16  ;;  %v27421_v11 = vpop.f32.mrf.mxu0  ;;  %20699 = vmatpush3.msra.mxu1 %v27341_v61  ;;  %20710 = vmatprep.mubr.msk.f32.mxu1 %vm293_vm0, %v26835_v31  ;;  %v22135_v4 = vpop.eup %22134  ;;  %v5858_v20 = vadd.f32 0.0001, %v5816_v14  ;;  %v30686_v16 = vld [vmem:[#allocation59_spill] sm:$0xff]  ;;  %v5910_v61 = vadd.f32 %v27067_v15, %v27063_v56 }
 0x40f   :  { %v20238_v10 = vpop.f32.mrf.mxu1  ;;  %20700 = vmatprep.subr.mxu1 %v27355_v63  ;;  %v22137_v53 = vpop.eup %22136  ;;  %v5909_v21 = vadd.f32 %v30686_v16, %v27043_v0  ;;  %v5991_v59 = vmul.f32 %v22131_v5, %v5855_v33  ;;  %v27447_v40 = vmul.f32 %v22133_v49, %v5856_v55 }
 0x410   :  { %v5560_v12 = vmul.f32 2.0, %v5518_v42  ;;  %v27430_v58 = vpop.f32.mrf.mxu0  ;;  %20701 = vmatpush3.msra.mxu1 %v27355_v63  ;;  %v5735_v31 = vmul.f32 %v22135_v4, %v5601_v3  ;;  %v5690_v10 = vadd.f32 0.0009, %v30687_v1  ;;  %v27436_v24 = vpop.xlane.xlu1 %6152  ;;  %v27449_v1 = vmul.f32 %v22137_v53, %v5857_v25 }
 0x411   :  { %30688 = vst [vmem:[#allocation48_spill] sm:$0xff] %v27436_v24  ;;  %v4876_v29 = vpop.f32.mrf.mxu1  ;;  %20702 = vmatprep.subr.mxu1 %v27312_v9  ;;  %v22139_v14 = vpop.eup %22138  ;;  %v5952_v36 = vadd.f32 0.0001, %v5910_v61 }
 0x412   :  { %v27439_v0 = vpop.xlane.xlu0 %6372  ;;  %v5602_v42 = vadd.f32 0.0009, %v5560_v12  ;;  %v5519_v16 = vsub.f32 %v4876_v29, %v27366_v44  ;;  %v27442_v63 = vpop.f32.mrf.mxu0  ;;  %v6332_v3 = vsel %vm6098_vm2, %v5735_v31, 0.0  ;;  %20703 = vmatpush3.msra.mxu1 %v27312_v9  ;;  %v6063_v15 = vmul.f32 %v5987_v41, %v5735_v31  ;;  %v30690_v29 = vld [vmem:[#allocation65_spill] sm:$0xff]  ;;  %v30692_v31 = vld [vmem:[#allocation19_spill] sm:$0xff] }
 0x413   :  { %30689 = vst [vmem:[#allocation6_spill] sm:$0xff] %v27439_v0  ;;  %v22141_v56 = vpop.eup %22140  ;;  %v20241_v4 = vpop.f32.mrf.mxu1  ;;  %6333 = vadd.xlane.f32.xlu1 %v6332_v3  ;;  %20704 = vmatprep.subr.mxu1 %v27333_v17  ;;  %v5951_v44 = vadd.f32 0.0001, %v5909_v21  ;;  %v5911_v0 = vadd.f32 %v30690_v29, %v27082_v28  ;;  %22150 = vrcp.f32 %v5690_v10  ;;  %v27458_v49 = vmul.f32 %v22139_v14, %v5858_v20  ;;  %v30691_v21 = vld [vmem:[#allocation36_spill] sm:$0xff]  ;;  %v30693_v10 = vld [vmem:[#allocation31_spill] sm:$0xff]  ;;  %v30695_v3 = vld [vmem:[#allocation29_spill] sm:$0xff] }
 0x414   :  { %v22143_v12 = vpop.eup %22142  ;;  %v5561_v24 = vmul.f32 2.0, %v5519_v16  ;;  %v27453_v52 = vpop.f32.mrf.mxu0  ;;  %20705 = vmatpush3.msra.mxu1 %v27333_v17  ;;  %v5737_v9 = vmul.f32 %v22141_v56, %v5602_v42  ;;  %v6121_v5 = vsel %vm6098_vm2, %v6063_v15, 0.0  ;;  %v27465_v61 = vmul.f32 %v30692_v31, %v30691_v21  ;;  %v30694_v42 = vld [vmem:[#allocation32_spill] sm:$0xff]  ;;  %v30698_v29 = vld [vmem:[#allocation11_spill] sm:$0xff] }
 0x415   :  { %v4881_v41 = vpop.f32.mrf.mxu1  ;;  %20706 = vmatprep.subr.mxu1 %v27284_v39  ;;  %v22145_v17 = vpop.eup %22144  ;;  %v5912_v16 = vadd.f32 %v30694_v42, %v30693_v10  ;;  %v5691_v20 = vadd.f32 0.0009, %v30695_v3  ;;  %22152 = vrcp.f32 %v5951_v44 }
 0x416   :  { %v5603_v33 = vadd.f32 0.0009, %v5561_v24  ;;  %v5520_v55 = vsub.f32 %v4881_v41, %v27380_v2  ;;  %v20513_v25 = vpop.f32.mrf.mxu0  ;;  %v6335_v28 = vsel %vm6098_vm2, %v5737_v9, 0.0  ;;  %20707 = vmatpush3.msra.mxu1 %v27284_v39  ;;  %v6064_v53 = vmul.f32 %v5989_v30, %v5737_v9  ;;  %v27470_v14 = vpop.xlane.xlu1 %6369 }
 0x417   :  { %30696 = vst [vmem:[#allocation49_spill] sm:$0xff] %v27470_v14  ;;  %v20244_v24 = vpop.f32.mrf.mxu1  ;;  %6122 = vadd.xlane.f32.xlu1 %v6121_v5  ;;  %6336 = vadd.xlane.f32.xlu0 %v6335_v28  ;;  %v27472_v2 = vmul.f32 %v22143_v12, %v5859_v45  ;;  %v5953_v39 = vadd.f32 0.0001, %v5911_v0  ;;  %v27474_v30 = vpop.xlane.xlu0 %6161  ;;  %22154 = vrcp.f32 %v5952_v36  ;;  %v5913_v9 = vadd.f32 %v30698_v29, %v27129_v8 }
 0x418   :  { %30697 = vst [vmem:[#allocation94_spill] sm:$0xff] %v27474_v30  ;;  %v5562_v15 = vmul.f32 2.0, %v5520_v55  ;;  %v6909_v56 = vpop.f32.mrf.mxu0  ;;  %20708 = vmatprep.subr.mxu1 %v27302_v57  ;;  %v5739_v4 = vmul.f32 %v22145_v17, %v5603_v33  ;;  %v5914_v41 = vadd.f32 %v27155_v22, %v27151_v7  ;;  %v6124_v45 = vsel %vm6098_vm2, %v6064_v53, 0.0  ;;  %v22147_v36 = vpop.eup %22146  ;;  %v30699_v7 = vld [vmem:[#allocation37_spill] sm:$0xff] }
 0x419   :  { %v4886_v5 = vpop.f32.mrf.mxu1  ;;  %20709 = vmatpush3.msra.mxu1 %v27302_v57  ;;  %v5825_v22 = vmul.f32 2.0, %v27465_v61  ;;  %v30700_v55 = vld [vmem:[#allocation21_spill] sm:$0xff]  ;;  %v5954_v28 = vadd.f32 0.0001, %v5912_v16  ;;  %22156 = vrcp.f32 %v5691_v20  ;;  %v5955_v10 = vadd.f32 0.0001, %v5913_v9 }
 0x41a   :  { %v5604_v0 = vadd.f32 0.0009, %v5562_v15  ;;  %v5521_v12 = vsub.f32 %v4886_v5, %v27384_v38  ;;  %v27484_v44 = vpop.f32.mrf.mxu0  ;;  %20716 = vmatprep.subr.mxu1 %v20513_v25  ;;  %v6338_v33 = vsel %vm6098_vm2, %v5739_v4, 0.0  ;;  %20711 = vmatmul.mubr.msk.f32.vlgmr.msra.gmra.mxu1 %vm293_vm0, %v26909_v23  ;;  %v6065_v8 = vmul.f32 %v5991_v59, %v5739_v4  ;;  %v30701_v38 = vld [vmem:[#allocation63_spill] sm:$0xff]  ;;  %v30702_v16 = vld [vmem:[#allocation77_spill] sm:$0xff]  ;;  %v27503_v20 = vpop.xlane.xlu1 %6158  ;;  %v30705_v5 = vld [vmem:[#allocation82_spill] sm:$0xff] }
 0x41b   :  { %v27492_v57 = vmul.f32 %v30700_v55, %v30699_v7  ;;  %v20247_v53 = vpop.f32.mrf.mxu1  ;;  %6339 = vadd.xlane.f32.xlu1 %v6338_v33  ;;  %6125 = vadd.xlane.f32.xlu0 %v6124_v45  ;;  %22158 = vrcp.f32 %v5953_v39  ;;  %v5699_v17 = vadd.f32 0.0009, %v30701_v38  ;;  %v5956_v42 = vadd.f32 0.0001, %v5914_v41  ;;  %30703 = vst [vmem:[#allocation108_spill] sm:$0xff] %v27503_v20  ;;  %v22149_v15 = vpop.eup %22148  ;;  %v30704_v41 = vld [vmem:[#allocation38_spill] sm:$0xff] }
 0x41c   :  { %v5563_v21 = vmul.f32 2.0, %v5521_v12  ;;  %v27495_v31 = vpop.f32.mrf.mxu0  ;;  %20717 = vmatpush3.msra.mxu1 %v20513_v25  ;;  %v27497_v23 = vpop.xlane.xlu0 %6396  ;;  %v5741_v59 = vmul.f32 %v22147_v36, %v5604_v0  ;;  %20713 = vmatprep.mubr.msk.f32.mxu1 %vm293_vm0, %v26915_v50  ;;  %v5915_v3 = vadd.f32 %v30702_v16, %v27170_v26  ;;  %v6127_v39 = vsel %vm6098_vm2, %v6065_v8, 0.0  ;;  %v30706_v45 = vld [vmem:[#allocation39_spill] sm:$0xff]  ;;  %v30707_v0 = vld [vmem:[#allocation84_spill] sm:$0xff]  ;;  %v30709_v8 = vld [vmem:[#allocation86_spill] sm:$0xff] }
 0x41d   :  { %20718 = vmatprep.subr.mxu1 %v6909_v56  ;;  %v4891_v24 = vpop.f32.mrf.mxu1  ;;  %v27513_v26 = vmul.f32 %v30705_v5, %v30704_v41  ;;  %v27517_v12 = vmul.f32 %v30707_v0, %v30706_v45  ;;  %22160 = vrcp.f32 %v5954_v28  ;;  %v30708_v33 = vld [vmem:[#allocation40_spill] sm:$0xff]  ;;  %v27528_v28 = vadd.f32 0.0001, %v5825_v22  ;;  %v30712_v0 = vld [vmem:[#allocation41_spill] sm:$0xff] }
 0x41e   :  { %v5605_v4 = vadd.f32 0.0009, %v5563_v21  ;;  %v5522_v25 = vsub.f32 %v4891_v24, %v27389_v48  ;;  %v27507_v29 = vpop.f32.mrf.mxu0  ;;  %20719 = vmatpush3.msra.mxu1 %v6909_v56  ;;  %v6341_v50 = vsel %vm6098_vm2, %v5741_v59, 0.0  ;;  %v6066_v9 = vmul.f32 %v27447_v40, %v5741_v59  ;;  %v30710_v56 = vld [vmem:[#allocation58_spill] sm:$0xff] }
 0x41f   :  { %v27521_v36 = vmul.f32 %v30709_v8, %v30708_v33  ;;  %20720 = vmatprep.subr.mxu1 %v27442_v63  ;;  %v20250_v48 = vpop.f32.mrf.mxu1  ;;  %6128 = vadd.xlane.f32.xlu1 %v6127_v39  ;;  %22162 = vrcp.f32 %v5699_v17  ;;  %v5700_v40 = vadd.f32 0.0009, %v30710_v56  ;;  %v5826_v21 = vmul.f32 2.0, %v27492_v57  ;;  %v30713_v33 = vld [vmem:[#allocation88_spill] sm:$0xff] }
 0x420   :  { %v5564_v7 = vmul.f32 2.0, %v5522_v25  ;;  %6342 = vadd.xlane.f32.xlu0 %v6341_v50  ;;  %v27525_v55 = vpop.f32.mrf.mxu0  ;;  %20721 = vmatpush3.msra.mxu1 %v27442_v63  ;;  %v6186_v53 = vpop.xlane.xlu0 %6185  ;;  %v5743_v38 = vmul.f32 %v22149_v15, %v5605_v4  ;;  %22164 = vrcp.f32 %v5955_v10  ;;  %v5957_v59 = vadd.f32 0.0001, %v5915_v3  ;;  %v27540_v10 = vld [vmem:[%s30085_s7] sm:$0xff]  ;;  %v30711_v4 = vld [vmem:[#allocation9_spill] sm:$0xff] }
 0x421   :  { %20722 = vmatprep.subr.mxu1 %v27453_v52  ;;  %v6400_v16 = vpop.xlane.xlu1 %6399  ;;  %20714 = vmatmul.mubr.msk.f32.gmra.mxu1 %vm293_vm0, %v26940_v27  ;;  %v22151_v17 = vpop.eup %22150  ;;  %22166 = vrcp.f32 %v5956_v42  ;;  %v5827_v27 = vmul.f32 2.0, %v27513_v26  ;;  %v5828_v42 = vmul.f32 2.0, %v27517_v12  ;;  %v5701_v25 = vadd.f32 0.0009, %v30711_v4 }
 0x422   :  { %v5606_v24 = vadd.f32 0.0009, %v5564_v7  ;;  %v4896_v39 = vpop.f32.mrf.mxu1  ;;  %20723 = vmatpush3.msra.mxu1 %v27453_v52  ;;  %v6344_v63 = vsel %vm6098_vm2, %v5743_v38, 0.0  ;;  %v6067_v22 = vmul.f32 %v27449_v1, %v5743_v38  ;;  %20732 = vmatprep.mubr.msk.f32.mxu1 %vm293_vm0, %v27540_v10  ;;  %v6130_v52 = vsel %vm6098_vm2, %v6066_v9, 0.0  ;;  %v22153_v45 = vpop.eup %22152  ;;  %v30714_v7 = vld [vmem:[#allocation42_spill] sm:$0xff] }
 0x423   :  { %v5523_v3 = vsub.f32 %v4896_v39, %v27407_v60  ;;  %v27547_v15 = vpop.f32.mrf.mxu0  ;;  %20724 = vmatprep.subr.mxu1 %v27421_v11  ;;  %6345 = vadd.xlane.f32.xlu1 %v6344_v63  ;;  %v5829_v1 = vmul.f32 2.0, %v27521_v36  ;;  %22168 = vrcp.f32 %v5700_v40  ;;  %v5868_v60 = vadd.f32 0.0001, %v5826_v21  ;;  %v30715_v38 = vld [vmem:[#allocation90_spill] sm:$0xff] }
 0x424   :  { %v20253_v50 = vpop.f32.mrf.mxu1  ;;  %6131 = vadd.xlane.f32.xlu0 %v6130_v52  ;;  %20725 = vmatpush3.msra.mxu1 %v27421_v11  ;;  %v6403_v41 = vpop.xlane.xlu0 %6402  ;;  %v5745_v5 = vmul.f32 %v22151_v17, %v5606_v24  ;;  %v27556_v8 = vmul.f32 %v30713_v33, %v30712_v0  ;;  %22170 = vrcp.f32 %v5957_v59  ;;  %v27563_v39 = vmul.f32 %v30715_v38, %v30714_v7 }
 0x425   :  { %v5565_v48 = vmul.f32 2.0, %v5523_v3  ;;  %v27558_v9 = vpop.f32.mrf.mxu0  ;;  %20726 = vmatprep.subr.mxu1 %v27430_v58  ;;  %v6189_v56 = vpop.xlane.xlu1 %6188  ;;  %v6133_v11 = vsel %vm6098_vm2, %v6067_v22, 0.0  ;;  %v27569_v59 = vadd.f32 0.0001, %v5827_v27  ;;  %v27571_v24 = vadd.f32 0.0001, %v5828_v42 }
 0x426   :  { %v22155_v40 = vpop.eup %22154  ;;  %20727 = vmatpush3.msra.mxu1 %v27430_v58  ;;  %v6347_v21 = vsel %vm6098_vm2, %v5745_v5, 0.0  ;;  %v6068_v17 = vmul.f32 %v27458_v49, %v5745_v5  ;;  %v6279_v4 = vadd.f32 %v6189_v56, %v6186_v53  ;;  %v27574_v0 = vadd.f32 0.0001, %v5829_v1  ;;  %v30716_v58 = vld [vmem:[#allocation76_spill] sm:$0xff] }
 0x427   :  { %v5607_v63 = vadd.f32 0.0009, %v5565_v48  ;;  %v5066_v3 = vpop.f32.mrf.mxu1  ;;  %v20525_v52 = vpop.f32.mrf.mxu0  ;;  %20728 = vmatprep.subr.mxu1 %v27399_v46  ;;  %6134 = vadd.xlane.f32.xlu1 %v6133_v11  ;;  %22172 = vrcp.f32 %v5701_v25  ;;  %v5702_v22 = vadd.f32 0.0009, %v30716_v58  ;;  %v5830_v42 = vmul.f32 2.0, %v27556_v8  ;;  %v30719_v58 = vld [vmem:[#allocation98_spill] sm:$0xff] }
 0x428   :  { %v22157_v50 = vpop.eup %22156  ;;  %v5531_v33 = vsub.f32 %v5066_v3, %v27465_v61  ;;  %6348 = vadd.xlane.f32.xlu0 %v6347_v21  ;;  %20729 = vmatpush3.msra.mxu1 %v27399_v46  ;;  %v6192_v49 = vpop.xlane.xlu0 %6191  ;;  %v6489_v53 = vadd.f32 %v6400_v16, %v27497_v23  ;;  %v5831_v25 = vmul.f32 2.0, %v27563_v39  ;;  %v6015_v46 = vmul.f32 %v22153_v45, %v27528_v28 }
 0x429   :  { %v22159_v27 = vpop.eup %22158  ;;  %v20309_v5 = vpop.f32.mrf.mxu1  ;;  %20730 = vmatprep.subr.mxu1 %v27414_v43  ;;  %v6280_v1 = vadd.f32 %v6279_v4, %v6192_v49  ;;  %v5747_v56 = vmul.f32 %v22157_v50, %v5607_v63  ;;  %v27585_v38 = vmul.f32 %v22155_v40, %v5868_v60  ;;  %v6136_v16 = vsel %vm6098_vm2, %v6068_v17, 0.0  ;;  %v27594_v63 = vld [vmem:[%s30085_s7 + $0x8] sm:$0xff]  ;;  %v30718_v50 = vld [vmem:[#allocation50_spill] sm:$0xff]  ;;  %v30720_v49 = vld [vmem:[#allocation73_spill] sm:$0xff] }
 0x42a   :  { %v6949_v48 = vpop.f32.mrf.mxu0  ;;  %v5573_v7 = vmul.f32 2.0, %v5531_v33  ;;  %20731 = vmatpush3.msra.mxu1 %v27414_v43  ;;  %v6406_v61 = vpop.xlane.xlu1 %6405  ;;  %v6490_v11 = vadd.f32 %v6489_v53, %v6403_v41  ;;  %22174 = vrcp.f32 %v5702_v22  ;;  %v30717_v41 = vld [vmem:[#allocation74_spill] sm:$0xff]  ;;  %v5872_v4 = vadd.f32 0.0001, %v5830_v42 }
 0x42b   :  { %v5071_v21 = vpop.f32.mrf.mxu1  ;;  %20738 = vmatprep.subr.mxu1 %v20525_v52  ;;  %v6350_v23 = vsel %vm6117_vm3, %v5747_v56, 0.0  ;;  %20733 = vmatmul.mubr.msk.f32.vlgmr.msra.gmra.mxu1 %vm293_vm0, %v27594_v63  ;;  %v6069_v43 = vmul.f32 %v27472_v2, %v5747_v56  ;;  %v22161_v28 = vpop.eup %22160  ;;  %v5703_v45 = vadd.f32 0.0009, %v30717_v41  ;;  %v27603_v33 = vmul.f32 %v30719_v58, %v30718_v50  ;;  %v30721_v53 = vld [vmem:[#allocation70_spill] sm:$0xff] }
 0x42c   :  { %v27587_v3 = vpop.f32.mrf.mxu0  ;;  %v5615_v60 = vadd.f32 0.0009, %v5573_v7  ;;  %v5532_v40 = vsub.f32 %v5071_v21, %v27492_v57  ;;  %6351 = vadd.xlane.f32.xlu1 %v6350_v23  ;;  %6137 = vadd.xlane.f32.xlu0 %v6136_v16  ;;  %v22163_v17 = vpop.eup %22162  ;;  %v5923_v5 = vadd.f32 %v30721_v53, %v30720_v49  ;;  %v6491_v14 = vadd.f32 %v6490_v11, %v6406_v61  ;;  %v27612_v57 = vld [vmem:[%s30085_s7 + $0x10] sm:$0xff] }
 0x42d   :  { %v20312_v2 = vpop.f32.mrf.mxu1  ;;  %20739 = vmatpush3.msra.mxu1 %v20525_v52  ;;  %20735 = vmatprep.mubr.msk.f32.mxu1 %vm293_vm0, %v27612_v57  ;;  %v22165_v22 = vpop.eup %22164  ;;  %v5873_v42 = vadd.f32 0.0001, %v5831_v25  ;;  %v27617_v61 = vmul.f32 %v22159_v27, %v27569_v59  ;;  %v30722_v52 = vld [vmem:[#allocation78_spill] sm:$0xff]  ;;  %v6139_v53 = vsel %vm6117_vm3, %v6069_v43, 0.0  ;;  %v27624_v25 = vmul.f32 %v22161_v28, %v27571_v24 }
 0x42e   :  { %v27607_v56 = vpop.f32.mrf.mxu0  ;;  %v5574_v7 = vmul.f32 2.0, %v5532_v40  ;;  %20740 = vmatprep.subr.mxu1 %v6949_v48  ;;  %v6195_v21 = vpop.xlane.xlu1 %6194  ;;  %v5763_v16 = vmul.f32 %v22163_v17, %v5615_v60  ;;  %v5704_v41 = vadd.f32 0.0009, %v30722_v52  ;;  %22176 = vrcp.f32 %v5703_v45 }
 0x42f   :  { %v6409_v23 = vpop.xlane.xlu0 %6408  ;;  %v22167_v11 = vpop.eup %22166  ;;  %20741 = vmatpush3.msra.mxu1 %v6949_v48  ;;  %v5839_v17 = vmul.f32 2.0, %v27603_v33  ;;  %v5965_v2 = vadd.f32 0.0001, %v5923_v5  ;;  %v6281_v48 = vadd.f32 %v6280_v1, %v6195_v21  ;;  %v27638_v5 = vld [vmem:[%s30085_s7 + $0x18] sm:$0xff] }
 0x430   :  { %v5076_v50 = vpop.f32.mrf.mxu1  ;;  %v27620_v58 = vpop.f32.mrf.mxu0  ;;  %v6492_v49 = vadd.f32 %v6491_v14, %v6409_v23  ;;  %v5616_v40 = vadd.f32 0.0009, %v5574_v7  ;;  %20742 = vmatprep.subr.mxu1 %v27547_v15  ;;  %6140 = vadd.xlane.f32.xlu1 %v6139_v53  ;;  %v6077_v59 = vmul.f32 %v6015_v46, %v5763_v16  ;;  %v5924_v14 = vadd.f32 %v27221_v62, %v27217_v19 }
 0x431   :  { %v5533_v60 = vsub.f32 %v5076_v50, %v27513_v26  ;;  %v22169_v27 = vpop.eup %22168  ;;  %20743 = vmatpush3.msra.mxu1 %v27547_v15  ;;  %v27643_v62 = vmul.f32 %v22165_v22, %v27574_v0  ;;  %v27645_v19 = vmul.f32 %v22167_v11, %v5872_v4  ;;  %22178 = vrcp.f32 %v5704_v41  ;;  %v30723_v15 = vld [vmem:[#allocation72_spill] sm:$0xff] }
 0x432   :  { %v20315_v43 = vpop.f32.mrf.mxu1  ;;  %v27631_v23 = vpop.f32.mrf.mxu0  ;;  %20744 = vmatprep.subr.mxu1 %v27558_v9  ;;  %v5765_v46 = vmul.f32 %v22169_v27, %v5616_v40  ;;  %20736 = vmatmul.mubr.msk.f32.gmra.mxu1 %vm293_vm0, %v27638_v5  ;;  %v5705_v1 = vadd.f32 0.0009, %v30723_v15  ;;  %v6374_v50 = vsel %vm6098_vm2, %v5763_v16, 0.0  ;;  %v27658_v41 = vadd.f32 0.0001, %v5839_v17 }
 0x433   :  { %v22171_v24 = vpop.eup %22170  ;;  %v5575_v28 = vmul.f32 2.0, %v5533_v60  ;;  %v6198_v26 = vpop.xlane.xlu0 %6197  ;;  %20745 = vmatpush3.msra.mxu1 %v27558_v9  ;;  %20754 = vmatprep.mubr.msk.f32.mxu1 %vm293_vm0, %v27540_v10  ;;  %22180 = vrcp.f32 %v5965_v2  ;;  %v5966_v9 = vadd.f32 0.0001, %v5924_v14  ;;  %v5925_v17 = vadd.f32 %v27241_v51, %v27237_v47  ;;  %v30724_v51 = vld [vmem:[#allocation51_spill] sm:$0xff] }
 0x434   :  { %v6412_v45 = vpop.xlane.xlu1 %6411  ;;  %v5081_v7 = vpop.f32.mrf.mxu1  ;;  %v6282_v52 = vadd.f32 %v6281_v48, %v6198_v26  ;;  %20746 = vmatprep.subr.mxu1 %v27507_v29  ;;  %6375 = vadd.xlane.f32.xlu1 %v6374_v50  ;;  %v6377_v4 = vsel %vm6098_vm2, %v5765_v46, 0.0  ;;  %v6078_v22 = vmul.f32 %v27585_v38, %v5765_v46  ;;  %v27663_v60 = vmul.f32 %v22171_v24, %v5873_v42  ;;  %v30725_v47 = vld [vmem:[#allocation99_spill] sm:$0xff] }
 0x435   :  { %v27648_v21 = vpop.f32.mrf.mxu0  ;;  %v5617_v53 = vadd.f32 0.0009, %v5575_v28  ;;  %v5534_v0 = vsub.f32 %v5081_v7, %v27517_v12  ;;  %v22173_v11 = vpop.eup %22172  ;;  %6378 = vadd.xlane.f32.xlu0 %v6377_v4  ;;  %20747 = vmatpush3.msra.mxu1 %v27507_v29  ;;  %v6493_v27 = vadd.f32 %v6492_v49, %v6412_v45  ;;  %22182 = vrcp.f32 %v5705_v1 }
 0x436   :  { %v20318_v40 = vpop.f32.mrf.mxu1  ;;  %20748 = vmatprep.subr.mxu1 %v27525_v55  ;;  %v6163_v42 = vsel %vm6098_vm2, %v6077_v59, 0.0  ;;  %v6166_v26 = vsel %vm6098_vm2, %v6078_v22, 0.0  ;;  %v27676_v46 = vmul.f32 %v30725_v47, %v30724_v51  ;;  %22184 = vrcp.f32 %v5966_v9 }
 0x437   :  { %v27660_v16 = vpop.f32.mrf.mxu0  ;;  %v5576_v12 = vmul.f32 2.0, %v5534_v0  ;;  %v6415_v38 = vpop.xlane.xlu0 %6414  ;;  %v5767_v43 = vmul.f32 %v22173_v11, %v5617_v53  ;;  %20749 = vmatpush3.msra.mxu1 %v27525_v55  ;;  %v30726_v55 = vld [vmem:[#allocation80_spill] sm:$0xff]  ;;  %v5967_v22 = vadd.f32 0.0001, %v5925_v17  ;;  %v5926_v11 = vadd.f32 %v27270_v18, %v27264_v13 }
 0x438   :  { %v6201_v48 = vpop.xlane.xlu1 %6200  ;;  %v5086_v2 = vpop.f32.mrf.mxu1  ;;  %v6494_v29 = vsel %vm6231_vm4, %v6415_v38, 0.0  ;;  %20750 = vmatprep.subr.mxu1 %v27484_v44  ;;  %6164 = vadd.xlane.f32.xlu1 %v6163_v42  ;;  %v5713_v15 = vadd.f32 0.0009, %v30726_v55  ;;  %v5714_v13 = vadd.f32 0.0009, %v27245_v35  ;;  %v5927_v35 = vadd.f32 %v27298_v54, %v27294_v34  ;;  %v30727_v55 = vld [vmem:[#allocation28_spill] sm:$0xff] }
 0x439   :  { %v20537_v14 = vpop.f32.mrf.mxu0  ;;  %v5618_v24 = vadd.f32 0.0009, %v5576_v12  ;;  %v5535_v49 = vsub.f32 %v5086_v2, %v27521_v36  ;;  %v6495_v28 = vadd.f32 %v6494_v29, %v6493_v27  ;;  %v22175_v45 = vpop.eup %22174  ;;  %6167 = vadd.xlane.f32.xlu0 %v6166_v26  ;;  %20751 = vmatpush3.msra.mxu1 %v27484_v44  ;;  %v6079_v36 = vmul.f32 %v27617_v61, %v5767_v43 }
 0x43a   :  { %v20321_v1 = vpop.f32.mrf.mxu1  ;;  %v6283_v50 = vadd.f32 %v6282_v52, %v6201_v48  ;;  %20752 = vmatprep.subr.mxu1 %v27495_v31  ;;  %v6380_v61 = vsel %vm6098_vm2, %v5767_v43, 0.0  ;;  %22186 = vrcp.f32 %v5713_v15  ;;  %v5715_v54 = vadd.f32 0.0009, %v30727_v55  ;;  %v30732_v55 = vld [vmem:[#allocation105_spill] sm:$0xff] }
 0x43b   :  { %v6989_v59 = vpop.f32.mrf.mxu0  ;;  %v5577_v7 = vmul.f32 2.0, %v5535_v49  ;;  %v6496_v53 = vrot.slane %v6495_v28, 4  ;;  %v6204_v0 = vpop.xlane.xlu0 %6203  ;;  %v5769_v4 = vmul.f32 %v22175_v45, %v5618_v24  ;;  %20753 = vmatpush3.msra.mxu1 %v27495_v31  ;;  %22188 = vrcp.f32 %v5967_v22 }
 0x43c   :  { %v5091_v9 = vpop.f32.mrf.mxu1  ;;  %v6284_v44 = vsel %vm6231_vm4, %v6204_v0, 0.0  ;;  %20760 = vmatprep.subr.mxu1 %v20537_v14  ;;  %6381 = vadd.xlane.f32.xlu1 %v6380_v61  ;;  %v22177_v38 = vpop.eup %22176  ;;  %v5968_v24 = vadd.f32 0.0001, %v5926_v11  ;;  %22190 = vrcp.f32 %v5714_v13  ;;  %v30728_v0 = vld [vmem:[#allocation52_spill] sm:$0xff]  ;;  %v5969_v11 = vadd.f32 0.0001, %v5927_v35 }
 0x43d   :  { %v27684_v40 = vpop.f32.mrf.mxu0  ;;  %v5619_v12 = vadd.f32 0.0009, %v5577_v7  ;;  %v6497_v52 = vadd.f32 %v6496_v53, %v6495_v28  ;;  %v5536_v27 = vsub.f32 %v5091_v9, %v27556_v8  ;;  %v6285_v48 = vadd.f32 %v6284_v44, %v6283_v50  ;;  %20755 = vmatmul.mubr.msk.f32.vlgmr.msra.gmra.mxu1 %vm293_vm0, %v27594_v63 }
 0x43e   :  { %v20324_v18 = vpop.f32.mrf.mxu1  ;;  %v6383_v17 = vsel %vm6098_vm2, %v5769_v4, 0.0  ;;  %v6080_v31 = vmul.f32 %v27624_v25, %v5769_v4  ;;  %20761 = vmatpush3.msra.mxu1 %v20537_v14  ;;  %v6169_v28 = vsel %vm6098_vm2, %v6079_v36, 0.0  ;;  %20757 = vmatprep.mubr.msk.f32.mxu1 %vm293_vm0, %v27612_v57  ;;  %v22179_v26 = vpop.eup %22178  ;;  %v30729_v4 = vld [vmem:[#allocation100_spill] sm:$0xff]  ;;  %22192 = vrcp.f32 %v5968_v24  ;;  %v30730_v24 = vld [vmem:[#allocation46_spill] sm:$0xff] }
 0x43f   :  { %v27692_v2 = vpop.f32.mrf.mxu0  ;;  %v6498_v43 = vrot.slane %v6497_v52, 2  ;;  %v5578_v29 = vmul.f32 2.0, %v5536_v27  ;;  %v6286_v8 = vrot.slane %v6285_v48, 4  ;;  %6384 = vadd.xlane.f32.xlu0 %v6383_v17  ;;  %v5771_v42 = vmul.f32 %v22177_v38, %v5619_v12  ;;  %20762 = vmatprep.subr.mxu1 %v6989_v59 }
 0x440   :  { %v5096_v49 = vpop.f32.mrf.mxu1  ;;  %20763 = vmatpush3.msra.mxu1 %v6989_v59  ;;  %6170 = vadd.xlane.f32.xlu1 %v6169_v28  ;;  %v6172_v15 = vsel %vm6098_vm2, %v6080_v31, 0.0  ;;  %v22181_v36 = vpop.eup %22180  ;;  %v27716_v22 = vmul.f32 %v30729_v4, %v30728_v0  ;;  %v5716_v44 = vadd.f32 0.0009, %v27300_v6  ;;  %v5840_v27 = vmul.f32 2.0, %v27676_v46  ;;  %v30735_v0 = vld [vmem:[#allocation83_spill] sm:$0xff] }
 0x441   :  { %v6499_v25 = vadd.f32 %v6498_v43, %v6497_v52  ;;  %v5620_v45 = vadd.f32 0.0009, %v5578_v29  ;;  %v6287_v51 = vadd.f32 %v6286_v8, %v6285_v48  ;;  %v5537_v47 = vsub.f32 %v5096_v49, %v27563_v39  ;;  %v27703_v14 = vpop.f32.mrf.mxu0  ;;  %20764 = vmatprep.subr.mxu1 %v27648_v21  ;;  %20758 = vmatmul.mubr.msk.f32.gmra.mxu1 %vm293_vm0, %v27638_v5 }
 0x442   :  { %v20327_v34 = vpop.f32.mrf.mxu1  ;;  %v6081_v1 = vmul.f32 %v27643_v62, %v5771_v42  ;;  %20765 = vmatpush3.msra.mxu1 %v27648_v21  ;;  %v6386_v62 = vsel %vm6098_vm2, %v5771_v42, 0.0  ;;  %20776 = vmatprep.mubr.msk.f32.mxu1 %vm293_vm0, %v27540_v10  ;;  %v22183_v9 = vpop.eup %22182  ;;  %22194 = vrcp.f32 %v5715_v54  ;;  %v5928_v18 = vadd.f32 %v27327_v37, %v27323_v32 }
 0x443   :  { %v6500_v7 = vrot.slane %v6499_v25, 1  ;;  %v6288_v39 = vrot.slane %v6287_v51, 2  ;;  %v5579_v50 = vmul.f32 2.0, %v5537_v47  ;;  %6173 = vadd.xlane.f32.xlu0 %v6172_v15  ;;  %v27711_v59 = vpop.f32.mrf.mxu0  ;;  %v5773_v53 = vmul.f32 %v22179_v26, %v5620_v45  ;;  %20766 = vmatprep.subr.mxu1 %v27660_v16  ;;  %v22185_v6 = vpop.eup %22184  ;;  %v30731_v47 = vld [vmem:[#allocation81_spill] sm:$0xff] }
 0x444   :  { %v5266_v21 = vpop.f32.mrf.mxu1  ;;  %20767 = vmatpush3.msra.mxu1 %v27660_v16  ;;  %6387 = vadd.xlane.f32.xlu1 %v6386_v62  ;;  %v5841_v29 = vmul.f32 2.0, %v27716_v22  ;;  %22196 = vrcp.f32 %v5969_v11  ;;  %v5717_v35 = vadd.f32 0.0009, %v30730_v24  ;;  %v5718_v4 = vadd.f32 0.0009, %v30735_v0 }
 0x445   :  { %v6289_v61 = vadd.f32 %v6288_v39, %v6287_v51  ;;  %v5621_v12 = vadd.f32 0.0009, %v5579_v50  ;;  %v6389_v52 = vsel %vm6098_vm2, %v5773_v53, 0.0  ;;  %v5545_v48 = vsub.f32 %v5266_v21, %v27603_v33  ;;  %v27727_v38 = vpop.f32.mrf.mxu0  ;;  %20768 = vmatprep.subr.mxu1 %v27620_v58  ;;  %v30733_v39 = vld [vmem:[#allocation53_spill] sm:$0xff] }
 0x446   :  { %v6082_v13 = vmul.f32 %v27645_v19, %v5773_v53  ;;  %v6501_v17 = vadd.f32 %v6500_v7, %v6499_v25  ;;  %v20383_v31 = vpop.f32.mrf.mxu1  ;;  %20769 = vmatpush3.msra.mxu1 %v27620_v58  ;;  %v6175_v19 = vsel %vm6098_vm2, %v6081_v1, 0.0  ;;  %22198 = vrcp.f32 %v5716_v44  ;;  %v30734_v50 = vld [vmem:[#allocation101_spill] sm:$0xff] }
 0x447   :  { %v6290_v16 = vrot.slane %v6289_v61, 1  ;;  %6390 = vadd.xlane.f32.xlu0 %v6389_v52  ;;  %v5775_v43 = vmul.f32 %v22183_v9, %v5621_v12  ;;  %v5587_v33 = vmul.f32 2.0, %v5545_v48  ;;  %v27735_v8 = vpop.f32.mrf.mxu0  ;;  %20770 = vmatprep.subr.mxu1 %v27631_v23  ;;  %v6043_v58 = vmul.f32 %v22181_v36, %v27658_v41  ;;  %v22187_v45 = vpop.eup %22186  ;;  %v30737_v31 = vld [vmem:[#allocation54_spill] sm:$0xff] }
 0x448   :  { %v5271_v32 = vpop.f32.mrf.mxu1  ;;  %20771 = vmatpush3.msra.mxu1 %v27631_v23  ;;  %6176 = vadd.xlane.f32.xlu1 %v6175_v19  ;;  %v6178_v25 = vsel %vm6098_vm2, %v6082_v13, 0.0  ;;  %v5970_v51 = vadd.f32 0.0001, %v5928_v18  ;;  %v5929_v23 = vadd.f32 %v30732_v55, %v30731_v47  ;;  %v6519_v54 = vmul.f32 0.00034293553, %v6501_v17  ;;  %v22189_v36 = vpop.eup %22188 }
 0x449   :  { %v6291_v42 = vadd.f32 %v6290_v16, %v6289_v61  ;;  %v6083_v37 = vmul.f32 %v27663_v60, %v5775_v43  ;;  %v5629_v49 = vadd.f32 0.0009, %v5587_v33  ;;  %v5546_v28 = vsub.f32 %v5271_v32, %v27676_v46  ;;  %v20549_v26 = vpop.f32.mrf.mxu0  ;;  %20772 = vmatprep.subr.mxu1 %v27587_v3  ;;  %v22191_v12 = vpop.eup %22190  ;;  %v30739_v33 = vld [vmem:[#allocation47_spill] sm:$0xff] }
 0x44a   :  { %v20386_v60 = vpop.f32.mrf.mxu1  ;;  %20773 = vmatpush3.msra.mxu1 %v27587_v3  ;;  %v6392_v46 = vsel %vm6117_vm3, %v5775_v43, 0.0  ;;  %v5882_v7 = vadd.f32 0.0001, %v5840_v27  ;;  %v5422_v53 = vmul.f32 %v30734_v50, %v30733_v39  ;;  %22200 = vrcp.f32 %v5717_v35  ;;  %v30738_v43 = vld [vmem:[#allocation102_spill] sm:$0xff] }
 0x44b   :  { %v6309_v34 = vmul.f32 0.00034293553, %v6291_v42  ;;  %6179 = vadd.xlane.f32.xlu0 %v6178_v25  ;;  %v5588_v41 = vmul.f32 2.0, %v5546_v28  ;;  %v7029_v15 = vpop.f32.mrf.mxu0  ;;  %20774 = vmatprep.subr.mxu1 %v27607_v56  ;;  %v5791_v1 = vmul.f32 %v22187_v45, %v5629_v49  ;;  %v5883_v21 = vadd.f32 0.0001, %v5841_v29  ;;  %v22193_v17 = vpop.eup %22192 }
 0x44c   :  { %v5276_v62 = vpop.f32.mrf.mxu1  ;;  %20775 = vmatpush3.msra.mxu1 %v27607_v56  ;;  %6393 = vadd.xlane.f32.xlu1 %v6392_v46  ;;  %22202 = vrcp.f32 %v5970_v51  ;;  %v6045_v56 = vmul.f32 %v22185_v6, %v5882_v7  ;;  %v5971_v27 = vadd.f32 0.0001, %v5929_v23  ;;  %v5842_v16 = vmul.f32 2.0, %v5422_v53 }
 0x44d   :  { %v27755_v11 = vsel %vm16348_vm5, %v6309_v34, %v6519_v54  ;;  %v5630_v3 = vadd.f32 0.0009, %v5588_v41  ;;  %v5547_v9 = vsub.f32 %v5276_v62, %v27716_v22  ;;  %v27759_v44 = vpop.f32.mrf.mxu0  ;;  %20782 = vmatprep.subr.mxu1 %v20549_v26  ;;  %20777 = vmatmul.mubr.msk.f32.vlgmr.msra.gmra.mxu1 %vm293_vm0, %v27594_v63  ;;  %v6091_v61 = vmul.f32 %v6043_v58, %v5791_v1  ;;  %v30740_v54 = vld [vmem:[#allocation55_spill] sm:$0xff] }
 0x44e   :  { %30736 = vst [vmem:[#allocation8_spill] sm:$0xff] %v27755_v11  ;;  %v20389_v52 = vpop.f32.mrf.mxu1  ;;  %20783 = vmatpush3.msra.mxu1 %v20549_v26  ;;  %20779 = vmatprep.mubr.msk.f32.mxu1 %vm293_vm0, %v27612_v57  ;;  %v6181_v22 = vsel %vm6117_vm3, %v6083_v37, 0.0  ;;  %v5423_v29 = vmul.f32 %v30738_v43, %v30737_v31  ;;  %22204 = vrcp.f32 %v5718_v4  ;;  %v5719_v19 = vadd.f32 0.0009, %v30739_v33  ;;  %v30741_v34 = vld [vmem:[#allocation103_spill] sm:$0xff] }
 0x44f   :  { %v5589_v48 = vmul.f32 2.0, %v5547_v9  ;;  %v27765_v13 = vpop.f32.mrf.mxu0  ;;  %20784 = vmatprep.subr.mxu1 %v7029_v15  ;;  %v5793_v18 = vmul.f32 %v22191_v12, %v5630_v3  ;;  %v22195_v35 = vpop.eup %22194  ;;  %v6047_v28 = vmul.f32 %v22189_v36, %v5883_v21  ;;  %22206 = vrcp.f32 %v5971_v27  ;;  %v30742_v3 = vld [vmem:[#allocation56_spill] sm:$0xff] }
 0x450   :  { %v5281_v42 = vpop.f32.mrf.mxu1  ;;  %20785 = vmatpush3.msra.mxu1 %v7029_v15  ;;  %6182 = vadd.xlane.f32.xlu1 %v6181_v22  ;;  %v6416_v45 = vsel %vm6098_vm2, %v5791_v1, 0.0  ;;  %v5884_v55 = vadd.f32 0.0001, %v5842_v16  ;;  %v5843_v23 = vmul.f32 2.0, %v5423_v29  ;;  %v5424_v60 = vmul.f32 %v30741_v34, %v30740_v54  ;;  %v30743_v9 = vld [vmem:[#allocation104_spill] sm:$0xff] }
 0x451   :  { %v5631_v6 = vadd.f32 0.0009, %v5589_v48  ;;  %v5548_v32 = vsub.f32 %v5281_v42, %v5422_v53  ;;  %v27771_v58 = vpop.f32.mrf.mxu0  ;;  %20786 = vmatprep.subr.mxu1 %v27727_v38  ;;  %v6419_v37 = vsel %vm6098_vm2, %v5793_v18, 0.0  ;;  %20780 = vmatmul.mubr.msk.f32.gmra.mxu1 %vm293_vm0, %v27638_v5  ;;  %v6092_v24 = vmul.f32 %v6045_v56, %v5793_v18  ;;  %v22197_v47 = vpop.eup %22196 }
 0x452   :  { %v20392_v49 = vpop.f32.mrf.mxu1  ;;  %6420 = vadd.xlane.f32.xlu0 %v6419_v37  ;;  %20787 = vmatpush3.msra.mxu1 %v27727_v38  ;;  %22208 = vrcp.f32 %v5719_v19  ;;  %v6049_v0 = vmul.f32 %v22193_v17, %v5884_v55  ;;  %v5885_v4 = vadd.f32 0.0001, %v5843_v23  ;;  %v5844_v62 = vmul.f32 2.0, %v5424_v60 }
 0x453   :  { %v5590_v26 = vmul.f32 2.0, %v5548_v32  ;;  %v27778_v25 = vpop.f32.mrf.mxu0  ;;  %20788 = vmatprep.subr.mxu1 %v27735_v8  ;;  %20798 = vmatprep.mubr.msk.f32.mxu1 %vm293_vm0, %v27540_v10  ;;  %v5795_v51 = vmul.f32 %v22195_v35, %v5631_v6  ;;  %v22199_v41 = vpop.eup %22198  ;;  %v6208_v10 = vsel %vm6098_vm2, %v6092_v24, 0.0  ;;  %v5425_v12 = vmul.f32 %v30743_v9, %v30742_v3  ;;  %v8116_v24 = vld [vmem:[%s30086_s4 + $0x18] sm:$0xff] }
 0x454   :  { %v5286_v38 = vpop.f32.mrf.mxu1  ;;  %20789 = vmatpush3.msra.mxu1 %v27735_v8  ;;  %6417 = vadd.xlane.f32.xlu1 %v6416_v45  ;;  %v6205_v8 = vsel %vm6098_vm2, %v6091_v61, 0.0  ;;  %v6051_v31 = vmul.f32 %v22197_v47, %v5885_v4  ;;  %v5886_v43 = vadd.f32 0.0001, %v5844_v62 }
 0x455   :  { %v5632_v15 = vadd.f32 0.0009, %v5590_v26  ;;  %v5549_v46 = vsub.f32 %v5286_v38, %v5423_v29  ;;  %v20558_v36 = vpop.f32.mrf.mxu0  ;;  %20790 = vmatprep.subr.mxu1 %v27703_v14  ;;  %v27789_v1 = vmul.f32 %v6047_v28, %v5795_v51  ;;  %v5845_v19 = vmul.f32 2.0, %v5425_v12  ;;  %v8115_v38 = vld [vmem:[%s30086_s4 + $0x10] sm:$0xff] }
 0x456   :  { %v20395_v7 = vpop.f32.mrf.mxu1  ;;  %6209 = vadd.xlane.f32.xlu0 %v6208_v10  ;;  %20791 = vmatpush3.msra.mxu1 %v27703_v14 }
 0x457   :  { %v5591_v39 = vmul.f32 2.0, %v5549_v46  ;;  %v7059_v50 = vpop.f32.mrf.mxu0  ;;  %20792 = vmatprep.subr.mxu1 %v27711_v59  ;;  %v5797_v53 = vmul.f32 %v22199_v41, %v5632_v15  ;;  %v22201_v61 = vpop.eup %22200  ;;  %v5887_v47 = vadd.f32 0.0001, %v5845_v19  ;;  %v6211_v54 = vsel %vm6098_vm2, %v27789_v1, 0.0 }
 0x458   :  { %v5291_v21 = vpop.f32.mrf.mxu1  ;;  %20793 = vmatpush3.msra.mxu1 %v27711_v59  ;;  %6206 = vadd.xlane.f32.xlu1 %v6205_v8 }
 0x459   :  { %v5633_v52 = vadd.f32 0.0009, %v5591_v39  ;;  %v5550_v56 = vsub.f32 %v5291_v21, %v5424_v60  ;;  %v20561_v14 = vpop.f32.mrf.mxu0  ;;  %20794 = vmatprep.subr.mxu1 %v27684_v40  ;;  %v6425_v27 = vsel %vm6098_vm2, %v5797_v53, 0.0  ;;  %v6094_v48 = vmul.f32 %v6049_v0, %v5797_v53  ;;  %v22203_v18 = vpop.eup %22202 }
 0x45a   :  { %20804 = vmatprep.subr.mxu0 %v20561_v14  ;;  %v20398_v22 = vpop.f32.mrf.mxu1  ;;  %6426 = vadd.xlane.f32.xlu0 %v6425_v27 }
 0x45b   :  { %v5592_v17 = vmul.f32 2.0, %v5550_v56  ;;  %v7069_v16 = vpop.f32.mrf.mxu0  ;;  %20795 = vmatpush3.msra.mxu1 %v27684_v40  ;;  %20805 = vmatpush3.msra.mxu0 %v20561_v14  ;;  %v5799_v59 = vmul.f32 %v22201_v61, %v5633_v52  ;;  %v22205_v33 = vpop.eup %22204  ;;  %v6422_v40 = vsel %vm6098_vm2, %v5795_v51, 0.0  ;;  %v6214_v37 = vsel %vm6098_vm2, %v6094_v48, 0.0 }
 0x45c   :  { %20796 = vmatprep.subr.mxu1 %v27692_v2  ;;  %20806 = vmatprep.subr.mxu0 %v7069_v16  ;;  %v5296_v29 = vpop.f32.mrf.mxu1  ;;  %v22207_v26 = vpop.eup %22206 }
 0x45d   :  { %v5634_v42 = vadd.f32 0.0009, %v5592_v17  ;;  %v5551_v6 = vsub.f32 %v5296_v29, %v5425_v12  ;;  %20797 = vmatpush3.msra.mxu1 %v27692_v2  ;;  %20807 = vmatpush3.msra.mxu0 %v7069_v16  ;;  %v6095_v32 = vmul.f32 %v6051_v31, %v5799_v59  ;;  %v6053_v2 = vmul.f32 %v22203_v18, %v5886_v43 }
 0x45e   :  { %20799 = vmatmul.mubr.msk.f32.vlgmr.msra.gmra.mxu1 %vm293_vm0, %v27594_v63  ;;  %20808 = vmatprep.subr.mxu0 %v20558_v36  ;;  %v20401_v35 = vpop.f32.mrf.mxu1  ;;  %v6055_v60 = vmul.f32 %v22207_v26, %v5887_v47  ;;  %v6428_v15 = vsel %vm6098_vm2, %v5799_v59, 0.0 }
 0x45f   :  { %v5593_v49 = vmul.f32 2.0, %v5551_v6  ;;  %6423 = vadd.xlane.f32.xlu1 %v6422_v40  ;;  %6215 = vadd.xlane.f32.xlu0 %v6214_v37  ;;  %v5801_v28 = vmul.f32 %v22205_v33, %v5634_v42  ;;  %v22209_v45 = vpop.eup %22208 }
 0x460   :  { %20809 = vmatpush3.msra.mxu0 %v20558_v36  ;;  %20801 = vmatprep.mubr.msk.f32.mxu1 %vm293_vm0, %v27612_v57  ;;  %v8114_v36 = vld [vmem:[%s30086_s4 + $0x8] sm:$0xff] }
 0x461   :  { %v5635_v51 = vadd.f32 0.0009, %v5593_v49  ;;  %20810 = vmatprep.subr.mxu0 %v7059_v50  ;;  %v6431_v55 = vsel %vm6098_vm2, %v5801_v28, 0.0  ;;  %v6096_v23 = vmul.f32 %v6053_v2, %v5801_v28  ;;  %20826 = vmatprep.subr.mxu1 %v8116_v24 }
 0x462   :  { %20811 = vmatpush3.msra.mxu0 %v7059_v50  ;;  %20802 = vmatmul.mubr.msk.f32.gmra.mxu1 %vm293_vm0, %v27638_v5 }
 0x463   :  { %20812 = vmatprep.subr.mxu0 %v27771_v58  ;;  %6212 = vadd.xlane.f32.xlu1 %v6211_v54  ;;  %v5803_v34 = vmul.f32 %v22209_v45, %v5635_v51  ;;  %v6220_v46 = vsel %vm6098_vm2, %v6096_v23, 0.0 }
 0x464   :  { %6432 = vadd.xlane.f32.xlu0 %v6431_v55  ;;  %20813 = vmatpush3.msra.mxu0 %v27771_v58  ;;  %v6217_v58 = vsel %vm6098_vm2, %v6095_v32, 0.0 }
 0x465   :  { %20814 = vmatprep.subr.mxu0 %v27778_v25  ;;  %v6097_v41 = vmul.f32 %v6055_v60, %v5803_v34  ;;  %20827 = vmatpush3.msra.mxu1 %v8116_v24 }
 0x466   :  { %20815 = vmatpush3.msra.mxu0 %v27778_v25  ;;  %20828 = vmatprep.subr.mxu1 %v8115_v38  ;;  %v8113_v25 = vld [vmem:[%s30086_s4] sm:$0xff] }
 0x467   :  { %20816 = vmatprep.subr.mxu0 %v27759_v44  ;;  %6429 = vadd.xlane.f32.xlu1 %v6428_v15 }
 0x468   :  { %6221 = vadd.xlane.f32.xlu0 %v6220_v46  ;;  %20817 = vmatpush3.msra.mxu0 %v27759_v44  ;;  %v30744_v44 = vmov 0.0  }
 0x469   :  { %20818 = vmatprep.subr.mxu0 %v27765_v13  ;;  %20829 = vmatpush3.msra.mxu1 %v8115_v38 }
 0x46a   :  { %20819 = vmatpush3.msra.mxu0 %v27765_v13  ;;  %20830 = vmatprep.subr.mxu1 %v8114_v36  ;;  %v6434_v13 = vsel %vm6117_vm3, %v5803_v34, 0.0 }
 0x46b   :  { %20821 = vmatmul.mubr.msk.f32.vlgmr.msra.gmra.mxu0 %vm293_vm0, %v27594_v63  ;;  %6218 = vadd.xlane.f32.xlu1 %v6217_v58  ;;  %v6223_v63 = vsel %vm6117_vm3, %v6097_v41, 0.0 }
 0x46c   :  { %20823 = vmatprep.mubr.msk.f32.mxu0 %vm293_vm0, %v27612_v57  ;;  %20831 = vmatpush3.msra.mxu1 %v8114_v36 }
 0x46d   :  { %20832 = vmatprep.subr.mxu1 %v8113_v25  ;;  %21014 = vmatprep.subr.mxu0 %v30744_v44 }
 0x46e   :  { %20833 = vmatpush3.msra.mxu1 %v8113_v25 }
 0x46f   :  { %20824 = vmatmul.mubr.msk.f32.gmra.mxu0 %vm293_vm0, %v27638_v5  ;;  %6435 = vadd.xlane.f32.xlu1 %v6434_v13 }
 0x470   :  { %21022 = vmatprep.mubr.msk.f32.mxu0 %vm22535_vm1, %v30744_v44  ;;  %21354 = vmatprep.subr.mxu1 %v30744_v44 }
 0x473   :  { %6224 = vadd.xlane.f32.xlu1 %v6223_v63 }
 0x479   :  { %v27848_v57 = vpop.f32.mrf.mxu1 }
 0x47b   :  { %v27850_v10 = vpop.f32.mrf.mxu1 }
 0x47c   :  { %20834 = vmatprep.mubr.msk.f32.mxu1 %vm8189_vm6, %v27850_v10 }
 0x47d   :  { %v27854_v1 = vpop.f32.mrf.mxu1  ;;  %20835 = vmatmul.mubr.msk.f32.vlgmr.msra.gmra.mxu1 %vm8189_vm6, %v27848_v57 }
 0x47f   :  { %v27858_v5 = vpop.f32.mrf.mxu1 }
 0x480   :  { %20837 = vmatprep.mubr.msk.f32.mxu1 %vm8189_vm6, %v27858_v5 }
 0x481   :  { %20838 = vmatmul.mubr.msk.f32.gmra.mxu1 %vm8189_vm6, %v27854_v1 }
 0x489   :  { %v27864_v7 = vpop.f32.mrf.mxu1 }
 0x48b   :  { %v27866_v39 = vpop.f32.mrf.mxu1 }
 0x48c   :  { %20840 = vmatprep.mubr.msk.f32.mxu1 %vm8189_vm6, %v27866_v39 }
 0x48d   :  { %v27870_v50 = vpop.f32.mrf.mxu1  ;;  %20841 = vmatmul.mubr.msk.f32.gmra.mxu1 %vm8189_vm6, %v27864_v7 }
 0x48f   :  { %v27874_v8 = vpop.f32.mrf.mxu1 }
 0x490   :  { %20843 = vmatprep.mubr.msk.f32.mxu1 %vm8189_vm6, %v27874_v8 }
 0x491   :  { %20844 = vmatmul.mubr.msk.f32.gmra.mxu1 %vm8189_vm6, %v27870_v50 }
 0x499   :  { %v27880_v53 = vpop.f32.mrf.mxu1 }
 0x49b   :  { %v27882_v0 = vpop.f32.mrf.mxu1 }
 0x49c   :  { %v6334_v4 = vpop.xlane.xlu1 %6333  ;;  %20846 = vmatprep.mubr.msk.f32.mxu1 %vm8189_vm6, %v27882_v0 }
 0x49d   :  { %v27886_v62 = vpop.f32.mrf.mxu1  ;;  %20847 = vmatmul.mubr.msk.f32.gmra.mxu1 %vm8189_vm6, %v27880_v53 }
 0x49f   :  { %v27890_v3 = vpop.f32.mrf.mxu1 }
 0x4a0   :  { %v6123_v9 = vpop.xlane.xlu1 %6122  ;;  %v6337_v12 = vpop.xlane.xlu0 %6336  ;;  %20849 = vmatprep.mubr.msk.f32.mxu1 %vm8189_vm6, %v27890_v3 }
 0x4a1   :  { %v6450_v21 = vadd.f32 %v6337_v12, %v6334_v4  ;;  %20850 = vmatmul.mubr.msk.f32.gmra.mxu1 %vm8189_vm6, %v27886_v62 }
 0x4a4   :  { %v6340_v52 = vpop.xlane.xlu1 %6339  ;;  %v6126_v56 = vpop.xlane.xlu0 %6125 }
 0x4a5   :  { %v6451_v14 = vadd.f32 %v6450_v21, %v6340_v52  ;;  %v6240_v27 = vadd.f32 %v6126_v56, %v6123_v9 }
 0x4a8   :  { %v6129_v48 = vpop.xlane.xlu1 %6128 }
 0x4a9   :  { %v6241_v61 = vadd.f32 %v6240_v27, %v6129_v48  ;;  %v6343_v22 = vpop.xlane.xlu0 %6342  ;;  %v27896_v18 = vpop.f32.mrf.mxu1 }
 0x4aa   :  { %v6452_v17 = vadd.f32 %v6451_v14, %v6343_v22 }
 0x4ab   :  { %v27898_v16 = vpop.f32.mrf.mxu1 }
 0x4ac   :  { %v6346_v59 = vpop.xlane.xlu1 %6345  ;;  %20852 = vmatprep.mubr.msk.f32.mxu1 %vm8189_vm6, %v27898_v16 }
 0x4ad   :  { %v6453_v31 = vadd.f32 %v6452_v17, %v6346_v59  ;;  %v6132_v43 = vpop.xlane.xlu0 %6131  ;;  %v27902_v29 = vpop.f32.mrf.mxu1  ;;  %20853 = vmatmul.mubr.msk.f32.gmra.mxu1 %vm8189_vm6, %v27896_v18 }
 0x4ae   :  { %v6242_v33 = vadd.f32 %v6241_v61, %v6132_v43 }
 0x4af   :  { %v27906_v19 = vpop.f32.mrf.mxu1 }
 0x4b0   :  { %v6135_v42 = vpop.xlane.xlu1 %6134  ;;  %20855 = vmatprep.mubr.msk.f32.mxu1 %vm8189_vm6, %v27906_v19 }
 0x4b1   :  { %v6243_v6 = vadd.f32 %v6242_v33, %v6135_v42  ;;  %v6349_v32 = vpop.xlane.xlu0 %6348  ;;  %20856 = vmatmul.mubr.msk.f32.gmra.mxu1 %vm8189_vm6, %v27902_v29 }
 0x4b2   :  { %v6454_v40 = vadd.f32 %v6453_v31, %v6349_v32 }
 0x4b5   :  { %v6352_v37 = vpop.xlane.xlu1 %6351  ;;  %v6138_v24 = vpop.xlane.xlu0 %6137 }
 0x4b6   :  { %v6455_v35 = vsel %vm6231_vm4, %v6352_v37, 0.0  ;;  %v6244_v49 = vadd.f32 %v6243_v6, %v6138_v24 }
 0x4b7   :  { %v6456_v28 = vadd.f32 %v6455_v35, %v6454_v40 }
 0x4b9   :  { %v6457_v2 = vrot.slane %v6456_v28, 4  ;;  %v6141_v26 = vpop.xlane.xlu1 %6140  ;;  %v27913_v45 = vpop.f32.mrf.mxu1 }
 0x4ba   :  { %v6245_v47 = vsel %vm6231_vm4, %v6141_v26, 0.0 }
 0x4bb   :  { %v6458_v51 = vadd.f32 %v6457_v2, %v6456_v28  ;;  %v6246_v55 = vadd.f32 %v6245_v47, %v6244_v49  ;;  %v27916_v23 = vpop.f32.mrf.mxu1 }
 0x4bc   :  { %20858 = vmatprep.mubr.msk.f32.mxu1 %vm8189_vm6, %v27916_v23 }
 0x4bd   :  { %v6459_v54 = vrot.slane %v6458_v51, 2  ;;  %v6247_v34 = vrot.slane %v6246_v55, 4  ;;  %v6376_v60 = vpop.xlane.xlu1 %6375  ;;  %v27920_v38 = vpop.f32.mrf.mxu1  ;;  %20859 = vmatmul.mubr.msk.f32.gmra.mxu1 %vm8189_vm6, %v27913_v45 }
 0x4be   :  { %v6379_v41 = vpop.xlane.xlu0 %6378 }
 0x4bf   :  { %v6460_v15 = vadd.f32 %v6459_v54, %v6458_v51  ;;  %v6248_v46 = vadd.f32 %v6247_v34, %v6246_v55  ;;  %v6476_v36 = vadd.f32 %v6379_v41, %v6376_v60  ;;  %v27924_v58 = vpop.f32.mrf.mxu1 }
 0x4c0   :  { %20861 = vmatprep.mubr.msk.f32.mxu1 %vm8189_vm6, %v27924_v58  ;;  %v8135_v11 = vmul.f32 %v27924_v58, %v27924_v58 }
 0x4c1   :  { %v6461_v25 = vrot.slane %v6460_v15, 1  ;;  %v6249_v13 = vrot.slane %v6248_v46, 2  ;;  %v6165_v63 = vpop.xlane.xlu1 %6164  ;;  %20862 = vmatmul.mubr.msk.f32.gmra.mxu1 %vm8189_vm6, %v27920_v38 }
 0x4c2   :  { %v6168_v4 = vpop.xlane.xlu0 %6167 }
 0x4c3   :  { %v6250_v9 = vadd.f32 %v6249_v13, %v6248_v46  ;;  %v6266_v12 = vadd.f32 %v6168_v4, %v6165_v63  ;;  %v6462_v21 = vadd.f32 %v6461_v25, %v6460_v15 }
 0x4c5   :  { %v6251_v52 = vrot.slane %v6250_v9, 1  ;;  %v6382_v56 = vpop.xlane.xlu1 %6381  ;;  %v6516_v22 = vmul.f32 0.00034293553, %v6462_v21 }
 0x4c6   :  { %v6477_v14 = vadd.f32 %v6476_v36, %v6382_v56 }
 0x4c7   :  { %v6252_v27 = vadd.f32 %v6251_v52, %v6250_v9 }
 0x4c8   :  { %v6385_v48 = vpop.xlane.xlu0 %6384 }
 0x4c9   :  { %v6478_v61 = vadd.f32 %v6477_v14, %v6385_v48  ;;  %v6306_v17 = vmul.f32 0.00034293553, %v6252_v27  ;;  %v6171_v59 = vpop.xlane.xlu1 %6170  ;;  %v27930_v31 = vpop.f32.mrf.mxu1 }
 0x4ca   :  { %v6267_v43 = vadd.f32 %v6266_v12, %v6171_v59 }
 0x4cb   :  { %v27933_v33 = vsel %vm16348_vm5, %v6306_v17, %v6516_v22  ;;  %v27935_v6 = vpop.f32.mrf.mxu1 }
 0x4cc   :  { %30745 = vst [vmem:[#allocation95_spill] sm:$0xff] %v27933_v33  ;;  %v6174_v42 = vpop.xlane.xlu0 %6173  ;;  %20864 = vmatprep.mubr.msk.f32.mxu1 %vm8189_vm6, %v27935_v6 }
 0x4cd   :  { %v6268_v32 = vadd.f32 %v6267_v43, %v6174_v42  ;;  %v6388_v40 = vpop.xlane.xlu1 %6387  ;;  %v27939_v37 = vpop.f32.mrf.mxu1  ;;  %20865 = vmatmul.mubr.msk.f32.gmra.mxu1 %vm8189_vm6, %v27930_v31 }
 0x4ce   :  { %v6479_v24 = vadd.f32 %v6478_v61, %v6388_v40 }
 0x4cf   :  { %v27943_v49 = vpop.f32.mrf.mxu1 }
 0x4d0   :  { %v6391_v35 = vpop.xlane.xlu0 %6390  ;;  %20867 = vmatprep.mubr.msk.f32.mxu1 %vm8189_vm6, %v27943_v49 }
 0x4d1   :  { %v6480_v28 = vadd.f32 %v6479_v24, %v6391_v35  ;;  %v6177_v2 = vpop.xlane.xlu1 %6176  ;;  %20868 = vmatmul.mubr.msk.f32.gmra.mxu1 %vm8189_vm6, %v27939_v37 }
 0x4d2   :  { %v6269_v26 = vadd.f32 %v6268_v32, %v6177_v2 }
 0x4d4   :  { %v6180_v47 = vpop.xlane.xlu0 %6179 }
 0x4d5   :  { %v6270_v51 = vadd.f32 %v6269_v26, %v6180_v47  ;;  %v6394_v55 = vpop.xlane.xlu1 %6393 }
 0x4d6   :  { %v6481_v54 = vsel %vm6231_vm4, %v6394_v55, 0.0 }
 0x4d7   :  { %v6482_v34 = vadd.f32 %v6481_v54, %v6480_v28 }
 0x4d9   :  { %v6483_v60 = vrot.slane %v6482_v34, 4  ;;  %v6183_v41 = vpop.xlane.xlu1 %6182 }
 0x4da   :  { %v6271_v15 = vsel %vm6231_vm4, %v6183_v41, 0.0  ;;  %v27951_v46 = vpop.f32.mrf.mxu1 }
 0x4db   :  { %v6484_v36 = vadd.f32 %v6483_v60, %v6482_v34  ;;  %v6272_v25 = vadd.f32 %v6271_v15, %v6270_v51  ;;  %v6421_v13 = vpop.xlane.xlu0 %6420 }
 0x4dc   :  { %v27953_v63 = vpop.f32.mrf.mxu1 }
 0x4dd   :  { %v6485_v4 = vrot.slane %v6484_v36, 2  ;;  %v6273_v9 = vrot.slane %v6272_v25, 4  ;;  %v6418_v12 = vpop.xlane.xlu1 %6417  ;;  %20870 = vmatprep.mubr.msk.f32.mxu1 %vm8189_vm6, %v27953_v63 }
 0x4de   :  { %v6502_v21 = vadd.f32 %v6421_v13, %v6418_v12  ;;  %20871 = vmatmul.mubr.msk.f32.gmra.mxu1 %vm8189_vm6, %v27951_v46 }
 0x4df   :  { %v6486_v52 = vadd.f32 %v6485_v4, %v6484_v36  ;;  %v6274_v56 = vadd.f32 %v6273_v9, %v6272_v25  ;;  %v6210_v14 = vpop.xlane.xlu0 %6209 }
 0x4e1   :  { %v6487_v27 = vrot.slane %v6486_v52, 1  ;;  %v6275_v48 = vrot.slane %v6274_v56, 2  ;;  %v6207_v61 = vpop.xlane.xlu1 %6206  ;;  %v27959_v22 = vpop.f32.mrf.mxu1 }
 0x4e2   :  { %v6292_v17 = vadd.f32 %v6210_v14, %v6207_v61 }
 0x4e3   :  { %v6276_v59 = vadd.f32 %v6275_v48, %v6274_v56  ;;  %v27961_v43 = vpop.f32.mrf.mxu1  ;;  %v6488_v42 = vadd.f32 %v6487_v27, %v6486_v52  ;;  %v6427_v40 = vpop.xlane.xlu0 %6426 }
 0x4e4   :  { %20873 = vmatprep.mubr.msk.f32.mxu1 %vm8189_vm6, %v27961_v43 }
 0x4e5   :  { %v6277_v32 = vrot.slane %v6276_v59, 1  ;;  %20874 = vmatmul.mubr.msk.f32.gmra.mxu1 %vm8189_vm6, %v27959_v22  ;;  %v6518_v28 = vmul.f32 0.00034293553, %v6488_v42 }
 0x4e7   :  { %v6278_v24 = vadd.f32 %v6277_v32, %v6276_v59 }
 0x4e8   :  { %v6424_v35 = vpop.xlane.xlu1 %6423  ;;  %v6216_v54 = vpop.xlane.xlu0 %6215 }
 0x4e9   :  { %v6308_v2 = vmul.f32 0.00034293553, %v6278_v24  ;;  %v6503_v26 = vadd.f32 %v6502_v21, %v6424_v35 }
 0x4eb   :  { %v27968_v47 = vsel %vm16348_vm5, %v6308_v2, %v6518_v28  ;;  %v6504_v51 = vadd.f32 %v6503_v26, %v6427_v40  ;;  %v27970_v55 = vpop.f32.mrf.mxu1 }
 0x4ec   :  { %30746 = vst [vmem:[#allocation109_spill] sm:$0xff] %v27968_v47  ;;  %v6213_v34 = vpop.xlane.xlu1 %6212 }
 0x4ed   :  { %v6293_v60 = vadd.f32 %v6292_v17, %v6213_v34  ;;  %v27972_v41 = vpop.f32.mrf.mxu1  ;;  %v6433_v13 = vpop.xlane.xlu0 %6432 }
 0x4ee   :  { %20876 = vmatprep.mubr.msk.f32.mxu1 %vm8189_vm6, %v27972_v41 }
 0x4ef   :  { %v6294_v15 = vadd.f32 %v6293_v60, %v6216_v54  ;;  %20877 = vmatmul.mubr.msk.f32.gmra.mxu1 %vm8189_vm6, %v27970_v55 }
 0x4f0   :  { %v6430_v36 = vpop.xlane.xlu1 %6429 }
 0x4f1   :  { %v6505_v25 = vadd.f32 %v6504_v51, %v6430_v36  ;;  %v6222_v48 = vpop.xlane.xlu0 %6221 }
 0x4f2   :  { %v27978_v4 = vpop.f32.mrf.mxu1 }
 0x4f3   :  { %v6506_v9 = vadd.f32 %v6505_v25, %v6433_v13 }
 0x4f4   :  { %v6219_v12 = vpop.xlane.xlu1 %6218  ;;  %v27980_v21 = vpop.f32.mrf.mxu1 }
 0x4f5   :  { %v6295_v52 = vadd.f32 %v6294_v15, %v6219_v12  ;;  %20879 = vmatprep.mubr.msk.f32.mxu1 %vm8189_vm6, %v27980_v21 }
 0x4f6   :  { %20880 = vmatmul.mubr.msk.f32.gmra.mxu1 %vm8189_vm6, %v27978_v4 }
 0x4f7   :  { %v6296_v61 = vadd.f32 %v6295_v52, %v6222_v48 }
 0x4f8   :  { %v6436_v56 = vpop.xlane.xlu1 %6435 }
 0x4f9   :  { %v6507_v14 = vsel %vm6231_vm4, %v6436_v56, 0.0 }
 0x4fa   :  { %v6508_v27 = vadd.f32 %v6507_v14, %v6506_v9 }
 0x4fc   :  { %v6509_v17 = vrot.slane %v6508_v27, 4  ;;  %v6225_v59 = vpop.xlane.xlu1 %6224 }
 0x4fd   :  { %v6297_v42 = vsel %vm6231_vm4, %v6225_v59, 0.0  ;;  %v27988_v32 = vpop.f32.mrf.mxu1 }
 0x4fe   :  { %v6510_v40 = vadd.f32 %v6509_v17, %v6508_v27  ;;  %v6298_v24 = vadd.f32 %v6297_v42, %v6296_v61 }
 0x4ff   :  { %v27990_v35 = vpop.f32.mrf.mxu1 }
 0x500   :  { %v6511_v28 = vrot.slane %v6510_v40, 2  ;;  %v6299_v2 = vrot.slane %v6298_v24, 4  ;;  %20882 = vmatprep.mubr.msk.f32.mxu1 %vm8189_vm6, %v27990_v35 }
 0x501   :  { %v27994_v26 = vpop.f32.mrf.mxu1  ;;  %20883 = vmatmul.mubr.msk.f32.gmra.mxu1 %vm8189_vm6, %v27988_v32 }
 0x502   :  { %v6512_v51 = vadd.f32 %v6511_v28, %v6510_v40  ;;  %v6300_v54 = vadd.f32 %v6299_v2, %v6298_v24 }
 0x503   :  { %v27998_v34 = vpop.f32.mrf.mxu1 }
 0x504   :  { %v6513_v60 = vrot.slane %v6512_v51, 1  ;;  %v6301_v15 = vrot.slane %v6300_v54, 2  ;;  %20885 = vmatprep.mubr.msk.f32.mxu1 %vm8189_vm6, %v27998_v34 }
 0x505   :  { %20886 = vmatmul.mubr.msk.f32.gmra.mxu1 %vm8189_vm6, %v27994_v26 }
 0x506   :  { %v6302_v36 = vadd.f32 %v6301_v15, %v6300_v54  ;;  %v6514_v25 = vadd.f32 %v6513_v60, %v6512_v51  ;;  %v8117_v54 = vmul.f32 %v27850_v10, %v27850_v10  ;;  %v8118_v60 = vmul.f32 %v27848_v57, %v27848_v57 }
 0x507   :  { %v8119_v15 = vmul.f32 %v27858_v5, %v27858_v5 }
 0x508   :  { %v6303_v13 = vrot.slane %v6302_v36, 1  ;;  %v6520_v12 = vmul.f32 0.00034293553, %v6514_v25  ;;  %v8121_v25 = vmul.f32 %v27866_v39, %v27866_v39 }
 0x50a   :  { %v6304_v9 = vadd.f32 %v6303_v13, %v6302_v36  ;;  %v8120_v36 = vmul.f32 %v27854_v1, %v27854_v1  ;;  %v8122_v13 = vmul.f32 %v27864_v7, %v27864_v7 }
 0x50c   :  { %v6310_v52 = vmul.f32 0.00034293553, %v6304_v9 }
 0x50d   :  { %v28004_v56 = vpop.f32.mrf.mxu1 }
 0x50e   :  { %v28007_v14 = vsel %vm16348_vm5, %v6310_v52, %v6520_v12  ;;  %v8123_v12 = vmul.f32 %v27874_v8, %v27874_v8 }
 0x50f   :  { %30747 = vst [vmem:[#allocation110_spill] sm:$0xff] %v28007_v14  ;;  %v28009_v27 = vpop.f32.mrf.mxu1  ;;  %v8133_v14 = vmul.f32 %v27916_v23, %v27916_v23 }
 0x510   :  { %20888 = vmatprep.mubr.msk.f32.mxu1 %vm8189_vm6, %v28009_v27 }
 0x511   :  { %v28013_v48 = vpop.f32.mrf.mxu1  ;;  %20889 = vmatmul.mubr.msk.f32.gmra.mxu1 %vm8189_vm6, %v28004_v56 }
 0x513   :  { %v28017_v61 = vpop.f32.mrf.mxu1 }
 0x514   :  { %20891 = vmatprep.mubr.msk.f32.mxu1 %vm8189_vm6, %v28017_v61 }
 0x515   :  { %20892 = vmatmul.mubr.msk.f32.gmra.mxu1 %vm8189_vm6, %v28013_v48 }
 0x51e   :  { %v28023_v17 = vpop.f32.mrf.mxu1 }
 0x520   :  { %v28025_v59 = vpop.f32.mrf.mxu1 }
 0x521   :  { %20894 = vmatprep.mubr.msk.f32.mxu1 %vm8189_vm6, %v28025_v59 }
 0x522   :  { %v28029_v42 = vpop.f32.mrf.mxu1  ;;  %20895 = vmatmul.mubr.msk.f32.gmra.mxu1 %vm8189_vm6, %v28023_v17 }
 0x523   :  { %30748 = vst [vmem:[#allocation96_spill] sm:$0xff] %v28029_v42 }
 0x524   :  { %v28033_v40 = vpop.f32.mrf.mxu1 }
 0x525   :  { %30749 = vst [vmem:[#allocation97_spill] sm:$0xff] %v28033_v40  ;;  %20897 = vmatprep.mubr.msk.f32.mxu1 %vm8189_vm6, %v28033_v40 }
 0x526   :  { %20898 = vmatmul.mubr.msk.f32.gmra.mxu1 %vm8189_vm6, %v28029_v42 }
 0x52b   :  { %v28039_v24 = vpop.f32.mrf.mxu0 }
 0x52c   :  { %30750 = vst [vmem:[#allocation16_spill] sm:$0xff] %v28039_v24 }
 0x52d   :  { %v28041_v28 = vpop.f32.mrf.mxu0 }
 0x52e   :  { %30751 = vst [vmem:[#allocation5_spill] sm:$0xff] %v28041_v28  ;;  %20900 = vmatprep.mubr.msk.f32.mxu1 %vm8189_vm6, %v28041_v28 }
 0x52f   :  { %v28045_v2 = vpop.f32.mrf.mxu0  ;;  %20901 = vmatmul.mubr.msk.f32.gmra.mxu1 %vm8189_vm6, %v28039_v24 }
 0x530   :  { %30752 = vst [vmem:[#allocation106_spill] sm:$0xff] %v28045_v2 }
 0x531   :  { %v28049_v51 = vpop.f32.mrf.mxu0 }
 0x532   :  { %30753 = vst [vmem:[#allocation18_spill] sm:$0xff] %v28049_v51  ;;  %20903 = vmatprep.mubr.msk.f32.mxu1 %vm8189_vm6, %v28049_v51 }
 0x533   :  { %20904 = vmatmul.mubr.msk.f32.gmra.mxu1 %vm8189_vm6, %v28045_v2 }
 0x534   :  { %20906 = vmatprep.mubr.msk.f32.mxu1 %vm8189_vm6, %v8117_v54  ;;  %v8124_v54 = vmul.f32 %v27870_v50, %v27870_v50 }
 0x537   :  { %20907 = vmatmul.mubr.msk.f32.gmra.mxu1 %vm8189_vm6, %v8118_v60 }
 0x538   :  { %20909 = vmatprep.mubr.msk.f32.mxu1 %vm8189_vm6, %v8119_v15  ;;  %v8125_v15 = vmul.f32 %v27882_v0, %v27882_v0 }
 0x53b   :  { %20910 = vmatmul.mubr.msk.f32.gmra.mxu1 %vm8189_vm6, %v8120_v36 }
 0x53c   :  { %20912 = vmatprep.mubr.msk.f32.mxu1 %vm8189_vm6, %v8121_v25  ;;  %v8126_v25 = vmul.f32 %v27880_v53, %v27880_v53 }
 0x53d   :  { %v20836_v9 = vpop.f32.mrf.mxu1 }
 0x53f   :  { %20913 = vmatmul.mubr.msk.f32.gmra.mxu1 %vm8189_vm6, %v8122_v13  ;;  %v8616_v52 = vpop.f32.mrf.mxu1  ;;  %v8127_v13 = vmul.f32 %v27890_v3, %v27890_v3 }
 0x540   :  { %20915 = vmatprep.mubr.msk.f32.mxu1 %vm8189_vm6, %v8123_v12  ;;  %v28091_v12 = vld [vmem:[%s30087_s3] sm:$0xff] }
 0x541   :  { %v20839_v60 = vpop.f32.mrf.mxu1 }
 0x542   :  { %21015 = vmatpush3.msra.mxu0 %v20839_v60  ;;  %v28108_v60 = vld [vmem:[%s30087_s3 + $0x8] sm:$0xff] }
 0x543   :  { %20916 = vmatmul.mubr.msk.f32.gmra.mxu1 %vm8189_vm6, %v8124_v54  ;;  %v8626_v36 = vpop.f32.mrf.mxu1  ;;  %21016 = vmatprep.subr.mxu0 %v30744_v44  ;;  %v8128_v54 = vmul.f32 %v27886_v62, %v27886_v62 }
 0x544   :  { %20918 = vmatprep.mubr.msk.f32.mxu1 %vm8189_vm6, %v8125_v15  ;;  %21017 = vmatpush3.msra.mxu0 %v8626_v36  ;;  %v8131_v36 = vmul.f32 %v27906_v19, %v27906_v19 }
 0x545   :  { %21018 = vmatprep.subr.mxu0 %v30744_v44 }
 0x546   :  { %21019 = vmatpush3.msra.mxu0 %v20836_v9  ;;  %v8129_v9 = vmul.f32 %v27898_v16, %v27898_v16 }
 0x547   :  { %20919 = vmatmul.mubr.msk.f32.gmra.mxu1 %vm8189_vm6, %v8126_v25  ;;  %21020 = vmatprep.subr.mxu0 %v30744_v44  ;;  %v28123_v25 = vld [vmem:[%s30087_s3 + $0x10] sm:$0x3f] }
 0x548   :  { %20921 = vmatprep.mubr.msk.f32.mxu1 %vm8189_vm6, %v8127_v13  ;;  %21021 = vmatpush3.msra.mxu0 %v8616_v52  ;;  %v8130_v52 = vmul.f32 %v27896_v18, %v27896_v18 }
 0x549   :  { %21023 = vmatmul.mubr.msk.f32.vlgmr.msra.gmra.mxu0 %vm8189_vm6, %v28091_v12  ;;  %21031 = vmatprep.subr.mxu0 %v30744_v44 }
 0x54a   :  { %21025 = vmatprep.mubr.msk.f32.mxu0 %vm22535_vm1, %v30744_v44 }
 0x54b   :  { %20922 = vmatmul.mubr.msk.f32.gmra.mxu1 %vm8189_vm6, %v8128_v54  ;;  %v8132_v54 = vmul.f32 %v27902_v29, %v27902_v29 }
 0x54c   :  { %20924 = vmatprep.mubr.msk.f32.mxu1 %vm8189_vm6, %v8129_v9 }
 0x54d   :  { %v20842_v15 = vpop.f32.mrf.mxu1  ;;  %21026 = vmatmul.mubr.msk.f32.gmra.mxu0 %vm8189_vm6, %v28108_v60 }
 0x54e   :  { %21028 = vmatprep.mubr.msk.f32.mxu0 %vm22535_vm1, %v30744_v44 }
 0x54f   :  { %20925 = vmatmul.mubr.msk.f32.gmra.mxu1 %vm8189_vm6, %v8130_v52  ;;  %v8636_v13 = vpop.f32.mrf.mxu1 }
 0x550   :  { %20927 = vmatprep.mubr.msk.f32.mxu1 %vm8189_vm6, %v8131_v36  ;;  %v8134_v36 = vmul.f32 %v27913_v45, %v27913_v45 }
 0x551   :  { %v20845_v9 = vpop.f32.mrf.mxu1  ;;  %21029 = vmatmul.mubr.msk.f32.gmra.mxu0 %vm8189_vm6, %v28123_v25 }
 0x552   :  { %21032 = vmatpush3.msra.mxu0 %v20845_v9  ;;  %21039 = vmatprep.mubr.msk.f32.mxu0 %vm22535_vm1, %v30744_v44 }
 0x553   :  { %20928 = vmatmul.mubr.msk.f32.gmra.mxu1 %vm8189_vm6, %v8132_v54  ;;  %v8646_v52 = vpop.f32.mrf.mxu1  ;;  %21033 = vmatprep.subr.mxu0 %v30744_v44  ;;  %v8137_v54 = vmul.f32 %v27935_v6, %v27935_v6 }
 0x554   :  { %20930 = vmatprep.mubr.msk.f32.mxu1 %vm8189_vm6, %v8133_v14  ;;  %21034 = vmatpush3.msra.mxu0 %v8646_v52  ;;  %v8136_v14 = vmul.f32 %v27920_v38, %v27920_v38  ;;  %v8140_v52 = vmul.f32 %v27939_v37, %v27939_v37 }
 0x555   :  { %21035 = vmatprep.subr.mxu0 %v30744_v44 }
 0x556   :  { %21036 = vmatpush3.msra.mxu0 %v20842_v15 }
 0x557   :  { %20931 = vmatmul.mubr.msk.f32.gmra.mxu1 %vm8189_vm6, %v8134_v36  ;;  %21037 = vmatprep.subr.mxu0 %v30744_v44 }
 0x558   :  { %20933 = vmatprep.mubr.msk.f32.mxu1 %vm8189_vm6, %v8135_v11  ;;  %21038 = vmatpush3.msra.mxu0 %v8636_v13  ;;  %v8138_v11 = vmul.f32 %v27930_v31, %v27930_v31  ;;  %v8139_v13 = vmul.f32 %v27943_v49, %v27943_v49 }
 0x559   :  { %21040 = vmatmul.mubr.msk.f32.vlgmr.msra.gmra.mxu0 %vm8189_vm6, %v28091_v12  ;;  %21048 = vmatprep.subr.mxu0 %v30744_v44 }
 0x55a   :  { %21042 = vmatprep.mubr.msk.f32.mxu0 %vm22535_vm1, %v30744_v44 }
 0x55b   :  { %20934 = vmatmul.mubr.msk.f32.gmra.mxu1 %vm8189_vm6, %v8136_v14  ;;  %v8141_v14 = vmul.f32 %v27953_v63, %v27953_v63 }
 0x55c   :  { %20936 = vmatprep.mubr.msk.f32.mxu1 %vm8189_vm6, %v8137_v54 }
 0x55d   :  { %v20848_v15 = vpop.f32.mrf.mxu1  ;;  %21043 = vmatmul.mubr.msk.f32.gmra.mxu0 %vm8189_vm6, %v28108_v60 }
 0x55e   :  { %21045 = vmatprep.mubr.msk.f32.mxu0 %vm22535_vm1, %v30744_v44 }
 0x55f   :  { %20937 = vmatmul.mubr.msk.f32.gmra.mxu1 %vm8189_vm6, %v8138_v11  ;;  %v8656_v9 = vpop.f32.mrf.mxu1  ;;  %v8142_v11 = vmul.f32 %v27951_v46, %v27951_v46 }
 0x560   :  { %20939 = vmatprep.mubr.msk.f32.mxu1 %vm8189_vm6, %v8139_v13  ;;  %v8143_v13 = vmul.f32 %v27961_v43, %v27961_v43 }
 0x561   :  { %v20851_v36 = vpop.f32.mrf.mxu1  ;;  %21046 = vmatmul.mubr.msk.f32.gmra.mxu0 %vm8189_vm6, %v28123_v25 }
 0x562   :  { %21049 = vmatpush3.msra.mxu0 %v20851_v36  ;;  %21056 = vmatprep.mubr.msk.f32.mxu0 %vm22535_vm1, %v30744_v44  ;;  %v8145_v36 = vmul.f32 %v27972_v41, %v27972_v41 }
 0x563   :  { %20940 = vmatmul.mubr.msk.f32.gmra.mxu1 %vm8189_vm6, %v8140_v52  ;;  %v8666_v54 = vpop.f32.mrf.mxu1  ;;  %21050 = vmatprep.subr.mxu0 %v30744_v44  ;;  %v8144_v52 = vmul.f32 %v27959_v22, %v27959_v22 }
 0x564   :  { %20942 = vmatprep.mubr.msk.f32.mxu1 %vm8189_vm6, %v8141_v14  ;;  %21051 = vmatpush3.msra.mxu0 %v8666_v54  ;;  %v8147_v14 = vmul.f32 %v27980_v21, %v27980_v21 }
 0x565   :  { %21052 = vmatprep.subr.mxu0 %v30744_v44 }
 0x566   :  { %21053 = vmatpush3.msra.mxu0 %v20848_v15  ;;  %v8146_v15 = vmul.f32 %v27970_v55, %v27970_v55 }
 0x567   :  { %20943 = vmatmul.mubr.msk.f32.gmra.mxu1 %vm8189_vm6, %v8142_v11  ;;  %21054 = vmatprep.subr.mxu0 %v30744_v44  ;;  %v8148_v11 = vmul.f32 %v27978_v4, %v27978_v4 }
 0x568   :  { %20945 = vmatprep.mubr.msk.f32.mxu1 %vm8189_vm6, %v8143_v13  ;;  %21055 = vmatpush3.msra.mxu0 %v8656_v9 }
 0x569   :  { %21057 = vmatmul.mubr.msk.f32.vlgmr.msra.gmra.mxu0 %vm8189_vm6, %v28091_v12  ;;  %21065 = vmatprep.subr.mxu0 %v30744_v44 }
 0x56a   :  { %21059 = vmatprep.mubr.msk.f32.mxu0 %vm22535_vm1, %v30744_v44 }
 0x56b   :  { %20946 = vmatmul.mubr.msk.f32.gmra.mxu1 %vm8189_vm6, %v8144_v52  ;;  %v8149_v52 = vmul.f32 %v27990_v35, %v27990_v35 }
 0x56c   :  { %20948 = vmatprep.mubr.msk.f32.mxu1 %vm8189_vm6, %v8145_v36 }
 0x56d   :  { %v20854_v9 = vpop.f32.mrf.mxu1  ;;  %21060 = vmatmul.mubr.msk.f32.gmra.mxu0 %vm8189_vm6, %v28108_v60 }
 0x56e   :  { %21062 = vmatprep.mubr.msk.f32.mxu0 %vm22535_vm1, %v30744_v44 }
 0x56f   :  { %20949 = vmatmul.mubr.msk.f32.gmra.mxu1 %vm8189_vm6, %v8146_v15  ;;  %v8676_v54 = vpop.f32.mrf.mxu1  ;;  %v8150_v15 = vmul.f32 %v27988_v32, %v27988_v32 }
 0x570   :  { %20951 = vmatprep.mubr.msk.f32.mxu1 %vm8189_vm6, %v8147_v14  ;;  %v8151_v14 = vmul.f32 %v27998_v34, %v27998_v34 }
 0x571   :  { %v20857_v13 = vpop.f32.mrf.mxu1  ;;  %21063 = vmatmul.mubr.msk.f32.gmra.mxu0 %vm8189_vm6, %v28123_v25 }
 0x572   :  { %21066 = vmatpush3.msra.mxu0 %v20857_v13  ;;  %21073 = vmatprep.mubr.msk.f32.mxu0 %vm22535_vm1, %v30744_v44  ;;  %v8153_v13 = vmul.f32 %v28009_v27, %v28009_v27 }
 0x573   :  { %20952 = vmatmul.mubr.msk.f32.gmra.mxu1 %vm8189_vm6, %v8148_v11  ;;  %v8686_v36 = vpop.f32.mrf.mxu1  ;;  %21067 = vmatprep.subr.mxu0 %v30744_v44  ;;  %v8152_v11 = vmul.f32 %v27994_v26, %v27994_v26 }
 0x574   :  { %20954 = vmatprep.mubr.msk.f32.mxu1 %vm8189_vm6, %v8149_v52  ;;  %21068 = vmatpush3.msra.mxu0 %v8686_v36  ;;  %v8155_v52 = vmul.f32 %v28017_v61, %v28017_v61 }
 0x575   :  { %21069 = vmatprep.subr.mxu0 %v30744_v44 }
 0x576   :  { %21070 = vmatpush3.msra.mxu0 %v20854_v9  ;;  %v8154_v9 = vmul.f32 %v28004_v56, %v28004_v56 }
 0x577   :  { %20955 = vmatmul.mubr.msk.f32.gmra.mxu1 %vm8189_vm6, %v8150_v15  ;;  %21071 = vmatprep.subr.mxu0 %v30744_v44  ;;  %v8156_v15 = vmul.f32 %v28013_v48, %v28013_v48 }
 0x578   :  { %20957 = vmatprep.mubr.msk.f32.mxu1 %vm8189_vm6, %v8151_v14  ;;  %21072 = vmatpush3.msra.mxu0 %v8676_v54 }
 0x579   :  { %21074 = vmatmul.mubr.msk.f32.vlgmr.msra.gmra.mxu0 %vm8189_vm6, %v28091_v12  ;;  %21082 = vmatprep.subr.mxu0 %v30744_v44 }
 0x57a   :  { %21076 = vmatprep.mubr.msk.f32.mxu0 %vm22535_vm1, %v30744_v44 }
 0x57b   :  { %20958 = vmatmul.mubr.msk.f32.gmra.mxu1 %vm8189_vm6, %v8152_v11  ;;  %v8157_v11 = vmul.f32 %v28025_v59, %v28025_v59 }
 0x57c   :  { %20960 = vmatprep.mubr.msk.f32.mxu1 %vm8189_vm6, %v8153_v13 }
 0x57d   :  { %v20860_v54 = vpop.f32.mrf.mxu1  ;;  %21077 = vmatmul.mubr.msk.f32.gmra.mxu0 %vm8189_vm6, %v28108_v60 }
 0x57e   :  { %21079 = vmatprep.mubr.msk.f32.mxu0 %vm22535_vm1, %v30744_v44 }
 0x57f   :  { %20961 = vmatmul.mubr.msk.f32.gmra.mxu1 %vm8189_vm6, %v8154_v9  ;;  %v8696_v36 = vpop.f32.mrf.mxu1  ;;  %v8158_v9 = vmul.f32 %v28023_v17, %v28023_v17 }
 0x580   :  { %20963 = vmatprep.mubr.msk.f32.mxu1 %vm8189_vm6, %v8155_v52  ;;  %v8159_v52 = vmul.f32 %v28033_v40, %v28033_v40 }
 0x581   :  { %v20863_v14 = vpop.f32.mrf.mxu1  ;;  %21080 = vmatmul.mubr.msk.f32.gmra.mxu0 %vm8189_vm6, %v28123_v25 }
 0x582   :  { %21083 = vmatpush3.msra.mxu0 %v20863_v14  ;;  %21090 = vmatprep.mubr.msk.f32.mxu0 %vm22535_vm1, %v30744_v44  ;;  %v8161_v14 = vmul.f32 %v28041_v28, %v28041_v28 }
 0x583   :  { %20964 = vmatmul.mubr.msk.f32.gmra.mxu1 %vm8189_vm6, %v8156_v15  ;;  %v8706_v13 = vpop.f32.mrf.mxu1  ;;  %21084 = vmatprep.subr.mxu0 %v30744_v44  ;;  %v8160_v15 = vmul.f32 %v28029_v42, %v28029_v42 }
 0x584   :  { %20966 = vmatprep.mubr.msk.f32.mxu1 %vm8189_vm6, %v8157_v11  ;;  %21085 = vmatpush3.msra.mxu0 %v8706_v13  ;;  %v8163_v11 = vmul.f32 %v28049_v51, %v28049_v51 }
 0x585   :  { %21086 = vmatprep.subr.mxu0 %v30744_v44 }
 0x586   :  { %21087 = vmatpush3.msra.mxu0 %v20860_v54  ;;  %v8162_v54 = vmul.f32 %v28039_v24, %v28039_v24 }
 0x587   :  { %20967 = vmatmul.mubr.msk.f32.gmra.mxu1 %vm8189_vm6, %v8158_v9  ;;  %21088 = vmatprep.subr.mxu0 %v30744_v44  ;;  %v8164_v9 = vmul.f32 %v28045_v2, %v28045_v2 }
 0x588   :  { %20969 = vmatprep.mubr.msk.f32.mxu1 %vm8189_vm6, %v8159_v52  ;;  %21089 = vmatpush3.msra.mxu0 %v8696_v36 }
 0x589   :  { %21091 = vmatmul.mubr.msk.f32.vlgmr.msra.gmra.mxu0 %vm8189_vm6, %v28091_v12  ;;  %21099 = vmatprep.subr.mxu0 %v30744_v44 }
 0x58a   :  { %21093 = vmatprep.mubr.msk.f32.mxu0 %vm22535_vm1, %v30744_v44 }
 0x58b   :  { %20970 = vmatmul.mubr.msk.f32.gmra.mxu1 %vm8189_vm6, %v8160_v15  ;;  %v8165_v15 = vmul.f32 %v27953_v63, %v27850_v10 }
 0x58c   :  { %20972 = vmatprep.mubr.msk.f32.mxu1 %vm8189_vm6, %v8161_v14 }
 0x58d   :  { %v20866_v36 = vpop.f32.mrf.mxu1  ;;  %21094 = vmatmul.mubr.msk.f32.gmra.mxu0 %vm8189_vm6, %v28108_v60 }
 0x58e   :  { %21096 = vmatprep.mubr.msk.f32.mxu0 %vm22535_vm1, %v30744_v44 }
 0x58f   :  { %20973 = vmatmul.mubr.msk.f32.gmra.mxu1 %vm8189_vm6, %v8162_v54  ;;  %v8716_v13 = vpop.f32.mrf.mxu1  ;;  %v8166_v54 = vmul.f32 %v27951_v46, %v27848_v57 }
 0x590   :  { %20975 = vmatprep.mubr.msk.f32.mxu1 %vm8189_vm6, %v8163_v11  ;;  %v8167_v11 = vmul.f32 %v27961_v43, %v27858_v5 }
 0x591   :  { %v20869_v52 = vpop.f32.mrf.mxu1  ;;  %21097 = vmatmul.mubr.msk.f32.gmra.mxu0 %vm8189_vm6, %v28123_v25 }
 0x592   :  { %21100 = vmatpush3.msra.mxu0 %v20869_v52  ;;  %21107 = vmatprep.mubr.msk.f32.mxu0 %vm22535_vm1, %v30744_v44  ;;  %v8169_v52 = vmul.f32 %v27972_v41, %v27866_v39 }
 0x593   :  { %20976 = vmatmul.mubr.msk.f32.gmra.mxu1 %vm8189_vm6, %v8164_v9  ;;  %v8726_v14 = vpop.f32.mrf.mxu1  ;;  %21101 = vmatprep.subr.mxu0 %v30744_v44  ;;  %v8168_v9 = vmul.f32 %v27959_v22, %v27854_v1 }
 0x594   :  { %20978 = vmatprep.mubr.msk.f32.mxu1 %vm8189_vm6, %v8165_v15  ;;  %21102 = vmatpush3.msra.mxu0 %v8726_v14  ;;  %v8172_v14 = vmul.f32 %v27978_v4, %v27870_v50 }
 0x595   :  { %21103 = vmatprep.subr.mxu0 %v30744_v44 }
 0x596   :  { %21104 = vmatpush3.msra.mxu0 %v20866_v36  ;;  %v8170_v36 = vmul.f32 %v27970_v55, %v27864_v7 }
 0x597   :  { %20979 = vmatmul.mubr.msk.f32.gmra.mxu1 %vm8189_vm6, %v8166_v54  ;;  %21105 = vmatprep.subr.mxu0 %v30744_v44 }
 0x598   :  { %20981 = vmatprep.mubr.msk.f32.mxu1 %vm8189_vm6, %v8167_v11  ;;  %21106 = vmatpush3.msra.mxu0 %v8716_v13  ;;  %v8171_v13 = vmul.f32 %v27980_v21, %v27874_v8  ;;  %v8173_v11 = vmul.f32 %v27990_v35, %v27882_v0 }
 0x599   :  { %21108 = vmatmul.mubr.msk.f32.vlgmr.msra.gmra.mxu0 %vm8189_vm6, %v28091_v12  ;;  %21116 = vmatprep.subr.mxu0 %v30744_v44 }
 0x59a   :  { %21110 = vmatprep.mubr.msk.f32.mxu0 %vm22535_vm1, %v30744_v44 }
 0x59b   :  { %20982 = vmatmul.mubr.msk.f32.gmra.mxu1 %vm8189_vm6, %v8168_v9  ;;  %v8174_v9 = vmul.f32 %v27988_v32, %v27880_v53 }
 0x59c   :  { %20984 = vmatprep.mubr.msk.f32.mxu1 %vm8189_vm6, %v8169_v52 }
 0x59d   :  { %21111 = vmatmul.mubr.msk.f32.gmra.mxu0 %vm8189_vm6, %v28108_v60 }
 0x59e   :  { %v20872_v15 = vpop.f32.mrf.mxu1  ;;  %21113 = vmatprep.mubr.msk.f32.mxu0 %vm22535_vm1, %v30744_v44 }
 0x59f   :  { %20985 = vmatmul.mubr.msk.f32.gmra.mxu1 %vm8189_vm6, %v8170_v36  ;;  %v8175_v36 = vmul.f32 %v27998_v34, %v27890_v3 }
 0x5a0   :  { %20987 = vmatprep.mubr.msk.f32.mxu1 %vm8189_vm6, %v8171_v13  ;;  %v8736_v54 = vpop.f32.mrf.mxu1 }
 0x5a1   :  { %21114 = vmatmul.mubr.msk.f32.gmra.mxu0 %vm8189_vm6, %v28123_v25 }
 0x5a2   :  { %21124 = vmatprep.mubr.msk.f32.mxu0 %vm22535_vm1, %v30744_v44 }
 0x5a3   :  { %20988 = vmatmul.mubr.msk.f32.gmra.mxu1 %vm8189_vm6, %v8172_v14  ;;  %v8176_v14 = vmul.f32 %v27994_v26, %v27886_v62 }
 0x5a4   :  { %20990 = vmatprep.mubr.msk.f32.mxu1 %vm8189_vm6, %v8173_v11  ;;  %v8177_v11 = vmul.f32 %v28009_v27, %v27898_v16 }
 0x5a5   :  { %v20875_v52 = vpop.f32.mrf.mxu1 }
 0x5a6   :  { %21117 = vmatpush3.msra.mxu0 %v20875_v52  ;;  %v8179_v52 = vmul.f32 %v28017_v61, %v27906_v19 }
 0x5a7   :  { %20991 = vmatmul.mubr.msk.f32.gmra.mxu1 %vm8189_vm6, %v8174_v9  ;;  %v8746_v13 = vpop.f32.mrf.mxu1  ;;  %21118 = vmatprep.subr.mxu0 %v30744_v44  ;;  %v8178_v9 = vmul.f32 %v28004_v56, %v27896_v18 }
 0x5a8   :  { %20993 = vmatprep.mubr.msk.f32.mxu1 %vm8189_vm6, %v8175_v36  ;;  %21119 = vmatpush3.msra.mxu0 %v8746_v13  ;;  %v8181_v36 = vmul.f32 %v28025_v59, %v27916_v23 }
 0x5a9   :  { %21120 = vmatprep.subr.mxu0 %v30744_v44 }
 0x5aa   :  { %21121 = vmatpush3.msra.mxu0 %v20872_v15 }
 0x5ab   :  { %20994 = vmatmul.mubr.msk.f32.gmra.mxu1 %vm8189_vm6, %v8176_v14  ;;  %21122 = vmatprep.subr.mxu0 %v30744_v44  ;;  %v8182_v14 = vmul.f32 %v28023_v17, %v27913_v45 }
 0x5ac   :  { %20996 = vmatprep.mubr.msk.f32.mxu1 %vm8189_vm6, %v8177_v11  ;;  %21123 = vmatpush3.msra.mxu0 %v8736_v54  ;;  %v8180_v54 = vmul.f32 %v28013_v48, %v27902_v29  ;;  %v8183_v11 = vmul.f32 %v28033_v40, %v27924_v58 }
 0x5ad   :  { %21125 = vmatmul.mubr.msk.f32.vlgmr.msra.gmra.mxu0 %vm8189_vm6, %v28091_v12  ;;  %21133 = vmatprep.subr.mxu0 %v30744_v44 }
 0x5ae   :  { %21127 = vmatprep.mubr.msk.f32.mxu0 %vm22535_vm1, %v30744_v44 }
 0x5af   :  { %20997 = vmatmul.mubr.msk.f32.gmra.mxu1 %vm8189_vm6, %v8178_v9  ;;  %v20878_v15 = vpop.f32.mrf.mxu1 }
 0x5b0   :  { %20999 = vmatprep.mubr.msk.f32.mxu1 %vm8189_vm6, %v8179_v52 }
 0x5b1   :  { %21128 = vmatmul.mubr.msk.f32.gmra.mxu0 %vm8189_vm6, %v28108_v60  ;;  %v8756_v13 = vpop.f32.mrf.mxu1 }
 0x5b2   :  { %21130 = vmatprep.mubr.msk.f32.mxu0 %vm22535_vm1, %v30744_v44 }
 0x5b3   :  { %21000 = vmatmul.mubr.msk.f32.gmra.mxu1 %vm8189_vm6, %v8180_v54  ;;  %v8184_v54 = vmul.f32 %v28029_v42, %v27920_v38 }
 0x5b4   :  { %21002 = vmatprep.mubr.msk.f32.mxu1 %vm8189_vm6, %v8181_v36  ;;  %v8185_v36 = vmul.f32 %v28041_v28, %v27935_v6 }
 0x5b5   :  { %21131 = vmatmul.mubr.msk.f32.gmra.mxu0 %vm8189_vm6, %v28123_v25 }
 0x5b6   :  { %v20881_v9 = vpop.f32.mrf.mxu1  ;;  %21141 = vmatprep.mubr.msk.f32.mxu0 %vm22535_vm1, %v30744_v44 }
 0x5b7   :  { %21003 = vmatmul.mubr.msk.f32.gmra.mxu1 %vm8189_vm6, %v8182_v14  ;;  %21134 = vmatpush3.msra.mxu0 %v20881_v9  ;;  %v8186_v14 = vmul.f32 %v28039_v24, %v27930_v31 }
 0x5b8   :  { %21005 = vmatprep.mubr.msk.f32.mxu1 %vm8189_vm6, %v8183_v11  ;;  %v8766_v52 = vpop.f32.mrf.mxu1  ;;  %21135 = vmatprep.subr.mxu0 %v30744_v44  ;;  %v8187_v11 = vmul.f32 %v28049_v51, %v27943_v49 }
 0x5b9   :  { %21136 = vmatpush3.msra.mxu0 %v8766_v52 }
 0x5ba   :  { %21137 = vmatprep.subr.mxu0 %v30744_v44 }
 0x5bb   :  { %21006 = vmatmul.mubr.msk.f32.gmra.mxu1 %vm8189_vm6, %v8184_v54  ;;  %21138 = vmatpush3.msra.mxu0 %v20878_v15  ;;  %v8188_v15 = vmul.f32 %v28045_v2, %v27939_v37 }
 0x5bc   :  { %21008 = vmatprep.mubr.msk.f32.mxu1 %vm8189_vm6, %v8185_v36  ;;  %21139 = vmatprep.subr.mxu0 %v30744_v44 }
 0x5bd   :  { %21140 = vmatpush3.msra.mxu0 %v8756_v13 }
 0x5be   :  { %21142 = vmatmul.mubr.msk.f32.vlgmr.msra.gmra.mxu0 %vm8189_vm6, %v28091_v12  ;;  %21150 = vmatprep.subr.mxu0 %v30744_v44 }
 0x5bf   :  { %21009 = vmatmul.mubr.msk.f32.gmra.mxu1 %vm8189_vm6, %v8186_v14  ;;  %21144 = vmatprep.mubr.msk.f32.mxu0 %vm22535_vm1, %v30744_v44 }
 0x5c0   :  { %21011 = vmatprep.mubr.msk.f32.mxu1 %vm8189_vm6, %v8187_v11 }
 0x5c1   :  { %v20884_v9 = vpop.f32.mrf.mxu1 }
 0x5c2   :  { %21145 = vmatmul.mubr.msk.f32.gmra.mxu0 %vm8189_vm6, %v28108_v60 }
 0x5c3   :  { %21012 = vmatmul.mubr.msk.f32.gmra.mxu1 %vm8189_vm6, %v8188_v15  ;;  %v8776_v13 = vpop.f32.mrf.mxu1  ;;  %21147 = vmatprep.mubr.msk.f32.mxu0 %vm22535_vm1, %v30744_v44 }
 0x5c4   :  { %21362 = vmatprep.mubr.msk.f32.mxu1 %vm22535_vm1, %v30744_v44 }
 0x5c5   :  { %v20887_v52 = vpop.f32.mrf.mxu1 }
 0x5c6   :  { %21151 = vmatpush3.msra.mxu0 %v20887_v52 }
 0x5c7   :  { %v8786_v54 = vpop.f32.mrf.mxu1  ;;  %21152 = vmatprep.subr.mxu0 %v30744_v44  ;;  %21148 = vmatmul.mubr.msk.f32.gmra.mxu0 %vm8189_vm6, %v28123_v25 }
 0x5c8   :  { %21153 = vmatpush3.msra.mxu0 %v8786_v54  ;;  %21158 = vmatprep.mubr.msk.f32.mxu0 %vm22535_vm1, %v30744_v44 }
 0x5c9   :  { %21154 = vmatprep.subr.mxu0 %v30744_v44 }
 0x5ca   :  { %21155 = vmatpush3.msra.mxu0 %v20884_v9 }
 0x5cb   :  { %21156 = vmatprep.subr.mxu0 %v30744_v44 }
 0x5cc   :  { %21157 = vmatpush3.msra.mxu0 %v8776_v13 }
 0x5cd   :  { %21159 = vmatmul.mubr.msk.f32.vlgmr.msra.gmra.mxu0 %vm8189_vm6, %v28091_v12  ;;  %21167 = vmatprep.subr.mxu0 %v30744_v44 }
 0x5ce   :  { %21161 = vmatprep.mubr.msk.f32.mxu0 %vm22535_vm1, %v30744_v44 }
 0x5d1   :  { %v20890_v36 = vpop.f32.mrf.mxu1  ;;  %21162 = vmatmul.mubr.msk.f32.gmra.mxu0 %vm8189_vm6, %v28108_v60 }
 0x5d2   :  { %21164 = vmatprep.mubr.msk.f32.mxu0 %vm22535_vm1, %v30744_v44 }
 0x5d3   :  { %v8796_v14 = vpop.f32.mrf.mxu1 }
 0x5d5   :  { %v20893_v11 = vpop.f32.mrf.mxu1  ;;  %21165 = vmatmul.mubr.msk.f32.gmra.mxu0 %vm8189_vm6, %v28123_v25 }
 0x5d6   :  { %21168 = vmatpush3.msra.mxu0 %v20893_v11  ;;  %21175 = vmatprep.mubr.msk.f32.mxu0 %vm22535_vm1, %v30744_v44 }
 0x5d7   :  { %v8806_v15 = vpop.f32.mrf.mxu1  ;;  %21169 = vmatprep.subr.mxu0 %v30744_v44 }
 0x5d8   :  { %21170 = vmatpush3.msra.mxu0 %v8806_v15 }
 0x5d9   :  { %21171 = vmatprep.subr.mxu0 %v30744_v44 }
 0x5da   :  { %21172 = vmatpush3.msra.mxu0 %v20890_v36 }
 0x5db   :  { %21173 = vmatprep.subr.mxu0 %v30744_v44 }
 0x5dc   :  { %21174 = vmatpush3.msra.mxu0 %v8796_v14 }
 0x5dd   :  { %21176 = vmatmul.mubr.msk.f32.vlgmr.msra.gmra.mxu0 %vm8189_vm6, %v28091_v12  ;;  %21184 = vmatprep.subr.mxu0 %v30744_v44 }
 0x5de   :  { %21178 = vmatprep.mubr.msk.f32.mxu0 %vm22535_vm1, %v30744_v44 }
 0x5e1   :  { %21179 = vmatmul.mubr.msk.f32.gmra.mxu0 %vm8189_vm6, %v28108_v60 }
 0x5e2   :  { %v20896_v9 = vpop.f32.mrf.mxu1  ;;  %21181 = vmatprep.mubr.msk.f32.mxu0 %vm22535_vm1, %v30744_v44 }
 0x5e4   :  { %v8816_v13 = vpop.f32.mrf.mxu1 }
 0x5e5   :  { %21182 = vmatmul.mubr.msk.f32.gmra.mxu0 %vm8189_vm6, %v28123_v25 }
 0x5e6   :  { %v20899_v52 = vpop.f32.mrf.mxu1  ;;  %21192 = vmatprep.mubr.msk.f32.mxu0 %vm22535_vm1, %v30744_v44 }
 0x5e7   :  { %21185 = vmatpush3.msra.mxu0 %v20899_v52 }
 0x5e8   :  { %v8826_v54 = vpop.f32.mrf.mxu1  ;;  %21186 = vmatprep.subr.mxu0 %v30744_v44 }
 0x5e9   :  { %21187 = vmatpush3.msra.mxu0 %v8826_v54 }
 0x5ea   :  { %21188 = vmatprep.subr.mxu0 %v30744_v44 }
 0x5eb   :  { %21189 = vmatpush3.msra.mxu0 %v20896_v9 }
 0x5ec   :  { %21190 = vmatprep.subr.mxu0 %v30744_v44 }
 0x5ed   :  { %21191 = vmatpush3.msra.mxu0 %v8816_v13 }
 0x5ee   :  { %21193 = vmatmul.mubr.msk.f32.vlgmr.msra.gmra.mxu0 %vm8189_vm6, %v28091_v12  ;;  %21201 = vmatprep.subr.mxu0 %v30744_v44 }
 0x5ef   :  { %v20902_v36 = vpop.f32.mrf.mxu1  ;;  %21195 = vmatprep.mubr.msk.f32.mxu0 %vm22535_vm1, %v30744_v44 }
 0x5f1   :  { %v8836_v14 = vpop.f32.mrf.mxu1 }
 0x5f2   :  { %21196 = vmatmul.mubr.msk.f32.gmra.mxu0 %vm8189_vm6, %v28108_v60 }
 0x5f3   :  { %v20905_v11 = vpop.f32.mrf.mxu1  ;;  %21198 = vmatprep.mubr.msk.f32.mxu0 %vm22535_vm1, %v30744_v44 }
 0x5f4   :  { %21202 = vmatpush3.msra.mxu0 %v20905_v11 }
 0x5f5   :  { %v8846_v15 = vpop.f32.mrf.mxu1  ;;  %21203 = vmatprep.subr.mxu0 %v30744_v44 }
 0x5f6   :  { %21204 = vmatpush3.msra.mxu0 %v8846_v15 }
 0x5f7   :  { %v20908_v9 = vpop.f32.mrf.mxu1  ;;  %21199 = vmatmul.mubr.msk.f32.gmra.mxu0 %vm8189_vm6, %v28123_v25  ;;  %21205 = vmatprep.subr.mxu0 %v30744_v44 }
 0x5f8   :  { %21206 = vmatpush3.msra.mxu0 %v20902_v36  ;;  %21209 = vmatprep.mubr.msk.f32.mxu0 %vm22535_vm1, %v30744_v44 }
 0x5f9   :  { %v8856_v13 = vpop.f32.mrf.mxu1  ;;  %21207 = vmatprep.subr.mxu0 %v30744_v44 }
 0x5fa   :  { %21208 = vmatpush3.msra.mxu0 %v8836_v14 }
 0x5fb   :  { %v20911_v52 = vpop.f32.mrf.mxu1  ;;  %21210 = vmatmul.mubr.msk.f32.vlgmr.msra.gmra.mxu0 %vm8189_vm6, %v28091_v12  ;;  %21218 = vmatprep.subr.mxu0 %v30744_v44 }
 0x5fc   :  { %21212 = vmatprep.mubr.msk.f32.mxu0 %vm22535_vm1, %v30744_v44  ;;  %21219 = vmatpush3.msra.mxu0 %v20911_v52 }
 0x5fd   :  { %v8866_v54 = vpop.f32.mrf.mxu1  ;;  %21220 = vmatprep.subr.mxu0 %v30744_v44 }
 0x5fe   :  { %21221 = vmatpush3.msra.mxu0 %v8866_v54 }
 0x5ff   :  { %v20914_v36 = vpop.f32.mrf.mxu1  ;;  %21213 = vmatmul.mubr.msk.f32.gmra.mxu0 %vm8189_vm6, %v28108_v60  ;;  %21222 = vmatprep.subr.mxu0 %v30744_v44 }
 0x600   :  { %21215 = vmatprep.mubr.msk.f32.mxu0 %vm22535_vm1, %v30744_v44  ;;  %21223 = vmatpush3.msra.mxu0 %v20908_v9 }
 0x601   :  { %v8876_v14 = vpop.f32.mrf.mxu1  ;;  %21224 = vmatprep.subr.mxu0 %v30744_v44 }
 0x602   :  { %21225 = vmatpush3.msra.mxu0 %v8856_v13 }
 0x603   :  { %v20917_v11 = vpop.f32.mrf.mxu1  ;;  %21216 = vmatmul.mubr.msk.f32.gmra.mxu0 %vm8189_vm6, %v28123_v25  ;;  %21235 = vmatprep.subr.mxu0 %v30744_v44 }
 0x604   :  { %21226 = vmatprep.mubr.msk.f32.mxu0 %vm22535_vm1, %v30744_v44 }
 0x605   :  { %v8886_v15 = vpop.f32.mrf.mxu1 }
 0x607   :  { %v20920_v52 = vpop.f32.mrf.mxu1  ;;  %21227 = vmatmul.mubr.msk.f32.vlgmr.msra.gmra.mxu0 %vm8189_vm6, %v28091_v12 }
 0x608   :  { %21229 = vmatprep.mubr.msk.f32.mxu0 %vm22535_vm1, %v30744_v44  ;;  %21236 = vmatpush3.msra.mxu0 %v20917_v11 }
 0x609   :  { %v8896_v9 = vpop.f32.mrf.mxu1  ;;  %21237 = vmatprep.subr.mxu0 %v30744_v44  ;;  %v28489_v13 = vpop.f32.mrf.mxu0 }
 0x60a   :  { %30754 = vst [vmem:[#allocation67_spill] sm:$0xff] %v28489_v13  ;;  %21238 = vmatpush3.msra.mxu0 %v8886_v15 }
 0x60b   :  { %v20923_v54 = vpop.f32.mrf.mxu1  ;;  %21230 = vmatmul.mubr.msk.f32.gmra.mxu0 %vm8189_vm6, %v28108_v60  ;;  %21239 = vmatprep.subr.mxu0 %v30744_v44  ;;  %v21024_v47 = vpop.f32.mrf.mxu0 }
 0x60c   :  { %21232 = vmatprep.mubr.msk.f32.mxu0 %vm22535_vm1, %v30744_v44  ;;  %21240 = vmatpush3.msra.mxu0 %v20914_v36 }
 0x60d   :  { %v8906_v33 = vpop.f32.mrf.mxu1  ;;  %21241 = vmatprep.subr.mxu0 %v30744_v44  ;;  %v28497_v11 = vpop.f32.mrf.mxu0 }
 0x60e   :  { %30755 = vst [vmem:[#allocation2_spill] sm:$0xff] %v28497_v11  ;;  %21242 = vmatpush3.msra.mxu0 %v8876_v14 }
 0x60f   :  { %v20926_v20 = vpop.f32.mrf.mxu1  ;;  %21233 = vmatmul.mubr.msk.f32.gmra.mxu0 %vm8189_vm6, %v28123_v25  ;;  %21252 = vmatprep.subr.mxu0 %v30744_v44  ;;  %v21027_v15 = vpop.f32.mrf.mxu0 }
 0x610   :  { %21243 = vmatprep.mubr.msk.f32.mxu0 %vm22535_vm1, %v30744_v44 }
 0x611   :  { %v8916_v47 = vpop.f32.mrf.mxu1  ;;  %v28504_v30 = vpop.f32.mrf.mxu0 }
 0x612   :  { %30756 = vst [vmem:[#allocation20_spill] sm:$0xff] %v28504_v30 }
 0x613   :  { %v20929_v36 = vpop.f32.mrf.mxu1  ;;  %21244 = vmatmul.mubr.msk.f32.vlgmr.msra.gmra.mxu0 %vm8189_vm6, %v28091_v12  ;;  %v21030_v13 = vpop.f32.mrf.mxu0 }
 0x614   :  { %21246 = vmatprep.mubr.msk.f32.mxu0 %vm22535_vm1, %v30744_v44  ;;  %21253 = vmatpush3.msra.mxu0 %v20923_v54 }
 0x615   :  { %v8926_v14 = vpop.f32.mrf.mxu1  ;;  %21254 = vmatprep.subr.mxu0 %v30744_v44 }
 0x616   :  { %21255 = vmatpush3.msra.mxu0 %v8906_v33 }
 0x617   :  { %v20932_v15 = vpop.f32.mrf.mxu1  ;;  %21247 = vmatmul.mubr.msk.f32.gmra.mxu0 %vm8189_vm6, %v28108_v60  ;;  %21256 = vmatprep.subr.mxu0 %v30744_v44 }
 0x618   :  { %21249 = vmatprep.mubr.msk.f32.mxu0 %vm22535_vm1, %v30744_v44  ;;  %21257 = vmatpush3.msra.mxu0 %v20920_v52 }
 0x619   :  { %v8936_v30 = vpop.f32.mrf.mxu1  ;;  %21258 = vmatprep.subr.mxu0 %v30744_v44  ;;  %v28517_v13 = vpop.f32.mrf.mxu0 }
 0x61a   :  { %30757 = vst [vmem:[#allocation68_spill] sm:$0xff] %v28517_v13  ;;  %21259 = vmatpush3.msra.mxu0 %v8896_v9 }
 0x61b   :  { %v20935_v54 = vpop.f32.mrf.mxu1  ;;  %21250 = vmatmul.mubr.msk.f32.gmra.mxu0 %vm8189_vm6, %v28123_v25  ;;  %21269 = vmatprep.subr.mxu0 %v30744_v44  ;;  %v21041_v33 = vpop.f32.mrf.mxu0 }
 0x61c   :  { %21260 = vmatprep.mubr.msk.f32.mxu0 %vm22535_vm1, %v30744_v44 }
 0x61d   :  { %v8946_v11 = vpop.f32.mrf.mxu1  ;;  %v28524_v2 = vpop.f32.mrf.mxu0 }
 0x61e   :  { %30758 = vst [vmem:[#allocation4_spill] sm:$0xff] %v28524_v2 }
 0x61f   :  { %v20938_v52 = vpop.f32.mrf.mxu1  ;;  %21261 = vmatmul.mubr.msk.f32.vlgmr.msra.gmra.mxu0 %vm8189_vm6, %v28091_v12  ;;  %v21044_v51 = vpop.f32.mrf.mxu0 }
 0x620   :  { %21263 = vmatprep.mubr.msk.f32.mxu0 %vm22535_vm1, %v30744_v44  ;;  %21270 = vmatpush3.msra.mxu0 %v20929_v36 }
 0x621   :  { %v8956_v9 = vpop.f32.mrf.mxu1  ;;  %21271 = vmatprep.subr.mxu0 %v30744_v44  ;;  %v28531_v13 = vpop.f32.mrf.mxu0 }
 0x622   :  { %30759 = vst [vmem:[#allocation22_spill] sm:$0xff] %v28531_v13  ;;  %21272 = vmatpush3.msra.mxu0 %v8926_v14 }
 0x623   :  { %v20941_v33 = vpop.f32.mrf.mxu1  ;;  %21264 = vmatmul.mubr.msk.f32.gmra.mxu0 %vm8189_vm6, %v28108_v60  ;;  %21273 = vmatprep.subr.mxu0 %v30744_v44  ;;  %v21047_v2 = vpop.f32.mrf.mxu0 }
 0x624   :  { %21266 = vmatprep.mubr.msk.f32.mxu0 %vm22535_vm1, %v30744_v44  ;;  %21274 = vmatpush3.msra.mxu0 %v20926_v20 }
 0x625   :  { %v8966_v51 = vpop.f32.mrf.mxu1  ;;  %21275 = vmatprep.subr.mxu0 %v30744_v44 }
 0x626   :  { %21276 = vmatpush3.msra.mxu0 %v8916_v47 }
 0x627   :  { %v28539_v36 = vpop.f32.mrf.mxu1  ;;  %21267 = vmatmul.mubr.msk.f32.gmra.mxu0 %vm8189_vm6, %v28123_v25  ;;  %21286 = vmatprep.subr.mxu0 %v30744_v44 }
 0x628   :  { %21277 = vmatprep.mubr.msk.f32.mxu0 %vm22535_vm1, %v30744_v44 }
 0x629   :  { %v28546_v14 = vpop.f32.mrf.mxu1  ;;  %v28548_v2 = vpop.f32.mrf.mxu0 }
 0x62a   :  { %30760 = vst [vmem:[#allocation69_spill] sm:$0xff] %v28548_v2 }
 0x62b   :  { %v20947_v13 = vpop.f32.mrf.mxu1  ;;  %21278 = vmatmul.mubr.msk.f32.vlgmr.msra.gmra.mxu0 %vm8189_vm6, %v28091_v12  ;;  %v21058_v20 = vpop.f32.mrf.mxu0 }
 0x62c   :  { %21280 = vmatprep.mubr.msk.f32.mxu0 %vm22535_vm1, %v30744_v44  ;;  %21287 = vmatpush3.msra.mxu0 %v20935_v54 }
 0x62d   :  { %v8986_v47 = vpop.f32.mrf.mxu1  ;;  %21288 = vmatprep.subr.mxu0 %v30744_v44  ;;  %v28555_v24 = vpop.f32.mrf.mxu0 }
 0x62e   :  { %30761 = vst [vmem:[#allocation7_spill] sm:$0xff] %v28555_v24  ;;  %21289 = vmatpush3.msra.mxu0 %v8946_v11 }
 0x62f   :  { %v28557_v28 = vpop.f32.mrf.mxu1  ;;  %21281 = vmatmul.mubr.msk.f32.gmra.mxu0 %vm8189_vm6, %v28108_v60  ;;  %21290 = vmatprep.subr.mxu0 %v30744_v44  ;;  %v21061_v2 = vpop.f32.mrf.mxu0 }
 0x630   :  { %21283 = vmatprep.mubr.msk.f32.mxu0 %vm22535_vm1, %v30744_v44  ;;  %21291 = vmatpush3.msra.mxu0 %v20932_v15 }
 0x631   :  { %v28564_v20 = vpop.f32.mrf.mxu1  ;;  %21292 = vmatprep.subr.mxu0 %v30744_v44  ;;  %v28567_v54 = vpop.f32.mrf.mxu0 }
 0x632   :  { %30762 = vst [vmem:[#allocation3_spill] sm:$0xff] %v28567_v54  ;;  %21293 = vmatpush3.msra.mxu0 %v8936_v30 }
 0x633   :  { %v28569_v11 = vpop.f32.mrf.mxu1  ;;  %21284 = vmatmul.mubr.msk.f32.gmra.mxu0 %vm8189_vm6, %v28123_v25  ;;  %21303 = vmatprep.subr.mxu0 %v30744_v44  ;;  %v21064_v24 = vpop.f32.mrf.mxu0 }
 0x634   :  { %21294 = vmatprep.mubr.msk.f32.mxu0 %vm22535_vm1, %v30744_v44 }
 0x635   :  { %v28576_v2 = vpop.f32.mrf.mxu1 }
 0x637   :  { %v20956_v15 = vpop.f32.mrf.mxu1  ;;  %21295 = vmatmul.mubr.msk.f32.vlgmr.msra.gmra.mxu0 %vm8189_vm6, %v28091_v12 }
 0x638   :  { %21297 = vmatprep.mubr.msk.f32.mxu0 %vm22535_vm1, %v30744_v44  ;;  %21304 = vmatpush3.msra.mxu0 %v20941_v33 }
 0x639   :  { %v9016_v30 = vpop.f32.mrf.mxu1  ;;  %21305 = vmatprep.subr.mxu0 %v30744_v44  ;;  %v28583_v54 = vpop.f32.mrf.mxu0 }
 0x63a   :  { %30763 = vst [vmem:[#allocation10_spill] sm:$0xff] %v28583_v54  ;;  %21306 = vmatpush3.msra.mxu0 %v8966_v51 }
 0x63b   :  { %v20959_v24 = vpop.f32.mrf.mxu1  ;;  %21298 = vmatmul.mubr.msk.f32.gmra.mxu0 %vm8189_vm6, %v28108_v60  ;;  %21307 = vmatprep.subr.mxu0 %v30744_v44  ;;  %v21075_v42 = vpop.f32.mrf.mxu0 }
 0x63c   :  { %21300 = vmatprep.mubr.msk.f32.mxu0 %vm22535_vm1, %v30744_v44  ;;  %21308 = vmatpush3.msra.mxu0 %v20938_v52 }
 0x63d   :  { %v9026_v40 = vpop.f32.mrf.mxu1  ;;  %21309 = vmatprep.subr.mxu0 %v30744_v44  ;;  %21355 = vmatpush3.msra.mxu1 %v20959_v24  ;;  %v28591_v33 = vpop.f32.mrf.mxu0 }
 0x63e   :  { %30764 = vst [vmem:[#allocation64_spill] sm:$0xff] %v28591_v33  ;;  %21310 = vmatpush3.msra.mxu0 %v8956_v9  ;;  %21356 = vmatprep.subr.mxu1 %v30744_v44 }
 0x63f   :  { %v28594_v51 = vpop.f32.mrf.mxu1  ;;  %21301 = vmatmul.mubr.msk.f32.gmra.mxu0 %vm8189_vm6, %v28123_v25  ;;  %21357 = vmatpush3.msra.mxu1 %v9026_v40  ;;  %v21078_v42 = vpop.f32.mrf.mxu0 }
 0x640   :  { %21311 = vmatprep.mubr.msk.f32.mxu0 %vm22535_vm1, %v30744_v44  ;;  %21320 = vmatprep.subr.mxu0 %v30744_v44 }
 0x641   :  { %v28601_v52 = vpop.f32.mrf.mxu1  ;;  %21358 = vmatprep.subr.mxu1 %v30744_v44  ;;  %v28604_v24 = vpop.f32.mrf.mxu0 }
 0x642   :  { %30765 = vst [vmem:[#allocation23_spill] sm:$0xff] %v28604_v24  ;;  %21359 = vmatpush3.msra.mxu1 %v20956_v15 }
 0x643   :  { %v28606_v9 = vpop.f32.mrf.mxu1  ;;  %21312 = vmatmul.mubr.msk.f32.vlgmr.msra.gmra.mxu0 %vm8189_vm6, %v28091_v12  ;;  %21360 = vmatprep.subr.mxu1 %v30744_v44  ;;  %v21081_v40 = vpop.f32.mrf.mxu0 }
 0x644   :  { %21314 = vmatprep.mubr.msk.f32.mxu0 %vm22535_vm1, %v30744_v44  ;;  %21321 = vmatpush3.msra.mxu0 %v20947_v13  ;;  %v28648_v40 = vld [vmem:[%s30087_s3] sm:$0xff] }
 0x645   :  { %v28613_v42 = vpop.f32.mrf.mxu1  ;;  %21322 = vmatprep.subr.mxu0 %v30744_v44  ;;  %21361 = vmatpush3.msra.mxu1 %v9016_v30 }
 0x646   :  { %21323 = vmatpush3.msra.mxu0 %v8986_v47  ;;  %21363 = vmatmul.mubr.msk.f32.vlgmr.msra.gmra.mxu1 %vm8189_vm6, %v28091_v12 }
 0x647   :  { %v20968_v15 = vpop.f32.mrf.mxu1  ;;  %21315 = vmatmul.mubr.msk.f32.gmra.mxu0 %vm8189_vm6, %v28108_v60  ;;  %21324 = vmatprep.subr.mxu0 %v30744_v44 }
 0x648   :  { %21317 = vmatprep.mubr.msk.f32.mxu0 %vm22535_vm1, %v30744_v44  ;;  %21325 = vmatpush3.msra.mxu0 %v28539_v36 }
 0x649   :  { %v9056_v13 = vpop.f32.mrf.mxu1  ;;  %21326 = vmatprep.subr.mxu0 %v30744_v44  ;;  %21365 = vmatprep.mubr.msk.f32.mxu1 %vm22535_vm1, %v30744_v44  ;;  %v28627_v47 = vpop.f32.mrf.mxu0 }
 0x64a   :  { %30766 = vst [vmem:[#allocation71_spill] sm:$0xff] %v28627_v47  ;;  %21327 = vmatpush3.msra.mxu0 %v28546_v14  ;;  %21366 = vmatmul.mubr.msk.f32.gmra.mxu1 %vm8189_vm6, %v28108_v60 }
 0x64b   :  { %v20971_v12 = vpop.f32.mrf.mxu1  ;;  %21318 = vmatmul.mubr.msk.f32.gmra.mxu0 %vm8189_vm6, %v28123_v25  ;;  %21388 = vmatprep.subr.mxu1 %v30744_v44  ;;  %v21092_v36 = vpop.f32.mrf.mxu0 }
 0x64c   :  { %21328 = vmatprep.mubr.msk.f32.mxu0 %vm22535_vm1, %v30744_v44  ;;  %21389 = vmatpush3.msra.mxu1 %v20971_v12 }
 0x64d   :  { %v9066_v30 = vpop.f32.mrf.mxu1  ;;  %21390 = vmatprep.subr.mxu1 %v30744_v44  ;;  %21368 = vmatprep.mubr.msk.f32.mxu1 %vm22535_vm1, %v30744_v44  ;;  %v28640_v14 = vpop.f32.mrf.mxu0 }
 0x64e   :  { %30767 = vst [vmem:[#allocation24_spill] sm:$0xff] %v28640_v14  ;;  %21391 = vmatpush3.msra.mxu1 %v9066_v30  ;;  %21337 = vmatprep.subr.mxu0 %v30744_v44 }
 0x64f   :  { %v28643_v60 = vpop.f32.mrf.mxu1  ;;  %21329 = vmatmul.mubr.msk.f32.vlgmr.msra.gmra.mxu0 %vm8189_vm6, %v28648_v40  ;;  %21369 = vmatmul.mubr.msk.f32.gmra.mxu1 %vm8189_vm6, %v28123_v25  ;;  %v21095_v12 = vpop.f32.mrf.mxu0  ;;  %v28669_v25 = vld [vmem:[%s30087_s3 + $0x8] sm:$0xff] }
 0x650   :  { %21331 = vmatprep.mubr.msk.f32.mxu0 %vm22535_vm1, %v30744_v44  ;;  %21392 = vmatprep.subr.mxu1 %v30744_v44 }
 0x651   :  { %v28657_v36 = vpop.f32.mrf.mxu1  ;;  %21338 = vmatpush3.msra.mxu0 %v28569_v11  ;;  %21393 = vmatpush3.msra.mxu1 %v20968_v15  ;;  %v28660_v30 = vpop.f32.mrf.mxu0 }
 0x652   :  { %30768 = vst [vmem:[#allocation17_spill] sm:$0xff] %v28660_v30  ;;  %21339 = vmatprep.subr.mxu0 %v30744_v44  ;;  %21394 = vmatprep.subr.mxu1 %v30744_v44 }
 0x653   :  { %v28664_v14 = vpop.f32.mrf.mxu1  ;;  %21332 = vmatmul.mubr.msk.f32.gmra.mxu0 %vm8189_vm6, %v28669_v25  ;;  %21395 = vmatpush3.msra.mxu1 %v9056_v13  ;;  %v21098_v12 = vpop.f32.mrf.mxu0  ;;  %v28687_v13 = vld [vmem:[%s30087_s3 + $0x10] sm:$0x3f] }
 0x654   :  { %21334 = vmatprep.mubr.msk.f32.mxu0 %vm22535_vm1, %v30744_v44  ;;  %21340 = vmatpush3.msra.mxu0 %v28576_v2 }
 0x655   :  { %v28676_v11 = vpop.f32.mrf.mxu1  ;;  %21396 = vmatprep.mubr.msk.f32.mxu1 %vm22535_vm1, %v30744_v44  ;;  %21341 = vmatprep.subr.mxu0 %v30744_v44 }
 0x656   :  { %21397 = vmatmul.mubr.msk.f32.vlgmr.msra.gmra.mxu1 %vm8189_vm6, %v28648_v40  ;;  %21342 = vmatpush3.msra.mxu0 %v28557_v28 }
 0x657   :  { %v20980_v15 = vpop.f32.mrf.mxu1  ;;  %21335 = vmatmul.mubr.msk.f32.gmra.mxu0 %vm8189_vm6, %v28687_v13  ;;  %21343 = vmatprep.subr.mxu0 %v30744_v44 }
 0x658   :  { %21344 = vmatpush3.msra.mxu0 %v28564_v20  ;;  %21345 = vmatprep.mubr.msk.f32.mxu0 %vm22535_vm1, %v30744_v44 }
 0x659   :  { %v9096_v2 = vpop.f32.mrf.mxu1  ;;  %21399 = vmatprep.mubr.msk.f32.mxu1 %vm22535_vm1, %v30744_v44  ;;  %21422 = vmatprep.subr.mxu1 %v30744_v44  ;;  %v28698_v28 = vpop.f32.mrf.mxu0 }
 0x65a   :  { %30769 = vst [vmem:[#allocation66_spill] sm:$0xff] %v28698_v28  ;;  %21400 = vmatmul.mubr.msk.f32.gmra.mxu1 %vm8189_vm6, %v28669_v25  ;;  %21371 = vmatprep.subr.mxu0 %v30744_v44 }
 0x65b   :  { %v20983_v12 = vpop.f32.mrf.mxu1  ;;  %21346 = vmatmul.mubr.msk.f32.vlgmr.msra.gmra.mxu0 %vm8189_vm6, %v28648_v40  ;;  %21402 = vmatprep.mubr.msk.f32.mxu1 %vm22535_vm1, %v30744_v44  ;;  %v21109_v20 = vpop.f32.mrf.mxu0 }
 0x65c   :  { %21423 = vmatpush3.msra.mxu1 %v20983_v12  ;;  %21348 = vmatprep.mubr.msk.f32.mxu0 %vm22535_vm1, %v30744_v44 }
 0x65d   :  { %v9106_v30 = vpop.f32.mrf.mxu1  ;;  %21424 = vmatprep.subr.mxu1 %v30744_v44  ;;  %21372 = vmatpush3.msra.mxu0 %v28606_v9  ;;  %v28711_v28 = vpop.f32.mrf.mxu0 }
 0x65e   :  { %30770 = vst [vmem:[#allocation26_spill] sm:$0xff] %v28711_v28  ;;  %21425 = vmatpush3.msra.mxu1 %v9106_v30  ;;  %21373 = vmatprep.subr.mxu0 %v30744_v44 }
 0x65f   :  { %v28714_v47 = vpop.f32.mrf.mxu1  ;;  %21349 = vmatmul.mubr.msk.f32.gmra.mxu0 %vm8189_vm6, %v28669_v25  ;;  %21403 = vmatmul.mubr.msk.f32.gmra.mxu1 %vm8189_vm6, %v28687_v13  ;;  %v21112_v12 = vpop.f32.mrf.mxu0 }
 0x660   :  { %21426 = vmatprep.subr.mxu1 %v30744_v44  ;;  %21351 = vmatprep.mubr.msk.f32.mxu0 %vm22535_vm1, %v30744_v44 }
 0x661   :  { %21427 = vmatpush3.msra.mxu1 %v20980_v15  ;;  %v28723_v9 = vpop.f32.mrf.mxu1  ;;  %21374 = vmatpush3.msra.mxu0 %v28613_v42  ;;  %v28726_v30 = vpop.f32.mrf.mxu0 }
 0x662   :  { %30771 = vst [vmem:[#allocation14_spill] sm:$0xff] %v28726_v30  ;;  %21428 = vmatprep.subr.mxu1 %v30744_v44  ;;  %21430 = vmatprep.mubr.msk.f32.mxu1 %vm22535_vm1, %v30744_v44 }
 0x663   :  { %21429 = vmatpush3.msra.mxu1 %v9096_v2  ;;  %v20989_v20 = vpop.f32.mrf.mxu1  ;;  %21352 = vmatmul.mubr.msk.f32.gmra.mxu0 %vm8189_vm6, %v28687_v13  ;;  %v21115_v12 = vpop.f32.mrf.mxu0 }
 0x664   :  { %21375 = vmatprep.subr.mxu0 %v30744_v44  ;;  %21431 = vmatmul.mubr.msk.f32.vlgmr.msra.gmra.mxu1 %vm8189_vm6, %v28648_v40 }
 0x665   :  { %21376 = vmatpush3.msra.mxu0 %v28594_v51  ;;  %v9126_v42 = vpop.f32.mrf.mxu1  ;;  %21379 = vmatprep.mubr.msk.f32.mxu0 %vm22535_vm1, %v30744_v44 }
 0x666   :  { %21377 = vmatprep.subr.mxu0 %v30744_v44  ;;  %21433 = vmatprep.mubr.msk.f32.mxu1 %vm22535_vm1, %v30744_v44 }
 0x667   :  { %21378 = vmatpush3.msra.mxu0 %v28601_v52  ;;  %v20992_v15 = vpop.f32.mrf.mxu1  ;;  %21456 = vmatprep.subr.mxu1 %v30744_v44 }
 0x668   :  { %21380 = vmatmul.mubr.msk.f32.vlgmr.msra.gmra.mxu0 %vm8189_vm6, %v28648_v40  ;;  %21434 = vmatmul.mubr.msk.f32.gmra.mxu1 %vm8189_vm6, %v28669_v25 }
 0x669   :  { %v9136_v51 = vpop.f32.mrf.mxu1  ;;  %21382 = vmatprep.mubr.msk.f32.mxu0 %vm22535_vm1, %v30744_v44  ;;  %21405 = vmatprep.subr.mxu0 %v30744_v44 }
 0x66a   :  { %21436 = vmatprep.mubr.msk.f32.mxu1 %vm22535_vm1, %v30744_v44  ;;  %21406 = vmatpush3.msra.mxu0 %v28664_v14 }
 0x66b   :  { %v20995_v52 = vpop.f32.mrf.mxu1  ;;  %21407 = vmatprep.subr.mxu0 %v30744_v44 }
 0x66c   :  { %21383 = vmatmul.mubr.msk.f32.gmra.mxu0 %vm8189_vm6, %v28669_v25  ;;  %21437 = vmatmul.mubr.msk.f32.gmra.mxu1 %vm8189_vm6, %v28687_v13 }
 0x66d   :  { %21457 = vmatpush3.msra.mxu1 %v20995_v52  ;;  %v9146_v2 = vpop.f32.mrf.mxu1  ;;  %21408 = vmatpush3.msra.mxu0 %v28676_v11  ;;  %v28760_v12 = vpop.f32.mrf.mxu0 }
 0x66e   :  { %21458 = vmatprep.subr.mxu1 %v30744_v44  ;;  %21385 = vmatprep.mubr.msk.f32.mxu0 %vm22535_vm1, %v30744_v44 }
 0x66f   :  { %21409 = vmatprep.subr.mxu0 %v30744_v44  ;;  %21459 = vmatpush3.msra.mxu1 %v9146_v2  ;;  %v28766_v14 = vpop.f32.mrf.mxu1  ;;  %v21126_v30 = vpop.f32.mrf.mxu0 }
 0x670   :  { %21386 = vmatmul.mubr.msk.f32.gmra.mxu0 %vm8189_vm6, %v28687_v13  ;;  %21460 = vmatprep.subr.mxu1 %v30744_v44 }
 0x671   :  { %21410 = vmatpush3.msra.mxu0 %v28643_v60  ;;  %21461 = vmatpush3.msra.mxu1 %v20992_v15  ;;  %v28772_v11 = vpop.f32.mrf.mxu1  ;;  %v28774_v52 = vpop.f32.mrf.mxu0 }
 0x672   :  { %21411 = vmatprep.subr.mxu0 %v30744_v44  ;;  %21462 = vmatprep.subr.mxu1 %v30744_v44 }
 0x673   :  { %21412 = vmatpush3.msra.mxu0 %v28657_v36  ;;  %21413 = vmatprep.mubr.msk.f32.mxu0 %vm22535_vm1, %v30744_v44  ;;  %v21001_v30 = vpop.f32.mrf.mxu1  ;;  %v21129_v2 = vpop.f32.mrf.mxu0 }
 0x674   :  { %21439 = vmatprep.subr.mxu0 %v30744_v44  ;;  %21463 = vmatpush3.msra.mxu1 %v9136_v51 }
 0x675   :  { %21464 = vmatprep.mubr.msk.f32.mxu1 %vm22535_vm1, %v30744_v44  ;;  %21414 = vmatmul.mubr.msk.f32.vlgmr.msra.gmra.mxu0 %vm8189_vm6, %v28648_v40  ;;  %v9166_v60 = vpop.f32.mrf.mxu1  ;;  %v28786_v15 = vpop.f32.mrf.mxu0 }
 0x676   :  { %21440 = vmatpush3.msra.mxu0 %v20989_v20  ;;  %21465 = vmatmul.mubr.msk.f32.vlgmr.msra.gmra.mxu1 %vm8189_vm6, %v28648_v40 }
 0x677   :  { %21441 = vmatprep.subr.mxu0 %v30744_v44  ;;  %21416 = vmatprep.mubr.msk.f32.mxu0 %vm22535_vm1, %v30744_v44  ;;  %v21004_v36 = vpop.f32.mrf.mxu1  ;;  %v21132_v51 = vpop.f32.mrf.mxu0 }
 0x678   :  { %21442 = vmatpush3.msra.mxu0 %v9126_v42  ;;  %21467 = vmatprep.mubr.msk.f32.mxu1 %vm22535_vm1, %v30744_v44 }
 0x679   :  { %21443 = vmatprep.subr.mxu0 %v30744_v44  ;;  %21417 = vmatmul.mubr.msk.f32.gmra.mxu0 %vm8189_vm6, %v28669_v25  ;;  %v9176_v20 = vpop.f32.mrf.mxu1 }
 0x67a   :  { %21444 = vmatpush3.msra.mxu0 %v28714_v47  ;;  %21468 = vmatmul.mubr.msk.f32.gmra.mxu1 %vm8189_vm6, %v28669_v25 }
 0x67b   :  { %21445 = vmatprep.subr.mxu0 %v30744_v44  ;;  %21419 = vmatprep.mubr.msk.f32.mxu0 %vm22535_vm1, %v30744_v44  ;;  %v21007_v42 = vpop.f32.mrf.mxu1 }
 0x67c   :  { %21446 = vmatpush3.msra.mxu0 %v28723_v9  ;;  %21470 = vmatprep.mubr.msk.f32.mxu1 %vm22535_vm1, %v30744_v44 }
 0x67d   :  { %21420 = vmatmul.mubr.msk.f32.gmra.mxu0 %vm8189_vm6, %v28687_v13  ;;  %21490 = vmatprep.subr.mxu1 %v30744_v44  ;;  %v9186_v47 = vpop.f32.mrf.mxu1 }
 0x67e   :  { %21471 = vmatmul.mubr.msk.f32.gmra.mxu1 %vm8189_vm6, %v28687_v13  ;;  %21447 = vmatprep.mubr.msk.f32.mxu0 %vm22535_vm1, %v30744_v44  ;;  %v28814_v2 = vpop.f32.mrf.mxu0 }
 0x67f   :  { %21491 = vmatpush3.msra.mxu1 %v21007_v42  ;;  %21473 = vmatprep.subr.mxu0 %v30744_v44  ;;  %v21010_v28 = vpop.f32.mrf.mxu1 }
 0x680   :  { %21492 = vmatprep.subr.mxu1 %v30744_v44  ;;  %21498 = vmatprep.mubr.msk.f32.mxu1 %vm22535_vm1, %v30744_v44  ;;  %v21143_v9 = vpop.f32.mrf.mxu0 }
 0x681   :  { %21493 = vmatpush3.msra.mxu1 %v9186_v47  ;;  %21448 = vmatmul.mubr.msk.f32.vlgmr.msra.gmra.mxu0 %vm8189_vm6, %v28648_v40  ;;  %v12199_v47 = vld [vmem:[%s30088_s10 + $0x8] sm:$0xff] }
 0x682   :  { %21474 = vmatpush3.msra.mxu0 %v21001_v30  ;;  %21494 = vmatprep.subr.mxu1 %v30744_v44  ;;  %v28823_v51 = vpop.f32.mrf.mxu0  ;;  %v12201_v30 = vld [vmem:[%s30088_s10 + $0x18] sm:$0xff] }
 0x683   :  { %21475 = vmatprep.subr.mxu0 %v30744_v44  ;;  %21495 = vmatpush3.msra.mxu1 %v21004_v36  ;;  %v9196_v36 = vpop.f32.mrf.mxu1 }
 0x684   :  { %21476 = vmatpush3.msra.mxu0 %v9166_v60  ;;  %21496 = vmatprep.subr.mxu1 %v30744_v44  ;;  %v21146_v42 = vpop.f32.mrf.mxu0 }
 0x685   :  { %21450 = vmatprep.mubr.msk.f32.mxu0 %vm22535_vm1, %v30744_v44  ;;  %21477 = vmatprep.subr.mxu0 %v30744_v44  ;;  %v12198_v42 = vld [vmem:[%s30088_s10] sm:$0xff] }
 0x686   :  { %21497 = vmatpush3.msra.mxu1 %v9176_v20  ;;  %21451 = vmatmul.mubr.msk.f32.gmra.mxu0 %vm8189_vm6, %v28669_v25  ;;  %v12200_v20 = vld [vmem:[%s30088_s10 + $0x10] sm:$0xff] }
 0x687   :  { %21478 = vmatpush3.msra.mxu0 %v28766_v14  ;;  %21499 = vmatmul.mubr.msk.f32.vlgmr.msra.gmra.mxu1 %vm8189_vm6, %v28648_v40  ;;  %v28838_v60 = vpop.f32.mrf.mxu0 }
 0x688   :  { %21479 = vmatprep.subr.mxu0 %v30744_v44  ;;  %21453 = vmatprep.mubr.msk.f32.mxu0 %vm22535_vm1, %v30744_v44 }
 0x689   :  { %21480 = vmatpush3.msra.mxu0 %v28772_v11  ;;  %21501 = vmatprep.mubr.msk.f32.mxu1 %vm22535_vm1, %v30744_v44  ;;  %v21149_v14 = vpop.f32.mrf.mxu0  ;;  %v21013_v11 = vpop.f32.mrf.mxu1 }
 0x68a   :  { %21454 = vmatmul.mubr.msk.f32.gmra.mxu0 %vm8189_vm6, %v28687_v13  ;;  %21524 = vmatprep.subr.mxu1 %v12201_v30 }
 0x68b   :  { %21502 = vmatmul.mubr.msk.f32.gmra.mxu1 %vm8189_vm6, %v28669_v25  ;;  %21481 = vmatprep.mubr.msk.f32.mxu0 %vm22535_vm1, %v30744_v44  ;;  %v9206_v14 = vpop.f32.mrf.mxu1 }
 0x68c   :  { %21525 = vmatpush3.msra.mxu1 %v12201_v30  ;;  %21504 = vmatprep.mubr.msk.f32.mxu1 %vm22535_vm1, %v30744_v44 }
 0x68d   :  { %21526 = vmatprep.subr.mxu1 %v12200_v20  ;;  %21507 = vmatprep.subr.mxu0 %v30744_v44  ;;  %v28861_v9 = vpop.f32.mrf.mxu0 }
 0x68e   :  { %21527 = vmatpush3.msra.mxu1 %v12200_v20  ;;  %21482 = vmatmul.mubr.msk.f32.vlgmr.msra.gmra.mxu0 %vm8189_vm6, %v28648_v40 }
 0x68f   :  { %21505 = vmatmul.mubr.msk.f32.gmra.mxu1 %vm8189_vm6, %v28687_v13  ;;  %21508 = vmatpush3.msra.mxu0 %v21013_v11  ;;  %v21160_v30 = vpop.f32.mrf.mxu0 }
 0x690   :  { %21528 = vmatprep.subr.mxu1 %v12199_v47  ;;  %21509 = vmatprep.subr.mxu0 %v30744_v44 }
 0x691   :  { %21529 = vmatpush3.msra.mxu1 %v12199_v47  ;;  %21532 = vmatprep.mubr.msk.f32.mxu1 %vm8189_vm6, %v27850_v10  ;;  %v28873_v20 = vpop.f32.mrf.mxu0 }
 0x692   :  { %21510 = vmatpush3.msra.mxu0 %v9206_v14  ;;  %21530 = vmatprep.subr.mxu1 %v12198_v42 }
 0x693   :  { %21511 = vmatprep.subr.mxu0 %v30744_v44  ;;  %21531 = vmatpush3.msra.mxu1 %v12198_v42  ;;  %v21163_v11 = vpop.f32.mrf.mxu0 }
 0x694   :  { %21512 = vmatpush3.msra.mxu0 %v21010_v28  ;;  %21533 = vmatmul.mubr.msk.f32.vlgmr.msra.gmra.mxu1 %vm8189_vm6, %v27848_v57 }
 0x695   :  { %21513 = vmatprep.subr.mxu0 %v30744_v44  ;;  %21535 = vmatprep.mubr.msk.f32.mxu1 %vm8189_vm6, %v27858_v5  ;;  %v28881_v47 = vpop.f32.mrf.mxu0 }
 0x696   :  { %21514 = vmatpush3.msra.mxu0 %v9196_v36  ;;  %21484 = vmatprep.mubr.msk.f32.mxu0 %vm22535_vm1, %v30744_v44  ;;  %v30784_v36 = vld [vmem:[#allocation106_spill] sm:$0xff] }
 0x697   :  { %21485 = vmatmul.mubr.msk.f32.gmra.mxu0 %vm8189_vm6, %v28669_v25  ;;  %v21166_v10 = vpop.f32.mrf.mxu0 }
 0x698   :  { %21536 = vmatmul.mubr.msk.f32.gmra.mxu1 %vm8189_vm6, %v27854_v1  ;;  %21487 = vmatprep.mubr.msk.f32.mxu0 %vm22535_vm1, %v30744_v44 }
 0x699   :  { %21538 = vmatprep.mubr.msk.f32.mxu1 %vm8189_vm6, %v27866_v39 }
 0x69b   :  { %21488 = vmatmul.mubr.msk.f32.gmra.mxu0 %vm8189_vm6, %v28687_v13 }
 0x69c   :  { %21539 = vmatmul.mubr.msk.f32.gmra.mxu1 %vm8189_vm6, %v27864_v7  ;;  %21515 = vmatprep.mubr.msk.f32.mxu0 %vm22535_vm1, %v30744_v44 }
 0x69d   :  { %21541 = vmatprep.mubr.msk.f32.mxu1 %vm8189_vm6, %v27874_v8  ;;  %v28901_v57 = vpop.f32.mrf.mxu0 }
 0x69f   :  { %v21177_v1 = vpop.f32.mrf.mxu0  ;;  %21516 = vmatmul.mubr.msk.f32.vlgmr.msra.gmra.mxu0 %vm8189_vm6, %v28648_v40 }
 0x6a0   :  { %21542 = vmatmul.mubr.msk.f32.gmra.mxu1 %vm8189_vm6, %v27870_v50  ;;  %21518 = vmatprep.mubr.msk.f32.mxu0 %vm22535_vm1, %v30744_v44 }
 0x6a1   :  { %21544 = vmatprep.mubr.msk.f32.mxu1 %vm8189_vm6, %v27882_v0  ;;  %v28911_v5 = vpop.f32.mrf.mxu0 }
 0x6a2   :  { %30772 = vst [vmem:[#allocation13_spill] sm:$0xff] %v28911_v5 }
 0x6a3   :  { %v21180_v7 = vpop.f32.mrf.mxu0  ;;  %21519 = vmatmul.mubr.msk.f32.gmra.mxu0 %vm8189_vm6, %v28669_v25  ;;  %v30781_v25 = vld [vmem:[#allocation16_spill] sm:$0xff] }
 0x6a4   :  { %21545 = vmatmul.mubr.msk.f32.gmra.mxu1 %vm8189_vm6, %v27880_v53  ;;  %21521 = vmatprep.mubr.msk.f32.mxu0 %vm22535_vm1, %v30744_v44  ;;  %v29093_v44 = vmul.f32 %v28881_v47, %v28881_v47 }
 0x6a5   :  { %21547 = vmatprep.mubr.msk.f32.mxu1 %vm8189_vm6, %v27890_v3  ;;  %v28921_v39 = vpop.f32.mrf.mxu0 }
 0x6a6   :  { %30773 = vst [vmem:[#allocation59_spill] sm:$0xff] %v28921_v39  ;;  %30798 = vst [vmem:[#allocation38_spill] sm:$0xff] %v29093_v44  ;;  %v29119_v39 = vmul.f32 %v28583_v54, %v28583_v54  ;;  %v30802_v54 = vld [vmem:[#allocation71_spill] sm:$0xff] }
 0x6a7   :  { %v21183_v50 = vpop.f32.mrf.mxu0  ;;  %21522 = vmatmul.mubr.msk.f32.gmra.mxu0 %vm8189_vm6, %v28687_v13  ;;  %v30782_v13 = vld [vmem:[#allocation18_spill] sm:$0xff] }
 0x6a8   :  { %21548 = vmatmul.mubr.msk.f32.gmra.mxu1 %vm8189_vm6, %v27886_v62 }
 0x6a9   :  { %21550 = vmatprep.mubr.msk.f32.mxu1 %vm8189_vm6, %v27898_v16 }
 0x6ac   :  { %21551 = vmatmul.mubr.msk.f32.gmra.mxu1 %vm8189_vm6, %v27896_v18 }
 0x6ad   :  { %21553 = vmatprep.mubr.msk.f32.mxu1 %vm8189_vm6, %v27906_v19 }
 0x6ae   :  { %v28933_v8 = vpop.f32.mrf.mxu0 }
 0x6af   :  { %30774 = vst [vmem:[#allocation57_spill] sm:$0xff] %v28933_v8 }
 0x6b0   :  { %21554 = vmatmul.mubr.msk.f32.gmra.mxu1 %vm8189_vm6, %v27902_v29  ;;  %v21194_v53 = vpop.f32.mrf.mxu0 }
 0x6b1   :  { %21556 = vmatprep.mubr.msk.f32.mxu1 %vm8189_vm6, %v27916_v23 }
 0x6b2   :  { %v28939_v0 = vpop.f32.mrf.mxu0 }
 0x6b4   :  { %21557 = vmatmul.mubr.msk.f32.gmra.mxu1 %vm8189_vm6, %v27913_v45  ;;  %v21197_v62 = vpop.f32.mrf.mxu0 }
 0x6b5   :  { %21559 = vmatprep.mubr.msk.f32.mxu1 %vm8189_vm6, %v27924_v58  ;;  %v30786_v62 = vld [vmem:[#allocation69_spill] sm:$0xff] }
 0x6b7   :  { %v28945_v3 = vpop.f32.mrf.mxu0 }
 0x6b8   :  { %21560 = vmatmul.mubr.msk.f32.gmra.mxu1 %vm8189_vm6, %v27920_v38 }
 0x6b9   :  { %21562 = vmatprep.mubr.msk.f32.mxu1 %vm8189_vm6, %v27935_v6  ;;  %v21200_v18 = vpop.f32.mrf.mxu0 }
 0x6ba   :  { %v29043_v18 = vmul.f32 %v30786_v62, %v30786_v62 }
 0x6bb   :  { %v28951_v16 = vpop.f32.mrf.mxu0 }
 0x6bc   :  { %30775 = vst [vmem:[#allocation65_spill] sm:$0xff] %v28951_v16  ;;  %21563 = vmatmul.mubr.msk.f32.gmra.mxu1 %vm8189_vm6, %v27930_v31 }
 0x6bd   :  { %21565 = vmatprep.mubr.msk.f32.mxu1 %vm8189_vm6, %v27943_v49  ;;  %v21211_v29 = vpop.f32.mrf.mxu0 }
 0x6bf   :  { %v28957_v19 = vpop.f32.mrf.mxu0 }
 0x6c0   :  { %30776 = vst [vmem:[#allocation36_spill] sm:$0xff] %v28957_v19  ;;  %21566 = vmatmul.mubr.msk.f32.gmra.mxu1 %vm8189_vm6, %v27939_v37 }
 0x6c1   :  { %21568 = vmatprep.mubr.msk.f32.mxu1 %vm8189_vm6, %v27953_v63  ;;  %v21214_v45 = vpop.f32.mrf.mxu0 }
 0x6c2   :  { %v29049_v45 = vmul.f32 %v28861_v9, %v28861_v9 }
 0x6c3   :  { %v28963_v23 = vpop.f32.mrf.mxu0 }
 0x6c4   :  { %30777 = vst [vmem:[#allocation19_spill] sm:$0xff] %v28963_v23  ;;  %21569 = vmatmul.mubr.msk.f32.gmra.mxu1 %vm8189_vm6, %v27951_v46 }
 0x6c5   :  { %21571 = vmatprep.mubr.msk.f32.mxu1 %vm8189_vm6, %v27961_v43  ;;  %v21217_v38 = vpop.f32.mrf.mxu0 }
 0x6c7   :  { %v28969_v58 = vpop.f32.mrf.mxu0 }
 0x6c8   :  { %21572 = vmatmul.mubr.msk.f32.gmra.mxu1 %vm8189_vm6, %v27959_v22 }
 0x6c9   :  { %21574 = vmatprep.mubr.msk.f32.mxu1 %vm8189_vm6, %v27972_v41  ;;  %v21228_v31 = vpop.f32.mrf.mxu0 }
 0x6cb   :  { %v28975_v6 = vpop.f32.mrf.mxu0 }
 0x6cc   :  { %21575 = vmatmul.mubr.msk.f32.gmra.mxu1 %vm8189_vm6, %v27970_v55 }
 0x6cd   :  { %21577 = vmatprep.mubr.msk.f32.mxu1 %vm8189_vm6, %v27980_v21  ;;  %v21231_v37 = vpop.f32.mrf.mxu0 }
 0x6cf   :  { %v28981_v49 = vpop.f32.mrf.mxu0 }
 0x6d0   :  { %21578 = vmatmul.mubr.msk.f32.gmra.mxu1 %vm8189_vm6, %v27978_v4 }
 0x6d1   :  { %21580 = vmatprep.mubr.msk.f32.mxu1 %vm8189_vm6, %v27990_v35  ;;  %v21234_v46 = vpop.f32.mrf.mxu0  ;;  %v12196_v35 = vld [vmem:[%s30089_s9] sm:$0xff] }
 0x6d2   :  { %21612 = vmatprep.mubr.msk.f32.mxu0 %vm8189_vm6, %v12196_v35  ;;  %v30788_v46 = vld [vmem:[#allocation7_spill] sm:$0xff] }
 0x6d3   :  { %v28987_v63 = vpop.f32.mrf.mxu0 }
 0x6d4   :  { %21581 = vmatmul.mubr.msk.f32.gmra.mxu1 %vm8189_vm6, %v27988_v32 }
 0x6d5   :  { %21583 = vmatprep.mubr.msk.f32.mxu1 %vm8189_vm6, %v27998_v34  ;;  %v21245_v22 = vpop.f32.mrf.mxu0  ;;  %v30778_v34 = vld [vmem:[#allocation97_spill] sm:$0xff] }
 0x6d6   :  { %v29054_v22 = vmul.f32 %v30788_v46, %v30788_v46 }
 0x6d7   :  { %v28993_v43 = vpop.f32.mrf.mxu0 }
 0x6d8   :  { %21584 = vmatmul.mubr.msk.f32.gmra.mxu1 %vm8189_vm6, %v27994_v26 }
 0x6d9   :  { %21586 = vmatprep.mubr.msk.f32.mxu1 %vm8189_vm6, %v28009_v27  ;;  %v21248_v55 = vpop.f32.mrf.mxu0 }
 0x6db   :  { %v28999_v41 = vpop.f32.mrf.mxu0 }
 0x6dc   :  { %21587 = vmatmul.mubr.msk.f32.gmra.mxu1 %vm8189_vm6, %v28004_v56 }
 0x6dd   :  { %21589 = vmatprep.mubr.msk.f32.mxu1 %vm8189_vm6, %v28017_v61  ;;  %v21251_v4 = vpop.f32.mrf.mxu0  ;;  %v30780_v61 = vld [vmem:[#allocation5_spill] sm:$0xff] }
 0x6df   :  { %v10410_v21 = vpop.f32.mrf.mxu0 }
 0x6e0   :  { %21590 = vmatmul.mubr.msk.f32.gmra.mxu1 %vm8189_vm6, %v28013_v48  ;;  %v30779_v48 = vld [vmem:[#allocation96_spill] sm:$0xff]  ;;  %v11684_v38 = vsub.f32 %v10410_v21, %v29043_v18  ;;  %v29065_v21 = vmul.f32 %v28873_v20, %v28873_v20 }
 0x6e1   :  { %21592 = vmatprep.mubr.msk.f32.mxu1 %vm8189_vm6, %v28025_v59  ;;  %v21262_v32 = vpop.f32.mrf.mxu0 }
 0x6e2   :  { %v30790_v32 = vld [vmem:[#allocation67_spill] sm:$0xff] }
 0x6e3   :  { %v10415_v26 = vpop.f32.mrf.mxu0  ;;  %v11624_v35 = vmul.f32 %v30790_v32, %v30790_v32 }
 0x6e4   :  { %21593 = vmatmul.mubr.msk.f32.gmra.mxu1 %vm8189_vm6, %v28023_v17 }
 0x6e5   :  { %21595 = vmatprep.mubr.msk.f32.mxu1 %vm8189_vm6, %v30778_v34  ;;  %v21265_v56 = vpop.f32.mrf.mxu0 }
 0x6e6   :  { %v11642_v56 = vmul.f32 %v28760_v12, %v28760_v12 }
 0x6e7   :  { %v29017_v27 = vpop.f32.mrf.mxu0 }
 0x6e8   :  { %21596 = vmatmul.mubr.msk.f32.gmra.mxu1 %vm8189_vm6, %v30779_v48  ;;  %v11685_v48 = vsub.f32 %v10415_v26, %v29054_v22 }
 0x6e9   :  { %21598 = vmatprep.mubr.msk.f32.mxu1 %vm8189_vm6, %v30780_v61  ;;  %v21268_v59 = vpop.f32.mrf.mxu0 }
 0x6eb   :  { %v29023_v40 = vpop.f32.mrf.mxu0 }
 0x6ec   :  { %21599 = vmatmul.mubr.msk.f32.gmra.mxu1 %vm8189_vm6, %v30781_v25  ;;  %v30792_v25 = vld [vmem:[#allocation2_spill] sm:$0xff] }
 0x6ed   :  { %21601 = vmatprep.mubr.msk.f32.mxu1 %vm8189_vm6, %v30782_v13  ;;  %v21279_v17 = vpop.f32.mrf.mxu0  ;;  %v11625_v13 = vmul.f32 %v30792_v25, %v30792_v25 }
 0x6ee   :  { %v11643_v17 = vmul.f32 %v28774_v52, %v28774_v52 }
 0x6ef   :  { %v29029_v28 = vpop.f32.mrf.mxu0 }
 0x6f0   :  { %30783 = vst [vmem:[#allocation31_spill] sm:$0xff] %v29029_v28  ;;  %21602 = vmatmul.mubr.msk.f32.gmra.mxu1 %vm8189_vm6, %v30784_v36  ;;  %v29123_v28 = vmul.f32 %v28591_v33, %v28591_v33 }
 0x6f1   :  { %v21282_v42 = vpop.f32.mrf.mxu0 }
 0x6f2   :  { %v30793_v42 = vld [vmem:[#allocation20_spill] sm:$0xff] }
 0x6f3   :  { %v29033_v30 = vpop.f32.mrf.mxu0 }
 0x6f4   :  { %30785 = vst [vmem:[#allocation32_spill] sm:$0xff] %v29033_v30  ;;  %v30801_v30 = vld [vmem:[#allocation22_spill] sm:$0xff] }
 0x6f5   :  { %v21285_v14 = vpop.f32.mrf.mxu0 }
 0x6f6   :  { %v29076_v14 = vmul.f32 %v30793_v42, %v30793_v42 }
 0x6f7   :  { %v29035_v11 = vpop.f32.mrf.mxu0 }
 0x6f9   :  { %v21296_v10 = vpop.f32.mrf.mxu0 }
 0x6fa   :  { %v29080_v10 = vmul.f32 %v28786_v15, %v28786_v15 }
 0x6fb   :  { %v29037_v1 = vpop.f32.mrf.mxu0 }
 0x6fd   :  { %v21299_v7 = vpop.f32.mrf.mxu0 }
 0x6ff   :  { %v29039_v50 = vpop.f32.mrf.mxu0 }
 0x701   :  { %v21302_v53 = vpop.f32.mrf.mxu0 }
 0x702   :  { %v30795_v53 = vld [vmem:[#allocation3_spill] sm:$0xff] }
 0x703   :  { %v29045_v29 = vpop.f32.mrf.mxu0 }
 0x704   :  { %30787 = vst [vmem:[#allocation29_spill] sm:$0xff] %v29045_v29  ;;  %v11678_v29 = vsub.f32 %v28969_v58, %v11624_v35  ;;  %v29127_v58 = vmul.f32 %v28760_v12, %v30790_v32  ;;  %v30803_v12 = vld [vmem:[#allocation24_spill] sm:$0xff] }
 0x705   :  { %v21313_v31 = vpop.f32.mrf.mxu0  ;;  %v29145_v32 = vmul.f32 %v30803_v12, %v30803_v12 }
 0x706   :  { %v10890_v37 = vpop.f32.mrf.mxu1  ;;  %v11840_v12 = vmul.f32 2.0, %v29127_v58 }
 0x707   :  { %v29056_v55 = vpop.f32.mrf.mxu0  ;;  %v11702_v4 = vsub.f32 %v10890_v37, %v29049_v45  ;;  %v11876_v37 = vadd.f32 %v11642_v56, %v11624_v35 }
 0x708   :  { %30789 = vst [vmem:[#allocation11_spill] sm:$0xff] %v29056_v55  ;;  %v21364_v34 = vpop.f32.mrf.mxu1  ;;  %v30800_v55 = vld [vmem:[#allocation4_spill] sm:$0xff] }
 0x709   :  { %v21316_v61 = vpop.f32.mrf.mxu0  ;;  %v29068_v59 = vadd.f32 %v11702_v4, %v11684_v38  ;;  %v29087_v38 = vmul.f32 %v30795_v53, %v30795_v53  ;;  %v29103_v19 = vmul.f32 %v30800_v55, %v30800_v55 }
 0x70a   :  { %v10895_v36 = vpop.f32.mrf.mxu1  ;;  %v11877_v61 = vadd.f32 %v11643_v17, %v11625_v13 }
 0x70b   :  { %30791 = vst [vmem:[#allocation37_spill] sm:$0xff] %v29068_v59  ;;  %v29082_v7 = vpop.f32.mrf.mxu0  ;;  %v11703_v26 = vsub.f32 %v10895_v36, %v29065_v21  ;;  %30796 = vst [vmem:[#allocation63_spill] sm:$0xff] %v29087_v38  ;;  %v11686_v23 = vsub.f32 %v29017_v27, %v29087_v38  ;;  %v11894_v38 = vadd.f32 0.0001, %v11876_v37  ;;  %v30804_v37 = vld [vmem:[#allocation17_spill] sm:$0xff] }
 0x70c   :  { %30794 = vst [vmem:[#allocation21_spill] sm:$0xff] %v29082_v7  ;;  %v21367_v31 = vpop.f32.mrf.mxu1  ;;  %v30799_v7 = vld [vmem:[#allocation68_spill] sm:$0xff]  ;;  %v11895_v35 = vadd.f32 0.0001, %v11877_v61  ;;  %v29152_v61 = vmul.f32 %v30804_v37, %v30804_v37 }
 0x70d   :  { %v21319_v4 = vpop.f32.mrf.mxu0  ;;  %v29089_v34 = vadd.f32 %v11703_v26, %v11685_v48  ;;  %v29099_v36 = vmul.f32 %v30799_v7, %v30799_v7  ;;  %v11878_v48 = vadd.f32 %v29080_v10, %v29076_v14  ;;  %22210 = vrcp.f32 %v11894_v38 }
 0x70e   :  { %v29109_v4 = vmul.f32 %v28814_v2, %v28814_v2  ;;  %22212 = vrcp.f32 %v11895_v35 }
 0x70f   :  { %30797 = vst [vmem:[#allocation77_spill] sm:$0xff] %v29089_v34  ;;  %v10730_v26 = vpop.f32.mrf.mxu0  ;;  %v10900_v31 = vpop.f32.mrf.mxu1  ;;  %v29115_v34 = vmul.f32 %v30801_v30, %v30801_v30  ;;  %v11896_v33 = vadd.f32 0.0001, %v11878_v48  ;;  %v29156_v48 = vmul.f32 %v28933_v8, %v28933_v8  ;;  %v29174_v8 = vmul.f32 %v28838_v60, %v28838_v60 }
 0x710   :  { %v11696_v27 = vsub.f32 %v10730_v26, %v11642_v56  ;;  %v11704_v16 = vsub.f32 %v10900_v31, %v29093_v44  ;;  %v29133_v31 = vmul.f32 %v28604_v24, %v28604_v24  ;;  %v29137_v44 = vmul.f32 %v30802_v54, %v30802_v54 }
 0x711   :  { %v21330_v59 = vpop.f32.mrf.mxu0  ;;  %v21370_v5 = vpop.f32.mrf.mxu1  ;;  %30805 = vst [vmem:[#allocation82_spill] sm:$0xff] %v29156_v48  ;;  %v29163_v54 = vmul.f32 %v28774_v52, %v30792_v25  ;;  %22214 = vrcp.f32 %v11896_v33  ;;  %v11680_v52 = vsub.f32 %v28981_v49, %v29076_v14  ;;  %v29181_v33 = vmul.f32 %v28939_v0, %v28939_v0 }
 0x712   :  { %v11768_v56 = vadd.f32 %v11696_v27, %v11678_v29  ;;  %v29129_v26 = vadd.f32 %v11704_v16, %v11686_v23  ;;  %v29141_v5 = vmul.f32 %v28823_v51, %v28823_v51  ;;  %v11879_v16 = vadd.f32 %v29109_v4, %v29099_v36 }
 0x713   :  { %v10735_v59 = vpop.f32.mrf.mxu0  ;;  %v11679_v23 = vsub.f32 %v28975_v6, %v11625_v13  ;;  %v11690_v27 = vsub.f32 %v29035_v11, %v29137_v44  ;;  %v11841_v49 = vmul.f32 2.0, %v29163_v54 }
 0x714   :  { %v11697_v29 = vsub.f32 %v10735_v59, %v11643_v17  ;;  %v30806_v17 = vld [vmem:[#allocation66_spill] sm:$0xff]  ;;  %v11880_v59 = vadd.f32 %v29141_v5, %v29103_v19  ;;  %v11897_v11 = vadd.f32 0.0001, %v11879_v16 }
 0x715   :  { %v21333_v24 = vpop.f32.mrf.mxu0  ;;  %v29167_v38 = vmul.f32 %v30806_v17, %v30806_v17  ;;  %v30808_v17 = vld [vmem:[#allocation26_spill] sm:$0xff] }
 0x716   :  { %v11769_v6 = vadd.f32 %v11697_v29, %v11679_v23  ;;  %v11050_v13 = vpop.f32.mrf.mxu1  ;;  %v11691_v23 = vsub.f32 %v29037_v1, %v29145_v32  ;;  %v11786_v29 = vadd.f32 0.0009, %v11768_v56  ;;  %v29198_v1 = vmul.f32 %v28814_v2, %v30799_v7 }
 0x717   :  { %30807 = vst [vmem:[#allocation39_spill] sm:$0xff] %v29167_v38  ;;  %v10740_v37 = vpop.f32.mrf.mxu0  ;;  %v11708_v24 = vsub.f32 %v11050_v13, %v29156_v48  ;;  %v29189_v38 = vmul.f32 %v30808_v17, %v30808_v17  ;;  %v11858_v48 = vadd.f32 0.0001, %v11840_v12  ;;  %v11898_v56 = vadd.f32 0.0001, %v11880_v59 }
 0x718   :  { %v11698_v25 = vsub.f32 %v10740_v37, %v29080_v10  ;;  %v21398_v35 = vpop.f32.mrf.mxu1  ;;  %v29194_v37 = vmul.f32 %v28786_v15, %v30793_v42  ;;  %22216 = vrcp.f32 %v11897_v11  ;;  %v11881_v12 = vadd.f32 %v29174_v8, %v29115_v34 }
 0x719   :  { %v29185_v13 = vadd.f32 %v11708_v24, %v11690_v27  ;;  %v21336_v16 = vpop.f32.mrf.mxu0  ;;  %v29208_v15 = vmul.f32 %v28823_v51, %v30800_v55  ;;  %22218 = vrcp.f32 %v11786_v29  ;;  %v11787_v2 = vadd.f32 0.0009, %v11769_v6 }
 0x71a   :  { %v11770_v14 = vadd.f32 %v11698_v25, %v11680_v52  ;;  %v11055_v10 = vpop.f32.mrf.mxu1  ;;  %v11681_v52 = vsub.f32 %v28987_v63, %v29099_v36  ;;  %v11859_v59 = vadd.f32 0.0001, %v11841_v49  ;;  %v29214_v11 = vmul.f32 %v28945_v3, %v28945_v3 }
 0x71b   :  { %v10810_v27 = vpop.f32.mrf.mxu0  ;;  %v11709_v24 = vsub.f32 %v11055_v10, %v29181_v33  ;;  %v11692_v63 = vsub.f32 %v29039_v50, %v29152_v61  ;;  %22220 = vrcp.f32 %v11898_v56  ;;  %v29223_v51 = vmul.f32 %v28838_v60, %v30801_v30 }
 0x71c   :  { %v11699_v25 = vsub.f32 %v10810_v27, %v29109_v4  ;;  %v21401_v35 = vpop.f32.mrf.mxu1  ;;  %v11842_v4 = vmul.f32 2.0, %v29194_v37  ;;  %v11882_v55 = vadd.f32 %v29049_v45, %v29043_v18  ;;  %v11899_v29 = vadd.f32 0.0001, %v11881_v12  ;;  %v30809_v12 = vld [vmem:[#allocation14_spill] sm:$0xff] }
 0x71d   :  { %v29210_v42 = vadd.f32 %v11709_v24, %v11691_v23  ;;  %v21347_v7 = vpop.f32.mrf.mxu0  ;;  %v11682_v16 = vsub.f32 %v28993_v43, %v29103_v19  ;;  %v11843_v10 = vmul.f32 2.0, %v29198_v1  ;;  %v11844_v56 = vmul.f32 2.0, %v29208_v15  ;;  %v22211_v24 = vpop.eup %22210 }
 0x71e   :  { %v29218_v36 = vadd.f32 %v11699_v25, %v11681_v52  ;;  %22222 = vrcp.f32 %v11787_v2  ;;  %v11788_v60 = vadd.f32 0.0009, %v11770_v14  ;;  %v29235_v18 = vmul.f32 %v28861_v9, %v30786_v62 }
 0x71f   :  { %v10815_v6 = vpop.f32.mrf.mxu0  ;;  %v11060_v23 = vpop.f32.mrf.mxu1  ;;  %v11883_v19 = vadd.f32 %v29065_v21, %v29054_v22  ;;  %v29245_v52 = vmul.f32 %v30809_v12, %v30809_v12  ;;  %v11860_v14 = vadd.f32 0.0001, %v11842_v4  ;;  %v11845_v25 = vmul.f32 2.0, %v29223_v51 }
 0x720   :  { %v11700_v50 = vsub.f32 %v10815_v6, %v29141_v5  ;;  %v11710_v49 = vsub.f32 %v11060_v23, %v29214_v11  ;;  %v22213_v5 = vpop.eup %22212  ;;  %v11900_v35 = vadd.f32 0.0001, %v11882_v55  ;;  %22224 = vrcp.f32 %v11899_v29 }
 0x721   :  { %v21350_v30 = vpop.f32.mrf.mxu0  ;;  %v21404_v27 = vpop.f32.mrf.mxu1  ;;  %v29250_v9 = vmul.f32 %v28873_v20, %v30788_v46  ;;  %v11683_v62 = vsub.f32 %v28999_v41, %v29115_v34  ;;  %22226 = vrcp.f32 %v11788_v60  ;;  %v11913_v23 = vmul.f32 %v22211_v24, %v11858_v48 }
 0x722   :  { %v29239_v43 = vadd.f32 %v11700_v50, %v11682_v16  ;;  %v29241_v45 = vadd.f32 %v11710_v49, %v11692_v63  ;;  %v22215_v7 = vpop.eup %22214  ;;  %v11861_v63 = vadd.f32 0.0001, %v11843_v10  ;;  %v11862_v55 = vadd.f32 0.0001, %v11844_v56 }
 0x723   :  { %v10820_v2 = vpop.f32.mrf.mxu0  ;;  %v11846_v16 = vmul.f32 2.0, %v29235_v18  ;;  %v11901_v29 = vadd.f32 0.0001, %v11883_v19  ;;  %22228 = vrcp.f32 %v11900_v35  ;;  %v11651_v41 = vmul.f32 %v28901_v57, %v28901_v57 }
 0x724   :  { %v11701_v22 = vsub.f32 %v10820_v2, %v29174_v8  ;;  %v11210_v21 = vpop.f32.mrf.mxu1  ;;  %v11915_v8 = vmul.f32 %v22213_v5, %v11859_v59  ;;  %v29261_v34 = vadd.f32 0.0001, %v11845_v25  ;;  %v11847_v49 = vmul.f32 2.0, %v29250_v9  ;;  %v30810_v25 = vld [vmem:[#allocation13_spill] sm:$0xff] }
 0x725   :  { %v11714_v4 = vsub.f32 %v11210_v21, %v29127_v58  ;;  %v21353_v6 = vpop.f32.mrf.mxu0  ;;  %v29266_v58 = vmul.f32 %v28881_v47, %v30795_v53  ;;  %v29268_v56 = vmul.f32 %v22215_v7, %v11860_v14  ;;  %v22217_v60 = vpop.eup %22216  ;;  %v11687_v30 = vsub.f32 %v29023_v40, %v29119_v39  ;;  %v30811_v53 = vld [vmem:[#allocation37_spill] sm:$0xff] }
 0x726   :  { %v29257_v50 = vadd.f32 %v11701_v22, %v11683_v62  ;;  %v21432_v20 = vpop.f32.mrf.mxu1  ;;  %v22219_v19 = vpop.eup %22218  ;;  %v29273_v5 = vadd.f32 0.0001, %v11846_v16  ;;  %22230 = vrcp.f32 %v11901_v29  ;;  %v29277_v47 = vmul.f32 %v30810_v25, %v30810_v25  ;;  %v30813_v6 = vld [vmem:[#allocation38_spill] sm:$0xff] }
 0x727   :  { %v11732_v46 = vmul.f32 2.0, %v11714_v4  ;;  %v11792_v35 = vadd.f32 0.0009, %v30811_v53  ;;  %v29282_v21 = vadd.f32 0.0001, %v11847_v49  ;;  %v30812_v4 = vld [vmem:[#allocation63_spill] sm:$0xff] }
 0x728   :  { %v10970_v48 = vpop.f32.mrf.mxu0  ;;  %v11215_v10 = vpop.f32.mrf.mxu1  ;;  %v11884_v16 = vadd.f32 %v30813_v6, %v30812_v4  ;;  %v30815_v49 = vld [vmem:[#allocation59_spill] sm:$0xff] }
 0x729   :  { %v11750_v27 = vadd.f32 0.0009, %v11732_v46  ;;  %v11705_v24 = vsub.f32 %v10970_v48, %v11651_v41  ;;  %v11715_v59 = vsub.f32 %v11215_v10, %v29163_v54  ;;  %v22221_v22 = vpop.eup %22220  ;;  %v11848_v54 = vmul.f32 2.0, %v29266_v58  ;;  %v30814_v48 = vld [vmem:[#allocation31_spill] sm:$0xff] }
 0x72a   :  { %v21381_v14 = vpop.f32.mrf.mxu0  ;;  %v21435_v2 = vpop.f32.mrf.mxu1  ;;  %v29287_v46 = vmul.f32 %v22217_v60, %v11861_v63  ;;  %v11688_v10 = vsub.f32 %v30814_v48, %v29123_v28  ;;  %22232 = vrcp.f32 %v11792_v35  ;;  %v30816_v60 = vld [vmem:[#allocation77_spill] sm:$0xff]  ;;  %v29304_v17 = vmul.f32 %v22221_v22, %v11862_v55 }
 0x72b   :  { %v29280_v7 = vadd.f32 %v11705_v24, %v11687_v30  ;;  %v11733_v62 = vmul.f32 2.0, %v11715_v59  ;;  %v11805_v40 = vmul.f32 %v22219_v19, %v11750_v27  ;;  %v22223_v59 = vpop.eup %22222  ;;  %v29295_v19 = vmul.f32 %v30815_v49, %v30815_v49 }
 0x72c   :  { %v10975_v29 = vpop.f32.mrf.mxu0  ;;  %v11220_v20 = vpop.f32.mrf.mxu1  ;;  %v11793_v4 = vadd.f32 0.0009, %v30816_v60  ;;  %v29301_v48 = vadd.f32 0.0001, %v11848_v54  ;;  %v30820_v60 = vld [vmem:[#allocation65_spill] sm:$0xff] }
 0x72d   :  { %v11751_v30 = vadd.f32 0.0009, %v11733_v62  ;;  %v11706_v24 = vsub.f32 %v10975_v29, %v29277_v47  ;;  %v11716_v27 = vsub.f32 %v11220_v20, %v29194_v37  ;;  %v12082_v14 = vsel %vm11966_vm7, %v11805_v40, 0.0  ;;  %v22225_v35 = vpop.eup %22224 }
 0x72e   :  { %v21384_v53 = vpop.f32.mrf.mxu0  ;;  %v11948_v2 = vmul.f32 %v11913_v23, %v11805_v40  ;;  %v21438_v63 = vpop.f32.mrf.mxu1  ;;  %12083 = vadd.xlane.f32.xlu0 %v12082_v14  ;;  %v11902_v37 = vadd.f32 0.0001, %v11884_v16  ;;  %v11885_v20 = vadd.f32 %v11651_v41, %v29119_v39  ;;  %22234 = vrcp.f32 %v11793_v4  ;;  %v30819_v14 = vld [vmem:[#allocation82_spill] sm:$0xff] }
 0x72f   :  { %v29299_v6 = vadd.f32 %v11706_v24, %v11688_v10  ;;  %v11734_v62 = vmul.f32 2.0, %v11716_v27  ;;  %v11807_v29 = vmul.f32 %v22223_v59, %v11751_v30  ;;  %v30817_v53 = vld [vmem:[#allocation32_spill] sm:$0xff]  ;;  %v22227_v24 = vpop.eup %22226  ;;  %v30818_v27 = vld [vmem:[#allocation10_spill] sm:$0xff]  ;;  %v11794_v41 = vadd.f32 0.0009, %v29129_v26 }
 0x730   :  { %v10980_v12 = vpop.f32.mrf.mxu0  ;;  %v11689_v23 = vsub.f32 %v30817_v53, %v29133_v31  ;;  %v29312_v54 = vmul.f32 %v28901_v57, %v30818_v27  ;;  %v11967_v39 = vsel %vm11966_vm7, %v11948_v2, 0.0  ;;  %v22229_v30 = vpop.eup %22228  ;;  %22236 = vrcp.f32 %v11902_v37  ;;  %v30822_v53 = vld [vmem:[#allocation29_spill] sm:$0xff] }
 0x731   :  { %v11752_v40 = vadd.f32 0.0009, %v11734_v62  ;;  %v11707_v63 = vsub.f32 %v10980_v12, %v29295_v19  ;;  %v12085_v10 = vsel %vm11966_vm7, %v11807_v29, 0.0  ;;  %v11949_v55 = vmul.f32 %v11915_v8, %v11807_v29 }
 0x732   :  { %v21387_v16 = vpop.f32.mrf.mxu0  ;;  %12086 = vadd.xlane.f32.xlu1 %v12085_v10  ;;  %11968 = vadd.xlane.f32.xlu0 %v11967_v39  ;;  %v11903_v59 = vadd.f32 0.0001, %v11885_v20  ;;  %v11888_v57 = vadd.f32 %v30819_v14, %v29137_v44  ;;  %v29322_v62 = vmul.f32 %v30820_v60, %v30820_v60  ;;  %v29328_v29 = vmul.f32 %v22225_v35, %v29261_v34  ;;  %v30821_v20 = vld [vmem:[#allocation39_spill] sm:$0xff]  ;;  %v30824_v39 = vld [vmem:[#allocation36_spill] sm:$0xff] }
 0x733   :  { %v29316_v22 = vadd.f32 %v11707_v63, %v11689_v23  ;;  %v11809_v12 = vmul.f32 %v22227_v24, %v11752_v40  ;;  %v11970_v4 = vsel %vm11966_vm7, %v11949_v55, 0.0  ;;  %v29331_v37 = vmul.f32 2.0, %v29312_v54  ;;  %v22231_v10 = vpop.eup %22230  ;;  %v30823_v24 = vld [vmem:[#allocation64_spill] sm:$0xff] }
 0x734   :  { %v11693_v44 = vsub.f32 %v30822_v53, %v30821_v20  ;;  %v11789_v23 = vadd.f32 0.0009, %v29218_v36  ;;  %v29339_v27 = vmul.f32 %v30810_v25, %v30823_v24  ;;  %22238 = vrcp.f32 %v11794_v41 }
 0x735   :  { %v11130_v2 = vpop.f32.mrf.mxu0  ;;  %v12088_v8 = vsel %vm11973_vm8, %v11809_v12, 0.0  ;;  %v11950_v26 = vmul.f32 %v29268_v56, %v11809_v12  ;;  %v11925_v35 = vmul.f32 %v22229_v30, %v29273_v5  ;;  %22240 = vrcp.f32 %v11903_v59 }
 0x736   :  { %v11711_v40 = vsub.f32 %v11130_v2, %v29322_v62  ;;  %v11370_v63 = vpop.f32.mrf.mxu1  ;;  %11971 = vadd.xlane.f32.xlu1 %v11970_v4  ;;  %12089 = vadd.xlane.f32.xlu0 %v12088_v8  ;;  %v11906_v16 = vadd.f32 0.0001, %v11888_v57  ;;  %v29345_v36 = vmul.f32 %v30824_v39, %v30824_v39  ;;  %v11886_v25 = vadd.f32 %v29277_v47, %v29123_v28 }
 0x737   :  { %v11720_v34 = vsub.f32 %v11370_v63, %v29235_v18  ;;  %v21415_v56 = vpop.f32.mrf.mxu0  ;;  %v11889_v41 = vadd.f32 %v29181_v33, %v29145_v32  ;;  %v30825_v18 = vld [vmem:[#allocation11_spill] sm:$0xff]  ;;  %22242 = vrcp.f32 %v11789_v23  ;;  %v11790_v30 = vadd.f32 0.0009, %v29239_v43  ;;  %v22233_v4 = vpop.eup %22232 }
 0x738   :  { %v29347_v55 = vadd.f32 %v11711_v40, %v11693_v44  ;;  %v21466_v12 = vpop.f32.mrf.mxu1  ;;  %v11694_v14 = vsub.f32 %v30825_v18, %v29189_v38  ;;  %v11974_v8 = vsel %vm11973_vm8, %v11950_v26, 0.0  ;;  %v11887_v28 = vadd.f32 %v29295_v19, %v29133_v31  ;;  %v30826_v44 = vld [vmem:[#allocation19_spill] sm:$0xff] }
 0x739   :  { %v11738_v2 = vmul.f32 2.0, %v11720_v34  ;;  %v11135_v5 = vpop.f32.mrf.mxu0  ;;  %v11927_v53 = vmul.f32 %v22231_v10, %v29282_v21  ;;  %22244 = vrcp.f32 %v11906_v16  ;;  %v29364_v43 = vmul.f32 %v30826_v44, %v30826_v44  ;;  %v30827_v34 = vld [vmem:[#allocation21_spill] sm:$0xff] }
 0x73a   :  { %v11712_v59 = vsub.f32 %v11135_v5, %v29345_v36  ;;  %v11375_v57 = vpop.f32.mrf.mxu1  ;;  %11975 = vadd.xlane.f32.xlu0 %v11974_v8  ;;  %v11798_v23 = vadd.f32 0.0009, %v29185_v13  ;;  %v11907_v63 = vadd.f32 0.0001, %v11889_v41  ;;  %v11890_v31 = vadd.f32 %v29214_v11, %v29152_v61  ;;  %v30828_v11 = vld [vmem:[#allocation71_spill] sm:$0xff] }
 0x73b   :  { %v11756_v47 = vadd.f32 0.0009, %v11738_v2  ;;  %v11721_v32 = vsub.f32 %v11375_v57, %v29250_v9  ;;  %v21418_v33 = vpop.f32.mrf.mxu0  ;;  %v11695_v21 = vsub.f32 %v30827_v34, %v29245_v52  ;;  %22246 = vrcp.f32 %v11790_v30  ;;  %v22235_v61 = vpop.eup %22234  ;;  %v30829_v2 = vld [vmem:[#allocation57_spill] sm:$0xff] }
 0x73c   :  { %v29367_v40 = vadd.f32 %v11712_v59, %v11694_v14  ;;  %v21469_v26 = vpop.f32.mrf.mxu1  ;;  %v11791_v10 = vadd.f32 0.0009, %v29257_v50  ;;  %v11672_v5 = vmul.f32 %v30829_v2, %v30828_v11  ;;  %22248 = vrcp.f32 %v11798_v23 }
 0x73d   :  { %v11739_v19 = vmul.f32 2.0, %v11721_v32  ;;  %v11140_v9 = vpop.f32.mrf.mxu0  ;;  %v11817_v24 = vmul.f32 %v22233_v4, %v11756_v47  ;;  %v11799_v59 = vadd.f32 0.0009, %v29210_v42  ;;  %v22237_v57 = vpop.eup %22236  ;;  %22250 = vrcp.f32 %v11907_v63  ;;  %v30830_v32 = vld [vmem:[#allocation24_spill] sm:$0xff] }
 0x73e   :  { %v11713_v56 = vsub.f32 %v11140_v9, %v29364_v43  ;;  %v11380_v16 = vpop.f32.mrf.mxu1  ;;  %v11908_v8 = vadd.f32 0.0001, %v11890_v31  ;;  %22252 = vrcp.f32 %v11791_v10  ;;  %v11795_v33 = vadd.f32 0.0009, %v29280_v7 }
 0x73f   :  { %v11757_v13 = vadd.f32 0.0009, %v11739_v19  ;;  %v11722_v12 = vsub.f32 %v11380_v16, %v29266_v58  ;;  %v21421_v18 = vpop.f32.mrf.mxu0  ;;  %v12100_v41 = vsel %vm11966_vm7, %v11817_v24, 0.0  ;;  %v11954_v14 = vmul.f32 %v11925_v35, %v11817_v24 }
 0x740   :  { %v29380_v30 = vadd.f32 %v11713_v56, %v11695_v21  ;;  %12101 = vadd.xlane.f32.xlu0 %v12100_v41  ;;  %v21472_v50 = vpop.f32.mrf.mxu1  ;;  %v29384_v35 = vmul.f32 %v28939_v0, %v30830_v32  ;;  %v11904_v24 = vadd.f32 0.0001, %v11886_v25  ;;  %22254 = vrcp.f32 %v11799_v59 }
 0x741   :  { %v11740_v4 = vmul.f32 2.0, %v11722_v12  ;;  %v11290_v58 = vpop.f32.mrf.mxu0  ;;  %v11819_v47 = vmul.f32 %v22235_v61, %v11757_v13  ;;  %v11986_v19 = vsel %vm11966_vm7, %v11954_v14, 0.0  ;;  %v22239_v31 = vpop.eup %22238  ;;  %v11800_v34 = vadd.f32 0.0009, %v29241_v45  ;;  %v30831_v61 = vld [vmem:[#allocation17_spill] sm:$0xff] }
 0x742   :  { %v11717_v23 = vsub.f32 %v11290_v58, %v29198_v1  ;;  %v29391_v0 = vpop.eup %22240  ;;  %v11852_v7 = vmul.f32 2.0, %v11672_v5  ;;  %22256 = vrcp.f32 %v11908_v8  ;;  %v11929_v10 = vmul.f32 %v22237_v57, %v29301_v48 }
 0x743   :  { %v11758_v42 = vadd.f32 0.0009, %v11740_v4  ;;  %v21449_v26 = vpop.f32.mrf.mxu0  ;;  %v12103_v9 = vsel %vm11966_vm7, %v11819_v47, 0.0  ;;  %v11955_v63 = vmul.f32 %v11927_v53, %v11819_v47  ;;  %v11905_v56 = vadd.f32 0.0001, %v11887_v28 }
 0x744   :  { %v11735_v21 = vmul.f32 2.0, %v11717_v23  ;;  %11987 = vadd.xlane.f32.xlu0 %v11986_v19  ;;  %12104 = vadd.xlane.f32.xlu1 %v12103_v9  ;;  %v11853_v16 = vmul.f32 2.0, %v29384_v35  ;;  %22258 = vrcp.f32 %v11795_v33  ;;  %v22243_v25 = vpop.eup %22242  ;;  %v29400_v11 = vmul.f32 %v28945_v3, %v30831_v61 }
 0x745   :  { %v11821_v1 = vmul.f32 %v22239_v31, %v11758_v42  ;;  %v11989_v41 = vsel %vm11966_vm7, %v11955_v63, 0.0  ;;  %22260 = vrcp.f32 %v11800_v34  ;;  %v29403_v50 = vadd.f32 0.0001, %v29331_v37 }
 0x746   :  { %v11753_v53 = vadd.f32 0.0009, %v11735_v21  ;;  %v11295_v13 = vpop.f32.mrf.mxu0  ;;  %v22245_v59 = vpop.eup %22244  ;;  %v11870_v57 = vadd.f32 0.0001, %v11852_v7  ;;  %22262 = vrcp.f32 %v11904_v24  ;;  %v11796_v3 = vadd.f32 0.0009, %v29299_v6 }
 0x747   :  { %v11718_v12 = vsub.f32 %v11295_v13, %v29208_v15  ;;  %v11530_v45 = vpop.f32.mrf.mxu1  ;;  %v12106_v18 = vsel %vm11973_vm8, %v11821_v1, 0.0  ;;  %v11956_v14 = vmul.f32 %v11929_v10, %v11821_v1  ;;  %v29406_v15 = vmul.f32 2.0, %v29339_v27 }
 0x748   :  { %v11811_v48 = vmul.f32 %v22243_v25, %v11753_v53  ;;  %v11726_v28 = vsub.f32 %v11530_v45, %v11672_v5  ;;  %12107 = vadd.xlane.f32.xlu0 %v12106_v18  ;;  %11990 = vadd.xlane.f32.xlu1 %v11989_v41  ;;  %v21452_v2 = vpop.f32.mrf.mxu0  ;;  %v22247_v32 = vpop.eup %22246  ;;  %22264 = vrcp.f32 %v11905_v56  ;;  %v11871_v26 = vadd.f32 0.0001, %v11853_v16 }
 0x749   :  { %v11736_v8 = vmul.f32 2.0, %v11718_v12  ;;  %v21500_v4 = vpop.f32.mrf.mxu1  ;;  %v11992_v37 = vsel %vm11973_vm8, %v11956_v14, 0.0  ;;  %v11854_v19 = vmul.f32 2.0, %v29400_v11  ;;  %v22249_v31 = vpop.eup %22248  ;;  %v11937_v7 = vmul.f32 %v22245_v59, %v11870_v57 }
 0x74a   :  { %v11744_v58 = vmul.f32 2.0, %v11726_v28  ;;  %v11300_v47 = vpop.f32.mrf.mxu0  ;;  %v11951_v5 = vmul.f32 %v29287_v46, %v11811_v48  ;;  %v11891_v46 = vadd.f32 %v29322_v62, %v30821_v20  ;;  %v22251_v1 = vpop.eup %22250  ;;  %22266 = vrcp.f32 %v11796_v3 }
 0x74b   :  { %v11754_v33 = vadd.f32 0.0009, %v11736_v8  ;;  %v11535_v23 = vpop.f32.mrf.mxu1  ;;  %v11719_v42 = vsub.f32 %v11300_v47, %v29223_v51  ;;  %v12091_v56 = vsel %vm11966_vm7, %v11811_v48, 0.0  ;;  %v22253_v53 = vpop.eup %22252  ;;  %v11797_v20 = vadd.f32 0.0009, %v29316_v22 }
 0x74c   :  { %v11762_v9 = vadd.f32 0.0009, %v11744_v58  ;;  %v11727_v63 = vsub.f32 %v11535_v23, %v29384_v35  ;;  %11993 = vadd.xlane.f32.xlu0 %v11992_v37  ;;  %v21455_v6 = vpop.f32.mrf.mxu0  ;;  %v11872_v48 = vadd.f32 0.0001, %v11854_v19  ;;  %v11909_v28 = vadd.f32 0.0001, %v11891_v46 }
 0x74d   :  { %v21503_v24 = vpop.f32.mrf.mxu1  ;;  %v11813_v34 = vmul.f32 %v22247_v32, %v11754_v33  ;;  %v11737_v21 = vmul.f32 2.0, %v11719_v42  ;;  %v22255_v61 = vpop.eup %22254  ;;  %v11939_v22 = vmul.f32 %v22251_v1, %v11871_v26  ;;  %v11977_v58 = vsel %vm11966_vm7, %v11951_v5, 0.0  ;;  %v30832_v42 = vld [vmem:[#allocation23_spill] sm:$0xff] }
 0x74e   :  { %v11829_v10 = vmul.f32 %v22249_v31, %v11762_v9  ;;  %v11745_v51 = vmul.f32 2.0, %v11727_v63  ;;  %v11450_v16 = vpop.f32.mrf.mxu0  ;;  %22268 = vrcp.f32 %v11797_v20  ;;  %v11801_v33 = vadd.f32 0.0009, %v29347_v55 }
 0x74f   :  { %v11540_v13 = vpop.f32.mrf.mxu1  ;;  %v12094_v35 = vsel %vm11966_vm7, %v11813_v34, 0.0  ;;  %v11755_v25 = vadd.f32 0.0009, %v11737_v21  ;;  %v11952_v12 = vmul.f32 %v29304_v17, %v11813_v34  ;;  %v11723_v62 = vsub.f32 %v11450_v16, %v29312_v54  ;;  %v22257_v8 = vpop.eup %22256 }
 0x750   :  { %v11763_v45 = vadd.f32 0.0009, %v11745_v51  ;;  %v11728_v18 = vsub.f32 %v11540_v13, %v29400_v11  ;;  %12095 = vadd.xlane.f32.xlu1 %v12094_v35  ;;  %12092 = vadd.xlane.f32.xlu0 %v12091_v56  ;;  %v21483_v41 = vpop.f32.mrf.mxu0  ;;  %v11960_v14 = vmul.f32 %v11937_v7, %v11829_v10  ;;  %v11892_v17 = vadd.f32 %v29345_v36, %v29189_v38 }
 0x751   :  { %v21506_v2 = vpop.f32.mrf.mxu1  ;;  %v11815_v59 = vmul.f32 %v22253_v53, %v11755_v25  ;;  %v11741_v57 = vmul.f32 2.0, %v11723_v62  ;;  %v22259_v3 = vpop.eup %22258  ;;  %v11980_v11 = vsel %vm11966_vm7, %v11952_v12, 0.0  ;;  %v11671_v26 = vmul.f32 %v30815_v49, %v30832_v42 }
 0x752   :  { %v11746_v54 = vmul.f32 2.0, %v11728_v18  ;;  %v11831_v4 = vmul.f32 %v22255_v61, %v11763_v45  ;;  %v22261_v36 = vpop.eup %22260  ;;  %22270 = vrcp.f32 %v11909_v28  ;;  %v11931_v5 = vmul.f32 %v29391_v0, %v29403_v50 }
 0x753   :  { %v11759_v47 = vadd.f32 0.0009, %v11741_v57  ;;  %v29427_v32 = vmul.f32 %v29328_v29, %v11815_v59  ;;  %v11910_v29 = vadd.f32 0.0001, %v11892_v17  ;;  %v11893_v9 = vadd.f32 %v29364_v43, %v29245_v52  ;;  %v22263_v31 = vpop.eup %22262 }
 0x754   :  { %v11764_v23 = vadd.f32 0.0009, %v11746_v54  ;;  %v21534_v37 = vpop.f32.mrf.mxu1  ;;  %11981 = vadd.xlane.f32.xlu1 %v11980_v11  ;;  %11978 = vadd.xlane.f32.xlu0 %v11977_v58  ;;  %v29430_v38 = vmul.f32 %v11939_v22, %v11831_v4  ;;  %v11941_v6 = vmul.f32 %v22257_v8, %v11872_v48  ;;  %v12118_v46 = vsel %vm11966_vm7, %v11829_v10, 0.0  ;;  %v30833_v10 = vld [vmem:[#allocation66_spill] sm:$0xff] }
 0x755   :  { %v11823_v19 = vmul.f32 %v22259_v3, %v11759_v47  ;;  %v12121_v24 = vsel %vm11966_vm7, %v11831_v4, 0.0  ;;  %v22265_v21 = vpop.eup %22264  ;;  %22272 = vrcp.f32 %v11801_v33  ;;  %v11802_v0 = vadd.f32 0.0009, %v29367_v40  ;;  %v30835_v3 = vld [vmem:[#allocation14_spill] sm:$0xff] }
 0x756   :  { %v29438_v55 = vmul.f32 %v22261_v36, %v11764_v23  ;;  %v12268_v63 = vpop.f32.mrf.mxu1  ;;  %v11868_v7 = vadd.f32 0.0001, %v29406_v15  ;;  %v11851_v1 = vmul.f32 2.0, %v11671_v26  ;;  %v11675_v51 = vmul.f32 %v30820_v60, %v30833_v10 }
 0x757   :  { %v11455_v34 = vpop.f32.mrf.mxu0  ;;  %v29442_v49 = vmul.f32 %v11931_v5, %v11823_v19  ;;  %22274 = vrcp.f32 %v11910_v29  ;;  %v11911_v16 = vadd.f32 0.0001, %v11893_v9  ;;  %v22267_v13 = vpop.eup %22266  ;;  %v11803_v35 = vadd.f32 0.0009, %v29380_v30  ;;  %v30834_v30 = vld [vmem:[#allocation26_spill] sm:$0xff] }
 0x758   :  { %v21537_v50 = vpop.f32.mrf.mxu1  ;;  %12119 = vadd.xlane.f32.xlu0 %v12118_v46  ;;  %12122 = vadd.xlane.f32.xlu1 %v12121_v24  ;;  %v11724_v52 = vsub.f32 %v11455_v34, %v29339_v27  ;;  %v29447_v43 = vmul.f32 %v11941_v6, %v29438_v55  ;;  %v12004_v27 = vsel %vm11966_vm7, %v11960_v14, 0.0  ;;  %22276 = vrcp.f32 %v11802_v0 }
 0x759   :  { %21604 = vmatprep.subr.mxu0 %v21537_v50  ;;  %v21486_v56 = vpop.f32.mrf.mxu0  ;;  %v12097_v60 = vsel %vm11973_vm8, %v11815_v59, 0.0  ;;  %v11869_v20 = vadd.f32 0.0001, %v11851_v1  ;;  %v11855_v45 = vmul.f32 2.0, %v11675_v51  ;;  %v11933_v41 = vmul.f32 %v22263_v31, %v11868_v7  ;;  %v29465_v59 = vld [vmem:[%s30089_s9 + $0x8] sm:$0xff] }
 0x75a   :  { %v12278_v53 = vpop.f32.mrf.mxu1  ;;  %21605 = vmatpush3.msra.mxu0 %v21537_v50  ;;  %v11742_v40 = vmul.f32 2.0, %v11724_v52  ;;  %v11676_v61 = vmul.f32 %v30824_v39, %v30834_v30  ;;  %22278 = vrcp.f32 %v11911_v16  ;;  %v12109_v2 = vsel %vm11966_vm7, %v11823_v19, 0.0 }
 0x75b   :  { %21606 = vmatprep.subr.mxu0 %v12278_v53  ;;  %v11460_v25 = vpop.f32.mrf.mxu0  ;;  %22280 = vrcp.f32 %v11803_v35  ;;  %v12007_v39 = vsel %vm11966_vm7, %v29430_v38, 0.0  ;;  %v22269_v22 = vpop.eup %22268  ;;  %v11677_v11 = vmul.f32 %v30826_v44, %v30835_v3  ;;  %v11935_v47 = vmul.f32 %v22265_v21, %v11869_v20  ;;  %v29482_v44 = vld [vmem:[%s30089_s9] sm:$0xff] }
 0x75c   :  { %v29454_v15 = vpop.f32.mrf.mxu1  ;;  %21607 = vmatpush3.msra.mxu0 %v12278_v53  ;;  %12005 = vadd.xlane.f32.xlu0 %v12004_v27  ;;  %v11760_v12 = vadd.f32 0.0009, %v11742_v40  ;;  %v11725_v62 = vsub.f32 %v11460_v25, %v11671_v26  ;;  %v11873_v23 = vadd.f32 0.0001, %v11855_v45  ;;  %v12124_v26 = vsel %vm11973_vm8, %v29438_v55, 0.0 }
 0x75d   :  { %21608 = vmatprep.subr.mxu0 %v21534_v37  ;;  %12098 = vadd.xlane.f32.xlu1 %v12097_v60  ;;  %v21489_v18 = vpop.f32.mrf.mxu0  ;;  %v11983_v29 = vsel %vm11973_vm8, %v29427_v32, 0.0  ;;  %v11857_v31 = vmul.f32 2.0, %v11677_v11  ;;  %v11995_v7 = vsel %vm11966_vm7, %v29442_v49, 0.0 }
 0x75e   :  { %v29459_v14 = vpop.f32.mrf.mxu1  ;;  %21609 = vmatpush3.msra.mxu0 %v21534_v37  ;;  %v11825_v48 = vmul.f32 %v22267_v13, %v11760_v12  ;;  %v11743_v28 = vmul.f32 2.0, %v11725_v62  ;;  %v11856_v37 = vmul.f32 2.0, %v11676_v61  ;;  %v12010_v62 = vsel %vm11973_vm8, %v29447_v43, 0.0 }
 0x75f   :  { %21610 = vmatprep.subr.mxu0 %v12268_v63  ;;  %v11610_v57 = vpop.f32.mrf.mxu0  ;;  %v22271_v33 = vpop.eup %22270  ;;  %v11875_v13 = vadd.f32 0.0001, %v11857_v31 }
 0x760   :  { %v21543_v8 = vpop.f32.mrf.mxu1  ;;  %21611 = vmatpush3.msra.mxu0 %v12268_v63  ;;  %12110 = vadd.xlane.f32.xlu0 %v12109_v2  ;;  %v11761_v17 = vadd.f32 0.0009, %v11743_v28  ;;  %v11729_v54 = vsub.f32 %v11610_v57, %v11675_v51  ;;  %v29469_v4 = vmul.f32 %v11933_v41, %v11825_v48  ;;  %v11874_v24 = vadd.f32 0.0001, %v11856_v37 }
 0x761   :  { %21615 = vmatprep.subr.mxu0 %v21543_v8  ;;  %12008 = vadd.xlane.f32.xlu1 %v12007_v39  ;;  %v21517_v58 = vpop.f32.mrf.mxu0  ;;  %v11943_v50 = vmul.f32 %v22271_v33, %v11873_v23  ;;  %v12112_v32 = vsel %vm11966_vm7, %v11825_v48, 0.0 }
 0x762   :  { %v12298_v36 = vpop.f32.mrf.mxu1  ;;  %21613 = vmatmul.mubr.msk.f32.vlgmr.msra.gmra.mxu0 %vm8189_vm6, %v29465_v59  ;;  %v29475_v38 = vmul.f32 %v22269_v22, %v11761_v17  ;;  %v11747_v42 = vmul.f32 2.0, %v11729_v54  ;;  %v22273_v55 = vpop.eup %22272  ;;  %v11998_v18 = vsel %vm11966_vm7, %v29469_v4, 0.0 }
 0x763   :  { %21616 = vmatpush3.msra.mxu0 %v21543_v8  ;;  %21623 = vmatprep.mubr.msk.f32.mxu0 %vm8189_vm6, %v29482_v44  ;;  %v11615_v19 = vpop.f32.mrf.mxu0 }
 0x764   :  { %21617 = vmatprep.subr.mxu0 %v12298_v36  ;;  %v21546_v5 = vpop.f32.mrf.mxu1  ;;  %12125 = vadd.xlane.f32.xlu0 %v12124_v26  ;;  %v11765_v9 = vadd.f32 0.0009, %v11747_v42  ;;  %v11730_v63 = vsub.f32 %v11615_v19, %v11676_v61  ;;  %v29489_v6 = vmul.f32 %v11935_v47, %v29475_v38  ;;  %v22275_v52 = vpop.eup %22274  ;;  %v12115_v57 = vsel %vm11973_vm8, %v29475_v38, 0.0 }
 0x765   :  { %21618 = vmatpush3.msra.mxu0 %v12298_v36  ;;  %11984 = vadd.xlane.f32.xlu1 %v11983_v29  ;;  %v21520_v46 = vpop.f32.mrf.mxu0  ;;  %v22277_v40 = vpop.eup %22276 }
 0x766   :  { %21619 = vmatprep.subr.mxu0 %v29454_v15  ;;  %v12308_v34 = vpop.f32.mrf.mxu1  ;;  %v11835_v21 = vmul.f32 %v22273_v55, %v11765_v9  ;;  %v11748_v0 = vmul.f32 2.0, %v11730_v63  ;;  %v12001_v22 = vsel %vm11973_vm8, %v29489_v6, 0.0 }
 0x767   :  { %21620 = vmatpush3.msra.mxu0 %v29454_v15  ;;  %v11620_v1 = vpop.f32.mrf.mxu0  ;;  %v11945_v15 = vmul.f32 %v22275_v52, %v11874_v24  ;;  %v22279_v12 = vpop.eup %22278  ;;  %v30836_v52 = vld [vmem:[#allocation62_spill] sm:$0xff] }
 0x768   :  { %21621 = vmatprep.subr.mxu0 %v29459_v14  ;;  %v21549_v10 = vpop.f32.mrf.mxu1  ;;  %11996 = vadd.xlane.f32.xlu0 %v11995_v7  ;;  %v11766_v51 = vadd.f32 0.0009, %v11748_v0  ;;  %v11731_v56 = vsub.f32 %v11620_v1, %v11677_v11  ;;  %v12127_v16 = vsel %vm11966_vm7, %v11835_v21, 0.0  ;;  %v11963_v53 = vmul.f32 %v11943_v50, %v11835_v21  ;;  %v22281_v20 = vpop.eup %22280  ;;  %v13415_v50 = vld [vmem:[%s30090_s6 + $0x8] sm:$0xff]  ;;  %v13414_v1 = vld [vmem:[%s30090_s6] sm:$0xff] }
 0x769   :  { %21622 = vmatpush3.msra.mxu0 %v29459_v14  ;;  %12113 = vadd.xlane.f32.xlu1 %v12112_v32  ;;  %v21523_v35 = vpop.f32.mrf.mxu0  ;;  %v11947_v28 = vmul.f32 %v22279_v12, %v11875_v13  ;;  %v30837_v32 = vld [vmem:[#allocation30_spill] sm:$0xff]  ;;  %v30843_v12 = vld [vmem:[#allocation35_spill] sm:$0xff] }
 0x76a   :  { %21626 = vmatprep.subr.mxu0 %v21549_v10  ;;  %v12318_v27 = vpop.f32.mrf.mxu1  ;;  %21624 = vmatmul.mubr.msk.f32.vlgmr.msra.gmra.mxu0 %vm8189_vm6, %v29465_v59  ;;  %v11837_v49 = vmul.f32 %v22277_v40, %v11766_v51  ;;  %v11749_v25 = vmul.f32 2.0, %v11731_v56  ;;  %v12013_v60 = vsel %vm11966_vm7, %v11963_v53, 0.0  ;;  %v6226_v7 = vadd.f32 %v30837_v32, %v30836_v52  ;;  %v30838_v51 = vld [vmem:[#allocation61_spill] sm:$0xff]  ;;  %v30840_v40 = vld [vmem:[#allocation12_spill] sm:$0xff] }
 0x76b   :  { %21627 = vmatpush3.msra.mxu0 %v21549_v10  ;;  %21634 = vmatprep.mubr.msk.f32.mxu0 %vm8189_vm6, %v29482_v44  ;;  %v30839_v56 = vld [vmem:[#allocation33_spill] sm:$0xff]  ;;  %v30841_v35 = vld [vmem:[#allocation60_spill] sm:$0xff] }
 0x76c   :  { %21628 = vmatprep.subr.mxu0 %v12318_v27  ;;  %v21552_v45 = vpop.f32.mrf.mxu1  ;;  %12011 = vadd.xlane.f32.xlu0 %v12010_v62  ;;  %v11767_v41 = vadd.f32 0.0009, %v11749_v25  ;;  %v12130_v30 = vsel %vm11966_vm7, %v11837_v49, 0.0  ;;  %v11964_v61 = vmul.f32 %v11945_v15, %v11837_v49  ;;  %v6227_v13 = vadd.f32 %v6226_v7, %v30840_v40  ;;  %v30842_v25 = vld [vmem:[#allocation25_spill] sm:$0xff] }
 0x76d   :  { %21629 = vmatpush3.msra.mxu0 %v12318_v27  ;;  %11999 = vadd.xlane.f32.xlu1 %v11998_v18 }
 0x76e   :  { %21630 = vmatprep.subr.mxu0 %v21546_v5  ;;  %v12328_v14 = vpop.f32.mrf.mxu1  ;;  %v11839_v48 = vmul.f32 %v22281_v20, %v11767_v41  ;;  %v12016_v43 = vsel %vm11966_vm7, %v11964_v61, 0.0  ;;  %21736 = vmatprep.subr.mxu1 %v13415_v50  ;;  %v6228_v15 = vadd.f32 %v6227_v13, %v30842_v25 }
 0x76f   :  { %21631 = vmatpush3.msra.mxu0 %v21546_v5  ;;  %21737 = vmatpush3.msra.mxu1 %v13415_v50  ;;  %v30859_v50 = vld [vmem:[#allocation93_spill] sm:$0xff] }
 0x770   :  { %21632 = vmatprep.subr.mxu0 %v12308_v34  ;;  %v21555_v2 = vpop.f32.mrf.mxu1  ;;  %12128 = vadd.xlane.f32.xlu0 %v12127_v16  ;;  %v12133_v8 = vsel %vm11973_vm8, %v11839_v48, 0.0  ;;  %v11965_v39 = vmul.f32 %v11947_v28, %v11839_v48  ;;  %v6437_v16 = vadd.f32 %v30839_v56, %v30838_v51  ;;  %v30861_v51 = vld [vmem:[#allocation107_spill] sm:$0xff] }
 0x771   :  { %21633 = vmatpush3.msra.mxu0 %v12308_v34  ;;  %12116 = vadd.xlane.f32.xlu1 %v12115_v57  ;;  %v30848_v57 = vld [vmem:[#allocation43_spill] sm:$0xff] }
 0x772   :  { %21637 = vmatprep.subr.mxu0 %v21555_v2  ;;  %v12338_v17 = vpop.f32.mrf.mxu1  ;;  %21635 = vmatmul.mubr.msk.f32.vlgmr.msra.gmra.mxu0 %vm8189_vm6, %v29465_v59  ;;  %v12019_v54 = vsel %vm11973_vm8, %v11965_v39, 0.0  ;;  %v6438_v27 = vadd.f32 %v6437_v16, %v30841_v35  ;;  %v30849_v39 = vld [vmem:[#allocation15_spill] sm:$0xff]  ;;  %v30862_v16 = vld [vmem:[#allocation108_spill] sm:$0xff] }
 0x773   :  { %21638 = vmatpush3.msra.mxu0 %v21555_v2  ;;  %21645 = vmatprep.mubr.msk.f32.mxu0 %vm8189_vm6, %v29482_v44 }
 0x774   :  { %21639 = vmatprep.subr.mxu0 %v12338_v17  ;;  %v21558_v4 = vpop.f32.mrf.mxu1  ;;  %12014 = vadd.xlane.f32.xlu0 %v12013_v60  ;;  %v6439_v62 = vadd.f32 %v6438_v27, %v30843_v12 }
 0x775   :  { %21640 = vmatpush3.msra.mxu0 %v12338_v17  ;;  %12002 = vadd.xlane.f32.xlu1 %v12001_v22  ;;  %v6442_v17 = vsel %vm6231_vm4, %v30849_v39, 0.0 }
 0x776   :  { %21641 = vmatprep.subr.mxu0 %v21552_v45  ;;  %v12348_v3 = vpop.f32.mrf.mxu1  ;;  %21738 = vmatprep.subr.mxu1 %v13414_v1 }
 0x777   :  { %21642 = vmatpush3.msra.mxu0 %v21552_v45  ;;  %21739 = vmatpush3.msra.mxu1 %v13414_v1  ;;  %v30844_v45 = vld [vmem:[#allocation34_spill] sm:$0xff] }
 0x778   :  { %21643 = vmatprep.subr.mxu0 %v12328_v14  ;;  %v21561_v11 = vpop.f32.mrf.mxu1  ;;  %v6229_v18 = vadd.f32 %v6228_v15, %v30844_v45  ;;  %v30860_v1 = vld [vmem:[#allocation94_spill] sm:$0xff] }
 0x779   :  { %21644 = vmatpush3.msra.mxu0 %v12328_v14  ;;  %12131 = vadd.xlane.f32.xlu1 %v12130_v30  ;;  %v30845_v30 = vld [vmem:[#allocation75_spill] sm:$0xff]  ;;  %v30846_v14 = vld [vmem:[#allocation85_spill] sm:$0xff] }
 0x77a   :  { %21648 = vmatprep.subr.mxu0 %v21561_v11  ;;  %v12358_v58 = vpop.f32.mrf.mxu1  ;;  %21646 = vmatmul.mubr.msk.f32.vlgmr.msra.gmra.mxu0 %vm8189_vm6, %v29465_v59  ;;  %v6440_v61 = vadd.f32 %v6439_v62, %v30845_v30  ;;  %v6230_v48 = vadd.f32 %v6229_v18, %v30846_v14 }
 0x77b   :  { %21649 = vmatpush3.msra.mxu0 %v21561_v11  ;;  %21656 = vmatprep.mubr.msk.f32.mxu0 %vm8189_vm6, %v29482_v44  ;;  %v30850_v11 = vmov 0.0  }
 0x77c   :  { %21650 = vmatprep.subr.mxu0 %v12358_v58  ;;  %v21564_v47 = vpop.f32.mrf.mxu1 }
 0x77d   :  { %21651 = vmatpush3.msra.mxu0 %v12358_v58  ;;  %12017 = vadd.xlane.f32.xlu1 %v12016_v43  ;;  %v30847_v43 = vld [vmem:[#allocation79_spill] sm:$0xff] }
 0x77e   :  { %21652 = vmatprep.subr.mxu0 %v21558_v4  ;;  %v12368_v33 = vpop.f32.mrf.mxu1  ;;  %v6232_v28 = vsel %vm6231_vm4, %v30847_v43, 0.0 }
 0x77f   :  { %21653 = vmatpush3.msra.mxu0 %v21558_v4 }
 0x780   :  { %21654 = vmatprep.subr.mxu0 %v12348_v3  ;;  %v21567_v23 = vpop.f32.mrf.mxu1 }
 0x781   :  { %21655 = vmatpush3.msra.mxu0 %v12348_v3  ;;  %12134 = vadd.xlane.f32.xlu1 %v12133_v8  ;;  %v6441_v8 = vadd.f32 %v6440_v61, %v30848_v57 }
 0x782   :  { %21659 = vmatprep.subr.mxu0 %v21567_v23  ;;  %v12378_v37 = vpop.f32.mrf.mxu1  ;;  %21657 = vmatmul.mubr.msk.f32.vlgmr.msra.gmra.mxu0 %vm8189_vm6, %v29465_v59 }
 0x783   :  { %21660 = vmatpush3.msra.mxu0 %v21567_v23  ;;  %21667 = vmatprep.mubr.msk.f32.mxu0 %vm8189_vm6, %v29482_v44  ;;  %v6443_v4 = vadd.f32 %v6442_v17, %v6441_v8 }
 0x784   :  { %21661 = vmatprep.subr.mxu0 %v12378_v37  ;;  %v21570_v36 = vpop.f32.mrf.mxu1 }
 0x785   :  { %21662 = vmatpush3.msra.mxu0 %v12378_v37  ;;  %12020 = vadd.xlane.f32.xlu1 %v12019_v54  ;;  %v6233_v54 = vadd.f32 %v6232_v28, %v6230_v48  ;;  %v6444_v58 = vrot.slane %v6443_v4, 4 }
 0x786   :  { %21663 = vmatprep.subr.mxu0 %v21564_v47  ;;  %v12388_v38 = vpop.f32.mrf.mxu1 }
 0x787   :  { %21664 = vmatpush3.msra.mxu0 %v21564_v47  ;;  %v6234_v3 = vrot.slane %v6233_v54, 4  ;;  %v30851_v47 = vld [vmem:[#allocation89_spill] sm:$0xff] }
 0x788   :  { %21665 = vmatprep.subr.mxu0 %v12368_v33  ;;  %v21573_v42 = vpop.f32.mrf.mxu1 }
 0x789   :  { %21666 = vmatpush3.msra.mxu0 %v12368_v33  ;;  %v30852_v33 = vld [vmem:[#allocation91_spill] sm:$0xff] }
 0x78a   :  { %21670 = vmatprep.subr.mxu0 %v21573_v42  ;;  %v12398_v26 = vpop.f32.mrf.mxu1  ;;  %21668 = vmatmul.mubr.msk.f32.vlgmr.msra.gmra.mxu0 %vm8189_vm6, %v29465_v59  ;;  %v6253_v23 = vadd.f32 %v30852_v33, %v30851_v47 }
 0x78b   :  { %21671 = vmatpush3.msra.mxu0 %v21573_v42  ;;  %21678 = vmatprep.mubr.msk.f32.mxu0 %vm8189_vm6, %v29482_v44  ;;  %v30853_v42 = vld [vmem:[#allocation92_spill] sm:$0xff] }
 0x78c   :  { %21672 = vmatprep.subr.mxu0 %v12398_v26  ;;  %v21576_v19 = vpop.f32.mrf.mxu1 }
 0x78d   :  { %21673 = vmatpush3.msra.mxu0 %v12398_v26  ;;  %v30854_v26 = vld [vmem:[#allocation45_spill] sm:$0xff] }
 0x78e   :  { %21674 = vmatprep.subr.mxu0 %v21570_v36  ;;  %v12408_v5 = vpop.f32.mrf.mxu1 }
 0x78f   :  { %21675 = vmatpush3.msra.mxu0 %v21570_v36 }
 0x790   :  { %21676 = vmatprep.subr.mxu0 %v12388_v38  ;;  %v21579_v29 = vpop.f32.mrf.mxu1 }
 0x791   :  { %21677 = vmatpush3.msra.mxu0 %v12388_v38  ;;  %v6235_v38 = vadd.f32 %v6234_v3, %v6233_v54 }
 0x792   :  { %21681 = vmatprep.subr.mxu0 %v21579_v29  ;;  %v12418_v9 = vpop.f32.mrf.mxu1  ;;  %21679 = vmatmul.mubr.msk.f32.vlgmr.msra.gmra.mxu0 %vm8189_vm6, %v29465_v59 }
 0x793   :  { %21682 = vmatpush3.msra.mxu0 %v21579_v29  ;;  %21689 = vmatprep.mubr.msk.f32.mxu0 %vm8189_vm6, %v29482_v44 }
 0x794   :  { %21683 = vmatprep.subr.mxu0 %v12418_v9  ;;  %v21582_v63 = vpop.f32.mrf.mxu1 }
 0x795   :  { %21684 = vmatpush3.msra.mxu0 %v12418_v9  ;;  %v6445_v9 = vadd.f32 %v6444_v58, %v6443_v4 }
 0x796   :  { %21685 = vmatprep.subr.mxu0 %v21576_v19  ;;  %v12428_v6 = vpop.f32.mrf.mxu1 }
 0x797   :  { %21686 = vmatpush3.msra.mxu0 %v21576_v19  ;;  %v6463_v19 = vadd.f32 %v30854_v26, %v30853_v42  ;;  %v6446_v7 = vrot.slane %v6445_v9, 2 }
 0x798   :  { %21687 = vmatprep.subr.mxu0 %v12408_v5  ;;  %v21585_v55 = vpop.f32.mrf.mxu1 }
 0x799   :  { %21688 = vmatpush3.msra.mxu0 %v12408_v5  ;;  %v30855_v5 = vld [vmem:[#allocation87_spill] sm:$0xff]  ;;  %v6447_v18 = vadd.f32 %v6446_v7, %v6445_v9 }
 0x79a   :  { %21692 = vmatprep.subr.mxu0 %v21585_v55  ;;  %v12438_v31 = vpop.f32.mrf.mxu1  ;;  %21690 = vmatmul.mubr.msk.f32.vlgmr.msra.gmra.mxu0 %vm8189_vm6, %v29465_v59  ;;  %v6254_v29 = vadd.f32 %v6253_v23, %v30855_v5 }
 0x79b   :  { %21693 = vmatpush3.msra.mxu0 %v21585_v55  ;;  %21700 = vmatprep.mubr.msk.f32.mxu0 %vm8189_vm6, %v29482_v44  ;;  %v6448_v57 = vrot.slane %v6447_v18, 1 }
 0x79c   :  { %21694 = vmatprep.subr.mxu0 %v12438_v31  ;;  %v21588_v46 = vpop.f32.mrf.mxu1 }
 0x79d   :  { %21695 = vmatpush3.msra.mxu0 %v12438_v31  ;;  %v6449_v47 = vadd.f32 %v6448_v57, %v6447_v18 }
 0x79e   :  { %21696 = vmatprep.subr.mxu0 %v21582_v63  ;;  %v12448_v24 = vpop.f32.mrf.mxu1 }
 0x79f   :  { %21697 = vmatpush3.msra.mxu0 %v21582_v63 }
 0x7a0   :  { %21698 = vmatprep.subr.mxu0 %v12428_v6  ;;  %v21591_v34 = vpop.f32.mrf.mxu1 }
 0x7a1   :  { %21699 = vmatpush3.msra.mxu0 %v12428_v6  ;;  %v30857_v6 = vld [vmem:[#allocation48_spill] sm:$0xff] }
 0x7a2   :  { %21703 = vmatprep.subr.mxu0 %v21591_v34  ;;  %v12458_v21 = vpop.f32.mrf.mxu1  ;;  %21701 = vmatmul.mubr.msk.f32.vlgmr.msra.gmra.mxu0 %vm8189_vm6, %v29465_v59  ;;  %v6255_v55 = vadd.f32 %v6254_v29, %v30857_v6  ;;  %v6515_v29 = vmul.f32 0.00034293553, %v6449_v47 }
 0x7a3   :  { %21704 = vmatpush3.msra.mxu0 %v21591_v34  ;;  %21711 = vmatprep.mubr.msk.f32.mxu0 %vm8189_vm6, %v29482_v44 }
 0x7a4   :  { %21705 = vmatprep.subr.mxu0 %v12458_v21  ;;  %v21594_v0 = vpop.f32.mrf.mxu1  ;;  %v6256_v52 = vadd.f32 %v6255_v55, %v30859_v50 }
 0x7a5   :  { %21706 = vmatpush3.msra.mxu0 %v12458_v21  ;;  %v30858_v21 = vld [vmem:[#allocation27_spill] sm:$0xff] }
 0x7a6   :  { %21707 = vmatprep.subr.mxu0 %v21588_v46  ;;  %v12468_v10 = vpop.f32.mrf.mxu1 }
 0x7a7   :  { %21708 = vmatpush3.msra.mxu0 %v21588_v46  ;;  %v6236_v46 = vrot.slane %v6235_v38, 2 }
 0x7a8   :  { %21709 = vmatprep.subr.mxu0 %v12448_v24  ;;  %v21597_v53 = vpop.f32.mrf.mxu1 }
 0x7a9   :  { %21710 = vmatpush3.msra.mxu0 %v12448_v24  ;;  %v6237_v27 = vadd.f32 %v6236_v46, %v6235_v38 }
 0x7aa   :  { %21714 = vmatprep.subr.mxu0 %v21597_v53  ;;  %v12478_v49 = vpop.f32.mrf.mxu1  ;;  %21712 = vmatmul.mubr.msk.f32.vlgmr.msra.gmra.mxu0 %vm8189_vm6, %v29465_v59 }
 0x7ab   :  { %21715 = vmatpush3.msra.mxu0 %v21597_v53  ;;  %21722 = vmatprep.mubr.msk.f32.mxu0 %vm8189_vm6, %v29482_v44  ;;  %v6257_v53 = vadd.f32 %v6256_v52, %v30862_v16  ;;  %v6238_v14 = vrot.slane %v6237_v27, 1 }
 0x7ac   :  { %21716 = vmatprep.subr.mxu0 %v12478_v49  ;;  %v21600_v60 = vpop.f32.mrf.mxu1 }
 0x7ad   :  { %21717 = vmatpush3.msra.mxu0 %v12478_v49  ;;  %v30863_v49 = vld [vmem:[#allocation6_spill] sm:$0xff]  ;;  %v6239_v17 = vadd.f32 %v6238_v14, %v6237_v27 }
 0x7ae   :  { %21718 = vmatprep.subr.mxu0 %v21594_v0  ;;  %v12488_v20 = vpop.f32.mrf.mxu1  ;;  %v6468_v25 = vsel %vm6231_vm4, %v30863_v49, 0.0 }
 0x7af   :  { %21719 = vmatpush3.msra.mxu0 %v21594_v0 }
 0x7b0   :  { %21720 = vmatprep.subr.mxu0 %v12468_v10  ;;  %v21603_v41 = vpop.f32.mrf.mxu1 }
 0x7b1   :  { %21721 = vmatpush3.msra.mxu0 %v12468_v10  ;;  %v6258_v10 = vsel %vm6231_vm4, %v30860_v1, 0.0 }
 0x7b2   :  { %21725 = vmatprep.subr.mxu0 %v21603_v41  ;;  %v12498_v2 = vpop.f32.mrf.mxu1  ;;  %21723 = vmatmul.mubr.msk.f32.vlgmr.msra.gmra.mxu0 %vm8189_vm6, %v29465_v59  ;;  %v6259_v62 = vadd.f32 %v6258_v10, %v6257_v53 }
 0x7b3   :  { %21726 = vmatpush3.msra.mxu0 %v21603_v41  ;;  %21733 = vmatprep.mubr.msk.f32.mxu0 %vm8189_vm6, %v29482_v44 }
 0x7b4   :  { %21727 = vmatprep.subr.mxu0 %v12498_v2  ;;  %v6260_v43 = vrot.slane %v6259_v62, 4 }
 0x7b5   :  { %21728 = vmatpush3.msra.mxu0 %v12498_v2 }
 0x7b6   :  { %21729 = vmatprep.subr.mxu0 %v21600_v60  ;;  %v6261_v3 = vadd.f32 %v6260_v43, %v6259_v62 }
 0x7b7   :  { %21730 = vmatpush3.msra.mxu0 %v21600_v60  ;;  %v12084_v22 = vpop.xlane.xlu0 %12083  ;;  %v30864_v60 = vld [vmem:[#allocation49_spill] sm:$0xff] }
 0x7b8   :  { %21731 = vmatprep.subr.mxu0 %v12488_v20  ;;  %v6262_v42 = vrot.slane %v6261_v3, 2 }
 0x7b9   :  { %21732 = vmatpush3.msra.mxu0 %v12488_v20 }
 0x7ba   :  { %21734 = vmatmul.mubr.msk.f32.vlgmr.msra.gmra.mxu0 %vm8189_vm6, %v29465_v59  ;;  %21830 = vmatprep.subr.mxu0 %v30850_v11  ;;  %v30856_v59 = vld [vmem:[#allocation44_spill] sm:$0xff] }
 0x7bb   :  { %v12087_v44 = vpop.xlane.xlu1 %12086  ;;  %21834 = vmatprep.mubr.msk.f32.mxu0 %vm22535_vm1, %v30850_v11  ;;  %v11969_v37 = vpop.xlane.xlu0 %11968  ;;  %v6464_v63 = vadd.f32 %v6463_v19, %v30856_v59 }
 0x7bc   :  { %v12136_v36 = vadd.f32 %v12087_v44, %v12084_v22 }
 0x7bd   :  { %v6465_v0 = vadd.f32 %v6464_v63, %v30858_v21 }
 0x7bf   :  { %v12090_v31 = vpop.xlane.xlu0 %12089  ;;  %v11972_v34 = vpop.xlane.xlu1 %11971  ;;  %v6466_v56 = vadd.f32 %v6465_v0, %v30861_v51 }
 0x7c0   :  { %v12137_v24 = vsel %vm6231_vm4, %v12090_v31, 0.0  ;;  %v12022_v13 = vadd.f32 %v11972_v34, %v11969_v37  ;;  %v6305_v37 = vmul.f32 0.00034293553, %v6239_v17  ;;  %v6263_v34 = vadd.f32 %v6262_v42, %v6261_v3 }
 0x7c1   :  { %v12138_v32 = vadd.f32 %v12137_v24, %v12136_v36  ;;  %v6467_v12 = vadd.f32 %v6466_v56, %v30864_v60 }
 0x7c2   :  { %v16349_v6 = vsel %vm16348_vm5, %v6305_v37, %v6515_v29  ;;  %v6264_v51 = vrot.slane %v6263_v34, 1 }
 0x7c3   :  { %v12139_v40 = vrot.slane %v12138_v32, 4  ;;  %v11976_v35 = vpop.xlane.xlu0 %11975  ;;  %v6469_v41 = vadd.f32 %v6468_v25, %v6467_v12 }
 0x7c4   :  { %v12023_v15 = vsel %vm6231_vm4, %v11976_v35, 0.0 }
 0x7c5   :  { %v12140_v20 = vadd.f32 %v12139_v40, %v12138_v32  ;;  %v12024_v45 = vadd.f32 %v12023_v15, %v12022_v13  ;;  %v6470_v8 = vrot.slane %v6469_v41, 4  ;;  %v6265_v13 = vadd.f32 %v6264_v51, %v6263_v34 }
 0x7c7   :  { %v12141_v30 = vrot.slane %v12140_v20, 2  ;;  %v12025_v61 = vrot.slane %v12024_v45, 4  ;;  %v6471_v33 = vadd.f32 %v6470_v8, %v6469_v41  ;;  %v6307_v15 = vmul.f32 0.00034293553, %v6265_v13 }
 0x7c9   :  { %v12102_v48 = vpop.xlane.xlu0 %12101  ;;  %v12142_v28 = vadd.f32 %v12141_v30, %v12140_v20  ;;  %v12026_v2 = vadd.f32 %v12025_v61, %v12024_v45  ;;  %v6472_v59 = vrot.slane %v6471_v33, 2 }
 0x7cb   :  { %v12027_v39 = vrot.slane %v12026_v2, 2  ;;  %v12143_v54 = vrot.slane %v12142_v28, 1  ;;  %v6473_v7 = vadd.f32 %v6472_v59, %v6471_v33 }
 0x7cd   :  { %v11988_v4 = vpop.xlane.xlu0 %11987  ;;  %v12105_v22 = vpop.xlane.xlu1 %12104  ;;  %v12028_v58 = vadd.f32 %v12027_v39, %v12026_v2  ;;  %v12144_v36 = vadd.f32 %v12143_v54, %v12142_v28  ;;  %v6474_v53 = vrot.slane %v6473_v7, 1 }
 0x7ce   :  { %v12154_v44 = vadd.f32 %v12105_v22, %v12102_v48 }
 0x7cf   :  { %v12029_v23 = vrot.slane %v12028_v58, 1  ;;  %v12190_v55 = vmul.f32 0.0020661156, %v12144_v36  ;;  %v6475_v49 = vadd.f32 %v6474_v53, %v6473_v7 }
 0x7d1   :  { %v12108_v38 = vpop.xlane.xlu0 %12107  ;;  %v12030_v26 = vadd.f32 %v12029_v23, %v12028_v58  ;;  %v11991_v5 = vpop.xlane.xlu1 %11990  ;;  %v6517_v62 = vmul.f32 0.00034293553, %v6475_v49 }
 0x7d2   :  { %v12155_v19 = vsel %vm6231_vm4, %v12108_v38, 0.0  ;;  %v12040_v46 = vadd.f32 %v11991_v5, %v11988_v4 }
 0x7d3   :  { %v12156_v9 = vadd.f32 %v12155_v19, %v12154_v44  ;;  %v12076_v63 = vmul.f32 0.0020661156, %v12030_v26  ;;  %v16351_v45 = vsel %vm16348_vm5, %v6307_v15, %v6517_v62 }
 0x7d5   :  { %v12157_v31 = vrot.slane %v12156_v9, 4  ;;  %v11994_v24 = vpop.xlane.xlu0 %11993  ;;  %v16356_v21 = vsel %vm16355_vm9, %v16349_v6, %v12076_v63 }
 0x7d6   :  { %v12041_v0 = vsel %vm6231_vm4, %v11994_v24, 0.0  ;;  %v29602_v32 = vsel %vm16362_vm10, %v16356_v21, %v12190_v55 }
 0x7d7   :  { %v12158_v50 = vadd.f32 %v12157_v31, %v12156_v9  ;;  %v12042_v52 = vadd.f32 %v12041_v0, %v12040_v46 }
 0x7d9   :  { %v12159_v1 = vrot.slane %v12158_v50, 2  ;;  %v12043_v10 = vrot.slane %v12042_v52, 4 }
 0x7db   :  { %v12160_v56 = vadd.f32 %v12159_v1, %v12158_v50  ;;  %v12044_v16 = vadd.f32 %v12043_v10, %v12042_v52 }
 0x7dd   :  { %v12045_v40 = vrot.slane %v12044_v16, 2  ;;  %v12161_v35 = vrot.slane %v12160_v56, 1 }
 0x7df   :  { %v12046_v27 = vadd.f32 %v12045_v40, %v12044_v16  ;;  %v12162_v60 = vadd.f32 %v12161_v35, %v12160_v56 }
 0x7e1   :  { %v12047_v25 = vrot.slane %v12046_v27, 1  ;;  %v12192_v18 = vmul.f32 0.0020661156, %v12162_v60 }
 0x7e3   :  { %v12048_v12 = vadd.f32 %v12047_v25, %v12046_v27 }
 0x7e5   :  { %v12078_v20 = vmul.f32 0.0020661156, %v12048_v12 }
 0x7e7   :  { %v16358_v41 = vsel %vm16355_vm9, %v16351_v45, %v12078_v20 }
 0x7e8   :  { %v29607_v30 = vsel %vm16362_vm10, %v16358_v41, %v12192_v18 }
 0x822   :  { %v21614_v61 = vpop.f32.mrf.mxu0 }
 0x823   :  { %v13417_v21 = vmul.f32 %v21614_v61, %v21614_v61 }
 0x824   :  { %v12579_v14 = vpop.f32.mrf.mxu0 }
 0x825   :  { %21740 = vmatprep.mubr.msk.f32.mxu1 %vm13452_vm11, %v12579_v14  ;;  %v13416_v34 = vmul.f32 %v12579_v14, %v12579_v14 }
 0x826   :  { %21741 = vmatmul.mubr.msk.f32.vlgmr.msra.gmra.mxu1 %vm13452_vm11, %v21614_v61 }
 0x82a   :  { %v21625_v48 = vpop.f32.mrf.mxu0 }
 0x82b   :  { %v13419_v50 = vmul.f32 %v21625_v48, %v21625_v48 }
 0x82c   :  { %v12654_v43 = vpop.f32.mrf.mxu0 }
 0x82d   :  { %21743 = vmatprep.mubr.msk.f32.mxu1 %vm13452_vm11, %v12654_v43  ;;  %v13418_v0 = vmul.f32 %v12654_v43, %v12654_v43 }
 0x82e   :  { %21744 = vmatmul.mubr.msk.f32.gmra.mxu1 %vm13452_vm11, %v21625_v48 }
 0x832   :  { %v21636_v28 = vpop.f32.mrf.mxu0 }
 0x833   :  { %v13421_v7 = vmul.f32 %v21636_v28, %v21636_v28 }
 0x834   :  { %v12729_v2 = vpop.f32.mrf.mxu0 }
 0x835   :  { %21746 = vmatprep.mubr.msk.f32.mxu1 %vm13452_vm11, %v12729_v2  ;;  %v13420_v52 = vmul.f32 %v12729_v2, %v12729_v2 }
 0x836   :  { %21747 = vmatmul.mubr.msk.f32.gmra.mxu1 %vm13452_vm11, %v21636_v28 }
 0x83a   :  { %v21647_v57 = vpop.f32.mrf.mxu0 }
 0x83b   :  { %v13423_v10 = vmul.f32 %v21647_v57, %v21647_v57 }
 0x83c   :  { %v12804_v8 = vpop.f32.mrf.mxu0 }
 0x83d   :  { %21749 = vmatprep.mubr.msk.f32.mxu1 %vm13452_vm11, %v12804_v8  ;;  %v13422_v1 = vmul.f32 %v12804_v8, %v12804_v8 }
 0x83e   :  { %21750 = vmatmul.mubr.msk.f32.gmra.mxu1 %vm13452_vm11, %v21647_v57 }
 0x842   :  { %v21658_v39 = vpop.f32.mrf.mxu0 }
 0x843   :  { %v13425_v56 = vmul.f32 %v21658_v39, %v21658_v39 }
 0x844   :  { %v12879_v17 = vpop.f32.mrf.mxu0 }
 0x845   :  { %21752 = vmatprep.mubr.msk.f32.mxu1 %vm13452_vm11, %v12879_v17  ;;  %v13424_v51 = vmul.f32 %v12879_v17, %v12879_v17 }
 0x846   :  { %21753 = vmatmul.mubr.msk.f32.gmra.mxu1 %vm13452_vm11, %v21658_v39 }
 0x84a   :  { %v21669_v54 = vpop.f32.mrf.mxu0 }
 0x84b   :  { %v13427_v53 = vmul.f32 %v21669_v54, %v21669_v54 }
 0x84c   :  { %v29619_v4 = vpop.f32.mrf.mxu0 }
 0x84d   :  { %21755 = vmatprep.mubr.msk.f32.mxu1 %vm13452_vm11, %v29619_v4  ;;  %v13426_v16 = vmul.f32 %v29619_v4, %v29619_v4 }
 0x84e   :  { %21756 = vmatmul.mubr.msk.f32.gmra.mxu1 %vm13452_vm11, %v21669_v54 }
 0x852   :  { %v21680_v22 = vpop.f32.mrf.mxu0 }
 0x853   :  { %v29624_v3 = vmul.f32 %v21680_v22, %v21614_v61  ;;  %v13429_v13 = vmul.f32 %v21680_v22, %v21680_v22  ;;  %v29711_v61 = vld [vmem:[%s30091_s5] sm:$0x3f] }
 0x854   :  { %v13029_v58 = vpop.f32.mrf.mxu0 }
 0x855   :  { %v29626_v44 = vmul.f32 %v13029_v58, %v12579_v14  ;;  %21758 = vmatprep.mubr.msk.f32.mxu1 %vm13452_vm11, %v13029_v58  ;;  %v13428_v40 = vmul.f32 %v13029_v58, %v13029_v58 }
 0x856   :  { %21759 = vmatmul.mubr.msk.f32.gmra.mxu1 %vm13452_vm11, %v21680_v22 }
 0x85a   :  { %v21691_v47 = vpop.f32.mrf.mxu0 }
 0x85b   :  { %v29630_v33 = vmul.f32 %v21691_v47, %v21625_v48  ;;  %v13431_v27 = vmul.f32 %v21691_v47, %v21691_v47 }
 0x85c   :  { %v13104_v23 = vpop.f32.mrf.mxu0 }
 0x85d   :  { %v29632_v37 = vmul.f32 %v13104_v23, %v12654_v43  ;;  %21761 = vmatprep.mubr.msk.f32.mxu1 %vm13452_vm11, %v13104_v23  ;;  %v13430_v35 = vmul.f32 %v13104_v23, %v13104_v23 }
 0x85e   :  { %21762 = vmatmul.mubr.msk.f32.gmra.mxu1 %vm13452_vm11, %v21691_v47 }
 0x862   :  { %v21702_v36 = vpop.f32.mrf.mxu0 }
 0x863   :  { %v29636_v38 = vmul.f32 %v21702_v36, %v21636_v28  ;;  %v13433_v25 = vmul.f32 %v21702_v36, %v21702_v36 }
 0x864   :  { %v13179_v42 = vpop.f32.mrf.mxu0 }
 0x865   :  { %v29638_v26 = vmul.f32 %v13179_v42, %v12729_v2  ;;  %21764 = vmatprep.mubr.msk.f32.mxu1 %vm13452_vm11, %v13179_v42  ;;  %v13432_v49 = vmul.f32 %v13179_v42, %v13179_v42 }
 0x866   :  { %21765 = vmatmul.mubr.msk.f32.gmra.mxu1 %vm13452_vm11, %v21702_v36 }
 0x86a   :  { %v21713_v19 = vpop.f32.mrf.mxu0 }
 0x86b   :  { %v29642_v5 = vmul.f32 %v21713_v19, %v21647_v57  ;;  %v13435_v60 = vmul.f32 %v21713_v19, %v21713_v19 }
 0x86c   :  { %v13254_v29 = vpop.f32.mrf.mxu0 }
 0x86d   :  { %v29644_v9 = vmul.f32 %v13254_v29, %v12804_v8  ;;  %21767 = vmatprep.mubr.msk.f32.mxu1 %vm13452_vm11, %v13254_v29  ;;  %v13434_v15 = vmul.f32 %v13254_v29, %v13254_v29 }
 0x86e   :  { %21768 = vmatmul.mubr.msk.f32.gmra.mxu1 %vm13452_vm11, %v21713_v19 }
 0x872   :  { %v21724_v59 = vpop.f32.mrf.mxu0 }
 0x873   :  { %v29648_v63 = vmul.f32 %v21724_v59, %v21658_v39  ;;  %v13437_v62 = vmul.f32 %v21724_v59, %v21724_v59 }
 0x874   :  { %v13329_v6 = vpop.f32.mrf.mxu0 }
 0x875   :  { %v29650_v55 = vmul.f32 %v13329_v6, %v12879_v17  ;;  %21770 = vmatprep.mubr.msk.f32.mxu1 %vm13452_vm11, %v13329_v6  ;;  %v13436_v12 = vmul.f32 %v13329_v6, %v13329_v6 }
 0x876   :  { %21771 = vmatmul.mubr.msk.f32.gmra.mxu1 %vm13452_vm11, %v21724_v59 }
 0x87a   :  { %v21735_v31 = vpop.f32.mrf.mxu0 }
 0x87b   :  { %v29654_v46 = vmul.f32 %v21735_v31, %v21669_v54  ;;  %v13439_v45 = vmul.f32 %v21735_v31, %v21735_v31 }
 0x87c   :  { %v13404_v24 = vpop.f32.mrf.mxu0 }
 0x87d   :  { %21773 = vmatprep.mubr.msk.f32.mxu1 %vm13452_vm11, %v13404_v24  ;;  %v13438_v20 = vmul.f32 %v13404_v24, %v13404_v24  ;;  %v13450_v18 = vmul.f32 %v13404_v24, %v29619_v4 }
 0x87e   :  { %21774 = vmatmul.mubr.msk.f32.gmra.mxu1 %vm13452_vm11, %v21735_v31 }
 0x87f   :  { %21776 = vmatprep.mubr.msk.f32.mxu1 %vm13452_vm11, %v13416_v34 }
 0x882   :  { %21777 = vmatmul.mubr.msk.f32.gmra.mxu1 %vm13452_vm11, %v13417_v21 }
 0x883   :  { %21779 = vmatprep.mubr.msk.f32.mxu1 %vm13452_vm11, %v13418_v0 }
 0x886   :  { %21780 = vmatmul.mubr.msk.f32.gmra.mxu1 %vm13452_vm11, %v13419_v50 }
 0x887   :  { %21782 = vmatprep.mubr.msk.f32.mxu1 %vm13452_vm11, %v13420_v52 }
 0x88a   :  { %21783 = vmatmul.mubr.msk.f32.gmra.mxu1 %vm13452_vm11, %v13421_v7 }
 0x88b   :  { %21785 = vmatprep.mubr.msk.f32.mxu1 %vm13452_vm11, %v13422_v1 }
 0x88e   :  { %21786 = vmatmul.mubr.msk.f32.gmra.mxu1 %vm13452_vm11, %v13423_v10 }
 0x88f   :  { %21788 = vmatprep.mubr.msk.f32.mxu1 %vm13452_vm11, %v13424_v51 }
 0x892   :  { %21789 = vmatmul.mubr.msk.f32.gmra.mxu1 %vm13452_vm11, %v13425_v56 }
 0x893   :  { %21791 = vmatprep.mubr.msk.f32.mxu1 %vm13452_vm11, %v13426_v16 }
 0x896   :  { %21792 = vmatmul.mubr.msk.f32.gmra.mxu1 %vm13452_vm11, %v13427_v53 }
 0x897   :  { %21794 = vmatprep.mubr.msk.f32.mxu1 %vm13452_vm11, %v13428_v40 }
 0x89a   :  { %21795 = vmatmul.mubr.msk.f32.gmra.mxu1 %vm13452_vm11, %v13429_v13 }
 0x89b   :  { %21797 = vmatprep.mubr.msk.f32.mxu1 %vm13452_vm11, %v13430_v35 }
 0x89e   :  { %21798 = vmatmul.mubr.msk.f32.gmra.mxu1 %vm13452_vm11, %v13431_v27 }
 0x89f   :  { %21800 = vmatprep.mubr.msk.f32.mxu1 %vm13452_vm11, %v13432_v49 }
 0x8a2   :  { %21801 = vmatmul.mubr.msk.f32.gmra.mxu1 %vm13452_vm11, %v13433_v25 }
 0x8a3   :  { %21803 = vmatprep.mubr.msk.f32.mxu1 %vm13452_vm11, %v13434_v15 }
 0x8a6   :  { %21804 = vmatmul.mubr.msk.f32.gmra.mxu1 %vm13452_vm11, %v13435_v60 }
 0x8a7   :  { %21806 = vmatprep.mubr.msk.f32.mxu1 %vm13452_vm11, %v13436_v12 }
 0x8aa   :  { %21807 = vmatmul.mubr.msk.f32.gmra.mxu1 %vm13452_vm11, %v13437_v62 }
 0x8ab   :  { %21809 = vmatprep.mubr.msk.f32.mxu1 %vm13452_vm11, %v13438_v20 }
 0x8ae   :  { %21810 = vmatmul.mubr.msk.f32.gmra.mxu1 %vm13452_vm11, %v13439_v45 }
 0x8af   :  { %21812 = vmatprep.mubr.msk.f32.mxu1 %vm13452_vm11, %v29626_v44 }
 0x8b2   :  { %21813 = vmatmul.mubr.msk.f32.gmra.mxu1 %vm13452_vm11, %v29624_v3 }
 0x8b3   :  { %21815 = vmatprep.mubr.msk.f32.mxu1 %vm13452_vm11, %v29632_v37 }
 0x8b6   :  { %21816 = vmatmul.mubr.msk.f32.gmra.mxu1 %vm13452_vm11, %v29630_v33 }
 0x8b7   :  { %21818 = vmatprep.mubr.msk.f32.mxu1 %vm13452_vm11, %v29638_v26 }
 0x8ba   :  { %21819 = vmatmul.mubr.msk.f32.gmra.mxu1 %vm13452_vm11, %v29636_v38 }
 0x8bb   :  { %21821 = vmatprep.mubr.msk.f32.mxu1 %vm13452_vm11, %v29644_v9 }
 0x8be   :  { %21822 = vmatmul.mubr.msk.f32.gmra.mxu1 %vm13452_vm11, %v29642_v5 }
 0x8bf   :  { %21824 = vmatprep.mubr.msk.f32.mxu1 %vm13452_vm11, %v29650_v55 }
 0x8c2   :  { %21825 = vmatmul.mubr.msk.f32.gmra.mxu1 %vm13452_vm11, %v29648_v63 }
 0x8c3   :  { %21827 = vmatprep.mubr.msk.f32.mxu1 %vm13452_vm11, %v13450_v18 }
 0x8c6   :  { %21828 = vmatmul.mubr.msk.f32.gmra.mxu1 %vm13452_vm11, %v29654_v46 }
 0x8e6   :  { %v21742_v41 = vpop.f32.mrf.mxu1 }
 0x8e7   :  { %21831 = vmatpush3.msra.mxu0 %v21742_v41 }
 0x8e8   :  { %v13699_v14 = vpop.f32.mrf.mxu1  ;;  %21832 = vmatprep.subr.mxu0 %v30850_v11 }
 0x8e9   :  { %21833 = vmatpush3.msra.mxu0 %v13699_v14 }
 0x8ea   :  { %21835 = vmatmul.mubr.msk.f32.vlgmr.msra.gmra.mxu0 %vm13452_vm11, %v29711_v61  ;;  %21837 = vmatprep.subr.mxu0 %v30850_v11 }
 0x8eb   :  { %21841 = vmatprep.mubr.msk.f32.mxu0 %vm22535_vm1, %v30850_v11 }
 0x8ee   :  { %v21745_v48 = vpop.f32.mrf.mxu1 }
 0x8ef   :  { %21838 = vmatpush3.msra.mxu0 %v21745_v48 }
 0x8f0   :  { %v13709_v43 = vpop.f32.mrf.mxu1  ;;  %21839 = vmatprep.subr.mxu0 %v30850_v11 }
 0x8f1   :  { %21840 = vmatpush3.msra.mxu0 %v13709_v43 }
 0x8f2   :  { %21842 = vmatmul.mubr.msk.f32.vlgmr.msra.gmra.mxu0 %vm13452_vm11, %v29711_v61  ;;  %21844 = vmatprep.subr.mxu0 %v30850_v11 }
 0x8f3   :  { %21848 = vmatprep.mubr.msk.f32.mxu0 %vm22535_vm1, %v30850_v11 }
 0x8f6   :  { %v21748_v28 = vpop.f32.mrf.mxu1 }
 0x8f7   :  { %21845 = vmatpush3.msra.mxu0 %v21748_v28 }
 0x8f8   :  { %v13719_v2 = vpop.f32.mrf.mxu1  ;;  %21846 = vmatprep.subr.mxu0 %v30850_v11 }
 0x8f9   :  { %21847 = vmatpush3.msra.mxu0 %v13719_v2 }
 0x8fa   :  { %21849 = vmatmul.mubr.msk.f32.vlgmr.msra.gmra.mxu0 %vm13452_vm11, %v29711_v61  ;;  %21851 = vmatprep.subr.mxu0 %v30850_v11 }
 0x8fb   :  { %21855 = vmatprep.mubr.msk.f32.mxu0 %vm22535_vm1, %v30850_v11 }
 0x8fe   :  { %v21751_v57 = vpop.f32.mrf.mxu1 }
 0x8ff   :  { %21852 = vmatpush3.msra.mxu0 %v21751_v57 }
 0x900   :  { %v13729_v8 = vpop.f32.mrf.mxu1  ;;  %21853 = vmatprep.subr.mxu0 %v30850_v11 }
 0x901   :  { %21854 = vmatpush3.msra.mxu0 %v13729_v8 }
 0x902   :  { %21856 = vmatmul.mubr.msk.f32.vlgmr.msra.gmra.mxu0 %vm13452_vm11, %v29711_v61  ;;  %21858 = vmatprep.subr.mxu0 %v30850_v11 }
 0x903   :  { %21862 = vmatprep.mubr.msk.f32.mxu0 %vm22535_vm1, %v30850_v11 }
 0x906   :  { %v21754_v39 = vpop.f32.mrf.mxu1 }
 0x907   :  { %21859 = vmatpush3.msra.mxu0 %v21754_v39 }
 0x908   :  { %v13739_v17 = vpop.f32.mrf.mxu1  ;;  %21860 = vmatprep.subr.mxu0 %v30850_v11 }
 0x909   :  { %21861 = vmatpush3.msra.mxu0 %v13739_v17 }
 0x90a   :  { %21863 = vmatmul.mubr.msk.f32.vlgmr.msra.gmra.mxu0 %vm13452_vm11, %v29711_v61  ;;  %21865 = vmatprep.subr.mxu0 %v30850_v11 }
 0x90b   :  { %21869 = vmatprep.mubr.msk.f32.mxu0 %vm22535_vm1, %v30850_v11 }
 0x90e   :  { %v21757_v54 = vpop.f32.mrf.mxu1 }
 0x90f   :  { %21866 = vmatpush3.msra.mxu0 %v21757_v54 }
 0x910   :  { %v13749_v4 = vpop.f32.mrf.mxu1  ;;  %21867 = vmatprep.subr.mxu0 %v30850_v11 }
 0x911   :  { %21868 = vmatpush3.msra.mxu0 %v13749_v4 }
 0x912   :  { %21870 = vmatmul.mubr.msk.f32.vlgmr.msra.gmra.mxu0 %vm13452_vm11, %v29711_v61  ;;  %21872 = vmatprep.subr.mxu0 %v30850_v11 }
 0x913   :  { %21876 = vmatprep.mubr.msk.f32.mxu0 %vm22535_vm1, %v30850_v11 }
 0x916   :  { %v21760_v22 = vpop.f32.mrf.mxu1 }
 0x917   :  { %21873 = vmatpush3.msra.mxu0 %v21760_v22 }
 0x918   :  { %v13759_v3 = vpop.f32.mrf.mxu1  ;;  %21874 = vmatprep.subr.mxu0 %v30850_v11 }
 0x919   :  { %21875 = vmatpush3.msra.mxu0 %v13759_v3 }
 0x91a   :  { %21877 = vmatmul.mubr.msk.f32.vlgmr.msra.gmra.mxu0 %vm13452_vm11, %v29711_v61  ;;  %21879 = vmatprep.subr.mxu0 %v30850_v11 }
 0x91b   :  { %21883 = vmatprep.mubr.msk.f32.mxu0 %vm22535_vm1, %v30850_v11 }
 0x91e   :  { %v21763_v58 = vpop.f32.mrf.mxu1 }
 0x91f   :  { %21880 = vmatpush3.msra.mxu0 %v21763_v58 }
 0x920   :  { %v13769_v44 = vpop.f32.mrf.mxu1  ;;  %21881 = vmatprep.subr.mxu0 %v30850_v11 }
 0x921   :  { %21882 = vmatpush3.msra.mxu0 %v13769_v44 }
 0x922   :  { %21884 = vmatmul.mubr.msk.f32.vlgmr.msra.gmra.mxu0 %vm13452_vm11, %v29711_v61  ;;  %21886 = vmatprep.subr.mxu0 %v30850_v11 }
 0x923   :  { %21890 = vmatprep.mubr.msk.f32.mxu0 %vm22535_vm1, %v30850_v11 }
 0x926   :  { %v21766_v47 = vpop.f32.mrf.mxu1 }
 0x927   :  { %21887 = vmatpush3.msra.mxu0 %v21766_v47 }
 0x928   :  { %v13779_v33 = vpop.f32.mrf.mxu1  ;;  %21888 = vmatprep.subr.mxu0 %v30850_v11 }
 0x929   :  { %21889 = vmatpush3.msra.mxu0 %v13779_v33 }
 0x92a   :  { %21891 = vmatmul.mubr.msk.f32.vlgmr.msra.gmra.mxu0 %vm13452_vm11, %v29711_v61  ;;  %21893 = vmatprep.subr.mxu0 %v30850_v11 }
 0x92b   :  { %21897 = vmatprep.mubr.msk.f32.mxu0 %vm22535_vm1, %v30850_v11 }
 0x92e   :  { %v21769_v23 = vpop.f32.mrf.mxu1 }
 0x92f   :  { %21894 = vmatpush3.msra.mxu0 %v21769_v23 }
 0x930   :  { %v13789_v37 = vpop.f32.mrf.mxu1  ;;  %21895 = vmatprep.subr.mxu0 %v30850_v11 }
 0x931   :  { %21896 = vmatpush3.msra.mxu0 %v13789_v37 }
 0x932   :  { %21898 = vmatmul.mubr.msk.f32.vlgmr.msra.gmra.mxu0 %vm13452_vm11, %v29711_v61  ;;  %21900 = vmatprep.subr.mxu0 %v30850_v11 }
 0x933   :  { %21904 = vmatprep.mubr.msk.f32.mxu0 %vm22535_vm1, %v30850_v11 }
 0x936   :  { %v21772_v36 = vpop.f32.mrf.mxu1 }
 0x937   :  { %21901 = vmatpush3.msra.mxu0 %v21772_v36 }
 0x938   :  { %v13799_v38 = vpop.f32.mrf.mxu1  ;;  %21902 = vmatprep.subr.mxu0 %v30850_v11 }
 0x939   :  { %21903 = vmatpush3.msra.mxu0 %v13799_v38 }
 0x93a   :  { %21905 = vmatmul.mubr.msk.f32.vlgmr.msra.gmra.mxu0 %vm13452_vm11, %v29711_v61  ;;  %21907 = vmatprep.subr.mxu0 %v30850_v11 }
 0x93b   :  { %21911 = vmatprep.mubr.msk.f32.mxu0 %vm22535_vm1, %v30850_v11 }
 0x93e   :  { %v21775_v42 = vpop.f32.mrf.mxu1 }
 0x93f   :  { %21908 = vmatpush3.msra.mxu0 %v21775_v42 }
 0x940   :  { %v13809_v26 = vpop.f32.mrf.mxu1  ;;  %21909 = vmatprep.subr.mxu0 %v30850_v11 }
 0x941   :  { %21910 = vmatpush3.msra.mxu0 %v13809_v26 }
 0x942   :  { %v21778_v19 = vpop.f32.mrf.mxu1  ;;  %21912 = vmatmul.mubr.msk.f32.vlgmr.msra.gmra.mxu0 %vm13452_vm11, %v29711_v61  ;;  %21914 = vmatprep.subr.mxu0 %v30850_v11 }
 0x943   :  { %21915 = vmatpush3.msra.mxu0 %v21778_v19  ;;  %21918 = vmatprep.mubr.msk.f32.mxu0 %vm22535_vm1, %v30850_v11 }
 0x944   :  { %v13819_v5 = vpop.f32.mrf.mxu1  ;;  %21916 = vmatprep.subr.mxu0 %v30850_v11 }
 0x945   :  { %21917 = vmatpush3.msra.mxu0 %v13819_v5 }
 0x946   :  { %v21781_v29 = vpop.f32.mrf.mxu1  ;;  %21919 = vmatmul.mubr.msk.f32.vlgmr.msra.gmra.mxu0 %vm13452_vm11, %v29711_v61  ;;  %21921 = vmatprep.subr.mxu0 %v30850_v11 }
 0x947   :  { %21922 = vmatpush3.msra.mxu0 %v21781_v29  ;;  %21925 = vmatprep.mubr.msk.f32.mxu0 %vm22535_vm1, %v30850_v11 }
 0x948   :  { %v13829_v9 = vpop.f32.mrf.mxu1  ;;  %21923 = vmatprep.subr.mxu0 %v30850_v11 }
 0x949   :  { %21924 = vmatpush3.msra.mxu0 %v13829_v9 }
 0x94a   :  { %v21784_v59 = vpop.f32.mrf.mxu1  ;;  %21926 = vmatmul.mubr.msk.f32.vlgmr.msra.gmra.mxu0 %vm13452_vm11, %v29711_v61  ;;  %21928 = vmatprep.subr.mxu0 %v30850_v11 }
 0x94b   :  { %21929 = vmatpush3.msra.mxu0 %v21784_v59  ;;  %21932 = vmatprep.mubr.msk.f32.mxu0 %vm22535_vm1, %v30850_v11 }
 0x94c   :  { %v13839_v63 = vpop.f32.mrf.mxu1  ;;  %21930 = vmatprep.subr.mxu0 %v30850_v11 }
 0x94d   :  { %21931 = vmatpush3.msra.mxu0 %v13839_v63 }
 0x94e   :  { %v21787_v6 = vpop.f32.mrf.mxu1  ;;  %21933 = vmatmul.mubr.msk.f32.vlgmr.msra.gmra.mxu0 %vm13452_vm11, %v29711_v61  ;;  %21935 = vmatprep.subr.mxu0 %v30850_v11 }
 0x94f   :  { %21936 = vmatpush3.msra.mxu0 %v21787_v6  ;;  %21939 = vmatprep.mubr.msk.f32.mxu0 %vm22535_vm1, %v30850_v11 }
 0x950   :  { %v13849_v55 = vpop.f32.mrf.mxu1  ;;  %21937 = vmatprep.subr.mxu0 %v30850_v11 }
 0x951   :  { %21938 = vmatpush3.msra.mxu0 %v13849_v55 }
 0x952   :  { %v21790_v31 = vpop.f32.mrf.mxu1  ;;  %21940 = vmatmul.mubr.msk.f32.vlgmr.msra.gmra.mxu0 %vm13452_vm11, %v29711_v61  ;;  %21942 = vmatprep.subr.mxu0 %v30850_v11 }
 0x953   :  { %21943 = vmatpush3.msra.mxu0 %v21790_v31  ;;  %21946 = vmatprep.mubr.msk.f32.mxu0 %vm22535_vm1, %v30850_v11 }
 0x954   :  { %v13859_v46 = vpop.f32.mrf.mxu1  ;;  %21944 = vmatprep.subr.mxu0 %v30850_v11 }
 0x955   :  { %21945 = vmatpush3.msra.mxu0 %v13859_v46 }
 0x956   :  { %v21793_v24 = vpop.f32.mrf.mxu1  ;;  %21947 = vmatmul.mubr.msk.f32.vlgmr.msra.gmra.mxu0 %vm13452_vm11, %v29711_v61  ;;  %21949 = vmatprep.subr.mxu0 %v30850_v11 }
 0x957   :  { %21950 = vmatpush3.msra.mxu0 %v21793_v24  ;;  %21953 = vmatprep.mubr.msk.f32.mxu0 %vm22535_vm1, %v30850_v11 }
 0x958   :  { %v13869_v34 = vpop.f32.mrf.mxu1  ;;  %21951 = vmatprep.subr.mxu0 %v30850_v11 }
 0x959   :  { %21952 = vmatpush3.msra.mxu0 %v13869_v34 }
 0x95a   :  { %v21796_v21 = vpop.f32.mrf.mxu1  ;;  %21954 = vmatmul.mubr.msk.f32.vlgmr.msra.gmra.mxu0 %vm13452_vm11, %v29711_v61  ;;  %21956 = vmatprep.subr.mxu0 %v30850_v11 }
 0x95b   :  { %21957 = vmatpush3.msra.mxu0 %v21796_v21  ;;  %21960 = vmatprep.mubr.msk.f32.mxu0 %vm22535_vm1, %v30850_v11 }
 0x95c   :  { %v13879_v0 = vpop.f32.mrf.mxu1  ;;  %21958 = vmatprep.subr.mxu0 %v30850_v11 }
 0x95d   :  { %21959 = vmatpush3.msra.mxu0 %v13879_v0 }
 0x95e   :  { %v21799_v50 = vpop.f32.mrf.mxu1  ;;  %21961 = vmatmul.mubr.msk.f32.vlgmr.msra.gmra.mxu0 %vm13452_vm11, %v29711_v61  ;;  %21963 = vmatprep.subr.mxu0 %v30850_v11 }
 0x95f   :  { %21964 = vmatpush3.msra.mxu0 %v21799_v50  ;;  %21967 = vmatprep.mubr.msk.f32.mxu0 %vm22535_vm1, %v30850_v11 }
 0x960   :  { %v13889_v52 = vpop.f32.mrf.mxu1  ;;  %21965 = vmatprep.subr.mxu0 %v30850_v11 }
 0x961   :  { %21966 = vmatpush3.msra.mxu0 %v13889_v52 }
 0x962   :  { %v21802_v7 = vpop.f32.mrf.mxu1  ;;  %21968 = vmatmul.mubr.msk.f32.vlgmr.msra.gmra.mxu0 %vm13452_vm11, %v29711_v61  ;;  %21970 = vmatprep.subr.mxu0 %v30850_v11 }
 0x963   :  { %21971 = vmatpush3.msra.mxu0 %v21802_v7  ;;  %21974 = vmatprep.mubr.msk.f32.mxu0 %vm22535_vm1, %v30850_v11 }
 0x964   :  { %v13899_v1 = vpop.f32.mrf.mxu1  ;;  %21972 = vmatprep.subr.mxu0 %v30850_v11 }
 0x965   :  { %21973 = vmatpush3.msra.mxu0 %v13899_v1 }
 0x966   :  { %v21805_v10 = vpop.f32.mrf.mxu1  ;;  %21975 = vmatmul.mubr.msk.f32.vlgmr.msra.gmra.mxu0 %vm13452_vm11, %v29711_v61  ;;  %21977 = vmatprep.subr.mxu0 %v30850_v11 }
 0x967   :  { %21978 = vmatpush3.msra.mxu0 %v21805_v10  ;;  %21981 = vmatprep.mubr.msk.f32.mxu0 %vm22535_vm1, %v30850_v11 }
 0x968   :  { %v13909_v51 = vpop.f32.mrf.mxu1  ;;  %21979 = vmatprep.subr.mxu0 %v30850_v11 }
 0x969   :  { %21980 = vmatpush3.msra.mxu0 %v13909_v51 }
 0x96a   :  { %v21808_v56 = vpop.f32.mrf.mxu1  ;;  %21982 = vmatmul.mubr.msk.f32.vlgmr.msra.gmra.mxu0 %vm13452_vm11, %v29711_v61  ;;  %21984 = vmatprep.subr.mxu0 %v30850_v11 }
 0x96b   :  { %21985 = vmatpush3.msra.mxu0 %v21808_v56  ;;  %21988 = vmatprep.mubr.msk.f32.mxu0 %vm22535_vm1, %v30850_v11 }
 0x96c   :  { %v13919_v16 = vpop.f32.mrf.mxu1  ;;  %21986 = vmatprep.subr.mxu0 %v30850_v11 }
 0x96d   :  { %21987 = vmatpush3.msra.mxu0 %v13919_v16 }
 0x96e   :  { %v21811_v53 = vpop.f32.mrf.mxu1  ;;  %21989 = vmatmul.mubr.msk.f32.vlgmr.msra.gmra.mxu0 %vm13452_vm11, %v29711_v61  ;;  %21991 = vmatprep.subr.mxu0 %v30850_v11 }
 0x96f   :  { %21992 = vmatpush3.msra.mxu0 %v21811_v53  ;;  %21995 = vmatprep.mubr.msk.f32.mxu0 %vm22535_vm1, %v30850_v11 }
 0x970   :  { %v13929_v40 = vpop.f32.mrf.mxu1  ;;  %21993 = vmatprep.subr.mxu0 %v30850_v11 }
 0x971   :  { %21994 = vmatpush3.msra.mxu0 %v13929_v40 }
 0x972   :  { %v21814_v13 = vpop.f32.mrf.mxu1  ;;  %21996 = vmatmul.mubr.msk.f32.vlgmr.msra.gmra.mxu0 %vm13452_vm11, %v29711_v61  ;;  %21998 = vmatprep.subr.mxu0 %v30850_v11 }
 0x973   :  { %21999 = vmatpush3.msra.mxu0 %v21814_v13  ;;  %22002 = vmatprep.mubr.msk.f32.mxu0 %vm22535_vm1, %v30850_v11 }
 0x974   :  { %v13939_v35 = vpop.f32.mrf.mxu1  ;;  %22000 = vmatprep.subr.mxu0 %v30850_v11 }
 0x975   :  { %22001 = vmatpush3.msra.mxu0 %v13939_v35 }
 0x976   :  { %v21817_v27 = vpop.f32.mrf.mxu1  ;;  %22003 = vmatmul.mubr.msk.f32.vlgmr.msra.gmra.mxu0 %vm13452_vm11, %v29711_v61  ;;  %22005 = vmatprep.subr.mxu0 %v30850_v11 }
 0x977   :  { %22006 = vmatpush3.msra.mxu0 %v21817_v27  ;;  %22009 = vmatprep.mubr.msk.f32.mxu0 %vm22535_vm1, %v30850_v11 }
 0x978   :  { %v13949_v49 = vpop.f32.mrf.mxu1  ;;  %22007 = vmatprep.subr.mxu0 %v30850_v11 }
 0x979   :  { %22008 = vmatpush3.msra.mxu0 %v13949_v49 }
 0x97a   :  { %v21820_v25 = vpop.f32.mrf.mxu1  ;;  %22010 = vmatmul.mubr.msk.f32.vlgmr.msra.gmra.mxu0 %vm13452_vm11, %v29711_v61  ;;  %22012 = vmatprep.subr.mxu0 %v30850_v11 }
 0x97b   :  { %22013 = vmatpush3.msra.mxu0 %v21820_v25  ;;  %22016 = vmatprep.mubr.msk.f32.mxu0 %vm22535_vm1, %v30850_v11 }
 0x97c   :  { %v13959_v15 = vpop.f32.mrf.mxu1  ;;  %22014 = vmatprep.subr.mxu0 %v30850_v11 }
 0x97d   :  { %22015 = vmatpush3.msra.mxu0 %v13959_v15 }
 0x97e   :  { %v21823_v60 = vpop.f32.mrf.mxu1  ;;  %22017 = vmatmul.mubr.msk.f32.vlgmr.msra.gmra.mxu0 %vm13452_vm11, %v29711_v61  ;;  %22019 = vmatprep.subr.mxu0 %v30850_v11 }
 0x97f   :  { %22020 = vmatpush3.msra.mxu0 %v21823_v60  ;;  %22023 = vmatprep.mubr.msk.f32.mxu0 %vm22535_vm1, %v30850_v11 }
 0x980   :  { %v13969_v12 = vpop.f32.mrf.mxu1  ;;  %22021 = vmatprep.subr.mxu0 %v30850_v11 }
 0x981   :  { %22022 = vmatpush3.msra.mxu0 %v13969_v12 }
 0x982   :  { %v21826_v62 = vpop.f32.mrf.mxu1  ;;  %22024 = vmatmul.mubr.msk.f32.vlgmr.msra.gmra.mxu0 %vm13452_vm11, %v29711_v61  ;;  %22026 = vmatprep.subr.mxu0 %v30850_v11 }
 0x983   :  { %22027 = vmatpush3.msra.mxu0 %v21826_v62  ;;  %22030 = vmatprep.mubr.msk.f32.mxu0 %vm22535_vm1, %v30850_v11 }
 0x984   :  { %v13979_v20 = vpop.f32.mrf.mxu1  ;;  %22028 = vmatprep.subr.mxu0 %v30850_v11 }
 0x985   :  { %22029 = vmatpush3.msra.mxu0 %v13979_v20 }
 0x986   :  { %v21829_v45 = vpop.f32.mrf.mxu1  ;;  %22031 = vmatmul.mubr.msk.f32.vlgmr.msra.gmra.mxu0 %vm13452_vm11, %v29711_v61  ;;  %22033 = vmatprep.subr.mxu0 %v30850_v11 }
 0x987   :  { %22034 = vmatpush3.msra.mxu0 %v21829_v45  ;;  %22037 = vmatprep.mubr.msk.f32.mxu0 %vm22535_vm1, %v30850_v11 }
 0x988   :  { %v13989_v18 = vpop.f32.mrf.mxu1  ;;  %22035 = vmatprep.subr.mxu0 %v30850_v11 }
 0x989   :  { %22036 = vmatpush3.msra.mxu0 %v13989_v18 }
 0x98a   :  { %22038 = vmatmul.mubr.msk.f32.vlgmr.msra.gmra.mxu0 %vm13452_vm11, %v29711_v61 }
 0x9aa   :  { %v14067_v41 = vpop.f32.mrf.mxu0 }
 0x9ab   :  { %v29890_v3 = vmul.f32 %v14067_v41, %v14067_v41 }
 0x9ac   :  { %v21836_v14 = vpop.f32.mrf.mxu0 }
 0x9b2   :  { %v14137_v48 = vpop.f32.mrf.mxu0 }
 0x9b3   :  { %v29898_v23 = vmul.f32 %v14137_v48, %v14137_v48 }
 0x9b4   :  { %v21843_v43 = vpop.f32.mrf.mxu0 }
 0x9ba   :  { %v14207_v28 = vpop.f32.mrf.mxu0 }
 0x9bb   :  { %v29907_v29 = vmul.f32 %v14207_v28, %v14207_v28 }
 0x9bc   :  { %v21850_v2 = vpop.f32.mrf.mxu0 }
 0x9c2   :  { %v14277_v57 = vpop.f32.mrf.mxu0 }
 0x9c3   :  { %v29918_v0 = vmul.f32 %v14277_v57, %v14277_v57 }
 0x9c4   :  { %v21857_v8 = vpop.f32.mrf.mxu0 }
 0x9ca   :  { %v14347_v39 = vpop.f32.mrf.mxu0 }
 0x9cb   :  { %v29929_v13 = vmul.f32 %v14347_v39, %v14347_v39 }
 0x9cc   :  { %v21864_v17 = vpop.f32.mrf.mxu0 }
 0x9d2   :  { %v14417_v54 = vpop.f32.mrf.mxu0 }
 0x9d3   :  { %v29940_v18 = vmul.f32 %v14417_v54, %v14417_v54 }
 0x9d4   :  { %v21871_v4 = vpop.f32.mrf.mxu0 }
 0x9da   :  { %v14487_v22 = vpop.f32.mrf.mxu0 }
 0x9db   :  { %v29892_v11 = vmul.f32 %v14487_v22, %v14487_v22  ;;  %v29894_v58 = vmul.f32 %v14487_v22, %v14067_v41 }
 0x9dc   :  { %v21878_v61 = vpop.f32.mrf.mxu0 }
 0x9dd   :  { %v16185_v44 = vadd.f32 %v29892_v11, %v29890_v3  ;;  %v16173_v19 = vmul.f32 2.0, %v29894_v58 }
 0x9df   :  { %v16191_v47 = vadd.f32 0.0001, %v16185_v44  ;;  %v16179_v6 = vadd.f32 0.0001, %v16173_v19 }
 0x9e1   :  { %22282 = vrcp.f32 %v16191_v47 }
 0x9e2   :  { %v14557_v33 = vpop.f32.mrf.mxu0 }
 0x9e3   :  { %v29900_v37 = vmul.f32 %v14557_v33, %v14557_v33  ;;  %v29902_v36 = vmul.f32 %v14557_v33, %v14137_v48 }
 0x9e4   :  { %v21885_v38 = vpop.f32.mrf.mxu0 }
 0x9e5   :  { %v16186_v42 = vadd.f32 %v29900_v37, %v29898_v23  ;;  %v16174_v34 = vmul.f32 2.0, %v29902_v36 }
 0x9e7   :  { %v16192_v26 = vadd.f32 0.0001, %v16186_v42  ;;  %v16180_v1 = vadd.f32 0.0001, %v16174_v34 }
 0x9e9   :  { %22284 = vrcp.f32 %v16192_v26 }
 0x9ea   :  { %v14627_v5 = vpop.f32.mrf.mxu0 }
 0x9eb   :  { %v29909_v9 = vmul.f32 %v14627_v5, %v14627_v5  ;;  %v29911_v59 = vmul.f32 %v14627_v5, %v14207_v28 }
 0x9ec   :  { %v21892_v63 = vpop.f32.mrf.mxu0 }
 0x9ed   :  { %v16187_v55 = vadd.f32 %v29909_v9, %v29907_v29  ;;  %v16175_v53 = vmul.f32 2.0, %v29911_v59 }
 0x9ee   :  { %v22283_v31 = vpop.eup %22282 }
 0x9ef   :  { %v16193_v46 = vadd.f32 0.0001, %v16187_v55  ;;  %v29915_v24 = vmul.f32 %v22283_v31, %v16179_v6  ;;  %v16181_v25 = vadd.f32 0.0001, %v16175_v53 }
 0x9f1   :  { %22286 = vrcp.f32 %v16193_v46 }
 0x9f2   :  { %v14697_v21 = vpop.f32.mrf.mxu0 }
 0x9f3   :  { %v29920_v50 = vmul.f32 %v14697_v21, %v14697_v21  ;;  %v29922_v52 = vmul.f32 %v14697_v21, %v14277_v57 }
 0x9f4   :  { %v21899_v7 = vpop.f32.mrf.mxu0 }
 0x9f5   :  { %v16188_v10 = vadd.f32 %v29920_v50, %v29918_v0  ;;  %v16176_v20 = vmul.f32 2.0, %v29922_v52 }
 0x9f6   :  { %v22285_v51 = vpop.eup %22284 }
 0x9f7   :  { %v16194_v56 = vadd.f32 0.0001, %v16188_v10  ;;  %v29926_v16 = vmul.f32 %v22285_v51, %v16180_v1  ;;  %v16182_v43 = vadd.f32 0.0001, %v16176_v20 }
 0x9f9   :  { %22288 = vrcp.f32 %v16194_v56 }
 0x9fa   :  { %v14767_v40 = vpop.f32.mrf.mxu0 }
 0x9fb   :  { %v29931_v35 = vmul.f32 %v14767_v40, %v14767_v40  ;;  %v29933_v27 = vmul.f32 %v14767_v40, %v14347_v39 }
 0x9fc   :  { %v21906_v49 = vpop.f32.mrf.mxu0 }
 0x9fd   :  { %v16189_v15 = vadd.f32 %v29931_v35, %v29929_v13  ;;  %v16177_v4 = vmul.f32 2.0, %v29933_v27 }
 0x9fe   :  { %v22287_v60 = vpop.eup %22286 }
 0x9ff   :  { %v16195_v12 = vadd.f32 0.0001, %v16189_v15  ;;  %v29937_v62 = vmul.f32 %v22287_v60, %v16181_v25  ;;  %v16183_v44 = vadd.f32 0.0001, %v16177_v4 }
 0xa01   :  { %22290 = vrcp.f32 %v16195_v12 }
 0xa02   :  { %v14837_v45 = vpop.f32.mrf.mxu0 }
 0xa03   :  { %v29942_v41 = vmul.f32 %v14837_v45, %v14837_v45  ;;  %v29944_v14 = vmul.f32 %v14837_v45, %v14417_v54 }
 0xa04   :  { %v21913_v48 = vpop.f32.mrf.mxu0 }
 0xa05   :  { %v16190_v28 = vadd.f32 %v29942_v41, %v29940_v18  ;;  %v16178_v42 = vmul.f32 2.0, %v29944_v14 }
 0xa06   :  { %v22289_v2 = vpop.eup %22288  ;;  %v14907_v57 = vpop.f32.mrf.mxu0 }
 0xa07   :  { %v16196_v8 = vadd.f32 0.0001, %v16190_v28  ;;  %v29948_v39 = vmul.f32 %v22289_v2, %v16182_v43  ;;  %v16184_v5 = vadd.f32 0.0001, %v16178_v42  ;;  %v16119_v7 = vsub.f32 %v14907_v57, %v29890_v3 }
 0xa08   :  { %v21920_v17 = vpop.f32.mrf.mxu0 }
 0xa09   :  { %22292 = vrcp.f32 %v16196_v8 }
 0xa0a   :  { %v14977_v22 = vpop.f32.mrf.mxu0 }
 0xa0b   :  { %v16120_v53 = vsub.f32 %v14977_v22, %v29898_v23 }
 0xa0c   :  { %v21927_v61 = vpop.f32.mrf.mxu0 }
 0xa0e   :  { %v22291_v47 = vpop.eup %22290  ;;  %v15047_v54 = vpop.f32.mrf.mxu0 }
 0xa0f   :  { %v29951_v33 = vmul.f32 %v22291_v47, %v16183_v44  ;;  %v16121_v60 = vsub.f32 %v15047_v54, %v29907_v29 }
 0xa10   :  { %v21934_v38 = vpop.f32.mrf.mxu0 }
 0xa12   :  { %v15117_v26 = vpop.f32.mrf.mxu0 }
 0xa13   :  { %v16122_v3 = vsub.f32 %v15117_v26, %v29918_v0 }
 0xa14   :  { %v21941_v19 = vpop.f32.mrf.mxu0 }
 0xa16   :  { %v22293_v63 = vpop.eup %22292  ;;  %v15187_v6 = vpop.f32.mrf.mxu0 }
 0xa17   :  { %v29954_v55 = vmul.f32 %v22293_v63, %v16184_v5 }
 0xa18   :  { %v21948_v31 = vpop.f32.mrf.mxu0 }
 0xa1a   :  { %v15257_v46 = vpop.f32.mrf.mxu0 }
 0xa1b   :  { %v16124_v47 = vsub.f32 %v15257_v46, %v29940_v18 }
 0xa1c   :  { %v21955_v34 = vpop.f32.mrf.mxu0 }
 0xa1e   :  { %v15327_v21 = vpop.f32.mrf.mxu0 }
 0xa1f   :  { %v16125_v1 = vsub.f32 %v15327_v21, %v29892_v11 }
 0xa20   :  { %v21962_v10 = vpop.f32.mrf.mxu0 }
 0xa21   :  { %v16149_v51 = vadd.f32 %v16125_v1, %v16119_v7 }
 0xa22   :  { %v15397_v56 = vpop.f32.mrf.mxu0 }
 0xa23   :  { %v16126_v40 = vsub.f32 %v15397_v56, %v29900_v37  ;;  %v16155_v11 = vadd.f32 0.0009, %v16149_v51 }
 0xa24   :  { %v21969_v49 = vpop.f32.mrf.mxu0 }
 0xa25   :  { %v16150_v25 = vadd.f32 %v16126_v40, %v16120_v53  ;;  %22294 = vrcp.f32 %v16155_v11 }
 0xa26   :  { %v15467_v15 = vpop.f32.mrf.mxu0 }
 0xa27   :  { %v16127_v12 = vsub.f32 %v15467_v15, %v29909_v9  ;;  %v16156_v37 = vadd.f32 0.0009, %v16150_v25  ;;  %v16123_v9 = vsub.f32 %v15187_v6, %v29929_v13 }
 0xa28   :  { %v21976_v20 = vpop.f32.mrf.mxu0 }
 0xa29   :  { %v16151_v45 = vadd.f32 %v16127_v12, %v16121_v60  ;;  %22296 = vrcp.f32 %v16156_v37 }
 0xa2a   :  { %v15537_v48 = vpop.f32.mrf.mxu0 }
 0xa2b   :  { %v16128_v43 = vsub.f32 %v15537_v48, %v29920_v50  ;;  %v16157_v29 = vadd.f32 0.0009, %v16151_v45 }
 0xa2c   :  { %v21983_v28 = vpop.f32.mrf.mxu0 }
 0xa2d   :  { %v16152_v2 = vadd.f32 %v16128_v43, %v16122_v3  ;;  %22298 = vrcp.f32 %v16157_v29 }
 0xa2e   :  { %v15607_v23 = vpop.f32.mrf.mxu0 }
 0xa2f   :  { %v16129_v8 = vsub.f32 %v15607_v23, %v29931_v35  ;;  %v16158_v50 = vadd.f32 0.0009, %v16152_v2 }
 0xa30   :  { %v21990_v57 = vpop.f32.mrf.mxu0 }
 0xa31   :  { %v16153_v22 = vadd.f32 %v16129_v8, %v16123_v9  ;;  %22300 = vrcp.f32 %v16158_v50 }
 0xa32   :  { %v15677_v17 = vpop.f32.mrf.mxu0  ;;  %v22295_v5 = vpop.eup %22294 }
 0xa33   :  { %v16130_v0 = vsub.f32 %v15677_v17, %v29942_v41  ;;  %v16159_v42 = vadd.f32 0.0009, %v16153_v22 }
 0xa34   :  { %v21997_v4 = vpop.f32.mrf.mxu0 }
 0xa35   :  { %v16154_v35 = vadd.f32 %v16130_v0, %v16124_v47  ;;  %22302 = vrcp.f32 %v16159_v42 }
 0xa36   :  { %v15747_v61 = vpop.f32.mrf.mxu0  ;;  %v22297_v7 = vpop.eup %22296 }
 0xa37   :  { %v16131_v44 = vsub.f32 %v15747_v61, %v29894_v58  ;;  %v16160_v31 = vadd.f32 0.0009, %v16154_v35 }
 0xa38   :  { %v22004_v54 = vpop.f32.mrf.mxu0 }
 0xa39   :  { %v16137_v38 = vmul.f32 2.0, %v16131_v44  ;;  %22304 = vrcp.f32 %v16160_v31 }
 0xa3a   :  { %v15817_v26 = vpop.f32.mrf.mxu0  ;;  %v22299_v25 = vpop.eup %22298 }
 0xa3b   :  { %v16143_v19 = vadd.f32 0.0009, %v16137_v38  ;;  %v16132_v13 = vsub.f32 %v15817_v26, %v29902_v36  ;;  %v12096_v38 = vpop.xlane.xlu1 %12095 }
 0xa3c   :  { %v22011_v63 = vpop.f32.mrf.mxu0 }
 0xa3d   :  { %v16162_v41 = vmul.f32 %v22295_v5, %v16143_v19  ;;  %v16138_v6 = vmul.f32 2.0, %v16132_v13 }
 0xa3e   :  { %v15887_v34 = vpop.f32.mrf.mxu0  ;;  %v22301_v11 = vpop.eup %22300 }
 0xa3f   :  { %v16144_v58 = vadd.f32 0.0009, %v16138_v6  ;;  %v16133_v18 = vsub.f32 %v15887_v34, %v29911_v59  ;;  %v16282_v46 = vsel %vm16215_vm12, %v16162_v41, 0.0  ;;  %v16209_v21 = vmul.f32 %v29915_v24, %v16162_v41  ;;  %v11982_v42 = vpop.xlane.xlu1 %11981 }
 0xa40   :  { %16283 = vadd.xlane.f32.xlu0 %v16282_v46  ;;  %v22018_v1 = vpop.f32.mrf.mxu0 }
 0xa41   :  { %v16164_v10 = vmul.f32 %v22297_v7, %v16144_v58  ;;  %v16139_v36 = vmul.f32 2.0, %v16133_v18  ;;  %v16216_v56 = vsel %vm16215_vm12, %v16209_v21, 0.0 }
 0xa42   :  { %v15957_v51 = vpop.f32.mrf.mxu0  ;;  %v22303_v37 = vpop.eup %22302 }
 0xa43   :  { %v16145_v53 = vadd.f32 0.0009, %v16139_v36  ;;  %v16134_v40 = vsub.f32 %v15957_v51, %v29922_v52  ;;  %v16285_v49 = vsel %vm16215_vm12, %v16164_v10, 0.0  ;;  %v16210_v59 = vmul.f32 %v29926_v16, %v16164_v10  ;;  %v12123_v35 = vpop.xlane.xlu1 %12122 }
 0xa44   :  { %16217 = vadd.xlane.f32.xlu0 %v16216_v56  ;;  %16286 = vadd.xlane.f32.xlu1 %v16285_v49  ;;  %v22025_v24 = vpop.f32.mrf.mxu0 }
 0xa45   :  { %v16166_v15 = vmul.f32 %v22299_v25, %v16145_v53  ;;  %v16140_v60 = vmul.f32 2.0, %v16134_v40  ;;  %v16219_v20 = vsel %vm16215_vm12, %v16210_v59, 0.0 }
 0xa46   :  { %v16027_v12 = vpop.f32.mrf.mxu0  ;;  %v22305_v4 = vpop.eup %22304 }
 0xa47   :  { %v16146_v45 = vadd.f32 0.0009, %v16140_v60  ;;  %v16135_v48 = vsub.f32 %v16027_v12, %v29933_v27  ;;  %v16288_v3 = vsel %vm16215_vm12, %v16166_v15, 0.0  ;;  %v16211_v52 = vmul.f32 %v29937_v62, %v16166_v15  ;;  %v12099_v26 = vpop.xlane.xlu1 %12098 }
 0xa48   :  { %16220 = vadd.xlane.f32.xlu1 %v16219_v20  ;;  %16289 = vadd.xlane.f32.xlu0 %v16288_v3  ;;  %v22032_v16 = vpop.f32.mrf.mxu0  ;;  %v12146_v10 = vsel %vm6231_vm4, %v12099_v26, 0.0 }
 0xa49   :  { %v16168_v43 = vmul.f32 %v22301_v11, %v16146_v45  ;;  %v16141_v28 = vmul.f32 2.0, %v16135_v48  ;;  %v16222_v23 = vsel %vm16215_vm12, %v16211_v52, 0.0 }
 0xa4a   :  { %v16097_v2 = vpop.f32.mrf.mxu0 }
 0xa4b   :  { %v16147_v57 = vadd.f32 0.0009, %v16141_v28  ;;  %v16136_v8 = vsub.f32 %v16097_v2, %v29944_v14  ;;  %v16291_v17 = vsel %vm16215_vm12, %v16168_v43, 0.0  ;;  %v16212_v27 = vmul.f32 %v29948_v39, %v16168_v43  ;;  %v12009_v13 = vpop.xlane.xlu1 %12008 }
 0xa4c   :  { %16223 = vadd.xlane.f32.xlu0 %v16222_v23  ;;  %16292 = vadd.xlane.f32.xlu1 %v16291_v17  ;;  %v22039_v62 = vpop.f32.mrf.mxu0 }
 0xa4d   :  { %v16170_v29 = vmul.f32 %v22303_v37, %v16147_v57  ;;  %v16142_v9 = vmul.f32 2.0, %v16136_v8  ;;  %v16225_v0 = vsel %vm16215_vm12, %v16212_v27, 0.0 }
 0xa4f   :  { %v16148_v22 = vadd.f32 0.0009, %v16142_v9  ;;  %v16213_v61 = vmul.f32 %v29951_v33, %v16170_v29  ;;  %v16294_v39 = vsel %vm16215_vm12, %v16170_v29, 0.0  ;;  %v12093_v33 = vpop.xlane.xlu0 %12092  ;;  %v11985_v63 = vpop.xlane.xlu1 %11984 }
 0xa50   :  { %16226 = vadd.xlane.f32.xlu1 %v16225_v0  ;;  %v12032_v18 = vsel %vm6231_vm4, %v11985_v63, 0.0  ;;  %v12145_v51 = vadd.f32 %v12096_v38, %v12093_v33 }
 0xa51   :  { %v16172_v50 = vmul.f32 %v22305_v4, %v16148_v22  ;;  %v16228_v44 = vsel %vm16215_vm12, %v16213_v61, 0.0 }
 0xa52   :  { %16229 = vadd.xlane.f32.xlu0 %v16228_v44  ;;  %v12147_v59 = vadd.f32 %v12146_v10, %v12145_v51 }
 0xa53   :  { %v16214_v14 = vmul.f32 %v29954_v55, %v16172_v50  ;;  %v16297_v54 = vsel %vm16215_vm12, %v16172_v50, 0.0  ;;  %v11979_v19 = vpop.xlane.xlu0 %11978  ;;  %v12114_v55 = vpop.xlane.xlu1 %12113 }
 0xa54   :  { %v12031_v21 = vadd.f32 %v11982_v42, %v11979_v19  ;;  %v12148_v52 = vrot.slane %v12147_v59, 4 }
 0xa55   :  { %v16231_v47 = vsel %vm16215_vm12, %v16214_v14, 0.0 }
 0xa56   :  { %16295 = vadd.xlane.f32.xlu0 %v16294_v39  ;;  %16232 = vadd.xlane.f32.xlu1 %v16231_v47  ;;  %v12033_v1 = vadd.f32 %v12032_v18, %v12031_v21  ;;  %v12149_v37 = vadd.f32 %v12148_v52, %v12147_v59 }
 0xa57   :  { %v12120_v5 = vpop.xlane.xlu0 %12119  ;;  %v12000_v31 = vpop.xlane.xlu1 %11999 }
 0xa58   :  { %v12034_v56 = vrot.slane %v12033_v1, 4  ;;  %v12172_v12 = vadd.f32 %v12123_v35, %v12120_v5  ;;  %v12150_v9 = vrot.slane %v12149_v37, 2 }
 0xa5a   :  { %16298 = vadd.xlane.f32.xlu1 %v16297_v54  ;;  %v12035_v20 = vadd.f32 %v12034_v56, %v12033_v1  ;;  %v12151_v47 = vadd.f32 %v12150_v9, %v12149_v37 }
 0xa5b   :  { %v12006_v41 = vpop.xlane.xlu0 %12005  ;;  %v12117_v58 = vpop.xlane.xlu1 %12116 }
 0xa5c   :  { %v12058_v24 = vadd.f32 %v12009_v13, %v12006_v41  ;;  %v12164_v45 = vsel %vm6231_vm4, %v12117_v58, 0.0  ;;  %v12036_v2 = vrot.slane %v12035_v20, 2  ;;  %v12152_v5 = vrot.slane %v12151_v47, 1 }
 0xa5e   :  { %v12037_v27 = vadd.f32 %v12036_v2, %v12035_v20  ;;  %v12153_v1 = vadd.f32 %v12152_v5, %v12151_v47 }
 0xa5f   :  { %v12111_v6 = vpop.xlane.xlu0 %12110  ;;  %v12003_v7 = vpop.xlane.xlu1 %12002 }
 0xa60   :  { %v12050_v53 = vsel %vm6231_vm4, %v12003_v7, 0.0  ;;  %v12163_v48 = vadd.f32 %v12114_v55, %v12111_v6  ;;  %v12038_v50 = vrot.slane %v12037_v27, 1 }
 0xa62   :  { %v12165_v16 = vadd.f32 %v12164_v45, %v12163_v48  ;;  %v12039_v26 = vadd.f32 %v12038_v50, %v12037_v27  ;;  %v12191_v45 = vmul.f32 0.0020661156, %v12153_v1 }
 0xa63   :  { %v12126_v34 = vpop.xlane.xlu0 %12125  ;;  %v12132_v49 = vpop.xlane.xlu1 %12131 }
 0xa64   :  { %v12173_v15 = vsel %vm6231_vm4, %v12126_v34, 0.0  ;;  %v12166_v8 = vrot.slane %v12165_v16, 4  ;;  %v12077_v58 = vmul.f32 0.0020661156, %v12039_v26 }
 0xa65   :  { %v12174_v11 = vadd.f32 %v12173_v15, %v12172_v12 }
 0xa66   :  { %v12167_v0 = vadd.f32 %v12166_v8, %v12165_v16 }
 0xa67   :  { %v11997_v46 = vpop.xlane.xlu0 %11996  ;;  %v12018_v28 = vpop.xlane.xlu1 %12017  ;;  %v12175_v57 = vrot.slane %v12174_v11, 4 }
 0xa68   :  { %v12049_v40 = vadd.f32 %v12000_v31, %v11997_v46  ;;  %v12168_v38 = vrot.slane %v12167_v0, 2 }
 0xa69   :  { %v12176_v4 = vadd.f32 %v12175_v57, %v12174_v11 }
 0xa6a   :  { %v12051_v60 = vadd.f32 %v12050_v53, %v12049_v40  ;;  %v12169_v55 = vadd.f32 %v12168_v38, %v12167_v0  ;;  %v30865_v40 = vld [vmem:[#allocation95_spill] sm:$0xff] }
 0xa6b   :  { %v12012_v36 = vpop.xlane.xlu0 %12011  ;;  %v12135_v29 = vpop.xlane.xlu1 %12134  ;;  %v12177_v54 = vrot.slane %v12176_v4, 2 }
 0xa6c   :  { %v12059_v25 = vsel %vm6231_vm4, %v12012_v36, 0.0  ;;  %v12052_v43 = vrot.slane %v12051_v60, 4  ;;  %v12182_v44 = vsel %vm6231_vm4, %v12135_v29, 0.0  ;;  %v12170_v51 = vrot.slane %v12169_v55, 1 }
 0xa6d   :  { %v12060_v3 = vadd.f32 %v12059_v25, %v12058_v24  ;;  %v12178_v63 = vadd.f32 %v12177_v54, %v12176_v4 }
 0xa6e   :  { %v12053_v17 = vadd.f32 %v12052_v43, %v12051_v60  ;;  %v12171_v16 = vadd.f32 %v12170_v51, %v12169_v55 }
 0xa6f   :  { %v12061_v23 = vrot.slane %v12060_v3, 4  ;;  %v12129_v22 = vpop.xlane.xlu0 %12128  ;;  %v12021_v33 = vpop.xlane.xlu1 %12020  ;;  %v12179_v36 = vrot.slane %v12178_v63, 1 }
 0xa70   :  { %v12054_v61 = vrot.slane %v12053_v17, 2  ;;  %v12181_v39 = vadd.f32 %v12132_v49, %v12129_v22  ;;  %v12068_v41 = vsel %vm6231_vm4, %v12021_v33, 0.0  ;;  %v16357_v49 = vsel %vm16355_vm9, %v30865_v40, %v12077_v58 }
 0xa71   :  { %v12062_v62 = vadd.f32 %v12061_v23, %v12060_v3  ;;  %v30005_v11 = vadd.f32 %v12179_v36, %v12178_v63  ;;  %v30008_v57 = vsel %vm16362_vm10, %v16357_v49, %v12191_v45  ;;  %v30014_v50 = vmul.f32 0.0020661156, %v12171_v16 }
 0xa72   :  { %v12055_v42 = vadd.f32 %v12054_v61, %v12053_v17  ;;  %v12183_v35 = vadd.f32 %v12182_v44, %v12181_v39  ;;  %v30866_v44 = vld [vmem:[#allocation109_spill] sm:$0xff] }
 0xa73   :  { %v12063_v14 = vrot.slane %v12062_v62, 2  ;;  %v12015_v19 = vpop.xlane.xlu0 %12014 }
 0xa74   :  { %v12056_v6 = vrot.slane %v12055_v42, 1  ;;  %v12184_v31 = vrot.slane %v12183_v35, 4  ;;  %v12067_v34 = vadd.f32 %v12018_v28, %v12015_v19 }
 0xa75   :  { %v12064_v13 = vadd.f32 %v12063_v14, %v12062_v62 }
 0xa76   :  { %v12069_v21 = vadd.f32 %v12068_v41, %v12067_v34  ;;  %v12057_v56 = vadd.f32 %v12056_v6, %v12055_v42  ;;  %v12185_v53 = vadd.f32 %v12184_v31, %v12183_v35 }
 0xa77   :  { %v12065_v46 = vrot.slane %v12064_v13, 1 }
 0xa78   :  { %v12070_v60 = vrot.slane %v12069_v21, 4  ;;  %v12079_v43 = vmul.f32 0.0020661156, %v12057_v56  ;;  %v12186_v28 = vrot.slane %v12185_v53, 2 }
 0xa79   :  { %v12066_v15 = vadd.f32 %v12065_v46, %v12064_v13 }
 0xa7a   :  { %v12071_v62 = vadd.f32 %v12070_v60, %v12069_v21  ;;  %v30018_v14 = vsel %vm16355_vm9, %v30866_v44, %v12079_v43  ;;  %v30020_v39 = vadd.f32 %v12186_v28, %v12185_v53 }
 0xa7b   :  { %v30010_v27 = vmul.f32 0.0020661156, %v12066_v15 }
 0xa7c   :  { %v12072_v19 = vrot.slane %v12071_v62, 2 }
 0xac9   :  { %v16284_v18 = vpop.xlane.xlu0 %16283 }
 0xaca   :  { %v16300_v7 = vsel %vm6231_vm4, %v16284_v18, 0.0 }
 0xacb   :  { %v16301_v10 = vrot.slane %v16300_v7, 4 }
 0xacd   :  { %v16302_v59 = vadd.f32 %v16301_v10, %v16300_v7  ;;  %v16218_v25 = vpop.xlane.xlu0 %16217  ;;  %v16287_v24 = vpop.xlane.xlu1 %16286 }
 0xace   :  { %v16234_v12 = vsel %vm6231_vm4, %v16218_v25, 0.0  ;;  %v16307_v20 = vsel %vm6231_vm4, %v16287_v24, 0.0 }
 0xacf   :  { %v16303_v48 = vrot.slane %v16302_v59, 2  ;;  %v16235_v3 = vrot.slane %v16234_v12, 4  ;;  %v16308_v52 = vrot.slane %v16307_v20, 4 }
 0xad1   :  { %v16304_v2 = vadd.f32 %v16303_v48, %v16302_v59  ;;  %v16236_v23 = vadd.f32 %v16235_v3, %v16234_v12  ;;  %v16309_v37 = vadd.f32 %v16308_v52, %v16307_v20  ;;  %v16221_v8 = vpop.xlane.xlu1 %16220  ;;  %v16290_v17 = vpop.xlane.xlu0 %16289  ;;  %v12073_v3 = vadd.f32 %v12072_v19, %v12071_v62 }
 0xad2   :  { %v16241_v29 = vsel %vm6231_vm4, %v16221_v8, 0.0  ;;  %v16314_v9 = vsel %vm6231_vm4, %v16290_v17, 0.0 }
 0xad3   :  { %v16305_v4 = vrot.slane %v16304_v2, 1  ;;  %v16237_v22 = vrot.slane %v16236_v23, 2  ;;  %v16310_v0 = vrot.slane %v16309_v37, 2  ;;  %v16242_v61 = vrot.slane %v16241_v29, 4 }
 0xad4   :  { %v16315_v47 = vrot.slane %v16314_v9, 4  ;;  %v12074_v44 = vrot.slane %v12073_v3, 1 }
 0xad5   :  { %v16306_v54 = vadd.f32 %v16305_v4, %v16304_v2  ;;  %v16238_v38 = vadd.f32 %v16237_v22, %v16236_v23  ;;  %v16311_v42 = vadd.f32 %v16310_v0, %v16309_v37  ;;  %v16243_v35 = vadd.f32 %v16242_v61, %v16241_v29  ;;  %v16224_v33 = vpop.xlane.xlu0 %16223  ;;  %v16293_v26 = vpop.xlane.xlu1 %16292 }
 0xad6   :  { %v16316_v13 = vadd.f32 %v16315_v47, %v16314_v9  ;;  %v16248_v5 = vsel %vm6231_vm4, %v16224_v33, 0.0  ;;  %v16321_v63 = vsel %vm6231_vm4, %v16293_v26, 0.0 }
 0xad7   :  { %v16239_v41 = vrot.slane %v16238_v38, 1  ;;  %v16312_v55 = vrot.slane %v16311_v42, 1  ;;  %v16244_v6 = vrot.slane %v16243_v35, 2  ;;  %v16249_v34 = vrot.slane %v16248_v5, 4 }
 0xad8   :  { %v16317_v31 = vrot.slane %v16316_v13, 2  ;;  %v16322_v58 = vrot.slane %v16321_v63, 4  ;;  %v16342_v18 = vmul.f32 0.027777778, %v16306_v54 }
 0xad9   :  { %v16240_v46 = vadd.f32 %v16239_v41, %v16238_v38  ;;  %v16245_v21 = vadd.f32 %v16244_v6, %v16243_v35  ;;  %v16227_v7 = vpop.xlane.xlu1 %16226  ;;  %v16250_v10 = vadd.f32 %v16249_v34, %v16248_v5  ;;  %v16313_v53 = vadd.f32 %v16312_v55, %v16311_v42 }
 0xada   :  { %v16318_v1 = vadd.f32 %v16317_v31, %v16316_v13  ;;  %v16323_v36 = vadd.f32 %v16322_v58, %v16321_v63  ;;  %v16255_v51 = vsel %vm6231_vm4, %v16227_v7, 0.0  ;;  %v12075_v34 = vadd.f32 %v12074_v44, %v12073_v3 }
 0xadb   :  { %v16276_v56 = vmul.f32 0.027777778, %v16240_v46  ;;  %v16246_v40 = vrot.slane %v16245_v21, 1  ;;  %v16256_v49 = vrot.slane %v16255_v51, 4  ;;  %v16230_v59 = vpop.xlane.xlu0 %16229  ;;  %v16251_v24 = vrot.slane %v16250_v10, 2 }
 0xadc   :  { %v16319_v25 = vrot.slane %v16318_v1, 1  ;;  %v16324_v15 = vrot.slane %v16323_v36, 2  ;;  %v16262_v60 = vsel %vm6231_vm4, %v16230_v59, 0.0  ;;  %v16343_v28 = vmul.f32 0.027777778, %v16313_v53  ;;  %v30867_v53 = vld [vmem:[#allocation8_spill] sm:$0xff] }
 0xadd   :  { %v16370_v12 = vsel %vm16369_vm13, %v29602_v32, %v16276_v56  ;;  %v16247_v20 = vadd.f32 %v16246_v40, %v16245_v21  ;;  %v16257_v45 = vadd.f32 %v16256_v49, %v16255_v51  ;;  %v16263_v48 = vrot.slane %v16262_v60, 4 }
 0xade   :  { %v16377_v52 = vsel %vm16376_vm14, %v16370_v12, %v16342_v18  ;;  %v16252_v16 = vadd.f32 %v16251_v24, %v16250_v10  ;;  %v16325_v43 = vadd.f32 %v16324_v15, %v16323_v36  ;;  %v16320_v32 = vadd.f32 %v16319_v25, %v16318_v1 }
 0xadf   :  { %16384 = vst.msk [vmem:[%s30092_s11] sm:$0x1] %vm16383_vm15, %v16377_v52  ;;  %v16277_v2 = vmul.f32 0.027777778, %v16247_v20  ;;  %v16258_v23 = vrot.slane %v16257_v45, 2  ;;  %v16264_v37 = vadd.f32 %v16263_v48, %v16262_v60  ;;  %v16296_v8 = vpop.xlane.xlu0 %16295  ;;  %v16233_v17 = vpop.xlane.xlu1 %16232  ;;  %v16366_v18 = vsel %vm16362_vm10, %v30018_v14, %v30014_v50 }
 0xae0   :  { %v16253_v29 = vrot.slane %v16252_v16, 1  ;;  %v16326_v9 = vrot.slane %v16325_v43, 1  ;;  %v16328_v62 = vsel %vm6231_vm4, %v16296_v8, 0.0  ;;  %v16269_v38 = vsel %vm6231_vm4, %v16233_v17, 0.0 }
 0xae1   :  { %v16371_v4 = vsel %vm16369_vm13, %v30008_v57, %v16277_v2  ;;  %v16259_v22 = vadd.f32 %v16258_v23, %v16257_v45  ;;  %v16265_v0 = vrot.slane %v16264_v37, 2  ;;  %v16329_v61 = vrot.slane %v16328_v62, 4 }
 0xae2   :  { %v16378_v47 = vsel %vm16376_vm14, %v16371_v4, %v16343_v28  ;;  %v16254_v54 = vadd.f32 %v16253_v29, %v16252_v16  ;;  %v16270_v26 = vrot.slane %v16269_v38, 4  ;;  %v16344_v57 = vmul.f32 0.027777778, %v16320_v32  ;;  %v30868_v28 = vld [vmem:[#allocation110_spill] sm:$0xff] }
 0xae3   :  { %16385 = vst.msk [vmem:[%s30092_s11 + $0x1] sm:$0x1] %vm16383_vm15, %v16378_v47  ;;  %v16260_v42 = vrot.slane %v16259_v22, 1  ;;  %v16266_v35 = vadd.f32 %v16265_v0, %v16264_v37  ;;  %v16330_v33 = vadd.f32 %v16329_v61, %v16328_v62  ;;  %v16299_v19 = vpop.xlane.xlu1 %16298  ;;  %v16327_v5 = vadd.f32 %v16326_v9, %v16325_v43 }
 0xae4   :  { %v16278_v13 = vmul.f32 0.027777778, %v16254_v54  ;;  %v16335_v63 = vsel %vm6231_vm4, %v16299_v19, 0.0  ;;  %v16271_v31 = vadd.f32 %v16270_v26, %v16269_v38  ;;  %v12188_v36 = vrot.slane %v30020_v39, 1 }
 0xae5   :  { %v16261_v41 = vadd.f32 %v16260_v42, %v16259_v22  ;;  %v16267_v55 = vrot.slane %v16266_v35, 1  ;;  %v16331_v6 = vrot.slane %v16330_v33, 2  ;;  %v16336_v46 = vrot.slane %v16335_v63, 4 }
 0xae6   :  { %v16372_v58 = vsel %vm16369_vm13, %v29607_v30, %v16278_v13  ;;  %v16345_v51 = vmul.f32 0.027777778, %v16327_v5  ;;  %v16272_v56 = vrot.slane %v16271_v31, 2  ;;  %v16360_v50 = vsel %vm16355_vm9, %v30867_v53, %v30010_v27 }
 0xae7   :  { %v16379_v21 = vsel %vm16376_vm14, %v16372_v58, %v16344_v57  ;;  %v16279_v7 = vmul.f32 0.027777778, %v16261_v41  ;;  %v16268_v1 = vadd.f32 %v16267_v55, %v16266_v35  ;;  %v16332_v10 = vadd.f32 %v16331_v6, %v16330_v33 }
 0xae8   :  { %16386 = vst.msk [vmem:[%s30092_s11 + $0x2] sm:$0x1] %vm16383_vm15, %v16379_v21  ;;  %v16337_v30 = vadd.f32 %v16336_v46, %v16335_v63  ;;  %v16273_v25 = vadd.f32 %v16272_v56, %v16271_v31  ;;  %v12194_v15 = vmul.f32 0.0020661156, %v30005_v11  ;;  %v12081_v60 = vmul.f32 0.0020661156, %v12075_v34 }
 0xae9   :  { %v16373_v14 = vsel %vm16369_vm13, %v16366_v18, %v16279_v7  ;;  %v16333_v40 = vrot.slane %v16332_v10, 1  ;;  %v16280_v59 = vmul.f32 0.027777778, %v16268_v1  ;;  %v12189_v20 = vadd.f32 %v12188_v36, %v30020_v39 }
 0xaea   :  { %v16380_v49 = vsel %vm16376_vm14, %v16373_v14, %v16345_v51  ;;  %v16338_v24 = vrot.slane %v16337_v30, 2  ;;  %v16274_v27 = vrot.slane %v16273_v25, 1  ;;  %v16367_v48 = vsel %vm16362_vm10, %v16360_v50, %v12194_v15 }
 0xaeb   :  { %16387 = vst.msk [vmem:[%s30092_s11 + $0x3] sm:$0x1] %vm16383_vm15, %v16380_v49  ;;  %v16334_v12 = vadd.f32 %v16333_v40, %v16332_v10  ;;  %v16374_v52 = vsel %vm16369_vm13, %v16367_v48, %v16280_v59  ;;  %v16361_v11 = vsel %vm16355_vm9, %v30868_v28, %v12081_v60  ;;  %v12195_v23 = vmul.f32 0.0020661156, %v12189_v20 }
 0xaec   :  { %v16339_v45 = vadd.f32 %v16338_v24, %v16337_v30  ;;  %v16275_v16 = vadd.f32 %v16274_v27, %v16273_v25 }
 0xaed   :  { %v16346_v3 = vmul.f32 0.027777778, %v16334_v12  ;;  %v16368_v8 = vsel %vm16362_vm10, %v16361_v11, %v12195_v23 }
 0xaee   :  { %v16340_v43 = vrot.slane %v16339_v45, 1  ;;  %v16281_v39 = vmul.f32 0.027777778, %v16275_v16 }
 0xaef   :  { %v16381_v2 = vsel %vm16376_vm14, %v16374_v52, %v16346_v3 }
 0xaf0   :  { %16388 = vst.msk [vmem:[%s30092_s11 + $0x4] sm:$0x1] %vm16383_vm15, %v16381_v2  ;;  %v16341_v37 = vadd.f32 %v16340_v43, %v16339_v45  ;;  %v16375_v32 = vsel %vm16369_vm13, %v16368_v8, %v16281_v39 }
 0xaf2   :  { %v16347_v17 = vmul.f32 0.027777778, %v16341_v37 }
 0xaf4   :  { %v16382_v29 = vsel %vm16376_vm14, %v16375_v32, %v16347_v17 }
 0xaf5   :  { %16389 = vst.msk [vmem:[%s30092_s11 + $0x5] sm:$0x1] %vm16383_vm15, %v16382_v29 }

</bundles_post_ra>
